<compile_context>
chip_gen: v6e
topology: v6e:2x2x1
jax: 0.10.0
libtpu: 0.0.40
codegen_flags: <defaults>
</compile_context>

<pallas_src>
import functools

import jax
import jax.numpy as jnp
import numpy as np
from jax import lax
from jax.experimental import pallas as pl
from jax.experimental.pallas import tpu as pltpu

DIM = 12          # input channels per plane (module default)
WIDTH = 128       # hidden width (module default)
OUT = 1 + 3       # sigma + rgb


def _softplus(x):
    # Matches torch.nn.Softplus(beta=1, threshold=20).
    twenty = jnp.asarray(20.0, dtype=x.dtype)
    return jnp.where(x > twenty, x, jnp.log1p(jnp.exp(jnp.minimum(x, twenty))))


def _decoder_kernel(x_ref,
                    w1_ref, b1_ref, w2_ref, b2_ref, w3_ref, b3_ref,
                    w4_ref, b4_ref, w5_ref, b5_ref,
                    out_ref, *, compute_dtype):
    # x_ref: (P*C, TM) in compute_dtype; weights (out, in); biases (out, 1) f32.
    cdt = compute_dtype

    def layer(h, w_ref, b_ref):
        y = jnp.dot(w_ref[...], h, preferred_element_type=jnp.float32) + b_ref[...]
        return _softplus(y.astype(cdt))

    h = layer(x_ref[...], w1_ref, b1_ref)           # (W, TM)
    h = layer(h, w2_ref, b2_ref)
    h = layer(h, w3_ref, b3_ref)
    h = layer(h, w4_ref, b4_ref)
    o = jnp.dot(w5_ref[...], h, preferred_element_type=jnp.float32) + b5_ref[...]
    # o: (4, TM) f32. Row 0 = sigma (raw), rows 1..3 = rgb (sigmoid-rescaled).
    row = lax.broadcasted_iota(jnp.int32, o.shape, 0)
    act = jax.nn.sigmoid(o) * (1.0 + 2 * 0.001) - 0.001
    out_ref[...] = jnp.where(row == 0, o, act)


def init_params(key, dim=DIM, width=WIDTH):
    """Deterministic synthetic parameters mirroring FullyConnectedLayer init.

    PyTorch: weight ~ randn(out, in), weight_gain = 1/sqrt(in), bias = 0.
    Stored here in torch (out, in) layout with the gain pre-applied; bias (out,).
    """
    layer_dims = [(dim, width), (width, width), (width, width),
                  (width, width), (width, OUT)]
    keys = jax.random.split(key, len(layer_dims))
    params = []
    for k, (fin, fout) in zip(keys, layer_dims):
        w = jax.random.normal(k, (fout, fin), dtype=jnp.float32) / np.sqrt(np.float32(fin))
        b = jnp.zeros((fout,), dtype=jnp.float32)
        params.extend([w, b])
    return tuple(params)


@functools.partial(jax.jit, static_argnames=("tile_m", "compute_dtype"))
def triplane_decoder_forward(sampled_features, viewdir, params, *,
                             tile_m=1024, compute_dtype=jnp.bfloat16):
    del viewdir  # unused by the PyTorch module's forward as well
    N, P, M, C = sampled_features.shape
    cdt = jnp.dtype(compute_dtype)

    w1, b1, w2, b2, w3, b3, w4, b4, w5, b5 = params
    width = w1.shape[0]

    # Lane-dense layout: (N, P, M, C) -> (N, P*C, M); fold plane-mean into W1.
    feat = jnp.transpose(sampled_features, (0, 1, 3, 2)).reshape(N, P * C, M)
    w1_fold = jnp.tile(w1, (1, P)) / P            # (width, P*C)

    # Lane-aligned tiling over M; pad M with zeros (padded outputs sliced off).
    tm = min(int(tile_m), pl.cdiv(M, 128) * 128)
    m_pad = pl.cdiv(M, tm) * tm
    if m_pad != M:
        feat = jnp.pad(feat, ((0, 0), (0, 0), (0, m_pad - M)))

    feat = feat.astype(cdt)
    ws = [w1_fold.astype(cdt), w2.astype(cdt), w3.astype(cdt),
          w4.astype(cdt), w5.astype(cdt)]
    bs = [b.reshape(-1, 1).astype(jnp.float32) for b in (b1, b2, b3, b4, b5)]
    flat_params = []
    for w, b in zip(ws, bs):
        flat_params += [w, b]

    grid = (N, m_pad // tm)

    feat_spec = pl.BlockSpec((None, P * C, tm), lambda n, m: (n, 0, m))

    def _full(arr):
        nd = arr.ndim
        return pl.BlockSpec(arr.shape, lambda n, m, _nd=nd: (0,) * _nd)

    in_specs = [feat_spec] + [_full(p) for p in flat_params]
    out_specs = pl.BlockSpec((None, OUT, tm), lambda n, m: (n, 0, m))
    out_shape = jax.ShapeDtypeStruct((N, OUT, m_pad), jnp.float32)

    flops = 2 * N * m_pad * (P * C * width + 3 * width * width + width * OUT)
    transcendentals = N * m_pad * width * 8           # exp + log1p, 4 softplus layers
    bytes_accessed = (N * m_pad * (P * C * feat.dtype.itemsize + OUT * 4)
                      + sum(int(np.prod(p.shape)) * p.dtype.itemsize
                            for p in flat_params))

    out = pl.pallas_call(
        functools.partial(_decoder_kernel, compute_dtype=cdt),
        grid=grid,
        in_specs=in_specs,
        out_specs=out_specs,
        out_shape=out_shape,
        compiler_params=pltpu.CompilerParams(
            dimension_semantics=("parallel", "parallel")),
        cost_estimate=pl.CostEstimate(flops=flops,
                                      transcendentals=transcendentals,
                                      bytes_accessed=bytes_accessed),
    )(feat, *flat_params)

    sigma = jnp.transpose(out[:, 0:1, :M], (0, 2, 1))   # (N, M, 1)
    rgb = jnp.transpose(out[:, 1:OUT, :M], (0, 2, 1))   # (N, M, 3)
    return {"rgb": rgb, "sigma": sigma}


def _reference_forward(sampled_features, params):
    """Pure-JAX reference of the PyTorch module (mean over planes, then MLP)."""
    x = jnp.mean(sampled_features, axis=1)               # (N, M, C)
    N, M, C = x.shape
    h = x.reshape(N * M, C)
    w1, b1, w2, b2, w3, b3, w4, b4, w5, b5 = params
    h = _softplus(h @ w1.T + b1)
    h = _softplus(h @ w2.T + b2)
    h = _softplus(h @ w3.T + b3)
    h = _softplus(h @ w4.T + b4)
    out = (h @ w5.T + b5).reshape(N, M, OUT)
    rgb = jax.nn.sigmoid(out[..., 1:]) * (1.0 + 2 * 0.001) - 0.001
    sigma = out[..., 0:1]
    return {"rgb": rgb, "sigma": sigma}


if __name__ == "__main__":
    key = jax.random.PRNGKey(0)
    k_feat, k_view, k_par = jax.random.split(key, 3)

    # Small shapes consistent with the module: batch=2, 3 triplanes,
    # M=512 sample points, C=12 feature channels per plane.
    N, P, M, C = 2, 3, 512, DIM
    sampled_features = jax.random.normal(k_feat, (N, P, M, C), dtype=jnp.float32)
    viewdir = jax.random.normal(k_view, (N, M, 3), dtype=jnp.float32)  # unused
    params = init_params(k_par)

    ref = _reference_forward(sampled_features, params)

    # f32 path: tight correctness check against the PyTorch-equivalent reference.
    out_f32 = triplane_decoder_forward(sampled_features, viewdir, params,
                                       tile_m=512, compute_dtype=jnp.float32)
    jax.block_until_ready(out_f32)
    np.testing.assert_allclose(np.asarray(out_f32["rgb"]), np.asarray(ref["rgb"]),
                               rtol=1e-4, atol=1e-4)
    np.testing.assert_allclose(np.asarray(out_f32["sigma"]), np.asarray(ref["sigma"]),
                               rtol=1e-4, atol=1e-4)

    # bf16 path (default; bf16 MXU/EUP on v6e/v7x with f32 accumulation):
    # loose tolerance as bf16 quantizes weights/activations.
    out_bf16 = triplane_decoder_forward(sampled_features, viewdir, params,
                                        tile_m=1024, compute_dtype=jnp.bfloat16)
    jax.block_until_ready(out_bf16)
    np.testing.assert_allclose(np.asarray(out_bf16["rgb"]), np.asarray(ref["rgb"]),
                               rtol=5e-2, atol=5e-2)
    np.testing.assert_allclose(np.asarray(out_bf16["sigma"]), np.asarray(ref["sigma"]),
                               rtol=5e-2, atol=1e-1)

    print("KERNEL_OK")
</pallas_src>

<mosaic_0001>
module attributes {stable_mosaic.version = 11 : i64} {
  func.func @_decoder_kernel(%arg0: i32, %arg1: i32, %arg2: memref<1x36x512xf32, #tpu.memory_space<vmem>>, %arg3: memref<128x36xf32, #tpu.memory_space<vmem>>, %arg4: memref<128x1xf32, #tpu.memory_space<vmem>>, %arg5: memref<128x128xf32, #tpu.memory_space<vmem>>, %arg6: memref<128x1xf32, #tpu.memory_space<vmem>>, %arg7: memref<128x128xf32, #tpu.memory_space<vmem>>, %arg8: memref<128x1xf32, #tpu.memory_space<vmem>>, %arg9: memref<128x128xf32, #tpu.memory_space<vmem>>, %arg10: memref<128x1xf32, #tpu.memory_space<vmem>>, %arg11: memref<4x128xf32, #tpu.memory_space<vmem>>, %arg12: memref<4x1xf32, #tpu.memory_space<vmem>>, %arg13: memref<1x4x512xf32, #tpu.memory_space<vmem>>) attributes {dimension_semantics = [#tpu.dimension_semantics<parallel>, #tpu.dimension_semantics<parallel>], iteration_bounds = array<i64: 2, 1>, scalar_prefetch = 0 : i64, scratch_operands = 0 : i64, tpu.core_type = #tpu.core_type<tc>, window_params = [{transform_indices = @transform_0, window_bounds = array<i64: 1, 36, 512>}, {pipeline_mode = #tpu.pipeline_mode<synchronous>, transform_indices = @transform_1, window_bounds = array<i64: 128, 36>}, {pipeline_mode = #tpu.pipeline_mode<synchronous>, transform_indices = @transform_2, window_bounds = array<i64: 128, 1>}, {pipeline_mode = #tpu.pipeline_mode<synchronous>, transform_indices = @transform_3, window_bounds = array<i64: 128, 128>}, {pipeline_mode = #tpu.pipeline_mode<synchronous>, transform_indices = @transform_4, window_bounds = array<i64: 128, 1>}, {pipeline_mode = #tpu.pipeline_mode<synchronous>, transform_indices = @transform_5, window_bounds = array<i64: 128, 128>}, {pipeline_mode = #tpu.pipeline_mode<synchronous>, transform_indices = @transform_6, window_bounds = array<i64: 128, 1>}, {pipeline_mode = #tpu.pipeline_mode<synchronous>, transform_indices = @transform_7, window_bounds = array<i64: 128, 128>}, {pipeline_mode = #tpu.pipeline_mode<synchronous>, transform_indices = @transform_8, window_bounds = array<i64: 128, 1>}, {pipeline_mode = #tpu.pipeline_mode<synchronous>, transform_indices = @transform_9, window_bounds = array<i64: 4, 128>}, {pipeline_mode = #tpu.pipeline_mode<synchronous>, transform_indices = @transform_10, window_bounds = array<i64: 4, 1>}, {transform_indices = @transform_11, window_bounds = array<i64: 1, 4, 512>}]} {
    %c0 = arith.constant 0 : index
    %c0_0 = arith.constant 0 : index
    %c0_1 = arith.constant 0 : index
    %0 = vector.load %arg2[%c0, %c0_0, %c0_1] : memref<1x36x512xf32, #tpu.memory_space<vmem>>, vector<1x36x512xf32>
    %1 = vector.shape_cast %0 : vector<1x36x512xf32> to vector<36x512xf32>
    %c0_2 = arith.constant 0 : index
    %c0_3 = arith.constant 0 : index
    %2 = vector.load %arg3[%c0_2, %c0_3] : memref<128x36xf32, #tpu.memory_space<vmem>>, vector<128x36xf32>
    %cst = arith.constant dense<0.000000e+00> : vector<128x512xf32>
    %3 = tpu.matmul %2, %1, %cst {dimension_numbers = #tpu.dot_dimension_numbers<[1], [0], [0], [1], [0, 0, 1, 1], [], []>} : vector<128x36xf32>, vector<36x512xf32>, vector<128x512xf32> -> vector<128x512xf32>
    %c0_4 = arith.constant 0 : index
    %c0_5 = arith.constant 0 : index
    %4 = vector.load %arg4[%c0_4, %c0_5] : memref<128x1xf32, #tpu.memory_space<vmem>>, vector<128x1xf32>
    %5 = vector.broadcast %4 : vector<128x1xf32> to vector<128x512xf32>
    %6 = arith.addf %3, %5 : vector<128x512xf32>
    %cst_6 = arith.constant 2.000000e+01 : f32
    %7 = vector.broadcast %cst_6 : f32 to vector<128x512xf32>
    %8 = arith.cmpf ogt, %6, %7 : vector<128x512xf32>
    %cst_7 = arith.constant 2.000000e+01 : f32
    %9 = vector.broadcast %cst_7 : f32 to vector<128x512xf32>
    %10 = arith.minimumf %6, %9 : vector<128x512xf32>
    %11 = math.exp %10 : vector<128x512xf32>
    %12 = math.log1p %11 : vector<128x512xf32>
    %13 = arith.select %8, %6, %12 : vector<128x512xi1>, vector<128x512xf32>
    %c0_8 = arith.constant 0 : index
    %c0_9 = arith.constant 0 : index
    %14 = vector.load %arg5[%c0_8, %c0_9] : memref<128x128xf32, #tpu.memory_space<vmem>>, vector<128x128xf32>
    %cst_10 = arith.constant dense<0.000000e+00> : vector<128x512xf32>
    %15 = tpu.matmul %14, %13, %cst_10 {dimension_numbers = #tpu.dot_dimension_numbers<[1], [0], [0], [1], [0, 0, 1, 1], [], []>} : vector<128x128xf32>, vector<128x512xf32>, vector<128x512xf32> -> vector<128x512xf32>
    %c0_11 = arith.constant 0 : index
    %c0_12 = arith.constant 0 : index
    %16 = vector.load %arg6[%c0_11, %c0_12] : memref<128x1xf32, #tpu.memory_space<vmem>>, vector<128x1xf32>
    %17 = vector.broadcast %16 : vector<128x1xf32> to vector<128x512xf32>
    %18 = arith.addf %15, %17 : vector<128x512xf32>
    %cst_13 = arith.constant 2.000000e+01 : f32
    %19 = vector.broadcast %cst_13 : f32 to vector<128x512xf32>
    %20 = arith.cmpf ogt, %18, %19 : vector<128x512xf32>
    %cst_14 = arith.constant 2.000000e+01 : f32
    %21 = vector.broadcast %cst_14 : f32 to vector<128x512xf32>
    %22 = arith.minimumf %18, %21 : vector<128x512xf32>
    %23 = math.exp %22 : vector<128x512xf32>
    %24 = math.log1p %23 : vector<128x512xf32>
    %25 = arith.select %20, %18, %24 : vector<128x512xi1>, vector<128x512xf32>
    %c0_15 = arith.constant 0 : index
    %c0_16 = arith.constant 0 : index
    %26 = vector.load %arg7[%c0_15, %c0_16] : memref<128x128xf32, #tpu.memory_space<vmem>>, vector<128x128xf32>
    %cst_17 = arith.constant dense<0.000000e+00> : vector<128x512xf32>
    %27 = tpu.matmul %26, %25, %cst_17 {dimension_numbers = #tpu.dot_dimension_numbers<[1], [0], [0], [1], [0, 0, 1, 1], [], []>} : vector<128x128xf32>, vector<128x512xf32>, vector<128x512xf32> -> vector<128x512xf32>
    %c0_18 = arith.constant 0 : index
    %c0_19 = arith.constant 0 : index
    %28 = vector.load %arg8[%c0_18, %c0_19] : memref<128x1xf32, #tpu.memory_space<vmem>>, vector<128x1xf32>
    %29 = vector.broadcast %28 : vector<128x1xf32> to vector<128x512xf32>
    %30 = arith.addf %27, %29 : vector<128x512xf32>
    %cst_20 = arith.constant 2.000000e+01 : f32
    %31 = vector.broadcast %cst_20 : f32 to vector<128x512xf32>
    %32 = arith.cmpf ogt, %30, %31 : vector<128x512xf32>
    %cst_21 = arith.constant 2.000000e+01 : f32
    %33 = vector.broadcast %cst_21 : f32 to vector<128x512xf32>
    %34 = arith.minimumf %30, %33 : vector<128x512xf32>
    %35 = math.exp %34 : vector<128x512xf32>
    %36 = math.log1p %35 : vector<128x512xf32>
    %37 = arith.select %32, %30, %36 : vector<128x512xi1>, vector<128x512xf32>
    %c0_22 = arith.constant 0 : index
    %c0_23 = arith.constant 0 : index
    %38 = vector.load %arg9[%c0_22, %c0_23] : memref<128x128xf32, #tpu.memory_space<vmem>>, vector<128x128xf32>
    %cst_24 = arith.constant dense<0.000000e+00> : vector<128x512xf32>
    %39 = tpu.matmul %38, %37, %cst_24 {dimension_numbers = #tpu.dot_dimension_numbers<[1], [0], [0], [1], [0, 0, 1, 1], [], []>} : vector<128x128xf32>, vector<128x512xf32>, vector<128x512xf32> -> vector<128x512xf32>
    %c0_25 = arith.constant 0 : index
    %c0_26 = arith.constant 0 : index
    %40 = vector.load %arg10[%c0_25, %c0_26] : memref<128x1xf32, #tpu.memory_space<vmem>>, vector<128x1xf32>
    %41 = vector.broadcast %40 : vector<128x1xf32> to vector<128x512xf32>
    %42 = arith.addf %39, %41 : vector<128x512xf32>
    %cst_27 = arith.constant 2.000000e+01 : f32
    %43 = vector.broadcast %cst_27 : f32 to vector<128x512xf32>
    %44 = arith.cmpf ogt, %42, %43 : vector<128x512xf32>
    %cst_28 = arith.constant 2.000000e+01 : f32
    %45 = vector.broadcast %cst_28 : f32 to vector<128x512xf32>
    %46 = arith.minimumf %42, %45 : vector<128x512xf32>
    %47 = math.exp %46 : vector<128x512xf32>
    %48 = math.log1p %47 : vector<128x512xf32>
    %49 = arith.select %44, %42, %48 : vector<128x512xi1>, vector<128x512xf32>
    %c0_29 = arith.constant 0 : index
    %c0_30 = arith.constant 0 : index
    %50 = vector.load %arg11[%c0_29, %c0_30] : memref<4x128xf32, #tpu.memory_space<vmem>>, vector<4x128xf32>
    %cst_31 = arith.constant dense<0.000000e+00> : vector<4x512xf32>
    %51 = tpu.matmul %50, %49, %cst_31 {dimension_numbers = #tpu.dot_dimension_numbers<[1], [0], [0], [1], [0, 0, 1, 1], [], []>} : vector<4x128xf32>, vector<128x512xf32>, vector<4x512xf32> -> vector<4x512xf32>
    %c0_32 = arith.constant 0 : index
    %c0_33 = arith.constant 0 : index
    %52 = vector.load %arg12[%c0_32, %c0_33] : memref<4x1xf32, #tpu.memory_space<vmem>>, vector<4x1xf32>
    %53 = vector.broadcast %52 : vector<4x1xf32> to vector<4x512xf32>
    %54 = arith.addf %51, %53 : vector<4x512xf32>
    %55 = tpu.iota {dimensions = array<i32: 0>} : vector<4x512xi32>
    %56 = arith.negf %54 : vector<4x512xf32>
    %57 = math.exp %56 : vector<4x512xf32>
    %cst_34 = arith.constant 1.000000e+00 : f32
    %58 = vector.broadcast %cst_34 : f32 to vector<4x512xf32>
    %59 = arith.addf %58, %57 : vector<4x512xf32>
    %60 = arith.divf %58, %59 : vector<4x512xf32>
    %cst_35 = arith.constant 1.002000e+00 : f32
    %61 = vector.broadcast %cst_35 : f32 to vector<4x512xf32>
    %62 = arith.mulf %60, %61 : vector<4x512xf32>
    %cst_36 = arith.constant 1.000000e-03 : f32
    %63 = vector.broadcast %cst_36 : f32 to vector<4x512xf32>
    %64 = arith.subf %62, %63 : vector<4x512xf32>
    %c0_i32 = arith.constant 0 : i32
    %65 = vector.broadcast %c0_i32 : i32 to vector<4x512xi32>
    %66 = arith.cmpi eq, %55, %65 : vector<4x512xi32>
    %67 = arith.select %66, %54, %64 : vector<4x512xi1>, vector<4x512xf32>
    %c0_37 = arith.constant 0 : index
    %c0_38 = arith.constant 0 : index
    %c0_39 = arith.constant 0 : index
    %68 = vector.load %arg13[%c0_37, %c0_38, %c0_39] : memref<1x4x512xf32, #tpu.memory_space<vmem>>, vector<1x4x512xf32>
    %69 = vector.shape_cast %68 : vector<1x4x512xf32> to vector<4x512xf32>
    %70 = vector.shape_cast %67 : vector<4x512xf32> to vector<1x4x512xf32>
    tpu.vector_store %arg13[%c0_37, %c0_38, %c0_39], %70 {strides = array<i32>} : memref<1x4x512xf32, #tpu.memory_space<vmem>>, vector<1x4x512xf32>,
    return
  }
  func.func @transform_0(%arg0: i32, %arg1: i32) -> (i32, i32, i32) {
    %c0_i32 = arith.constant 0 : i32
    %c0_i32_0 = arith.constant 0 : i32
    return %arg0, %c0_i32, %arg1 : i32, i32, i32
  }
  func.func @transform_1(%arg0: i32, %arg1: i32) -> (i32, i32) {
    %c0_i32 = arith.constant 0 : i32
    %c0_i32_0 = arith.constant 0 : i32
    %c0_i32_1 = arith.constant 0 : i32
    return %c0_i32, %c0_i32_0 : i32, i32
  }
  func.func @transform_2(%arg0: i32, %arg1: i32) -> (i32, i32) {
    %c0_i32 = arith.constant 0 : i32
    %c0_i32_0 = arith.constant 0 : i32
    %c0_i32_1 = arith.constant 0 : i32
    return %c0_i32, %c0_i32_0 : i32, i32
  }
  func.func @transform_3(%arg0: i32, %arg1: i32) -> (i32, i32) {
    %c0_i32 = arith.constant 0 : i32
    %c0_i32_0 = arith.constant 0 : i32
    %c0_i32_1 = arith.constant 0 : i32
    return %c0_i32, %c0_i32_0 : i32, i32
  }
  func.func @transform_4(%arg0: i32, %arg1: i32) -> (i32, i32) {
    %c0_i32 = arith.constant 0 : i32
    %c0_i32_0 = arith.constant 0 : i32
    %c0_i32_1 = arith.constant 0 : i32
    return %c0_i32, %c0_i32_0 : i32, i32
  }
  func.func @transform_5(%arg0: i32, %arg1: i32) -> (i32, i32) {
    %c0_i32 = arith.constant 0 : i32
    %c0_i32_0 = arith.constant 0 : i32
    %c0_i32_1 = arith.constant 0 : i32
    return %c0_i32, %c0_i32_0 : i32, i32
  }
  func.func @transform_6(%arg0: i32, %arg1: i32) -> (i32, i32) {
    %c0_i32 = arith.constant 0 : i32
    %c0_i32_0 = arith.constant 0 : i32
    %c0_i32_1 = arith.constant 0 : i32
    return %c0_i32, %c0_i32_0 : i32, i32
  }
  func.func @transform_7(%arg0: i32, %arg1: i32) -> (i32, i32) {
    %c0_i32 = arith.constant 0 : i32
    %c0_i32_0 = arith.constant 0 : i32
    %c0_i32_1 = arith.constant 0 : i32
    return %c0_i32, %c0_i32_0 : i32, i32
  }
  func.func @transform_8(%arg0: i32, %arg1: i32) -> (i32, i32) {
    %c0_i32 = arith.constant 0 : i32
    %c0_i32_0 = arith.constant 0 : i32
    %c0_i32_1 = arith.constant 0 : i32
    return %c0_i32, %c0_i32_0 : i32, i32
  }
  func.func @transform_9(%arg0: i32, %arg1: i32) -> (i32, i32) {
    %c0_i32 = arith.constant 0 : i32
    %c0_i32_0 = arith.constant 0 : i32
    %c0_i32_1 = arith.constant 0 : i32
    return %c0_i32, %c0_i32_0 : i32, i32
  }
  func.func @transform_10(%arg0: i32, %arg1: i32) -> (i32, i32) {
    %c0_i32 = arith.constant 0 : i32
    %c0_i32_0 = arith.constant 0 : i32
    %c0_i32_1 = arith.constant 0 : i32
    return %c0_i32, %c0_i32_0 : i32, i32
  }
  func.func @transform_11(%arg0: i32, %arg1: i32) -> (i32, i32, i32) {
    %c0_i32 = arith.constant 0 : i32
    %c0_i32_0 = arith.constant 0 : i32
    return %arg0, %c0_i32, %arg1 : i32, i32, i32
  }
}

</mosaic_0001>

<bundles_post_ra>
// kernel: triplane_decoder_forward.1
= control target key start
LH: loop header
LB: loop body
LE: loop exit
PB: predicated region body
PF: predicated region fallthrough
CT: control target
= control target key end

     0   :  { %s7323_s17 = smov 0   ;;  %s7325_s18 = smov 0   ;;  %s12394_s0 = inlined_call_operand.vmem [shape: f32[2,36,512], index: 0, kind: input, shape index: {}]   ;;  %s12395_s1 = inlined_call_operand.vmem [shape: f32[128,36], index: 1, kind: input, shape index: {}]   ;;  %s12396_s2 = inlined_call_operand.vmem [shape: f32[128,1], index: 2, kind: input, shape index: {}]   ;;  %s12397_s3 = inlined_call_operand.vmem [shape: f32[128,128], index: 3, kind: input, shape index: {}]   ;;  %s12398_s4 = inlined_call_operand.vmem [shape: f32[128,1], index: 4, kind: input, shape index: {}]   ;;  %s12399_s5 = inlined_call_operand.vmem [shape: f32[128,128], index: 5, kind: input, shape index: {}]   ;;  %s12400_s6 = inlined_call_operand.vmem [shape: f32[128,1], index: 6, kind: input, shape index: {}]   ;;  %s12401_s7 = inlined_call_operand.vmem [shape: f32[128,128], index: 7, kind: input, shape index: {}]   ;;  %s12402_s8 = inlined_call_operand.vmem [shape: f32[128,1], index: 8, kind: input, shape index: {}]   ;;  %s12403_s9 = inlined_call_operand.vmem [shape: f32[4,128], index: 9, kind: input, shape index: {}]   ;;  %s12404_s10 = inlined_call_operand.vmem [shape: f32[4,1], index: 10, kind: input, shape index: {}]   ;;  %s12405_s11 = inlined_call_operand.vmem [shape: f32[2,4,512], index: 11, kind: output, shape index: {}]  }
   0x1   :  { %s7327_s19 = smov 0  }
   0x2 LB: > { %s33_s20 = sadd.s32 1, %s7255_s18  ;;  %p6117_p0 = scmp.ge.s32.totalorder %s7259_s19, 1  ;;  %s7259_s19 = sphi %s7327_s19, %s21_s19   ;;  %s7255_s18 = sphi %s7325_s18, %s14132_s18   ;;  %s7251_s17 = sphi %s7323_s17, %s14131_s17  }
   0x3   : > { %p35_p1 = scmp.ge.s32.totalorder %s33_s20, 2  ;;  %p358_p2 = scmp.lt.s32.totalorder %s7259_s19, 3 }
   0x5   : > { %s14134_s20 = smov (%p35_p1, %s33_s20), 0  ;;  %p359_p3 = pnand %p6117_p0, %p358_p2 }
   0x7   : > { %362 = sbr.rel (%p359_p3) target bundleno = 2070 (0x816), region = 64 }
   0xc   : > { %p407_p4 = scmp.lt.s32.totalorder %s7251_s17, 1  ;;  %v12406_v0 = vmov 0.0   ;;  %v477_v1 = vld [vmem:[%s12396_s2 + $0x78] sm:$0xff]  ;;  %v7262_v2 = vmov 0   ;;  %v475_v3 = vld [vmem:[%s12396_s2 + $0x68] sm:$0xff]  ;;  %v476_v4 = vld [vmem:[%s12396_s2 + $0x70] sm:$0xff] }
   0xd   : > { %684 = vmatprep.mubr.f32.mxu0 %v12406_v0  ;;  %845 = vmatprep.mubr.f32.mxu1 %v12406_v0  ;;  %v474_v5 = vld [vmem:[%s12396_s2 + $0x60] sm:$0xff]  ;;  %vm607_vm0 = vcmask 1043456   ;;  %vm558_vm1 = vcmask 293888   ;;  %v473_v27 = vld [vmem:[%s12396_s2 + $0x58] sm:$0xff]  ;;  %v472_v28 = vld [vmem:[%s12396_s2 + $0x50] sm:$0xff] }
   0xe   : > { %s14136_s17 = smov (!%p407_p4, %s7251_s17), 1  ;;  %6195 = vset.pattern.permute.xlu0 %v7262_v2  ;;  %6196 = vset.pattern.permute.xlu1 %v7262_v2  ;;  %v446_v26 = vld [vmem:[%s12395_s1] sm:$0xff]  ;;  %v447_v29 = vld [vmem:[%s12395_s1 + $0x8] sm:$0xff]  ;;  %v448_v32 = vld [vmem:[%s12395_s1 + $0x10] sm:$0xff] }
   0xf   : > { %555 = vperm.xlu0 %6195, %v477_v1   ;;  %545 = vperm.xlu1 %6196, %v475_v3   ;;  %s6168_s25 = smul.u32 160, %s14136_s17  ;;  %v471_v30 = vld [vmem:[%s12396_s2 + $0x48] sm:$0xff]  ;;  %v470_v31 = vld [vmem:[%s12396_s2 + $0x40] sm:$0xff]  ;;  %v469_v33 = vld [vmem:[%s12396_s2 + $0x38] sm:$0xff]  ;;  %s6167_s30 = sshll.u32 %s14136_s17, 4 }
  0x10   : > { %v468_v34 = vld [vmem:[%s12396_s2 + $0x30] sm:$0xff]  ;;  %v449_v35 = vld [vmem:[%s12395_s1 + $0x18] sm:$0xff]  ;;  %v467_v36 = vld [vmem:[%s12396_s2 + $0x28] sm:$0xff]  ;;  %s424_s14 = scalar_lea.vmem %s12405_s11, %s6167_s30 }
  0x11   : > { %s7361_s13 = scalar_lea.vmem %s12394_s0, %s6168_s25  ;;  %v466_v37 = vld [vmem:[%s12396_s2 + $0x20] sm:$0xff]  ;;  %v465_v39 = vld [vmem:[%s12396_s2 + $0x18] sm:$0xff]  ;;  %v464_v40 = vld [vmem:[%s12396_s2 + $0x10] sm:$0xff] }
  0x12   : > { %v443_v6 = vld [vmem:[%s7361_s13 + $0x88] sm:$0xf]  ;;  %v445_v7 = vld [vmem:[%s7361_s13 + $0x98] sm:$0xf]  ;;  %v442_v8 = vld [vmem:[%s7361_s13 + $0x80] sm:$0xf] }
  0x13   : > { %550 = vperm.xlu0 %6195, %v476_v4   ;;  %540 = vperm.xlu1 %6196, %v474_v5   ;;  %v444_v9 = vld [vmem:[%s7361_s13 + $0x90] sm:$0xf]  ;;  %v439_v10 = vld [vmem:[%s7361_s13 + $0x68] sm:$0xff]  ;;  %v441_v11 = vld [vmem:[%s7361_s13 + $0x78] sm:$0xff] }
  0x14   : > { %6121 = vmatprep.subr.msk.mxu0 %vm607_vm0, %v443_v6  ;;  %6139 = vmatprep.subr.msk.mxu1 %vm607_vm0, %v445_v7  ;;  %v438_v12 = vld [vmem:[%s7361_s13 + $0x60] sm:$0xff]  ;;  %v440_v13 = vld [vmem:[%s7361_s13 + $0x70] sm:$0xff]  ;;  %v435_v14 = vld [vmem:[%s7361_s13 + $0x48] sm:$0xff] }
  0x15   : > { %6122 = vmatpush1.msk.msra.mxu0 %vm607_vm0, %v442_v8  ;;  %6140 = vmatpush1.msk.msra.mxu1 %vm607_vm0, %v444_v9  ;;  %v437_v15 = vld [vmem:[%s7361_s13 + $0x58] sm:$0xff]  ;;  %v434_v16 = vld [vmem:[%s7361_s13 + $0x40] sm:$0xff]  ;;  %v436_v17 = vld [vmem:[%s7361_s13 + $0x50] sm:$0xff] }
  0x16   : > { %644 = vmatprep.subr.mxu0 %v439_v10  ;;  %805 = vmatprep.subr.mxu1 %v441_v11  ;;  %v431_v18 = vld [vmem:[%s7361_s13 + $0x28] sm:$0xff]  ;;  %v433_v19 = vld [vmem:[%s7361_s13 + $0x38] sm:$0xff]  ;;  %v430_v20 = vld [vmem:[%s7361_s13 + $0x20] sm:$0xff] }
  0x17   : > { %645 = vmatpush1.msra.mxu0 %v438_v12  ;;  %806 = vmatpush1.msra.mxu1 %v440_v13  ;;  %v432_v21 = vld [vmem:[%s7361_s13 + $0x30] sm:$0xff]  ;;  %v427_v22 = vld [vmem:[%s7361_s13 + $0x8] sm:$0xff]  ;;  %v429_v23 = vld [vmem:[%s7361_s13 + $0x18] sm:$0xff] }
  0x18   : > { %646 = vmatprep.subr.mxu0 %v435_v14  ;;  %807 = vmatprep.subr.mxu1 %v437_v15  ;;  %v426_v24 = vld [vmem:[%s7361_s13] sm:$0xff]  ;;  %v428_v25 = vld [vmem:[%s7361_s13 + $0x10] sm:$0xff]  ;;  %v451_v41 = vld [vmem:[%s12395_s1 + $0x28] sm:$0xff] }
  0x19   : > { %647 = vmatpush1.msra.mxu0 %v434_v16  ;;  %808 = vmatpush1.msra.mxu1 %v436_v17  ;;  %v450_v38 = vld [vmem:[%s12395_s1 + $0x20] sm:$0xff]  ;;  %v463_v42 = vld [vmem:[%s12396_s2 + $0x8] sm:$0xff]  ;;  %v452_v44 = vld [vmem:[%s12395_s1 + $0x30] sm:$0xff] }
  0x1a   : > { %648 = vmatprep.subr.mxu0 %v431_v18  ;;  %809 = vmatprep.subr.mxu1 %v433_v19  ;;  %v462_v43 = vld [vmem:[%s12396_s2] sm:$0xff]  ;;  %v1869_v45 = vld [vmem:[%s12398_s4 + $0x78] sm:$0xff]  ;;  %v1868_v46 = vld [vmem:[%s12398_s4 + $0x70] sm:$0xff] }
  0x1b   : > { %649 = vmatpush1.msra.mxu0 %v430_v20  ;;  %810 = vmatpush1.msra.mxu1 %v432_v21  ;;  %v453_v47 = vld [vmem:[%s12395_s1 + $0x38] sm:$0xff]  ;;  %v1867_v48 = vld [vmem:[%s12398_s4 + $0x68] sm:$0xff]  ;;  %v1866_v49 = vld [vmem:[%s12398_s4 + $0x60] sm:$0xff] }
  0x1c   : > { %650 = vmatprep.subr.mxu0 %v427_v22  ;;  %811 = vmatprep.subr.mxu1 %v429_v23  ;;  %v454_v50 = vld [vmem:[%s12395_s1 + $0x40] sm:$0xff]  ;;  %v1865_v51 = vld [vmem:[%s12398_s4 + $0x58] sm:$0xff]  ;;  %v1864_v52 = vld [vmem:[%s12398_s4 + $0x50] sm:$0xff] }
  0x1d   : > { %651 = vmatpush1.msra.mxu0 %v426_v24  ;;  %812 = vmatpush1.msra.mxu1 %v428_v25  ;;  %v455_v53 = vld [vmem:[%s12395_s1 + $0x48] sm:$0xff]  ;;  %v1862_v55 = vld [vmem:[%s12398_s4 + $0x40] sm:$0xff]  ;;  %v456_v56 = vld [vmem:[%s12395_s1 + $0x50] sm:$0xff] }
  0x1e   : > { %6123 = vmatmul.mubr.msk.f32.vlgmr.msra.gmra.mxu0 %vm558_vm1, %v446_v26  ;;  %6141 = vmatmul.mubr.msk.f32.vlgmr.msra.gmra.mxu1 %vm558_vm1, %v446_v26  ;;  %v1863_v54 = vld [vmem:[%s12398_s4 + $0x48] sm:$0xff]  ;;  %v1861_v57 = vld [vmem:[%s12398_s4 + $0x38] sm:$0xff]  ;;  %v1860_v58 = vld [vmem:[%s12398_s4 + $0x30] sm:$0xff] }
  0x1f   : > { %690 = vmatprep.mubr.f32.mxu0 %v12406_v0  ;;  %851 = vmatprep.mubr.f32.mxu1 %v12406_v0  ;;  %v457_v59 = vld [vmem:[%s12395_s1 + $0x58] sm:$0xff]  ;;  %v1859_v60 = vld [vmem:[%s12398_s4 + $0x28] sm:$0xff]  ;;  %v1858_v61 = vld [vmem:[%s12398_s4 + $0x20] sm:$0xff] }
  0x20   : > { %535 = vperm.xlu0 %6195, %v473_v27   ;;  %530 = vperm.xlu1 %6196, %v472_v28   ;;  %v458_v62 = vld [vmem:[%s12395_s1 + $0x60] sm:$0xff]  ;;  %v1857_v63 = vld [vmem:[%s12398_s4 + $0x18] sm:$0xff]  ;;  %v1856_v1 = vld [vmem:[%s12398_s4 + $0x10] sm:$0xff] }
  0x21   : > { %v459_v2 = vld [vmem:[%s12395_s1 + $0x68] sm:$0xff]  ;;  %v1854_v4 = vld [vmem:[%s12398_s4] sm:$0xff]  ;;  %v460_v5 = vld [vmem:[%s12395_s1 + $0x70] sm:$0xff] }
  0x22   : > { %6124 = vmatmul.mubr.msk.f32.gmra.mxu0 %vm558_vm1, %v447_v29  ;;  %6142 = vmatmul.mubr.msk.f32.gmra.mxu1 %vm558_vm1, %v447_v29  ;;  %v1855_v3 = vld [vmem:[%s12398_s4 + $0x8] sm:$0xff]  ;;  %v3199_v6 = vld [vmem:[%s12400_s6 + $0x78] sm:$0xff]  ;;  %v3198_v7 = vld [vmem:[%s12400_s6 + $0x70] sm:$0xff] }
  0x23   : > { %696 = vmatprep.mubr.f32.mxu0 %v12406_v0  ;;  %857 = vmatprep.mubr.f32.mxu1 %v12406_v0  ;;  %v461_v8 = vld [vmem:[%s12395_s1 + $0x78] sm:$0xff]  ;;  %v3197_v9 = vld [vmem:[%s12400_s6 + $0x68] sm:$0xff]  ;;  %v3196_v10 = vld [vmem:[%s12400_s6 + $0x60] sm:$0xff] }
  0x24   : > { %525 = vperm.xlu0 %6195, %v471_v30   ;;  %520 = vperm.xlu1 %6196, %v470_v31   ;;  %v3195_v11 = vld [vmem:[%s12400_s6 + $0x58] sm:$0xff]  ;;  %v3194_v12 = vld [vmem:[%s12400_s6 + $0x50] sm:$0xff]  ;;  %v3193_v13 = vld [vmem:[%s12400_s6 + $0x48] sm:$0xff] }
  0x25   : > { %v3192_v14 = vld [vmem:[%s12400_s6 + $0x40] sm:$0xff]  ;;  %v3191_v15 = vld [vmem:[%s12400_s6 + $0x38] sm:$0xff]  ;;  %v3190_v16 = vld [vmem:[%s12400_s6 + $0x30] sm:$0xff] }
  0x26   : > { %6125 = vmatmul.mubr.msk.f32.gmra.mxu0 %vm558_vm1, %v448_v32  ;;  %6143 = vmatmul.mubr.msk.f32.gmra.mxu1 %vm558_vm1, %v448_v32  ;;  %v3189_v17 = vld [vmem:[%s12400_s6 + $0x28] sm:$0xff]  ;;  %v3188_v18 = vld [vmem:[%s12400_s6 + $0x20] sm:$0xff]  ;;  %v3187_v19 = vld [vmem:[%s12400_s6 + $0x18] sm:$0xff] }
  0x27   : > { %702 = vmatprep.mubr.f32.mxu0 %v12406_v0  ;;  %863 = vmatprep.mubr.f32.mxu1 %v12406_v0  ;;  %v3186_v20 = vld [vmem:[%s12400_s6 + $0x10] sm:$0xff]  ;;  %v3185_v21 = vld [vmem:[%s12400_s6 + $0x8] sm:$0xff]  ;;  %v3184_v22 = vld [vmem:[%s12400_s6] sm:$0xff] }
  0x28   : > { %515 = vperm.xlu0 %6195, %v469_v33   ;;  %510 = vperm.xlu1 %6196, %v468_v34   ;;  %v4529_v23 = vld [vmem:[%s12402_s8 + $0x78] sm:$0xff]  ;;  %v4528_v24 = vld [vmem:[%s12402_s8 + $0x70] sm:$0xff]  ;;  %v4527_v25 = vld [vmem:[%s12402_s8 + $0x68] sm:$0xff] }
  0x29   : > { %v4526_v26 = vld [vmem:[%s12402_s8 + $0x60] sm:$0xff]  ;;  %v4525_v27 = vld [vmem:[%s12402_s8 + $0x58] sm:$0xff]  ;;  %v4524_v28 = vld [vmem:[%s12402_s8 + $0x50] sm:$0xff] }
  0x2a   : > { %6126 = vmatmul.mubr.msk.f32.gmra.mxu0 %vm558_vm1, %v449_v35  ;;  %6144 = vmatmul.mubr.msk.f32.gmra.mxu1 %vm558_vm1, %v449_v35  ;;  %v4523_v29 = vld [vmem:[%s12402_s8 + $0x48] sm:$0xff]  ;;  %v4522_v30 = vld [vmem:[%s12402_s8 + $0x40] sm:$0xff]  ;;  %v4521_v31 = vld [vmem:[%s12402_s8 + $0x38] sm:$0xff] }
  0x2b   : > { %708 = vmatprep.mubr.f32.mxu0 %v12406_v0  ;;  %869 = vmatprep.mubr.f32.mxu1 %v12406_v0  ;;  %v4520_v32 = vld [vmem:[%s12402_s8 + $0x30] sm:$0xff]  ;;  %v4519_v33 = vld [vmem:[%s12402_s8 + $0x28] sm:$0xff]  ;;  %v4518_v34 = vld [vmem:[%s12402_s8 + $0x20] sm:$0xff] }
  0x2c   : > { %505 = vperm.xlu0 %6195, %v467_v36   ;;  %500 = vperm.xlu1 %6196, %v466_v37   ;;  %v4517_v35 = vld [vmem:[%s12402_s8 + $0x18] sm:$0xff]  ;;  %v4516_v36 = vld [vmem:[%s12402_s8 + $0x10] sm:$0xff]  ;;  %v4515_v37 = vld [vmem:[%s12402_s8 + $0x8] sm:$0xff] }
  0x2e   : > { %6127 = vmatmul.mubr.msk.f32.gmra.mxu0 %vm558_vm1, %v450_v38  ;;  %6145 = vmatmul.mubr.msk.f32.gmra.mxu1 %vm558_vm1, %v450_v38  ;;  %v4514_v38 = vld [vmem:[%s12402_s8] sm:$0xff] }
  0x2f   : > { %714 = vmatprep.mubr.f32.mxu0 %v12406_v0  ;;  %875 = vmatprep.mubr.f32.mxu1 %v12406_v0 }
  0x30   : > { %495 = vperm.xlu0 %6195, %v465_v39   ;;  %490 = vperm.xlu1 %6196, %v464_v40   ;;  %v5829_v39 = vld [vmem:[%s12404_s10] sm:$0xf] }
  0x32   : > { %6128 = vmatmul.mubr.msk.f32.gmra.mxu0 %vm558_vm1, %v451_v41  ;;  %6146 = vmatmul.mubr.msk.f32.gmra.mxu1 %vm558_vm1, %v451_v41 }
  0x33   : > { %720 = vmatprep.mubr.f32.mxu0 %v12406_v0  ;;  %881 = vmatprep.mubr.f32.mxu1 %v12406_v0 }
  0x34   : > { %485 = vperm.xlu0 %6195, %v463_v42   ;;  %480 = vperm.xlu1 %6196, %v462_v43  }
  0x36   : > { %6129 = vmatmul.mubr.msk.f32.gmra.mxu0 %vm558_vm1, %v452_v44  ;;  %6147 = vmatmul.mubr.msk.f32.gmra.mxu1 %vm558_vm1, %v452_v44 }
  0x37   : > { %726 = vmatprep.mubr.f32.mxu0 %v12406_v0  ;;  %887 = vmatprep.mubr.f32.mxu1 %v12406_v0 }
  0x38   : > { %1947 = vperm.xlu0 %6195, %v1869_v45   ;;  %1942 = vperm.xlu1 %6196, %v1868_v46  }
  0x3a   : > { %6130 = vmatmul.mubr.msk.f32.gmra.mxu0 %vm558_vm1, %v453_v47  ;;  %6148 = vmatmul.mubr.msk.f32.gmra.mxu1 %vm558_vm1, %v453_v47 }
  0x3b   : > { %732 = vmatprep.mubr.f32.mxu0 %v12406_v0  ;;  %893 = vmatprep.mubr.f32.mxu1 %v12406_v0 }
  0x3c   : > { %1937 = vperm.xlu0 %6195, %v1867_v48   ;;  %1932 = vperm.xlu1 %6196, %v1866_v49  }
  0x3e   : > { %6131 = vmatmul.mubr.msk.f32.gmra.mxu0 %vm558_vm1, %v454_v50  ;;  %6149 = vmatmul.mubr.msk.f32.gmra.mxu1 %vm558_vm1, %v454_v50 }
  0x3f   : > { %738 = vmatprep.mubr.f32.mxu0 %v12406_v0  ;;  %899 = vmatprep.mubr.f32.mxu1 %v12406_v0 }
  0x40   : > { %1927 = vperm.xlu0 %6195, %v1865_v51   ;;  %1922 = vperm.xlu1 %6196, %v1864_v52  }
  0x42   : > { %6132 = vmatmul.mubr.msk.f32.gmra.mxu0 %vm558_vm1, %v455_v53  ;;  %6150 = vmatmul.mubr.msk.f32.gmra.mxu1 %vm558_vm1, %v455_v53 }
  0x43   : > { %744 = vmatprep.mubr.f32.mxu0 %v12406_v0  ;;  %905 = vmatprep.mubr.f32.mxu1 %v12406_v0 }
  0x44   : > { %1917 = vperm.xlu0 %6195, %v1863_v54   ;;  %1912 = vperm.xlu1 %6196, %v1862_v55  }
  0x46   : > { %6133 = vmatmul.mubr.msk.f32.gmra.mxu0 %vm558_vm1, %v456_v56  ;;  %6151 = vmatmul.mubr.msk.f32.gmra.mxu1 %vm558_vm1, %v456_v56 }
  0x47   : > { %750 = vmatprep.mubr.f32.mxu0 %v12406_v0  ;;  %911 = vmatprep.mubr.f32.mxu1 %v12406_v0 }
  0x48   : > { %1907 = vperm.xlu0 %6195, %v1861_v57   ;;  %1902 = vperm.xlu1 %6196, %v1860_v58  }
  0x4a   : > { %6134 = vmatmul.mubr.msk.f32.gmra.mxu0 %vm558_vm1, %v457_v59  ;;  %6152 = vmatmul.mubr.msk.f32.gmra.mxu1 %vm558_vm1, %v457_v59 }
  0x4b   : > { %756 = vmatprep.mubr.f32.mxu0 %v12406_v0  ;;  %917 = vmatprep.mubr.f32.mxu1 %v12406_v0 }
  0x4c   : > { %1897 = vperm.xlu0 %6195, %v1859_v60   ;;  %1892 = vperm.xlu1 %6196, %v1858_v61  }
  0x4e   : > { %6135 = vmatmul.mubr.msk.f32.gmra.mxu0 %vm558_vm1, %v458_v62  ;;  %6153 = vmatmul.mubr.msk.f32.gmra.mxu1 %vm558_vm1, %v458_v62 }
  0x4f   : > { %762 = vmatprep.mubr.f32.mxu0 %v12406_v0  ;;  %923 = vmatprep.mubr.f32.mxu1 %v12406_v0 }
  0x50   : > { %1887 = vperm.xlu0 %6195, %v1857_v63   ;;  %1882 = vperm.xlu1 %6196, %v1856_v1  }
  0x52   : > { %6136 = vmatmul.mubr.msk.f32.gmra.mxu0 %vm558_vm1, %v459_v2  ;;  %6154 = vmatmul.mubr.msk.f32.gmra.mxu1 %vm558_vm1, %v459_v2 }
  0x53   : > { %768 = vmatprep.mubr.f32.mxu0 %v12406_v0  ;;  %929 = vmatprep.mubr.f32.mxu1 %v12406_v0 }
  0x54   : > { %1877 = vperm.xlu0 %6195, %v1855_v3   ;;  %1872 = vperm.xlu1 %6196, %v1854_v4  }
  0x56   : > { %6137 = vmatmul.mubr.msk.f32.gmra.mxu0 %vm558_vm1, %v460_v5  ;;  %6155 = vmatmul.mubr.msk.f32.gmra.mxu1 %vm558_vm1, %v460_v5 }
  0x57   : > { %774 = vmatprep.mubr.f32.mxu0 %v12406_v0  ;;  %935 = vmatprep.mubr.f32.mxu1 %v12406_v0 }
  0x58   : > { %3277 = vperm.xlu0 %6195, %v3199_v6   ;;  %3272 = vperm.xlu1 %6196, %v3198_v7  }
  0x5a   : > { %6138 = vmatmul.mubr.msk.f32.gmra.mxu0 %vm558_vm1, %v461_v8  ;;  %6156 = vmatmul.mubr.msk.f32.gmra.mxu1 %vm558_vm1, %v461_v8 }
  0x5b   : > { %2014 = vmatprep.mubr.f32.mxu0 %v12406_v0  ;;  %2175 = vmatprep.mubr.f32.mxu1 %v12406_v0 }
  0x5c   : > { %3267 = vperm.xlu0 %6195, %v3197_v9   ;;  %3262 = vperm.xlu1 %6196, %v3196_v10  }
  0x60   : > { %3257 = vperm.xlu0 %6195, %v3195_v11   ;;  %3252 = vperm.xlu1 %6196, %v3194_v12  }
  0x64   : > { %3247 = vperm.xlu0 %6195, %v3193_v13   ;;  %3242 = vperm.xlu1 %6196, %v3192_v14  }
  0x68   : > { %3237 = vperm.xlu0 %6195, %v3191_v15   ;;  %3232 = vperm.xlu1 %6196, %v3190_v16  }
  0x6c   : > { %3227 = vperm.xlu0 %6195, %v3189_v17   ;;  %3222 = vperm.xlu1 %6196, %v3188_v18  }
  0x70   : > { %3217 = vperm.xlu0 %6195, %v3187_v19   ;;  %3212 = vperm.xlu1 %6196, %v3186_v20  }
  0x74   : > { %3207 = vperm.xlu0 %6195, %v3185_v21   ;;  %3202 = vperm.xlu1 %6196, %v3184_v22  }
  0x78   : > { %4607 = vperm.xlu0 %6195, %v4529_v23   ;;  %4602 = vperm.xlu1 %6196, %v4528_v24  }
  0x7c   : > { %4597 = vperm.xlu0 %6195, %v4527_v25   ;;  %4592 = vperm.xlu1 %6196, %v4526_v26  }
  0x80   : > { %4587 = vperm.xlu0 %6195, %v4525_v27   ;;  %4582 = vperm.xlu1 %6196, %v4524_v28  }
  0x84   : > { %4577 = vperm.xlu0 %6195, %v4523_v29   ;;  %4572 = vperm.xlu1 %6196, %v4522_v30  }
  0x88   : > { %4567 = vperm.xlu0 %6195, %v4521_v31   ;;  %4562 = vperm.xlu1 %6196, %v4520_v32  }
  0x8a   : > { %v7678_v40 = vpop.permute.xlu1 %545  ;;  %v7680_v41 = vpop.permute.xlu0 %555 }
  0x8c   : > { %4557 = vperm.xlu0 %6195, %v4519_v33   ;;  %4552 = vperm.xlu1 %6196, %v4518_v34  }
  0x8e   : > { %v7682_v42 = vpop.permute.xlu1 %540  ;;  %v7684_v43 = vpop.permute.xlu0 %550 }
  0x90   : > { %4547 = vperm.xlu0 %6195, %v4517_v35   ;;  %4542 = vperm.xlu1 %6196, %v4516_v36  }
  0x94   : > { %4537 = vperm.xlu0 %6195, %v4515_v37   ;;  %4532 = vperm.xlu1 %6196, %v4514_v38  }
  0x98   : > { %5832 = vperm.xlu0 %6195, %v5829_v39  }
  0x9b   : > { %v7686_v44 = vpop.permute.xlu1 %530  ;;  %v7688_v45 = vpop.permute.xlu0 %535 }
  0x9f   : > { %v7690_v46 = vpop.permute.xlu1 %520  ;;  %v7692_v47 = vpop.permute.xlu0 %525 }
  0xa3   : > { %v7694_v48 = vpop.permute.xlu1 %510  ;;  %v7696_v49 = vpop.permute.xlu0 %515 }
  0xa7   : > { %v7698_v50 = vpop.permute.xlu1 %500  ;;  %v7700_v51 = vpop.permute.xlu0 %505 }
  0xab   : > { %v491_v52 = vpop.permute.xlu1 %490  ;;  %v496_v57 = vpop.permute.xlu0 %495 }
  0xaf   : > { %v481_v60 = vpop.permute.xlu1 %480  ;;  %v486_v4 = vpop.permute.xlu0 %485 }
  0xde   : > { %v686_v53 = vpop.f32.mrf.mxu0  ;;  %v847_v54 = vpop.f32.mrf.mxu1 }
  0xdf   : > { %v7702_v63 = vadd.f32 %v686_v53, %v481_v60  ;;  %v7704_v1 = vadd.f32 %v847_v54, %v481_v60 }
  0xe0   : > { %v688_v55 = vpop.f32.mrf.mxu0  ;;  %v849_v56 = vpop.f32.mrf.mxu1 }
  0xe1   : > { %13018 = vst [vmem:[#allocation2_spill] sm:$0xff] %v7702_v63  ;;  %13019 = vst [vmem:[#allocation3_spill] sm:$0xff] %v7704_v1  ;;  %v7706_v5 = vadd.f32 %v688_v55, %v481_v60  ;;  %v7708_v6 = vadd.f32 %v849_v56, %v481_v60  ;;  %v1006_v9 = vmin.f32 %v7702_v63, 20.0  ;;  %v1008_v11 = vmin.f32 %v7704_v1, 20.0 }
  0xe2   : > { %v692_v58 = vpop.f32.mrf.mxu0  ;;  %v853_v59 = vpop.f32.mrf.mxu1 }
  0xe3   : > { %13020 = vst [vmem:[#allocation4_spill] sm:$0xff] %v7706_v5  ;;  %13021 = vst [vmem:[#allocation5_spill] sm:$0xff] %v7708_v6  ;;  %v7711_v10 = vadd.f32 %v692_v58, %v486_v4  ;;  %v7714_v12 = vadd.f32 %v853_v59, %v486_v4  ;;  %v1007_v15 = vmin.f32 %v7706_v5, 20.0  ;;  %v1009_v17 = vmin.f32 %v7708_v6, 20.0 }
  0xe4   : > { %v694_v61 = vpop.f32.mrf.mxu0  ;;  %v855_v62 = vpop.f32.mrf.mxu1  ;;  %v1070_v21 = vmul.f32 1.442695, %v1006_v9  ;;  %v1074_v24 = vmul.f32 1.442695, %v1008_v11 }
  0xe5   : > { %13022 = vst [vmem:[#allocation6_spill] sm:$0xff] %v7711_v10  ;;  %13023 = vst [vmem:[#allocation7_spill] sm:$0xff] %v7714_v12  ;;  %v7717_v16 = vadd.f32 %v694_v61, %v486_v4  ;;  %v7720_v18 = vadd.f32 %v855_v62, %v486_v4  ;;  %v1010_v22 = vmin.f32 %v7711_v10, 20.0  ;;  %v1012_v25 = vmin.f32 %v7714_v12, 20.0 }
  0xe6   : > { %v698_v2 = vpop.f32.mrf.mxu0  ;;  %v859_v3 = vpop.f32.mrf.mxu1  ;;  %v1072_v29 = vmul.f32 1.442695, %v1007_v15  ;;  %v1076_v32 = vmul.f32 1.442695, %v1009_v17  ;;  %6197 = vpow2.f32 %v1070_v21 }
  0xe7   : > { %13024 = vst [vmem:[#allocation8_spill] sm:$0xff] %v7717_v16  ;;  %13025 = vst [vmem:[#allocation9_spill] sm:$0xff] %v7720_v18  ;;  %v7723_v23 = vadd.f32 %v698_v2, %v491_v52  ;;  %v7726_v26 = vadd.f32 %v859_v3, %v491_v52  ;;  %v1011_v30 = vmin.f32 %v7717_v16, 20.0  ;;  %v1013_v33 = vmin.f32 %v7720_v18, 20.0 }
  0xe8   : > { %v700_v7 = vpop.f32.mrf.mxu0  ;;  %v861_v8 = vpop.f32.mrf.mxu1  ;;  %v1078_v37 = vmul.f32 1.442695, %v1010_v22  ;;  %6199 = vpow2.f32 %v1074_v24  ;;  %v1082_v53 = vmul.f32 1.442695, %v1012_v25 }
  0xe9   : > { %13026 = vst [vmem:[#allocation10_spill] sm:$0xff] %v7723_v23  ;;  %13027 = vst [vmem:[#allocation11_spill] sm:$0xff] %v7726_v26  ;;  %v7729_v31 = vadd.f32 %v700_v7, %v491_v52  ;;  %v7732_v34 = vadd.f32 %v861_v8, %v491_v52  ;;  %v1014_v38 = vmin.f32 %v7723_v23, 20.0  ;;  %v1016_v54 = vmin.f32 %v7726_v26, 20.0 }
  0xea   : > { %v704_v13 = vpop.f32.mrf.mxu0  ;;  %v865_v14 = vpop.f32.mrf.mxu1  ;;  %6201 = vpow2.f32 %v1072_v29  ;;  %v1080_v59 = vmul.f32 1.442695, %v1011_v30  ;;  %v1084_v61 = vmul.f32 1.442695, %v1013_v33 }
  0xeb   : > { %13028 = vst [vmem:[#allocation12_spill] sm:$0xff] %v7729_v31  ;;  %13029 = vst [vmem:[#allocation13_spill] sm:$0xff] %v7732_v34  ;;  %v7735_v39 = vadd.f32 %v704_v13, %v496_v57  ;;  %v7738_v55 = vadd.f32 %v865_v14, %v496_v57  ;;  %v1015_v52 = vmin.f32 %v7729_v31, 20.0  ;;  %6203 = vpow2.f32 %v1076_v32 }
  0xec   : > { %v706_v19 = vpop.f32.mrf.mxu0  ;;  %v867_v20 = vpop.f32.mrf.mxu1  ;;  %v1017_v62 = vmin.f32 %v7732_v34, 20.0  ;;  %6205 = vpow2.f32 %v1078_v37  ;;  %v1086_v7 = vmul.f32 1.442695, %v1014_v38  ;;  %v1090_v11 = vmul.f32 1.442695, %v1016_v54 }
  0xed   : > { %13030 = vst [vmem:[#allocation14_spill] sm:$0xff] %v7735_v39  ;;  %13031 = vst [vmem:[#allocation15_spill] sm:$0xff] %v7738_v55  ;;  %v7741_v60 = vadd.f32 %v706_v19, %v496_v57  ;;  %v7744_v2 = vadd.f32 %v867_v20, %v496_v57  ;;  %v1018_v8 = vmin.f32 %v7735_v39, 20.0  ;;  %6207 = vpow2.f32 %v1082_v53 }
  0xee   : > { %v710_v27 = vpop.f32.mrf.mxu0  ;;  %v871_v28 = vpop.f32.mrf.mxu1  ;;  %v1020_v13 = vmin.f32 %v7738_v55, 20.0  ;;  %6209 = vpow2.f32 %v1080_v59  ;;  %v1088_v57 = vmul.f32 1.442695, %v1015_v52  ;;  %v1092_v21 = vmul.f32 1.442695, %v1017_v62 }
  0xef   : > { %13032 = vst [vmem:[#allocation16_spill] sm:$0xff] %v7741_v60  ;;  %13033 = vst [vmem:[#allocation17_spill] sm:$0xff] %v7744_v2  ;;  %v7748_v9 = vadd.f32 %v710_v27, %v7698_v50  ;;  %v7752_v14 = vadd.f32 %v871_v28, %v7698_v50  ;;  %v1019_v19 = vmin.f32 %v7741_v60, 20.0  ;;  %6211 = vpow2.f32 %v1084_v61 }
  0xf0   : > { %v712_v35 = vpop.f32.mrf.mxu0  ;;  %v873_v36 = vpop.f32.mrf.mxu1  ;;  %v1021_v22 = vmin.f32 %v7744_v2, 20.0  ;;  %6213 = vpow2.f32 %v1086_v7  ;;  %v1094_v28 = vmul.f32 1.442695, %v1018_v8  ;;  %v1098_v32 = vmul.f32 1.442695, %v1020_v13 }
  0xf1   : > { %13034 = vst [vmem:[#allocation18_spill] sm:$0xff] %v7748_v9  ;;  %13035 = vst [vmem:[#allocation19_spill] sm:$0xff] %v7752_v14  ;;  %v7756_v20 = vadd.f32 %v712_v35, %v7698_v50  ;;  %v7760_v24 = vadd.f32 %v873_v36, %v7698_v50  ;;  %v1022_v29 = vmin.f32 %v7748_v9, 20.0  ;;  %6215 = vpow2.f32 %v1090_v11 }
  0xf2   : > { %v716_v56 = vpop.f32.mrf.mxu0  ;;  %v877_v58 = vpop.f32.mrf.mxu1  ;;  %v1024_v33 = vmin.f32 %v7752_v14, 20.0  ;;  %6217 = vpow2.f32 %v1088_v57  ;;  %v1096_v50 = vmul.f32 1.442695, %v1019_v19  ;;  %v1100_v54 = vmul.f32 1.442695, %v1021_v22 }
  0xf3   : > { %13036 = vst [vmem:[#allocation20_spill] sm:$0xff] %v7756_v20  ;;  %13037 = vst [vmem:[#allocation21_spill] sm:$0xff] %v7760_v24  ;;  %v7764_v30 = vadd.f32 %v716_v56, %v7700_v51  ;;  %v7768_v35 = vadd.f32 %v877_v58, %v7700_v51  ;;  %v1023_v36 = vmin.f32 %v7756_v20, 20.0  ;;  %6219 = vpow2.f32 %v1092_v21  ;;  %v7782_v8 = vpop.eup %6197 }
  0xf4   : > { %v718_v3 = vpop.f32.mrf.mxu0  ;;  %v879_v4 = vpop.f32.mrf.mxu1  ;;  %v1025_v56 = vmin.f32 %v7760_v24, 20.0  ;;  %6221 = vpow2.f32 %v1094_v28  ;;  %v1102_v58 = vmul.f32 1.442695, %v1022_v29  ;;  %13043 = vst [vmem:[#allocation27_spill] sm:$0xff] %v7782_v8 }
  0xf5   : > { %13038 = vst [vmem:[#allocation22_spill] sm:$0xff] %v7764_v30  ;;  %13039 = vst [vmem:[#allocation23_spill] sm:$0xff] %v7768_v35  ;;  %v7772_v53 = vadd.f32 %v718_v3, %v7700_v51  ;;  %v7776_v59 = vadd.f32 %v879_v4, %v7700_v51  ;;  %v1026_v62 = vmin.f32 %v7764_v30, 20.0  ;;  %6223 = vpow2.f32 %v1098_v32  ;;  %v7788_v57 = vpop.eup %6199 }
  0xf6   : > { %v722_v15 = vpop.f32.mrf.mxu0  ;;  %v883_v17 = vpop.f32.mrf.mxu1  ;;  %v1106_v3 = vmul.f32 1.442695, %v1024_v33  ;;  %v1028_v11 = vmin.f32 %v7768_v35, 20.0  ;;  %13045 = vst [vmem:[#allocation29_spill] sm:$0xff] %v7788_v57  ;;  %6225 = vpow2.f32 %v1096_v50  ;;  %v1104_v19 = vmul.f32 1.442695, %v1023_v36 }
  0xf7   : > { %13040 = vst [vmem:[#allocation24_spill] sm:$0xff] %v7772_v53  ;;  %13041 = vst [vmem:[#allocation25_spill] sm:$0xff] %v7776_v59  ;;  %v7780_v7 = vadd.f32 %v722_v15, %v7694_v48  ;;  %v7786_v13 = vadd.f32 %v883_v17, %v7694_v48  ;;  %v1027_v21 = vmin.f32 %v7772_v53, 20.0  ;;  %v7794_v22 = vpop.eup %6201  ;;  %6227 = vpow2.f32 %v1100_v54 }
  0xf8   : > { %v724_v25 = vpop.f32.mrf.mxu0  ;;  %v885_v27 = vpop.f32.mrf.mxu1  ;;  %13047 = vst [vmem:[#allocation31_spill] sm:$0xff] %v7794_v22  ;;  %v1108_v28 = vmul.f32 1.442695, %v1025_v56  ;;  %v1029_v29 = vmin.f32 %v7776_v59, 20.0  ;;  %6229 = vpow2.f32 %v1102_v58  ;;  %v1110_v50 = vmul.f32 1.442695, %v1026_v62 }
  0xf9   : > { %13042 = vst [vmem:[#allocation26_spill] sm:$0xff] %v7780_v7  ;;  %13044 = vst [vmem:[#allocation28_spill] sm:$0xff] %v7786_v13  ;;  %v7792_v15 = vadd.f32 %v724_v25, %v7694_v48  ;;  %v7798_v17 = vadd.f32 %v885_v27, %v7694_v48  ;;  %v7800_v0 = vpop.eup %6203  ;;  %v1030_v36 = vmin.f32 %v7780_v7, 20.0  ;;  %6231 = vpow2.f32 %v1106_v3 }
  0xfa   : > { %v728_v37 = vpop.f32.mrf.mxu0  ;;  %v889_v38 = vpop.f32.mrf.mxu1  ;;  %13049 = vst [vmem:[#allocation33_spill] sm:$0xff] %v7800_v0  ;;  %v1114_v54 = vmul.f32 1.442695, %v1028_v11  ;;  %v1032_v56 = vmin.f32 %v7786_v13, 20.0  ;;  %6233 = vpow2.f32 %v1104_v19  ;;  %v1112_v58 = vmul.f32 1.442695, %v1027_v21 }
  0xfb   : > { %13046 = vst [vmem:[#allocation30_spill] sm:$0xff] %v7792_v15  ;;  %13048 = vst [vmem:[#allocation32_spill] sm:$0xff] %v7798_v17  ;;  %v7804_v25 = vadd.f32 %v728_v37, %v7696_v49  ;;  %v7806_v1 = vpop.eup %6205  ;;  %v7810_v48 = vadd.f32 %v889_v38, %v7696_v49  ;;  %v1031_v62 = vmin.f32 %v7792_v15, 20.0  ;;  %6235 = vpow2.f32 %v1108_v28 }
  0xfc   : > { %v730_v52 = vpop.f32.mrf.mxu0  ;;  %v891_v61 = vpop.f32.mrf.mxu1  ;;  %13051 = vst [vmem:[#allocation35_spill] sm:$0xff] %v7806_v1  ;;  %v1116_v3 = vmul.f32 1.442695, %v1029_v29  ;;  %v1033_v11 = vmin.f32 %v7798_v17, 20.0  ;;  %6237 = vpow2.f32 %v1110_v50  ;;  %v1118_v19 = vmul.f32 1.442695, %v1030_v36 }
  0xfd   : > { %13050 = vst [vmem:[#allocation34_spill] sm:$0xff] %v7804_v25  ;;  %13052 = vst [vmem:[#allocation36_spill] sm:$0xff] %v7810_v48  ;;  %v7812_v6 = vpop.eup %6207  ;;  %v7816_v37 = vadd.f32 %v730_v52, %v7696_v49  ;;  %v7822_v38 = vadd.f32 %v891_v61, %v7696_v49  ;;  %v1034_v21 = vmin.f32 %v7804_v25, 20.0  ;;  %6239 = vpow2.f32 %v1114_v54 }
  0xfe   : > { %v734_v51 = vpop.f32.mrf.mxu0  ;;  %v895_v4 = vpop.f32.mrf.mxu1  ;;  %13053 = vst [vmem:[#allocation37_spill] sm:$0xff] %v7812_v6  ;;  %v1122_v28 = vmul.f32 1.442695, %v1032_v56  ;;  %v1036_v29 = vmin.f32 %v7810_v48, 20.0  ;;  %v1120_v50 = vmul.f32 1.442695, %v1031_v62 }
  0xff   : > { %13054 = vst [vmem:[#allocation38_spill] sm:$0xff] %v7816_v37  ;;  %v7818_v5 = vpop.eup %6209  ;;  %13056 = vst [vmem:[#allocation40_spill] sm:$0xff] %v7822_v38  ;;  %v7828_v52 = vadd.f32 %v734_v51, %v7690_v46  ;;  %v7834_v49 = vadd.f32 %v895_v4, %v7690_v46  ;;  %6241 = vpow2.f32 %v1112_v58  ;;  %v1035_v36 = vmin.f32 %v7816_v37, 20.0 }
 0x100   : > { %v736_v32 = vpop.f32.mrf.mxu0  ;;  %v897_v33 = vpop.f32.mrf.mxu1  ;;  %13055 = vst [vmem:[#allocation39_spill] sm:$0xff] %v7818_v5  ;;  %v1124_v54 = vmul.f32 1.442695, %v1033_v11  ;;  %v1037_v56 = vmin.f32 %v7822_v38, 20.0  ;;  %v1126_v58 = vmul.f32 1.442695, %v1034_v21 }
 0x101   : > { %v7824_v16 = vpop.eup %6211  ;;  %13058 = vst [vmem:[#allocation42_spill] sm:$0xff] %v7828_v52  ;;  %13060 = vst [vmem:[#allocation44_spill] sm:$0xff] %v7834_v49  ;;  %v7840_v51 = vadd.f32 %v736_v32, %v7690_v46  ;;  %6243 = vpow2.f32 %v1116_v3  ;;  %v7846_v4 = vadd.f32 %v897_v33, %v7690_v46  ;;  %v1038_v62 = vmin.f32 %v7828_v52, 20.0 }
 0x102   : > { %v740_v27 = vpop.f32.mrf.mxu0  ;;  %v901_v63 = vpop.f32.mrf.mxu1  ;;  %13057 = vst [vmem:[#allocation41_spill] sm:$0xff] %v7824_v16  ;;  %v1130_v3 = vmul.f32 1.442695, %v1036_v29  ;;  %v1040_v11 = vmin.f32 %v7834_v49, 20.0  ;;  %v1128_v21 = vmul.f32 1.442695, %v1035_v36 }
 0x103   : > { %v7830_v57 = vpop.eup %6213  ;;  %13062 = vst [vmem:[#allocation46_spill] sm:$0xff] %v7840_v51  ;;  %13064 = vst [vmem:[#allocation48_spill] sm:$0xff] %v7846_v4  ;;  %6245 = vpow2.f32 %v1118_v19  ;;  %v7852_v32 = vadd.f32 %v740_v27, %v7692_v47  ;;  %v7858_v46 = vadd.f32 %v901_v63, %v7692_v47  ;;  %v1039_v27 = vmin.f32 %v7840_v51, 20.0 }
 0x104   : > { %v742_v12 = vpop.f32.mrf.mxu0  ;;  %v903_v18 = vpop.f32.mrf.mxu1  ;;  %13059 = vst [vmem:[#allocation43_spill] sm:$0xff] %v7830_v57  ;;  %v1132_v29 = vmul.f32 1.442695, %v1037_v56  ;;  %v1041_v63 = vmin.f32 %v7846_v4, 20.0  ;;  %v1134_v36 = vmul.f32 1.442695, %v1038_v62 }
 0x105   : > { %v7836_v10 = vpop.eup %6215  ;;  %13066 = vst [vmem:[#allocation50_spill] sm:$0xff] %v7852_v32  ;;  %6247 = vpow2.f32 %v1122_v28  ;;  %13068 = vst [vmem:[#allocation52_spill] sm:$0xff] %v7858_v46  ;;  %v7868_v1 = vadd.f32 %v742_v12, %v7692_v47  ;;  %v7874_v16 = vadd.f32 %v903_v18, %v7692_v47  ;;  %v1042_v12 = vmin.f32 %v7852_v32, 20.0 }
 0x106   : > { %v746_v61 = vpop.f32.mrf.mxu0  ;;  %v907_v8 = vpop.f32.mrf.mxu1  ;;  %13061 = vst [vmem:[#allocation45_spill] sm:$0xff] %v7836_v10  ;;  %v1138_v56 = vmul.f32 1.442695, %v1040_v11  ;;  %v1044_v47 = vmin.f32 %v7858_v46, 20.0 }
 0x107   : > { %v7842_v0 = vpop.eup %6217  ;;  %6249 = vpow2.f32 %v1120_v50  ;;  %13070 = vst [vmem:[#allocation54_spill] sm:$0xff] %v7868_v1  ;;  %13072 = vst [vmem:[#allocation56_spill] sm:$0xff] %v7874_v16  ;;  %v7884_v5 = vadd.f32 %v746_v61, %v7686_v44  ;;  %v7890_v18 = vadd.f32 %v907_v8, %v7686_v44  ;;  %v1043_v62 = vmin.f32 %v7868_v1, 20.0 }
 0x108   : > { %13063 = vst [vmem:[#allocation47_spill] sm:$0xff] %v7842_v0  ;;  %v748_v26 = vpop.f32.mrf.mxu0  ;;  %v909_v22 = vpop.f32.mrf.mxu1  ;;  %v1045_v11 = vmin.f32 %v7874_v16, 20.0 }
 0x109   : > { %v7848_v34 = vpop.eup %6219  ;;  %6251 = vpow2.f32 %v1124_v54  ;;  %13074 = vst [vmem:[#allocation58_spill] sm:$0xff] %v7884_v5  ;;  %13076 = vst [vmem:[#allocation60_spill] sm:$0xff] %v7890_v18  ;;  %v7898_v61 = vadd.f32 %v748_v26, %v7686_v44  ;;  %v7904_v8 = vadd.f32 %v909_v22, %v7686_v44  ;;  %v1146_v26 = vmul.f32 1.442695, %v1044_v47 }
 0x10a   : > { %13065 = vst [vmem:[#allocation49_spill] sm:$0xff] %v7848_v34  ;;  %v7854_v31 = vpop.eup %6221  ;;  %v7860_v33 = vpop.f32.mrf.mxu0  ;;  %6253 = vpow2.f32 %v1126_v58  ;;  %v1136_v58 = vmul.f32 1.442695, %v1039_v27  ;;  %v1046_v27 = vmin.f32 %v7884_v5, 20.0  ;;  %v1144_v44 = vmul.f32 1.442695, %v1043_v62 }
 0x10b   : > { %13067 = vst [vmem:[#allocation51_spill] sm:$0xff] %v7854_v31  ;;  %v7862_v6 = vpop.f32.mrf.mxu1  ;;  %v7864_v19 = vpop.eup %6223  ;;  %6255 = vpow2.f32 %v1130_v3  ;;  %13078 = vst [vmem:[#allocation62_spill] sm:$0xff] %v7898_v61  ;;  %v1140_v3 = vmul.f32 1.442695, %v1041_v63  ;;  %v1047_v22 = vmin.f32 %v7898_v61, 20.0 }
 0x10c   : > { %13069 = vst [vmem:[#allocation53_spill] sm:$0xff] %v7864_v19  ;;  %v7870_v28 = vpop.eup %6225  ;;  %v7876_v23 = vpop.f32.mrf.mxu0  ;;  %6257 = vpow2.f32 %v1128_v21  ;;  %13080 = vst [vmem:[#allocation64_spill] sm:$0xff] %v7904_v8  ;;  %v1142_v21 = vmul.f32 1.442695, %v1042_v12  ;;  %v1049_v12 = vmin.f32 %v7904_v8, 20.0 }
 0x10d   : > { %13071 = vst [vmem:[#allocation55_spill] sm:$0xff] %v7870_v28  ;;  %v7878_v55 = vpop.f32.mrf.mxu1  ;;  %v7880_v50 = vpop.eup %6227  ;;  %6259 = vpow2.f32 %v1132_v29  ;;  %v1048_v29 = vmin.f32 %v7890_v18, 20.0  ;;  %v1150_v47 = vmul.f32 1.442695, %v1046_v27 }
 0x10e   : > { %13073 = vst [vmem:[#allocation57_spill] sm:$0xff] %v7880_v50  ;;  %v7886_v54 = vpop.eup %6229  ;;  %v758_v10 = vpop.f32.mrf.mxu0  ;;  %6261 = vpow2.f32 %v1134_v36  ;;  %v1148_v36 = vmul.f32 1.442695, %v1045_v11  ;;  %v1152_v11 = vmul.f32 1.442695, %v1047_v22 }
 0x10f   : > { %13075 = vst [vmem:[#allocation59_spill] sm:$0xff] %v7886_v54  ;;  %v7892_v2 = vpop.f32.mrf.mxu1  ;;  %v7894_v60 = vpop.eup %6231  ;;  %6263 = vpow2.f32 %v1138_v56  ;;  %v7921_v28 = vadd.f32 %v758_v10, %v7682_v42  ;;  %v1156_v10 = vmul.f32 1.442695, %v1049_v12 }
 0x110   : > { %13077 = vst [vmem:[#allocation61_spill] sm:$0xff] %v7894_v60  ;;  %v7900_v57 = vpop.eup %6233  ;;  %v760_v39 = vpop.f32.mrf.mxu0  ;;  %6265 = vpow2.f32 %v1136_v58  ;;  %v1154_v58 = vmul.f32 1.442695, %v1048_v29 }
 0x111   : > { %13079 = vst [vmem:[#allocation63_spill] sm:$0xff] %v7900_v57  ;;  %v921_v34 = vpop.f32.mrf.mxu1  ;;  %v7906_v0 = vpop.eup %6235  ;;  %6267 = vpow2.f32 %v1140_v3  ;;  %13086 = vst [vmem:[#allocation70_spill] sm:$0xff] %v7921_v28  ;;  %v7926_v62 = vadd.f32 %v760_v39, %v7682_v42  ;;  %v1054_v60 = vmin.f32 %v7921_v28, 20.0  ;;  %v7938_v39 = vadd.f32 %v7860_v33, %v7688_v45 }
 0x112   : > { %13081 = vst [vmem:[#allocation65_spill] sm:$0xff] %v7906_v0  ;;  %v7909_v24 = vpop.eup %6237  ;;  %v764_v63 = vpop.f32.mrf.mxu0  ;;  %6269 = vpow2.f32 %v1142_v21  ;;  %v7941_v29 = vadd.f32 %v921_v34, %v7682_v42 }
 0x113   : > { %13082 = vst [vmem:[#allocation66_spill] sm:$0xff] %v7909_v24  ;;  %v925_v14 = vpop.f32.mrf.mxu1  ;;  %v7912_v19 = vpop.eup %6239  ;;  %6271 = vpow2.f32 %v1146_v26  ;;  %v1055_v27 = vmin.f32 %v7926_v62, 20.0  ;;  %13091 = vst [vmem:[#allocation75_spill] sm:$0xff] %v7938_v39  ;;  %v1166_v26 = vmul.f32 1.442695, %v1054_v60 }
 0x114   : > { %13083 = vst [vmem:[#allocation67_spill] sm:$0xff] %v7912_v19  ;;  %v7915_v31 = vpop.eup %6241  ;;  %v766_v50 = vpop.f32.mrf.mxu0  ;;  %6273 = vpow2.f32 %v1144_v44  ;;  %13092 = vst [vmem:[#allocation76_spill] sm:$0xff] %v7941_v29  ;;  %v7949_v12 = vadd.f32 %v925_v14, %v7678_v40  ;;  %v1057_v33 = vmin.f32 %v7941_v29, 20.0  ;;  %v7964_v14 = vadd.f32 %v7862_v6, %v7688_v45 }
 0x115   : > { %13084 = vst [vmem:[#allocation68_spill] sm:$0xff] %v7915_v31  ;;  %v927_v9 = vpop.f32.mrf.mxu1  ;;  %v7918_v56 = vpop.eup %6243  ;;  %6275 = vpow2.f32 %v1148_v36  ;;  %v1168_v22 = vmul.f32 1.442695, %v1055_v27  ;;  %v7946_v36 = vadd.f32 %v764_v63, %v7678_v40  ;;  %v7955_v60 = vadd.f32 %v766_v50, %v7678_v40 }
 0x116   : > { %13085 = vst [vmem:[#allocation69_spill] sm:$0xff] %v7918_v56  ;;  %v7923_v20 = vpop.eup %6245  ;;  %v770_v59 = vpop.f32.mrf.mxu0  ;;  %6277 = vpow2.f32 %v1150_v47  ;;  %13094 = vst [vmem:[#allocation78_spill] sm:$0xff] %v7949_v12  ;;  %v7958_v34 = vadd.f32 %v927_v9, %v7678_v40  ;;  %v7968_v63 = vadd.f32 %v7876_v23, %v7688_v45  ;;  %v1172_v40 = vmul.f32 1.442695, %v1057_v33 }
 0x117   : > { %13087 = vst [vmem:[#allocation71_spill] sm:$0xff] %v7923_v20  ;;  %v7928_v3 = vpop.eup %6247  ;;  %v931_v35 = vpop.f32.mrf.mxu1  ;;  %6279 = vpow2.f32 %v1154_v58  ;;  %13097 = vst [vmem:[#allocation81_spill] sm:$0xff] %v7964_v14  ;;  %v1060_v9 = vmin.f32 %v7949_v12, 20.0  ;;  %v1059_v30 = vmin.f32 %v7955_v60, 20.0  ;;  %v7979_v57 = vadd.f32 %v770_v59, %v7684_v43 }
 0x118   : > { %13088 = vst [vmem:[#allocation72_spill] sm:$0xff] %v7928_v3  ;;  %v7931_v21 = vpop.eup %6249  ;;  %6281 = vpow2.f32 %v1152_v11  ;;  %v772_v47 = vpop.f32.mrf.mxu0  ;;  %13098 = vst [vmem:[#allocation82_spill] sm:$0xff] %v7968_v63  ;;  %v1058_v11 = vmin.f32 %v7946_v36, 20.0  ;;  %v1061_v6 = vmin.f32 %v7958_v34, 20.0  ;;  %v1052_v56 = vmin.f32 %v7964_v14, 20.0 }
 0x119   : > { %13089 = vst [vmem:[#allocation73_spill] sm:$0xff] %v7931_v21  ;;  %v7934_v53 = vpop.eup %6251  ;;  %v933_v58 = vpop.f32.mrf.mxu1  ;;  %6283 = vpow2.f32 %v1156_v10  ;;  %v1178_v17 = vmul.f32 1.442695, %v1060_v9  ;;  %v1176_v19 = vmul.f32 1.442695, %v1059_v30  ;;  %v1062_v7 = vmin.f32 %v7979_v57, 20.0 }
 0x11a   : > { %13090 = vst [vmem:[#allocation74_spill] sm:$0xff] %v7934_v53  ;;  %v7943_v44 = vpop.eup %6253  ;;  %6285 = vpow2.f32 %v1166_v26  ;;  %v1174_v10 = vmul.f32 1.442695, %v1058_v11  ;;  %v7984_v26 = vadd.f32 %v931_v35, %v7684_v43  ;;  %v776_v33 = vpop.f32.mrf.mxu0  ;;  %v1180_v11 = vmul.f32 1.442695, %v1061_v6 }
 0x11b   : > { %13093 = vst [vmem:[#allocation77_spill] sm:$0xff] %v7943_v44  ;;  %v7951_v54 = vpop.eup %6255  ;;  %6287 = vpow2.f32 %v1168_v22  ;;  %v937_v13 = vpop.f32.mrf.mxu1  ;;  %v1050_v22 = vmin.f32 %v7938_v39, 20.0  ;;  %v7995_v35 = vadd.f32 %v772_v47, %v7684_v43  ;;  %v1182_v9 = vmul.f32 1.442695, %v1062_v7 }
 0x11c   : > { %13095 = vst [vmem:[#allocation79_spill] sm:$0xff] %v7951_v54  ;;  %v7960_v27 = vpop.eup %6257  ;;  %6289 = vpow2.f32 %v1172_v40  ;;  %v1064_v30 = vmin.f32 %v7984_v26, 20.0  ;;  %v8000_v15 = vadd.f32 %v933_v58, %v7684_v43  ;;  %v8009_v3 = vadd.f32 %v937_v13, %v7680_v41  ;;  %v778_v47 = vpop.f32.mrf.mxu0 }
 0x11d   : > { %13096 = vst [vmem:[#allocation80_spill] sm:$0xff] %v7960_v27  ;;  %v7971_v50 = vpop.eup %6259  ;;  %6291 = vpow2.f32 %v1174_v10  ;;  %v8003_v10 = vadd.f32 %v776_v33, %v7680_v41  ;;  %v939_v48 = vpop.f32.mrf.mxu1  ;;  %v8015_v43 = vadd.f32 %v7878_v55, %v7688_v45  ;;  %v8023_v33 = vadd.f32 %v7892_v2, %v7682_v42 }
 0x11e   : > { %13099 = vst [vmem:[#allocation83_spill] sm:$0xff] %v7971_v50  ;;  %v7975_v0 = vpop.eup %6261  ;;  %6293 = vpow2.f32 %v1178_v17  ;;  %v1186_v31 = vmul.f32 1.442695, %v1064_v30  ;;  %v1063_v17 = vmin.f32 %v7995_v35, 20.0  ;;  %v1065_v7 = vmin.f32 %v8000_v15, 20.0 }
 0x11f   : > { %13100 = vst [vmem:[#allocation84_spill] sm:$0xff] %v7975_v0  ;;  %v7981_v23 = vpop.eup %6263  ;;  %6295 = vpow2.f32 %v1176_v19  ;;  %13107 = vst [vmem:[#allocation91_spill] sm:$0xff] %v8015_v43  ;;  %v1066_v19 = vmin.f32 %v8003_v10, 20.0  ;;  %v8029_v55 = vadd.f32 %v778_v47, %v7680_v41  ;;  %v1158_v53 = vmul.f32 1.442695, %v1050_v22 }
 0x120   : > { %13101 = vst [vmem:[#allocation85_spill] sm:$0xff] %v7981_v23  ;;  %v7986_v24 = vpop.eup %6265  ;;  %6297 = vpow2.f32 %v1180_v11  ;;  %13109 = vst [vmem:[#allocation93_spill] sm:$0xff] %v8023_v33  ;;  %v1184_v13 = vmul.f32 1.442695, %v1063_v17  ;;  %v1068_v11 = vmin.f32 %v8009_v3, 20.0  ;;  %v1051_v42 = vmin.f32 %v7968_v63, 20.0 }
 0x121   : > { %13102 = vst [vmem:[#allocation86_spill] sm:$0xff] %v7986_v24  ;;  %v7990_v59 = vpop.eup %6267  ;;  %6299 = vpow2.f32 %v1182_v9  ;;  %v1188_v20 = vmul.f32 1.442695, %v1065_v7  ;;  %v1190_v45 = vmul.f32 1.442695, %v1066_v19  ;;  %v8032_v9 = vadd.f32 %v939_v48, %v7680_v41 }
 0x122   : > { %13103 = vst [vmem:[#allocation87_spill] sm:$0xff] %v7990_v59  ;;  %v7997_v40 = vpop.eup %6269  ;;  %6301 = vpow2.f32 %v1186_v31  ;;  %v1194_v31 = vmul.f32 1.442695, %v1068_v11  ;;  %v1053_v17 = vmin.f32 %v8015_v43, 20.0  ;;  %v1067_v7 = vmin.f32 %v8029_v55, 20.0 }
 0x123   : > { %13104 = vst [vmem:[#allocation88_spill] sm:$0xff] %v7997_v40  ;;  %v8005_v6 = vpop.eup %6271  ;;  %6303 = vpow2.f32 %v1184_v13  ;;  %v1069_v47 = vmin.f32 %v8032_v9, 20.0  ;;  %v1056_v41 = vmin.f32 %v8023_v33, 20.0  ;;  %v1162_v22 = vmul.f32 1.442695, %v1052_v56 }
 0x124   : > { %13105 = vst [vmem:[#allocation89_spill] sm:$0xff] %v8005_v6  ;;  %v8011_v38 = vpop.eup %6273  ;;  %6305 = vpow2.f32 %v1188_v20  ;;  %v1192_v13 = vmul.f32 1.442695, %v1067_v7  ;;  %v1160_v37 = vmul.f32 1.442695, %v1051_v42  ;;  %vm995_vm4 = vcmp.gt.f32.partialorder %v7955_v60, 20.0 }
 0x125   : > { %13106 = vst [vmem:[#allocation90_spill] sm:$0xff] %v8011_v38  ;;  %v8019_v58 = vpop.eup %6275  ;;  %6307 = vpow2.f32 %v1190_v45  ;;  %v1196_v11 = vmul.f32 1.442695, %v1069_v47  ;;  %v1164_v4 = vmul.f32 1.442695, %v1053_v17  ;;  %vm998_vm5 = vcmp.gt.f32.partialorder %v7979_v57, 20.0 }
 0x126   : > { %13108 = vst [vmem:[#allocation92_spill] sm:$0xff] %v8019_v58  ;;  %v8026_v30 = vpop.eup %6277  ;;  %6309 = vpow2.f32 %v1194_v31  ;;  %v1170_v54 = vmul.f32 1.442695, %v1056_v41  ;;  %vm1003_vm11 = vcmp.gt.f32.partialorder %v8029_v55, 20.0  ;;  %vm1004_vm1 = vcmp.gt.f32.partialorder %v8009_v3, 20.0 }
 0x127   : > { %13110 = vst [vmem:[#allocation94_spill] sm:$0xff] %v8026_v30  ;;  %v8034_v25 = vpop.eup %6279  ;;  %6311 = vpow2.f32 %v1158_v53  ;;  %vm1001_vm10 = vcmp.gt.f32.partialorder %v8000_v15, 20.0  ;;  %vm1000_vm0 = vcmp.gt.f32.partialorder %v7984_v26, 20.0 }
 0x128   : > { %13111 = vst [vmem:[#allocation95_spill] sm:$0xff] %v8034_v25  ;;  %v8037_v2 = vpop.eup %6281  ;;  %6313 = vpow2.f32 %v1192_v13 }
 0x129   : > { %13112 = vst [vmem:[#allocation96_spill] sm:$0xff] %v8037_v2  ;;  %v8042_v19 = vpop.eup %6283  ;;  %6315 = vpow2.f32 %v1196_v11 }
 0x12a   : > { %13113 = vst [vmem:[#allocation97_spill] sm:$0xff] %v8042_v19  ;;  %v8045_v48 = vpop.eup %6285  ;;  %6317 = vpow2.f32 %v1162_v22 }
 0x12b   : > { %13114 = vst [vmem:[#allocation98_spill] sm:$0xff] %v8045_v48  ;;  %v8047_v21 = vpop.eup %6287  ;;  %6319 = vpow2.f32 %v1160_v37  ;;  %v8065_v7 = vadd.f32 1.0, %v8045_v48  ;;  %v8072_v22 = vmul.f32 -0.5, %v8045_v48 }
 0x12c   : > { %v8049_v20 = vpop.eup %6289  ;;  %v1639_v56 = vadd.f32 1.0, %v8047_v21  ;;  %6321 = vpow2.f32 %v1164_v4  ;;  %v1642_v37 = vmul.f32 -0.5, %v8047_v21 }
 0x12d   : > { %13115 = vst [vmem:[#allocation99_spill] sm:$0xff] %v8049_v20  ;;  %v8051_v49 = vpop.eup %6291  ;;  %6323 = vpow2.f32 %v1170_v54  ;;  %13117 = vst [vmem:[#allocation101_spill] sm:$0xff] %v8072_v22  ;;  %v8077_v13 = vadd.f32 1.0, %v8049_v20 }
 0x12e   : > { %v8053_v44 = vpop.eup %6293  ;;  %v1666_v17 = vadd.f32 1.0, %v8051_v49  ;;  %v1669_v52 = vmul.f32 -0.5, %v8051_v49  ;;  %v8099_v46 = vadd.f32 1.0, %v1642_v37 }
 0x12f   : > { %13116 = vst [vmem:[#allocation100_spill] sm:$0xff] %v8053_v44  ;;  %v8055_v45 = vpop.eup %6295  ;;  %v8091_v54 = vadd.f32 1.0, %v8053_v44 }
 0x130   : > { %v8058_v31 = vpop.eup %6297  ;;  %v1675_v53 = vadd.f32 1.0, %v8055_v45  ;;  %v8116_v18 = vadd.f32 1.0, %v1669_v52 }
 0x131   : > { %v8061_v42 = vpop.eup %6299  ;;  %v1693_v59 = vadd.f32 1.0, %v8058_v31  ;;  %v8112_v37 = vmul.f32 -0.5, %v8058_v31 }
 0x132   : > { %v8067_v47 = vpop.eup %6301  ;;  %v1702_v41 = vadd.f32 1.0, %v8061_v42  ;;  %6325 = vlog2.f32 %v1675_v53  ;;  %v8083_v53 = vmul.f32 -0.5, %v8049_v20  ;;  %v1705_v32 = vmul.f32 -0.5, %v8061_v42 }
 0x133   : > { %v1720_v4 = vadd.f32 1.0, %v8067_v47  ;;  %6327 = vlog2.f32 %v1639_v56  ;;  %v8079_v11 = vpop.eup %6303  ;;  %v1681_v56 = vand.u32 2147483647, %v8055_v45  ;;  %v1708_v24 = vand.u32 2147483647, %v8061_v42 }
 0x134   : > { %6329 = vlog2.f32 %v1702_v41  ;;  %13118 = vst [vmem:[#allocation102_spill] sm:$0xff] %v8083_v53  ;;  %v8086_v51 = vpop.eup %6305  ;;  %v1711_v27 = vadd.f32 1.0, %v8079_v11  ;;  %v8096_v41 = vmul.f32 -0.5, %v8053_v44  ;;  %v1726_v14 = vand.u32 2147483647, %v8067_v47 }
 0x135   : > { %6331 = vlog2.f32 %v1666_v17  ;;  %v8093_v16 = vpop.eup %6307  ;;  %v1678_v17 = vmul.f32 -0.5, %v8055_v45  ;;  %v1729_v8 = vadd.f32 1.0, %v8086_v51  ;;  %v1714_v25 = vmul.f32 -0.5, %v8079_v11 }
 0x136   : > { %6333 = vlog2.f32 %v1720_v4  ;;  %v8101_v50 = vpop.eup %6309  ;;  %v1738_v1 = vadd.f32 1.0, %v8093_v16  ;;  %v1741_v40 = vmul.f32 -0.5, %v8093_v16  ;;  %v1706_v43 = vadd.f32 1.0, %v1705_v32 }
 0x137   : > { %6335 = vlog2.f32 %v1711_v27  ;;  %v8106_v0 = vpop.eup %6311  ;;  %v1756_v4 = vadd.f32 1.0, %v8101_v50  ;;  %v1759_v52 = vmul.f32 -0.5, %v8101_v50  ;;  %v1744_v39 = vand.u32 2147483647, %v8093_v16 }
 0x138   : > { %13119 = vst [vmem:[#allocation103_spill] sm:$0xff] %v8106_v0  ;;  %v6314_v23 = vpop.eup %6313  ;;  %6337 = vlog2.f32 %v1738_v1  ;;  %v1723_v1 = vmul.f32 -0.5, %v8067_v47  ;;  %vm8135_vm2 = vcmp.lt.f32.partialorder %v1681_v56, 0.0004427343  ;;  %v1742_v2 = vadd.f32 1.0, %v1741_v40 }
 0x139   : > { %v8118_v5 = vpop.eup %6315  ;;  %v1747_v6 = vadd.f32 1.0, %v6314_v23  ;;  %6339 = vlog2.f32 %v1756_v4  ;;  %v1750_v61 = vmul.f32 -0.5, %v6314_v23  ;;  %v1732_v29 = vmul.f32 -0.5, %v8086_v51 }
 0x13a   : > { %v8122_v58 = vpop.eup %6317  ;;  %v1765_v38 = vadd.f32 1.0, %v8118_v5  ;;  %v1768_v63 = vmul.f32 -0.5, %v8118_v5  ;;  %vm8143_vm3 = vcmp.lt.f32.partialorder %v1708_v24, 0.0004427343  ;;  %v1753_v33 = vand.u32 2147483647, %v6314_v23 }
 0x13b   : > { %13120 = vst [vmem:[#allocation104_spill] sm:$0xff] %v8122_v58  ;;  %v8127_v27 = vpop.eup %6319  ;;  %6341 = vlog2.f32 %v1747_v6  ;;  %v1717_v6 = vand.u32 2147483647, %v8079_v11  ;;  %v1751_v58 = vadd.f32 1.0, %v1750_v61  ;;  %v1762_v56 = vand.u32 2147483647, %v8101_v50 }
 0x13c   : > { %13121 = vst [vmem:[#allocation105_spill] sm:$0xff] %v8127_v27  ;;  %v8131_v4 = vpop.eup %6321  ;;  %6343 = vlog2.f32 %v1765_v38  ;;  %v1679_v20 = vadd.f32 1.0, %v1678_v17  ;;  %v1771_v12 = vand.u32 2147483647, %v8118_v5  ;;  %v1760_v40 = vadd.f32 1.0, %v1759_v52 }
 0x13d   : > { %13122 = vst [vmem:[#allocation106_spill] sm:$0xff] %v8131_v4  ;;  %v8139_v19 = vpop.eup %6323  ;;  %6345 = vlog2.f32 %v1729_v8  ;;  %v1715_v28 = vadd.f32 1.0, %v1714_v25  ;;  %v1769_v24 = vadd.f32 1.0, %v1768_v63  ;;  %vm8153_vm6 = vcmp.lt.f32.partialorder %v1744_v39, 0.0004427343 }
 0x13e   : > { %6347 = vlog2.f32 %v1693_v59  ;;  %v1735_v61 = vand.u32 2147483647, %v8086_v51  ;;  %v1707_v17 = vmul.f32 %v8061_v42, %v1706_v43  ;;  %v8160_v22 = vmul.f32 %v8093_v16, %v1742_v2  ;;  %v13156_v42 = vld [vmem:[#allocation102_spill] sm:$0xff] }
 0x13f   : > { %v6326_v38 = vpop.eup %6325  ;;  %vm8162_vm7 = vcmp.lt.f32.partialorder %v1717_v6, 0.0004427343  ;;  %v1733_v59 = vadd.f32 1.0, %v1732_v29  ;;  %v1724_v52 = vadd.f32 1.0, %v1723_v1  ;;  %v1752_v39 = vmul.f32 %v6314_v23, %v1751_v58 }
 0x140   : > { %v8148_v48 = vpop.eup %6327  ;;  %v1677_v53 = vmul.f32 0.6931472, %v6326_v38  ;;  %vm8166_vm8 = vcmp.lt.f32.partialorder %v1753_v33, 0.0004427343  ;;  %vm8170_vm9 = vcmp.lt.f32.partialorder %v1762_v56, 0.0004427343  ;;  %v8181_v23 = vmul.f32 %v8101_v50, %v1760_v40 }
 0x141   : > { %v6330_v8 = vpop.eup %6329  ;;  %vm8176_vm12 = vcmp.lt.f32.partialorder %v1771_v12, 0.0004427343  ;;  %v8184_v58 = vmul.f32 %v8079_v11, %v1715_v28  ;;  %v1680_v33 = vmul.f32 %v8055_v45, %v1679_v20  ;;  %6349 = vlog2.f32 %v8091_v54 }
 0x142   : > { %v6332_v4 = vpop.eup %6331  ;;  %v1704_v43 = vmul.f32 0.6931472, %v6330_v8  ;;  %v1770_v2 = vmul.f32 %v8118_v5, %v1769_v24  ;;  %vm8190_vm14 = vcmp.lt.f32.partialorder %v1735_v61, 0.0004427343  ;;  %vm8194_vm15 = vcmp.lt.f32.partialorder %v1726_v14, 0.0004427343 }
 0x143   : > { %v6334_v63 = vpop.eup %6333  ;;  %v1697_v50 = vadd.f32 1.0, %v8112_v37  ;;  %v1668_v28 = vmul.f32 0.6931472, %v6332_v4  ;;  %v1734_v5 = vmul.f32 %v8086_v51, %v1733_v59  ;;  %v1725_v20 = vmul.f32 %v8067_v47, %v1724_v52 }
 0x144   : > { %v6336_v16 = vpop.eup %6335  ;;  %v1683_v14 = vsel %vm8135_vm2, %v1680_v33, %v1677_v53  ;;  %v1671_v45 = vmul.f32 %v8051_v49, %v8116_v18  ;;  %v1710_v4 = vsel %vm8143_vm3, %v1707_v17, %v1704_v43  ;;  %v1722_v6 = vmul.f32 0.6931472, %v6334_v63  ;;  %v13155_v33 = vld [vmem:[#allocation100_spill] sm:$0xff] }
 0x145   : > { %v6338_v11 = vpop.eup %6337  ;;  %v1713_v1 = vmul.f32 0.6931472, %v6336_v16  ;;  %v13141_v47 = vand.u32 2147483647, %v8058_v31  ;;  %v13144_v18 = vand.u32 2147483647, %v8051_v49  ;;  %6351 = vlog2.f32 %v8077_v13 }
 0x146   : > { %v6340_v54 = vpop.eup %6339  ;;  %v1740_v37 = vmul.f32 0.6931472, %v6338_v11  ;;  %v1827_v38 = vsel %vm995_vm4, %v7955_v60, %v1683_v14  ;;  %vm997_vm3 = vcmp.gt.f32.partialorder %v7958_v34, 20.0  ;;  %v1698_v56 = vmul.f32 %v8058_v31, %v1697_v50  ;;  %v13159_v14 = vld [vmem:[#allocation106_spill] sm:$0xff] }
 0x147   : > { %v1758_v51 = vmul.f32 0.6931472, %v6340_v54  ;;  %vm8214_vm13 = vcmp.lt.f32.partialorder %v13141_v47, 0.0004427343  ;;  %vm8220_vm2 = vcmp.lt.f32.partialorder %v13144_v18, 0.0004427343  ;;  %6353 = vlog2.f32 %v8065_v7 }
 0x148   : > { %v6342_v32 = vpop.eup %6341  ;;  %v1674_v40 = vsel %vm8220_vm2, %v1671_v45, %v1668_v28  ;;  %v1746_v13 = vsel %vm8153_vm6, %v8160_v22, %v1740_v37  ;;  %v1830_v24 = vsel %vm998_vm5, %v7979_v57, %v1710_v4  ;;  %v1688_v60 = vadd.f32 1.0, %v8096_v41  ;;  %v13160_v54 = vld [vmem:[#allocation103_spill] sm:$0xff] }
 0x149   : > { %v6344_v49 = vpop.eup %6343  ;;  %v1749_v8 = vmul.f32 0.6931472, %v6342_v32  ;;  %vm991_vm4 = vcmp.gt.f32.partialorder %v7926_v62, 20.0  ;;  %v1719_v7 = vsel %vm8162_vm7, %v8184_v58, %v1713_v1  ;;  %v1728_v17 = vsel %vm8194_vm15, %v1725_v20, %v1722_v6  ;;  %v13161_v1 = vld [vmem:[#allocation70_spill] sm:$0xff]  ;;  %v13164_v18 = vld [vmem:[#allocation99_spill] sm:$0xff] }
 0x14a   : > { %v6346_v31 = vpop.eup %6345  ;;  %v1767_v61 = vmul.f32 0.6931472, %v6344_v49  ;;  %v1641_v0 = vmul.f32 0.6931472, %v8148_v48  ;;  %v1764_v57 = vsel %vm8170_vm9, %v8181_v23, %v1758_v51  ;;  %v1648_v59 = vadd.f32 1.0, %v8139_v19  ;;  %v13154_v23 = vld [vmem:[#allocation105_spill] sm:$0xff] }
 0x14b   : > { %v1755_v22 = vsel %vm8166_vm8, %v1752_v39, %v1749_v8  ;;  %v1731_v41 = vmul.f32 0.6931472, %v6346_v31  ;;  %v6348_v52 = vpop.eup %6347  ;;  %vm13147_vm5 = vcmp.gt.f32.partialorder %v8003_v10, 20.0  ;;  %v1644_v48 = vmul.f32 %v8047_v21, %v8099_v46  ;;  %v13163_v6 = vld [vmem:[#allocation98_spill] sm:$0xff]  ;;  %v13169_v31 = vld [vmem:[#allocation104_spill] sm:$0xff] }
 0x14c   : > { %v1835_v25 = vsel %vm1003_vm11, %v8029_v55, %v1755_v22  ;;  %v1773_v63 = vsel %vm8176_vm12, %v1770_v2, %v1767_v61  ;;  %v1834_v44 = vsel %vm13147_vm5, %v8003_v10, %v1746_v13  ;;  %vm13148_vm6 = vcmp.gt.f32.partialorder %v8032_v9, 20.0 }
 0x14d   : > { %1950 = vmatprep.subr.mxu0 %v1835_v25  ;;  %v1837_v27 = vsel %vm13148_vm6, %v8032_v9, %v1773_v63  ;;  %v1737_v39 = vsel %vm8190_vm14, %v1734_v5, %v1731_v41  ;;  %v1695_v43 = vmul.f32 0.6931472, %v6348_v52  ;;  %6355 = vlog2.f32 %v1648_v59  ;;  %v13171_v63 = vld [vmem:[#allocation96_spill] sm:$0xff] }
 0x14e   : > { %2111 = vmatprep.subr.mxu1 %v1837_v27  ;;  %1951 = vmatpush1.msra.mxu0 %v1834_v44  ;;  %v1836_v55 = vsel %vm1004_vm1, %v8009_v3, %v1764_v57  ;;  %vm13149_vm7 = vcmp.gt.f32.partialorder %v7995_v35, 20.0  ;;  %vm13150_vm8 = vcmp.gt.f32.partialorder %v7946_v36, 20.0  ;;  %v13151_v9 = vand.u32 2147483647, %v8047_v21  ;;  %v6350_v58 = vpop.eup %6349 }
 0x14f   : > { %v1831_v46 = vsel %vm13149_vm7, %v7995_v35, %v1719_v7  ;;  %v1826_v10 = vsel %vm13150_vm8, %v7946_v36, %v1674_v40  ;;  %2112 = vmatpush1.msra.mxu1 %v1836_v55  ;;  %v1833_v3 = vsel %vm1001_vm10, %v8000_v15, %v1737_v39  ;;  %v1701_v29 = vsel %vm8214_vm13, %v1698_v56, %v1695_v43  ;;  %v13157_v15 = vld [vmem:[#allocation101_spill] sm:$0xff]  ;;  %v13170_v7 = vld [vmem:[#allocation76_spill] sm:$0xff] }
 0x150   : > { %vm8279_vm9 = vcmp.lt.f32.partialorder %v13151_v9, 0.0004427343  ;;  %1952 = vmatprep.subr.mxu0 %v1831_v46  ;;  %v1603_v36 = vadd.f32 1.0, %v13154_v23  ;;  %2113 = vmatprep.subr.mxu1 %v1833_v3  ;;  %v1832_v21 = vsel %vm1000_vm0, %v7984_v26, %v1728_v17  ;;  %v1689_v2 = vmul.f32 %v13155_v33, %v1688_v60  ;;  %v13168_v56 = vld [vmem:[#allocation93_spill] sm:$0xff] }
 0x151   : > { %v1647_v35 = vsel %vm8279_vm9, %v1644_v48, %v1641_v0  ;;  %1953 = vmatpush1.msra.mxu0 %v1830_v24  ;;  %v1661_v12 = vadd.f32 1.0, %v13156_v42  ;;  %v1634_v50 = vadd.f32 1.0, %v13157_v15  ;;  %2114 = vmatpush1.msra.mxu1 %v1832_v21  ;;  %v1829_v28 = vsel %vm997_vm3, %v7958_v34, %v1701_v29  ;;  %v13162_v34 = vld [vmem:[#allocation78_spill] sm:$0xff]  ;;  %v13174_v55 = vld [vmem:[#allocation97_spill] sm:$0xff] }
 0x152   : > { %1954 = vmatprep.subr.mxu0 %v1827_v38  ;;  %v1686_v11 = vmul.f32 0.6931472, %v6350_v58  ;;  %v1651_v5 = vmul.f32 -0.5, %v8139_v19  ;;  %6357 = vlog2.f32 %v1603_v36  ;;  %2115 = vmatprep.subr.mxu1 %v1829_v28  ;;  %v13158_v26 = vand.u32 2147483647, %v13155_v33  ;;  %v6352_v47 = vpop.eup %6351  ;;  %v13175_v29 = vld [vmem:[#allocation94_spill] sm:$0xff] }
 0x153   : > { %1955 = vmatpush1.msra.mxu0 %v1826_v10  ;;  %v1823_v20 = vsel %vm991_vm4, %v7926_v62, %v1647_v35  ;;  %v1621_v45 = vadd.f32 1.0, %v13159_v14  ;;  %v1594_v37 = vadd.f32 1.0, %v13160_v54  ;;  %vm990_vm11 = vcmp.gt.f32.partialorder %v13161_v1, 20.0  ;;  %v13176_v36 = vld [vmem:[#allocation75_spill] sm:$0xff]  ;;  %v13177_v21 = vld [vmem:[#allocation82_spill] sm:$0xff] }
 0x154   : > { %vm1691_vm10 = vcmp.lt.f32.partialorder %v13158_v26, 0.0004427343  ;;  %vm996_vm12 = vcmp.gt.f32.partialorder %v13162_v34, 20.0  ;;  %1956 = vmatprep.subr.mxu0 %v1823_v20  ;;  %v1636_v51 = vand.u32 2147483647, %v13163_v6  ;;  %v1662_v53 = vmul.f32 %v13164_v18, %v1661_v12  ;;  %v6354_v38 = vpop.eup %6353  ;;  %v13183_v26 = vld [vmem:[#allocation95_spill] sm:$0xff] }
 0x155   : > { %v1692_v4 = vsel %vm1691_vm10, %v1689_v2, %v1686_v11  ;;  %v13165_v32 = vand.u32 2147483647, %v13164_v18  ;;  %6359 = vlog2.f32 %v1621_v45  ;;  %vm992_vm14 = vcmp.gt.f32.partialorder %v13168_v56, 20.0  ;;  %v13180_v2 = vld [vmem:[#allocation91_spill] sm:$0xff]  ;;  %v13184_v45 = vld [vmem:[#allocation81_spill] sm:$0xff]  ;;  %v13200_v11 = vld [vmem:[#allocation60_spill] sm:$0xff] }
 0x156   : > { %v1828_v30 = vsel %vm996_vm12, %v13162_v34, %v1692_v4  ;;  %v1659_v40 = vmul.f32 0.6931472, %v6352_v47  ;;  %v1635_v49 = vmul.f32 %v13163_v6, %v1634_v50  ;;  %v1652_v8 = vadd.f32 1.0, %v1651_v5  ;;  %v13187_v47 = vld [vmem:[#allocation90_spill] sm:$0xff] }
 0x157   : > { %vm8315_vm13 = vcmp.lt.f32.partialorder %v13165_v32, 0.0004427343  ;;  %2116 = vmatpush1.msra.mxu1 %v1828_v30  ;;  %6361 = vlog2.f32 %v1594_v37  ;;  %v1632_v13 = vmul.f32 0.6931472, %v6354_v38  ;;  %v1654_v24 = vand.u32 2147483647, %v8139_v19 }
 0x158   : > { %v1606_v60 = vmul.f32 -0.5, %v13154_v23  ;;  %v1612_v61 = vadd.f32 1.0, %v13169_v31  ;;  %vm993_vm15 = vcmp.gt.f32.partialorder %v13170_v7, 20.0  ;;  %v1665_v17 = vsel %vm8315_vm13, %v1662_v53, %v1659_v40  ;;  %v13204_v53 = vld [vmem:[#allocation87_spill] sm:$0xff] }
 0x159   : > { %vm1637_vm0 = vcmp.lt.f32.partialorder %v1636_v51, 0.0004427343  ;;  %v1624_v0 = vmul.f32 -0.5, %v13159_v14  ;;  %v1825_v22 = vsel %vm993_vm15, %v13170_v7, %v1665_v17  ;;  %v1597_v41 = vmul.f32 -0.5, %v13160_v54  ;;  %v13192_v17 = vld [vmem:[#allocation64_spill] sm:$0xff] }
 0x15a   : > { %v1638_v57 = vsel %vm1637_vm0, %v1635_v49, %v1632_v13  ;;  %6363 = vlog2.f32 %v1612_v61  ;;  %2117 = vmatprep.subr.mxu1 %v1825_v22  ;;  %v1653_v52 = vmul.f32 %v8139_v19, %v1652_v8  ;;  %v1609_v25 = vand.u32 2147483647, %v13154_v23  ;;  %v6356_v48 = vpop.eup %6355 }
 0x15b   : > { %v1822_v59 = vsel %vm990_vm11, %v13161_v1, %v1638_v57  ;;  %v1567_v44 = vadd.f32 1.0, %v13171_v63  ;;  %vm8336_vm1 = vcmp.lt.f32.partialorder %v1654_v24, 0.0004427343  ;;  %v1607_v39 = vadd.f32 1.0, %v1606_v60  ;;  %v13191_v24 = vld [vmem:[#allocation92_spill] sm:$0xff] }
 0x15c   : > { %1957 = vmatpush1.msra.mxu0 %v1822_v59  ;;  %v1627_v43 = vand.u32 2147483647, %v13159_v14  ;;  %v1585_v46 = vadd.f32 1.0, %v13174_v55  ;;  %v1650_v10 = vmul.f32 0.6931472, %v6356_v48  ;;  %v1615_v19 = vmul.f32 -0.5, %v13169_v31 }
 0x15d   : > { %v1600_v9 = vand.u32 2147483647, %v13160_v54  ;;  %6365 = vlog2.f32 %v1567_v44  ;;  %v1625_v16 = vadd.f32 1.0, %v1624_v0  ;;  %v1598_v3 = vadd.f32 1.0, %v1597_v41  ;;  %v13195_v44 = vld [vmem:[#allocation88_spill] sm:$0xff]  ;;  %v13209_v59 = vld [vmem:[#allocation85_spill] sm:$0xff] }
 0x15e   : > { %6367 = vlog2.f32 %v1585_v46  ;;  %v1558_v35 = vadd.f32 1.0, %v13175_v29  ;;  %vm986_vm2 = vcmp.gt.f32.partialorder %v13176_v36, 20.0  ;;  %v1656_v58 = vsel %vm8336_vm1, %v1653_v52, %v1650_v10  ;;  %v13198_v10 = vld [vmem:[#allocation89_spill] sm:$0xff] }
 0x15f   : > { %vm987_vm3 = vcmp.gt.f32.partialorder %v13177_v21, 20.0  ;;  %vm8349_vm4 = vcmp.lt.f32.partialorder %v1609_v25, 0.0004427343  ;;  %vm989_vm5 = vcmp.gt.f32.partialorder %v13180_v2, 20.0  ;;  %v6358_v42 = vpop.eup %6357  ;;  %v1824_v12 = vsel %vm992_vm14, %v13168_v56, %v1656_v58  ;;  %v13190_v56 = vld [vmem:[#allocation62_spill] sm:$0xff] }
 0x160   : > { %v1608_v15 = vmul.f32 %v13154_v23, %v1607_v39  ;;  %v1618_v50 = vand.u32 2147483647, %v13169_v31  ;;  %6369 = vlog2.f32 %v1558_v35  ;;  %2118 = vmatpush1.msra.mxu1 %v1824_v12  ;;  %v1605_v28 = vmul.f32 0.6931472, %v6358_v42  ;;  %v13203_v23 = vld [vmem:[#allocation86_spill] sm:$0xff] }
 0x161   : > { %vm8359_vm6 = vcmp.lt.f32.partialorder %v1627_v43, 0.0004427343  ;;  %v1616_v5 = vadd.f32 1.0, %v1615_v19  ;;  %v1576_v20 = vadd.f32 1.0, %v13183_v26  ;;  %vm988_vm7 = vcmp.gt.f32.partialorder %v13184_v45, 20.0 }
 0x162   : > { %v1626_v37 = vmul.f32 %v13159_v14, %v1625_v16  ;;  %v1599_v1 = vmul.f32 %v13160_v54, %v1598_v3  ;;  %vm8367_vm8 = vcmp.lt.f32.partialorder %v1600_v9, 0.0004427343  ;;  %v1570_v34 = vmul.f32 -0.5, %v13171_v63  ;;  %v6360_v4 = vpop.eup %6359 }
 0x163   : > { %v1611_v6 = vsel %vm8349_vm4, %v1608_v15, %v1605_v28  ;;  %v1588_v51 = vmul.f32 -0.5, %v13174_v55  ;;  %6371 = vlog2.f32 %v1576_v20  ;;  %v1531_v30 = vadd.f32 1.0, %v13187_v47 }
 0x164   : > { %v6362_v18 = vpop.eup %6361  ;;  %v1819_v14 = vsel %vm987_vm3, %v13177_v21, %v1611_v6  ;;  %v1623_v54 = vmul.f32 0.6931472, %v6360_v4  ;;  %vm8379_vm9 = vcmp.lt.f32.partialorder %v1618_v50, 0.0004427343  ;;  %v1561_v32 = vmul.f32 -0.5, %v13175_v29 }
 0x165   : > { %1958 = vmatprep.subr.mxu0 %v1819_v14  ;;  %v1596_v62 = vmul.f32 0.6931472, %v6362_v18  ;;  %v1617_v38 = vmul.f32 %v13169_v31, %v1616_v5  ;;  %vm983_vm10 = vcmp.gt.f32.partialorder %v13190_v56, 20.0  ;;  %v1573_v40 = vand.u32 2147483647, %v13171_v63 }
 0x166   : > { %6373 = vlog2.f32 %v1531_v30  ;;  %v1629_v49 = vsel %vm8359_vm6, %v1626_v37, %v1623_v54  ;;  %v1571_v8 = vadd.f32 1.0, %v1570_v34  ;;  %v1591_v13 = vand.u32 2147483647, %v13174_v55 }
 0x167   : > { %v1549_v60 = vadd.f32 1.0, %v13191_v24  ;;  %v6364_v61 = vpop.eup %6363  ;;  %v1821_v7 = vsel %vm989_vm5, %v13180_v2, %v1629_v49  ;;  %v1602_v31 = vsel %vm8367_vm8, %v1599_v1, %v1596_v62  ;;  %vm985_vm11 = vcmp.gt.f32.partialorder %v13192_v17, 20.0  ;;  %v13205_v62 = vld [vmem:[#allocation50_spill] sm:$0xff] }
 0x168   : > { %v1589_v0 = vadd.f32 1.0, %v1588_v51  ;;  %2119 = vmatprep.subr.mxu1 %v1821_v7  ;;  %v1818_v22 = vsel %vm986_vm2, %v13176_v36, %v1602_v31  ;;  %v1614_v57 = vmul.f32 0.6931472, %v6364_v61  ;;  %v1562_v41 = vadd.f32 1.0, %v1561_v32 }
 0x169   : > { %6375 = vlog2.f32 %v1549_v60  ;;  %1959 = vmatpush1.msra.mxu0 %v1818_v22  ;;  %vm8400_vm12 = vcmp.lt.f32.partialorder %v1573_v40, 0.0004427343  ;;  %v1579_v52 = vmul.f32 -0.5, %v13183_v26  ;;  %v1534_v25 = vmul.f32 -0.5, %v13187_v47  ;;  %v13207_v60 = vld [vmem:[#allocation54_spill] sm:$0xff] }
 0x16a   : > { %v1522_v48 = vadd.f32 1.0, %v13195_v44  ;;  %v6366_v27 = vpop.eup %6365  ;;  %v1620_v39 = vsel %vm8379_vm9, %v1617_v38, %v1614_v57  ;;  %v1572_v43 = vmul.f32 %v13171_v63, %v1571_v8  ;;  %vm8410_vm13 = vcmp.lt.f32.partialorder %v1591_v13, 0.0004427343  ;;  %v13208_v57 = vld [vmem:[#allocation52_spill] sm:$0xff] }
 0x16b   : > { %v1540_v9 = vadd.f32 1.0, %v13198_v10  ;;  %v6368_v19 = vpop.eup %6367  ;;  %v1820_v16 = vsel %vm988_vm7, %v13184_v45, %v1620_v39  ;;  %v1569_v3 = vmul.f32 0.6931472, %v6366_v27  ;;  %v1564_v35 = vand.u32 2147483647, %v13175_v29 }
 0x16c   : > { %6377 = vlog2.f32 %v1522_v48  ;;  %2120 = vmatpush1.msra.mxu1 %v1820_v16  ;;  %v1587_v36 = vmul.f32 0.6931472, %v6368_v19  ;;  %v1590_v58 = vmul.f32 %v13174_v55, %v1589_v0  ;;  %v1563_v63 = vmul.f32 %v13175_v29, %v1562_v41  ;;  %v13199_v29 = vld [vmem:[#allocation58_spill] sm:$0xff]  ;;  %v13210_v48 = vld [vmem:[#allocation56_spill] sm:$0xff] }
 0x16d   : > { %v1582_v21 = vand.u32 2147483647, %v13183_v26  ;;  %v6370_v33 = vpop.eup %6369  ;;  %v1575_v2 = vsel %vm8400_vm12, %v1572_v43, %v1569_v3  ;;  %v1580_v42 = vadd.f32 1.0, %v1579_v52  ;;  %v1535_v12 = vadd.f32 1.0, %v1534_v25 }
 0x16e   : > { %6379 = vlog2.f32 %v1540_v9  ;;  %v1815_v15 = vsel %vm983_vm10, %v13190_v56, %v1575_v2  ;;  %v1593_v50 = vsel %vm8410_vm13, %v1590_v58, %v1587_v36  ;;  %v1560_v28 = vmul.f32 0.6931472, %v6370_v33 }
 0x16f   : > { %v1552_v55 = vmul.f32 -0.5, %v13191_v24  ;;  %vm982_vm14 = vcmp.gt.f32.partialorder %v13199_v29, 20.0  ;;  %vm984_vm15 = vcmp.gt.f32.partialorder %v13200_v11, 20.0  ;;  %1960 = vmatprep.subr.mxu0 %v1815_v15  ;;  %v1817_v5 = vsel %vm985_vm11, %v13192_v17, %v1593_v50  ;;  %v13213_v50 = vld [vmem:[#allocation83_spill] sm:$0xff] }
 0x170   : > { %vm1565_vm0 = vcmp.lt.f32.partialorder %v1564_v35, 0.0004427343  ;;  %v6372_v20 = vpop.eup %6371  ;;  %2121 = vmatprep.subr.mxu1 %v1817_v5  ;;  %vm8435_vm1 = vcmp.lt.f32.partialorder %v1582_v21, 0.0004427343  ;;  %v1537_v1 = vand.u32 2147483647, %v13187_v47  ;;  %v1581_v51 = vmul.f32 %v13183_v26, %v1580_v42 }
 0x171   : > { %v1566_v45 = vsel %vm1565_vm0, %v1563_v63, %v1560_v28  ;;  %v1495_v34 = vadd.f32 1.0, %v13203_v23  ;;  %v1578_v6 = vmul.f32 0.6931472, %v6372_v20  ;;  %v1525_v30 = vmul.f32 -0.5, %v13195_v44  ;;  %v13211_v35 = vld [vmem:[#allocation80_spill] sm:$0xff]  ;;  %v13217_v5 = vld [vmem:[#allocation77_spill] sm:$0xff] }
 0x172   : > { %v1814_v4 = vsel %vm982_vm14, %v13199_v29, %v1566_v45  ;;  %v1536_v14 = vmul.f32 %v13187_v47, %v1535_v12  ;;  %v1553_v54 = vadd.f32 1.0, %v1552_v55  ;;  %v1513_v32 = vadd.f32 1.0, %v13204_v53  ;;  %v13206_v47 = vld [vmem:[#allocation84_spill] sm:$0xff]  ;;  %v13212_v12 = vld [vmem:[#allocation46_spill] sm:$0xff] }
 0x173   : > { %v6374_v18 = vpop.eup %6373  ;;  %1961 = vmatpush1.msra.mxu0 %v1814_v4  ;;  %6381 = vlog2.f32 %v1495_v34  ;;  %vm978_vm2 = vcmp.gt.f32.partialorder %v13205_v62, 20.0  ;;  %v1584_v38 = vsel %vm8435_vm1, %v1581_v51, %v1578_v6  ;;  %v1555_v40 = vand.u32 2147483647, %v13191_v24  ;;  %v13214_v55 = vld [vmem:[#allocation42_spill] sm:$0xff]  ;;  %v13218_v51 = vld [vmem:[#allocation79_spill] sm:$0xff] }
 0x174   : > { %v1533_v56 = vmul.f32 0.6931472, %v6374_v18  ;;  %v1543_v26 = vmul.f32 -0.5, %v13198_v10  ;;  %v1816_v49 = vsel %vm984_vm15, %v13200_v11, %v1584_v38  ;;  %vm1538_vm3 = vcmp.lt.f32.partialorder %v1537_v1, 0.0004427343 }
 0x175   : > { %6383 = vlog2.f32 %v1513_v32  ;;  %v1486_v8 = vadd.f32 1.0, %v13206_v47  ;;  %2122 = vmatpush1.msra.mxu1 %v1816_v49  ;;  %vm979_vm4 = vcmp.gt.f32.partialorder %v13207_v60, 20.0  ;;  %v1526_v7 = vadd.f32 1.0, %v1525_v30 }
 0x176   : > { %v6376_v13 = vpop.eup %6375  ;;  %v1539_v61 = vsel %vm1538_vm3, %v1536_v14, %v1533_v56  ;;  %v1528_v31 = vand.u32 2147483647, %v13195_v44  ;;  %v1554_v22 = vmul.f32 %v13191_v24, %v1553_v54  ;;  %vm980_vm5 = vcmp.gt.f32.partialorder %v13208_v57, 20.0  ;;  %v13219_v14 = vld [vmem:[#allocation44_spill] sm:$0xff] }
 0x177   : > { %v1811_v17 = vsel %vm979_vm4, %v13207_v60, %v1539_v61  ;;  %v1551_v0 = vmul.f32 0.6931472, %v6376_v13  ;;  %6385 = vlog2.f32 %v1486_v8  ;;  %vm1556_vm6 = vcmp.lt.f32.partialorder %v1555_v40, 0.0004427343  ;;  %v13220_v54 = vld [vmem:[#allocation48_spill] sm:$0xff] }
 0x178   : > { %1962 = vmatprep.subr.mxu0 %v1811_v17  ;;  %v1544_v41 = vadd.f32 1.0, %v1543_v26  ;;  %v1504_v52 = vadd.f32 1.0, %v13209_v59  ;;  %vm981_vm7 = vcmp.gt.f32.partialorder %v13210_v48, 20.0  ;;  %v1546_v39 = vand.u32 2147483647, %v13198_v10  ;;  %v13226_v17 = vld [vmem:[#allocation73_spill] sm:$0xff] }
 0x179   : > { %v6378_v25 = vpop.eup %6377  ;;  %v1557_v27 = vsel %vm1556_vm6, %v1554_v22, %v1551_v0  ;;  %v1498_v43 = vmul.f32 -0.5, %v13203_v23  ;;  %v1527_v24 = vmul.f32 %v13195_v44, %v1526_v7  ;;  %vm1529_vm8 = vcmp.lt.f32.partialorder %v1528_v31, 0.0004427343  ;;  %v13225_v31 = vld [vmem:[#allocation38_spill] sm:$0xff] }
 0x17a   : > { %v1813_v46 = vsel %vm981_vm7, %v13210_v48, %v1557_v27  ;;  %v1524_v9 = vmul.f32 0.6931472, %v6378_v25  ;;  %6387 = vlog2.f32 %v1504_v52  ;;  %v1501_v16 = vand.u32 2147483647, %v13203_v23  ;;  %v13229_v27 = vld [vmem:[#allocation74_spill] sm:$0xff] }
 0x17b   : > { %v6380_v19 = vpop.eup %6379  ;;  %2123 = vmatprep.subr.mxu1 %v1813_v46  ;;  %v1516_v3 = vmul.f32 -0.5, %v13204_v53  ;;  %v1459_v36 = vadd.f32 1.0, %v13211_v35  ;;  %v1545_v21 = vmul.f32 %v13198_v10, %v1544_v41  ;;  %v1489_v33 = vmul.f32 -0.5, %v13206_v47 }
 0x17c   : > { %v1530_v58 = vsel %vm1529_vm8, %v1527_v24, %v1524_v9  ;;  %v1542_v63 = vmul.f32 0.6931472, %v6380_v19  ;;  %vm1547_vm9 = vcmp.lt.f32.partialorder %v1546_v39, 0.0004427343  ;;  %v1499_v2 = vadd.f32 1.0, %v1498_v43  ;;  %v13230_v19 = vld [vmem:[#allocation34_spill] sm:$0xff] }
 0x17d   : > { %v1810_v44 = vsel %vm978_vm2, %v13205_v62, %v1530_v58  ;;  %6389 = vlog2.f32 %v1459_v36  ;;  %vm975_vm10 = vcmp.gt.f32.partialorder %v13212_v12, 20.0  ;;  %v1519_v15 = vand.u32 2147483647, %v13204_v53  ;;  %v13231_v36 = vld [vmem:[#allocation71_spill] sm:$0xff] }
 0x17e   : > { %1963 = vmatpush1.msra.mxu0 %v1810_v44  ;;  %v1548_v42 = vsel %vm1547_vm9, %v1545_v21, %v1542_v63  ;;  %v1477_v28 = vadd.f32 1.0, %v13213_v50  ;;  %vm974_vm11 = vcmp.gt.f32.partialorder %v13214_v55, 20.0  ;;  %vm8481_vm12 = vcmp.lt.f32.partialorder %v1501_v16, 0.0004427343  ;;  %v13232_v44 = vld [vmem:[#allocation40_spill] sm:$0xff] }
 0x17f   : > { %v1812_v10 = vsel %vm980_vm5, %v13208_v57, %v1548_v42  ;;  %v1517_v11 = vadd.f32 1.0, %v1516_v3  ;;  %v1450_v20 = vadd.f32 1.0, %v13217_v5  ;;  %v1490_v37 = vadd.f32 1.0, %v1489_v33 }
 0x180   : > { %v6382_v45 = vpop.eup %6381  ;;  %2124 = vmatpush1.msra.mxu1 %v1812_v10  ;;  %v1492_v1 = vand.u32 2147483647, %v13206_v47  ;;  %v1507_v34 = vmul.f32 -0.5, %v13209_v59  ;;  %6391 = vlog2.f32 %v1477_v28  ;;  %v1500_v6 = vmul.f32 %v13203_v23, %v1499_v2  ;;  %v13233_v2 = vld [vmem:[#allocation36_spill] sm:$0xff] }
 0x181   : > { %v1497_v4 = vmul.f32 0.6931472, %v6382_v45  ;;  %6393 = vlog2.f32 %v1450_v20  ;;  %v1468_v30 = vadd.f32 1.0, %v13218_v51  ;;  %vm976_vm13 = vcmp.gt.f32.partialorder %v13219_v14, 20.0  ;;  %v13234_v10 = vld [vmem:[#allocation72_spill] sm:$0xff] }
 0x182   : > { %v6384_v18 = vpop.eup %6383  ;;  %vm977_vm14 = vcmp.gt.f32.partialorder %v13220_v54, 20.0  ;;  %vm8492_vm15 = vcmp.lt.f32.partialorder %v1519_v15, 0.0004427343  ;;  %v1510_v62 = vand.u32 2147483647, %v13209_v59  ;;  %v1462_v38 = vmul.f32 -0.5, %v13211_v35 }
 0x183   : > { %v1503_v56 = vsel %vm8481_vm12, %v1500_v6, %v1497_v4  ;;  %v1515_v23 = vmul.f32 0.6931472, %v6384_v18  ;;  %v1518_v40 = vmul.f32 %v13204_v53, %v1517_v11  ;;  %6395 = vlog2.f32 %v1468_v30 }
 0x184   : > { %v6386_v26 = vpop.eup %6385  ;;  %v1807_v49 = vsel %vm975_vm10, %v13212_v12, %v1503_v56  ;;  %v1491_v8 = vmul.f32 %v13206_v47, %v1490_v37  ;;  %vm8505_vm0 = vcmp.lt.f32.partialorder %v1492_v1, 0.0004427343  ;;  %v1508_v60 = vadd.f32 1.0, %v1507_v34 }
 0x185   : > { %1964 = vmatprep.subr.mxu0 %v1807_v49  ;;  %v1521_v61 = vsel %vm8492_vm15, %v1518_v40, %v1515_v23  ;;  %v1488_v7 = vmul.f32 0.6931472, %v6386_v26  ;;  %vm971_vm1 = vcmp.gt.f32.partialorder %v13225_v31, 20.0  ;;  %v1480_v53 = vmul.f32 -0.5, %v13213_v50 }
 0x186   : > { %v1423_v0 = vadd.f32 1.0, %v13226_v17  ;;  %v1809_v47 = vsel %vm977_vm14, %v13220_v54, %v1521_v61  ;;  %vm8517_vm2 = vcmp.lt.f32.partialorder %v1510_v62, 0.0004427343  ;;  %v1463_v57 = vadd.f32 1.0, %v1462_v38  ;;  %v13239_v38 = vld [vmem:[#allocation68_spill] sm:$0xff] }
 0x187   : > { %v1465_v41 = vand.u32 2147483647, %v13211_v35  ;;  %v6388_v52 = vpop.eup %6387  ;;  %2125 = vmatprep.subr.mxu1 %v1809_v47  ;;  %v1494_v25 = vsel %vm8505_vm0, %v1491_v8, %v1488_v7  ;;  %v1453_v48 = vmul.f32 -0.5, %v13217_v5  ;;  %v1441_v39 = vadd.f32 1.0, %v13229_v27  ;;  %v13241_v7 = vld [vmem:[#allocation69_spill] sm:$0xff] }
 0x188   : > { %6397 = vlog2.f32 %v1423_v0  ;;  %v1806_v43 = vsel %vm974_vm11, %v13214_v55, %v1494_v25  ;;  %v1506_v46 = vmul.f32 0.6931472, %v6388_v52  ;;  %v1509_v9 = vmul.f32 %v13209_v59, %v1508_v60  ;;  %v13240_v60 = vld [vmem:[#allocation30_spill] sm:$0xff] }
 0x189   : > { %v1471_v24 = vmul.f32 -0.5, %v13218_v51  ;;  %vm970_vm3 = vcmp.gt.f32.partialorder %v13230_v19, 20.0  ;;  %1965 = vmatpush1.msra.mxu0 %v1806_v43  ;;  %v1481_v16 = vadd.f32 1.0, %v1480_v53  ;;  %v1483_v3 = vand.u32 2147483647, %v13213_v50  ;;  %v13242_v0 = vld [vmem:[#allocation26_spill] sm:$0xff] }
 0x18a   : > { %6399 = vlog2.f32 %v1441_v39  ;;  %v1414_v58 = vadd.f32 1.0, %v13231_v36  ;;  %v6390_v63 = vpop.eup %6389  ;;  %v1512_v21 = vsel %vm8517_vm2, %v1509_v9, %v1506_v46  ;;  %v1464_v33 = vmul.f32 %v13211_v35, %v1463_v57  ;;  %v13246_v46 = vld [vmem:[#allocation28_spill] sm:$0xff] }
 0x18b   : > { %vm973_vm4 = vcmp.gt.f32.partialorder %v13232_v44, 20.0  ;;  %v1456_v59 = vand.u32 2147483647, %v13217_v5  ;;  %vm972_vm5 = vcmp.gt.f32.partialorder %v13233_v2, 20.0  ;;  %v1808_v42 = vsel %vm976_vm13, %v13219_v14, %v1512_v21 }
 0x18c   : > { %v1461_v12 = vmul.f32 0.6931472, %v6390_v63  ;;  %v1454_v15 = vadd.f32 1.0, %v1453_v48  ;;  %v1474_v28 = vand.u32 2147483647, %v13218_v51  ;;  %2126 = vmatpush1.msra.mxu1 %v1808_v42  ;;  %v1472_v55 = vadd.f32 1.0, %v1471_v24 }
 0x18d   : > { %vm1466_vm6 = vcmp.lt.f32.partialorder %v1465_v41, 0.0004427343  ;;  %6401 = vlog2.f32 %v1414_v58  ;;  %v1432_v35 = vadd.f32 1.0, %v13234_v10  ;;  %v6392_v29 = vpop.eup %6391  ;;  %v1482_v20 = vmul.f32 %v13213_v50, %v1481_v16  ;;  %v13245_v41 = vld [vmem:[#allocation66_spill] sm:$0xff] }
 0x18e   : > { %v1467_v11 = vsel %vm1466_vm6, %v1464_v33, %v1461_v12  ;;  %vm8546_vm7 = vcmp.lt.f32.partialorder %v1483_v3, 0.0004427343  ;;  %v1426_v37 = vmul.f32 -0.5, %v13226_v17  ;;  %v6394_v1 = vpop.eup %6393  ;;  %v1479_v4 = vmul.f32 0.6931472, %v6392_v29  ;;  %v13255_v50 = vld [vmem:[#allocation22_spill] sm:$0xff] }
 0x18f   : > { %v1803_v34 = vsel %vm971_vm1, %v13225_v31, %v1467_v11  ;;  %v1444_v6 = vmul.f32 -0.5, %v13229_v27  ;;  %6403 = vlog2.f32 %v1432_v35  ;;  %v1452_v30 = vmul.f32 0.6931472, %v6394_v1 }
 0x190   : > { %1966 = vmatprep.subr.mxu0 %v1803_v34  ;;  %v1455_v18 = vmul.f32 %v13217_v5, %v1454_v15  ;;  %vm1457_vm8 = vcmp.lt.f32.partialorder %v1456_v59, 0.0004427343  ;;  %vm8556_vm9 = vcmp.lt.f32.partialorder %v1474_v28, 0.0004427343  ;;  %v6396_v14 = vpop.eup %6395  ;;  %v1485_v54 = vsel %vm8546_vm7, %v1482_v20, %v1479_v4 }
 0x191   : > { %v1473_v32 = vmul.f32 %v13218_v51, %v1472_v55  ;;  %v1429_v62 = vand.u32 2147483647, %v13226_v17  ;;  %v1387_v56 = vadd.f32 1.0, %v13239_v38  ;;  %v1805_v23 = vsel %vm973_vm4, %v13232_v44, %v1485_v54  ;;  %v13248_v44 = vld [vmem:[#allocation32_spill] sm:$0xff]  ;;  %v13251_v55 = vld [vmem:[#allocation63_spill] sm:$0xff] }
 0x192   : > { %v1458_v5 = vsel %vm1457_vm8, %v1455_v18, %v1452_v30  ;;  %v1470_v40 = vmul.f32 0.6931472, %v6396_v14  ;;  %v1427_v26 = vadd.f32 1.0, %v1426_v37  ;;  %2127 = vmatprep.subr.mxu1 %v1805_v23  ;;  %v1445_v8 = vadd.f32 1.0, %v1444_v6  ;;  %v13254_v30 = vld [vmem:[#allocation65_spill] sm:$0xff] }
 0x193   : > { %v1802_v49 = vsel %vm970_vm3, %v13230_v19, %v1458_v5  ;;  %v1417_v13 = vmul.f32 -0.5, %v13231_v36  ;;  %6405 = vlog2.f32 %v1387_v56  ;;  %vm967_vm10 = vcmp.gt.f32.partialorder %v13240_v60, 20.0  ;;  %v13247_v19 = vld [vmem:[#allocation67_spill] sm:$0xff] }
 0x194   : > { %1967 = vmatpush1.msra.mxu0 %v1802_v49  ;;  %v1476_v51 = vsel %vm8556_vm9, %v1473_v32, %v1470_v40  ;;  %v1435_v61 = vmul.f32 -0.5, %v13234_v10  ;;  %v1405_v31 = vadd.f32 1.0, %v13241_v7  ;;  %vm966_vm11 = vcmp.gt.f32.partialorder %v13242_v0, 20.0  ;;  %v13257_v40 = vld [vmem:[#allocation24_spill] sm:$0xff]  ;;  %v13258_v49 = vld [vmem:[#allocation23_spill] sm:$0xff] }
 0x195   : > { %v6398_v53 = vpop.eup %6397  ;;  %v1804_v47 = vsel %vm972_vm5, %v13233_v2, %v1476_v51  ;;  %vm8581_vm12 = vcmp.lt.f32.partialorder %v1429_v62, 0.0004427343  ;;  %v1447_v57 = vand.u32 2147483647, %v13229_v27  ;;  %v1378_v52 = vadd.f32 1.0, %v13245_v41  ;;  %v13256_v62 = vld [vmem:[#allocation59_spill] sm:$0xff] }
 0x196   : > { %2128 = vmatpush1.msra.mxu1 %v1804_v47  ;;  %v1425_v25 = vmul.f32 0.6931472, %v6398_v53  ;;  %v1428_v48 = vmul.f32 %v13226_v17, %v1427_v26  ;;  %v1420_v39 = vand.u32 2147483647, %v13231_v36  ;;  %6407 = vlog2.f32 %v1405_v31  ;;  %v13259_v51 = vld [vmem:[#allocation25_spill] sm:$0xff]  ;;  %v13267_v2 = vld [vmem:[#allocation18_spill] sm:$0xff] }
 0x197   : > { %v6400_v43 = vpop.eup %6399  ;;  %vm968_vm13 = vcmp.gt.f32.partialorder %v13246_v46, 20.0  ;;  %v1446_v9 = vmul.f32 %v13229_v27, %v1445_v8  ;;  %v1418_v24 = vadd.f32 1.0, %v1417_v13  ;;  %6409 = vlog2.f32 %v1378_v52  ;;  %v13262_v31 = vld [vmem:[#allocation61_spill] sm:$0xff] }
 0x198   : > { %v1396_v16 = vadd.f32 1.0, %v13247_v19  ;;  %v1431_v3 = vsel %vm8581_vm12, %v1428_v48, %v1425_v25  ;;  %v1443_v58 = vmul.f32 0.6931472, %v6400_v43  ;;  %v1436_v63 = vadd.f32 1.0, %v1435_v61 }
 0x199   : > { %v1438_v21 = vand.u32 2147483647, %v13234_v10  ;;  %v1799_v17 = vsel %vm967_vm10, %v13240_v60, %v1431_v3  ;;  %vm1448_vm14 = vcmp.lt.f32.partialorder %v1447_v57, 0.0004427343  ;;  %v1390_v33 = vmul.f32 -0.5, %v13239_v38  ;;  %v13275_v60 = vld [vmem:[#allocation47_spill] sm:$0xff] }
 0x19a   : > { %6411 = vlog2.f32 %v1396_v16  ;;  %v6402_v27 = vpop.eup %6401  ;;  %1968 = vmatprep.subr.mxu0 %v1799_v17  ;;  %vm969_vm15 = vcmp.gt.f32.partialorder %v13248_v44, 20.0  ;;  %v1449_v59 = vsel %vm1448_vm14, %v1446_v9, %v1443_v58  ;;  %vm8600_vm0 = vcmp.lt.f32.partialorder %v1420_v39, 0.0004427343  ;;  %v13265_v9 = vld [vmem:[#allocation20_spill] sm:$0xff] }
 0x19b   : > { %v1408_v42 = vmul.f32 -0.5, %v13241_v7  ;;  %v1801_v12 = vsel %vm969_vm15, %v13248_v44, %v1449_v59  ;;  %v1416_v15 = vmul.f32 0.6931472, %v6402_v27  ;;  %v1419_v28 = vmul.f32 %v13231_v36, %v1418_v24 }
 0x19c   : > { %v1351_v35 = vadd.f32 1.0, %v13251_v55  ;;  %v6404_v29 = vpop.eup %6403  ;;  %2129 = vmatprep.subr.mxu1 %v1801_v12  ;;  %v1437_v11 = vmul.f32 %v13234_v10, %v1436_v63  ;;  %vm8609_vm1 = vcmp.lt.f32.partialorder %v1438_v21, 0.0004427343  ;;  %v1393_v45 = vand.u32 2147483647, %v13239_v38  ;;  %v13266_v63 = vld [vmem:[#allocation55_spill] sm:$0xff] }
 0x19d   : > { %v1381_v37 = vmul.f32 -0.5, %v13245_v41  ;;  %v1422_v1 = vsel %vm8600_vm0, %v1419_v28, %v1416_v15  ;;  %v1434_v34 = vmul.f32 0.6931472, %v6404_v29  ;;  %v1391_v4 = vadd.f32 1.0, %v1390_v33  ;;  %v13268_v28 = vld [vmem:[#allocation57_spill] sm:$0xff] }
 0x19e   : > { %6413 = vlog2.f32 %v1351_v35  ;;  %v1798_v36 = vsel %vm966_vm11, %v13242_v0, %v1422_v1  ;;  %v1409_v6 = vadd.f32 1.0, %v1408_v42  ;;  %v1411_v10 = vand.u32 2147483647, %v13241_v7 }
 0x19f   : > { %v1369_v18 = vadd.f32 1.0, %v13254_v30  ;;  %vm962_vm2 = vcmp.gt.f32.partialorder %v13255_v50, 20.0  ;;  %1969 = vmatpush1.msra.mxu0 %v1798_v36  ;;  %v1440_v14 = vsel %vm8609_vm1, %v1437_v11, %v1434_v34  ;;  %v1384_v54 = vand.u32 2147483647, %v13245_v41 }
 0x1a0   : > { %v1399_v32 = vmul.f32 -0.5, %v13247_v19  ;;  %v1342_v56 = vadd.f32 1.0, %v13256_v62  ;;  %v6406_v23 = vpop.eup %6405  ;;  %v1800_v5 = vsel %vm968_vm13, %v13246_v46, %v1440_v14  ;;  %vm963_vm3 = vcmp.gt.f32.partialorder %v13257_v40, 20.0  ;;  %v13272_v14 = vld [vmem:[#allocation21_spill] sm:$0xff] }
 0x1a1   : > { %v1382_v26 = vadd.f32 1.0, %v1381_v37  ;;  %6415 = vlog2.f32 %v1369_v18  ;;  %vm964_vm4 = vcmp.gt.f32.partialorder %v13258_v49, 20.0  ;;  %2130 = vmatpush1.msra.mxu1 %v1800_v5  ;;  %v1389_v8 = vmul.f32 0.6931472, %v6406_v23 }
 0x1a2   : > { %v1392_v13 = vmul.f32 %v13239_v38, %v1391_v4  ;;  %vm1394_vm5 = vcmp.lt.f32.partialorder %v1393_v45, 0.0004427343  ;;  %6417 = vlog2.f32 %v1342_v56  ;;  %vm965_vm6 = vcmp.gt.f32.partialorder %v13259_v51, 20.0  ;;  %v13269_v45 = vld [vmem:[#allocation51_spill] sm:$0xff] }
 0x1a3   : > { %vm8635_vm7 = vcmp.lt.f32.partialorder %v1411_v10, 0.0004427343  ;;  %v1354_v61 = vmul.f32 -0.5, %v13251_v55  ;;  %v1360_v53 = vadd.f32 1.0, %v13262_v31  ;;  %v6408_v0 = vpop.eup %6407  ;;  %v1410_v22 = vmul.f32 %v13241_v7, %v1409_v6  ;;  %v13270_v6 = vld [vmem:[#allocation53_spill] sm:$0xff] }
 0x1a4   : > { %v1395_v47 = vsel %vm1394_vm5, %v1392_v13, %v1389_v8  ;;  %vm8642_vm8 = vcmp.lt.f32.partialorder %v1384_v54, 0.0004427343  ;;  %v1400_v38 = vadd.f32 1.0, %v1399_v32  ;;  %v6410_v52 = vpop.eup %6409  ;;  %v1407_v48 = vmul.f32 0.6931472, %v6408_v0 }
 0x1a5   : > { %v1795_v25 = vsel %vm963_vm3, %v13257_v40, %v1395_v47  ;;  %v1383_v39 = vmul.f32 %v13245_v41, %v1382_v26  ;;  %v1402_v43 = vand.u32 2147483647, %v13247_v19  ;;  %v1380_v46 = vmul.f32 0.6931472, %v6410_v52 }
 0x1a6   : > { %1970 = vmatprep.subr.mxu0 %v1795_v25  ;;  %vm959_vm9 = vcmp.gt.f32.partialorder %v13265_v9, 20.0  ;;  %v1372_v7 = vmul.f32 -0.5, %v13254_v30  ;;  %6419 = vlog2.f32 %v1360_v53  ;;  %v1413_v16 = vsel %vm8635_vm7, %v1410_v22, %v1407_v48 }
 0x1a7   : > { %v6412_v24 = vpop.eup %6411  ;;  %v1355_v3 = vadd.f32 1.0, %v1354_v61  ;;  %v1345_v58 = vmul.f32 -0.5, %v13256_v62  ;;  %v1315_v21 = vadd.f32 1.0, %v13266_v63  ;;  %v1797_v41 = vsel %vm965_vm6, %v13259_v51, %v1413_v16 }
 0x1a8   : > { %v1386_v17 = vsel %vm8642_vm8, %v1383_v39, %v1380_v46  ;;  %v1398_v33 = vmul.f32 0.6931472, %v6412_v24  ;;  %v1401_v27 = vmul.f32 %v13247_v19, %v1400_v38  ;;  %2131 = vmatprep.subr.mxu1 %v1797_v41  ;;  %vm1403_vm10 = vcmp.lt.f32.partialorder %v1402_v43, 0.0004427343  ;;  %v13278_v43 = vld [vmem:[#allocation49_spill] sm:$0xff] }
 0x1a9   : > { %v1794_v44 = vsel %vm962_vm2, %v13255_v50, %v1386_v17  ;;  %v1357_v59 = vand.u32 2147483647, %v13251_v55  ;;  %6421 = vlog2.f32 %v1315_v21  ;;  %vm958_vm11 = vcmp.gt.f32.partialorder %v13267_v2, 20.0  ;;  %v13271_v50 = vld [vmem:[#allocation19_spill] sm:$0xff] }
 0x1aa   : > { %1971 = vmatpush1.msra.mxu0 %v1794_v44  ;;  %v1404_v42 = vsel %vm1403_vm10, %v1401_v27, %v1398_v33  ;;  %v1373_v12 = vadd.f32 1.0, %v1372_v7  ;;  %v1375_v15 = vand.u32 2147483647, %v13254_v30  ;;  %v1333_v35 = vadd.f32 1.0, %v13268_v28  ;;  %v13281_v44 = vld [vmem:[#allocation16_spill] sm:$0xff] }
 0x1ab   : > { %v6414_v29 = vpop.eup %6413  ;;  %v1796_v19 = vsel %vm964_vm4, %v13258_v49, %v1404_v42  ;;  %v1356_v11 = vmul.f32 %v13251_v55, %v1355_v3  ;;  %v1346_v20 = vadd.f32 1.0, %v1345_v58  ;;  %v1306_v37 = vadd.f32 1.0, %v13269_v45  ;;  %v13280_v3 = vld [vmem:[#allocation43_spill] sm:$0xff] }
 0x1ac   : > { %2132 = vmatpush1.msra.mxu1 %v1796_v19  ;;  %v1353_v1 = vmul.f32 0.6931472, %v6414_v29  ;;  %v1363_v34 = vmul.f32 -0.5, %v13262_v31  ;;  %v1318_v4 = vmul.f32 -0.5, %v13266_v63  ;;  %6423 = vlog2.f32 %v1333_v35 }
 0x1ad   : > { %vm1358_vm12 = vcmp.lt.f32.partialorder %v1357_v59, 0.0004427343  ;;  %v1348_v36 = vand.u32 2147483647, %v13256_v62  ;;  %6425 = vlog2.f32 %v1306_v37  ;;  %v1324_v10 = vadd.f32 1.0, %v13270_v6  ;;  %v13282_v59 = vld [vmem:[#allocation17_spill] sm:$0xff] }
 0x1ae   : > { %v6416_v18 = vpop.eup %6415  ;;  %vm960_vm13 = vcmp.gt.f32.partialorder %v13271_v50, 20.0  ;;  %v1359_v55 = vsel %vm1358_vm12, %v1356_v11, %v1353_v1  ;;  %vm961_vm14 = vcmp.gt.f32.partialorder %v13272_v14, 20.0  ;;  %v1374_v54 = vmul.f32 %v13254_v30, %v1373_v12 }
 0x1af   : > { %vm8682_vm15 = vcmp.lt.f32.partialorder %v1375_v15, 0.0004427343  ;;  %v6418_v56 = vpop.eup %6417  ;;  %v1791_v23 = vsel %vm959_vm9, %v13265_v9, %v1359_v55  ;;  %v1371_v5 = vmul.f32 0.6931472, %v6416_v18  ;;  %v1366_v40 = vand.u32 2147483647, %v13262_v31 }
 0x1b0   : > { %6427 = vlog2.f32 %v1324_v10  ;;  %1972 = vmatprep.subr.mxu0 %v1791_v23  ;;  %v1344_v26 = vmul.f32 0.6931472, %v6418_v56  ;;  %v1347_v49 = vmul.f32 %v13256_v62, %v1346_v20  ;;  %v1364_v8 = vadd.f32 1.0, %v1363_v34  ;;  %v13279_v9 = vld [vmem:[#allocation14_spill] sm:$0xff]  ;;  %v13289_v23 = vld [vmem:[#allocation15_spill] sm:$0xff] }
 0x1b1   : > { %v1319_v13 = vadd.f32 1.0, %v1318_v4  ;;  %v1377_v30 = vsel %vm8682_vm15, %v1374_v54, %v1371_v5  ;;  %vm1349_vm0 = vcmp.lt.f32.partialorder %v1348_v36, 0.0004427343  ;;  %v1336_v51 = vmul.f32 -0.5, %v13268_v28 }
 0x1b2   : > { %v1279_v61 = vadd.f32 1.0, %v13275_v60  ;;  %v1793_v53 = vsel %vm961_vm14, %v13272_v14, %v1377_v30  ;;  %v1350_v0 = vsel %vm1349_vm0, %v1347_v49, %v1344_v26  ;;  %v1309_v47 = vmul.f32 -0.5, %v13269_v45  ;;  %v13288_v14 = vld [vmem:[#allocation39_spill] sm:$0xff] }
 0x1b3   : > { %v1327_v22 = vmul.f32 -0.5, %v13270_v6  ;;  %v6420_v62 = vpop.eup %6419  ;;  %2133 = vmatprep.subr.mxu1 %v1793_v53  ;;  %v1790_v57 = vsel %vm958_vm11, %v13267_v2, %v1350_v0  ;;  %vm8703_vm1 = vcmp.lt.f32.partialorder %v1366_v40, 0.0004427343  ;;  %v1321_v52 = vand.u32 2147483647, %v13266_v63  ;;  %v13283_v2 = vld [vmem:[#allocation45_spill] sm:$0xff] }
 0x1b4   : > { %6429 = vlog2.f32 %v1279_v61  ;;  %1973 = vmatpush1.msra.mxu0 %v1790_v57  ;;  %v1362_v25 = vmul.f32 0.6931472, %v6420_v62  ;;  %v1365_v48 = vmul.f32 %v13262_v31, %v1364_v8  ;;  %v1320_v39 = vmul.f32 %v13266_v63, %v1319_v13  ;;  %v13290_v40 = vld [vmem:[#allocation10_spill] sm:$0xff]  ;;  %v13291_v13 = vld [vmem:[#allocation41_spill] sm:$0xff] }
 0x1b5   : > { %v1297_v46 = vadd.f32 1.0, %v13278_v43  ;;  %vm954_vm2 = vcmp.gt.f32.partialorder %v13279_v9, 20.0  ;;  %v1337_v7 = vadd.f32 1.0, %v1336_v51  ;;  %v1339_v24 = vand.u32 2147483647, %v13268_v28 }
 0x1b6   : > { %v1312_v16 = vand.u32 2147483647, %v13269_v45  ;;  %v1270_v58 = vadd.f32 1.0, %v13280_v3  ;;  %v6422_v21 = vpop.eup %6421  ;;  %v1368_v41 = vsel %vm8703_vm1, %v1365_v48, %v1362_v25  ;;  %v1310_v17 = vadd.f32 1.0, %v1309_v47  ;;  %v13294_v47 = vld [vmem:[#allocation35_spill] sm:$0xff]  ;;  %v13295_v25 = vld [vmem:[#allocation37_spill] sm:$0xff] }
 0x1b7   : > { %v1328_v33 = vadd.f32 1.0, %v1327_v22  ;;  %6431 = vlog2.f32 %v1297_v46  ;;  %v1792_v31 = vsel %vm960_vm13, %v13271_v50, %v1368_v41  ;;  %v1317_v63 = vmul.f32 0.6931472, %v6422_v21  ;;  %v13296_v46 = vld [vmem:[#allocation12_spill] sm:$0xff] }
 0x1b8   : > { %v1282_v27 = vmul.f32 -0.5, %v13275_v60  ;;  %6433 = vlog2.f32 %v1270_v58  ;;  %2134 = vmatpush1.msra.mxu1 %v1792_v31  ;;  %vm955_vm3 = vcmp.gt.f32.partialorder %v13281_v44, 20.0  ;;  %vm1322_vm4 = vcmp.lt.f32.partialorder %v1321_v52, 0.0004427343 }
 0x1b9   : > { %vm957_vm5 = vcmp.gt.f32.partialorder %v13282_v59, 20.0  ;;  %v1288_v42 = vadd.f32 1.0, %v13283_v2  ;;  %v6424_v12 = vpop.eup %6423  ;;  %v1323_v15 = vsel %vm1322_vm4, %v1320_v39, %v1317_v63  ;;  %v1338_v35 = vmul.f32 %v13268_v28, %v1337_v7  ;;  %v13297_v7 = vld [vmem:[#allocation13_spill] sm:$0xff] }
 0x1ba   : > { %vm8725_vm6 = vcmp.lt.f32.partialorder %v1339_v24, 0.0004427343  ;;  %vm8729_vm7 = vcmp.lt.f32.partialorder %v1312_v16, 0.0004427343  ;;  %v6426_v11 = vpop.eup %6425  ;;  %v1787_v20 = vsel %vm955_vm3, %v13281_v44, %v1323_v15  ;;  %v1335_v37 = vmul.f32 0.6931472, %v6424_v12 }
 0x1bb   : > { %v1311_v1 = vmul.f32 %v13269_v45, %v1310_v17  ;;  %v1330_v34 = vand.u32 2147483647, %v13270_v6  ;;  %1974 = vmatprep.subr.mxu0 %v1787_v20  ;;  %v1308_v4 = vmul.f32 0.6931472, %v6426_v11  ;;  %v1329_v28 = vmul.f32 %v13270_v6, %v1328_v33  ;;  %v13301_v12 = vld [vmem:[#allocation11_spill] sm:$0xff] }
 0x1bc   : > { %v1283_v36 = vadd.f32 1.0, %v1282_v27  ;;  %6435 = vlog2.f32 %v1288_v42  ;;  %v1341_v18 = vsel %vm8725_vm6, %v1338_v35, %v1335_v37  ;;  %v1285_v50 = vand.u32 2147483647, %v13275_v60 }
 0x1bd   : > { %v6428_v10 = vpop.eup %6427  ;;  %v1300_v55 = vmul.f32 -0.5, %v13278_v43  ;;  %v1243_v54 = vadd.f32 1.0, %v13288_v14  ;;  %v1789_v45 = vsel %vm957_vm5, %v13282_v59, %v1341_v18  ;;  %v1314_v32 = vsel %vm8729_vm7, %v1311_v1, %v1308_v4  ;;  %v13300_v59 = vld [vmem:[#allocation31_spill] sm:$0xff] }
 0x1be   : > { %v1326_v6 = vmul.f32 0.6931472, %v6428_v10  ;;  %v1273_v56 = vmul.f32 -0.5, %v13280_v3  ;;  %vm956_vm8 = vcmp.gt.f32.partialorder %v13289_v23, 20.0  ;;  %2135 = vmatprep.subr.mxu1 %v1789_v45  ;;  %v1786_v5 = vsel %vm954_vm2, %v13279_v9, %v1314_v32  ;;  %v13304_v18 = vld [vmem:[#allocation27_spill] sm:$0xff] }
 0x1bf   : > { %vm1331_vm9 = vcmp.lt.f32.partialorder %v1330_v34, 0.0004427343  ;;  %6437 = vlog2.f32 %v1243_v54  ;;  %vm950_vm10 = vcmp.gt.f32.partialorder %v13290_v40, 20.0  ;;  %1975 = vmatpush1.msra.mxu0 %v1786_v5  ;;  %v1284_v49 = vmul.f32 %v13275_v60, %v1283_v36  ;;  %v13302_v34 = vld [vmem:[#allocation33_spill] sm:$0xff] }
 0x1c0   : > { %v1332_v26 = vsel %vm1331_vm9, %v1329_v28, %v1326_v6  ;;  %v1303_v8 = vand.u32 2147483647, %v13278_v43  ;;  %v1261_v30 = vadd.f32 1.0, %v13291_v13  ;;  %vm8757_vm11 = vcmp.lt.f32.partialorder %v1285_v50, 0.0004427343  ;;  %v13303_v28 = vld [vmem:[#allocation6_spill] sm:$0xff] }
 0x1c1   : > { %v6430_v51 = vpop.eup %6429  ;;  %v1788_v61 = vsel %vm956_vm8, %v13289_v23, %v1332_v26  ;;  %v1301_v0 = vadd.f32 1.0, %v1300_v55  ;;  %v1234_v22 = vadd.f32 1.0, %v13294_v47  ;;  %v1274_v57 = vadd.f32 1.0, %v1273_v56  ;;  %v13305_v5 = vld [vmem:[#allocation29_spill] sm:$0xff] }
 0x1c2   : > { %2136 = vmatpush1.msra.mxu1 %v1788_v61  ;;  %v1281_v62 = vmul.f32 0.6931472, %v6430_v51  ;;  %v1291_v38 = vmul.f32 -0.5, %v13283_v2  ;;  %6439 = vlog2.f32 %v1261_v30  ;;  %v1276_v60 = vand.u32 2147483647, %v13280_v3  ;;  %v13307_v30 = vld [vmem:[#allocation9_spill] sm:$0xff] }
 0x1c3   : > { %v1246_v52 = vmul.f32 -0.5, %v13288_v14  ;;  %6441 = vlog2.f32 %v1234_v22  ;;  %v1252_v48 = vadd.f32 1.0, %v13295_v25  ;;  %vm951_vm12 = vcmp.gt.f32.partialorder %v13296_v46, 20.0  ;;  %v1848_v51 = vld [vmem:[%s12397_s3 + $0x50] sm:$0xff] }
 0x1c4   : > { %v6432_v39 = vpop.eup %6431  ;;  %v1287_v9 = vsel %vm8757_vm11, %v1284_v49, %v1281_v62  ;;  %vm953_vm13 = vcmp.gt.f32.partialorder %v13297_v7, 20.0  ;;  %vm8770_vm14 = vcmp.lt.f32.partialorder %v1303_v8, 0.0004427343  ;;  %v1302_v41 = vmul.f32 %v13278_v43, %v1301_v0  ;;  %v13306_v49 = vld [vmem:[#allocation8_spill] sm:$0xff] }
 0x1c5   : > { %v6434_v16 = vpop.eup %6433  ;;  %v1783_v58 = vsel %vm951_vm12, %v13296_v46, %v1287_v9  ;;  %v1299_v21 = vmul.f32 0.6931472, %v6432_v39  ;;  %6443 = vlog2.f32 %v1252_v48  ;;  %v1275_v33 = vmul.f32 %v13280_v3, %v1274_v57 }
 0x1c6   : > { %1976 = vmatprep.subr.mxu0 %v1783_v58  ;;  %v1272_v17 = vmul.f32 0.6931472, %v6434_v16  ;;  %v1292_v31 = vadd.f32 1.0, %v1291_v38  ;;  %v1294_v63 = vand.u32 2147483647, %v13283_v2  ;;  %v1247_v44 = vadd.f32 1.0, %v1246_v52 }
 0x1c7   : > { %v1305_v27 = vsel %vm8770_vm14, %v1302_v41, %v1299_v21  ;;  %vm1277_vm15 = vcmp.lt.f32.partialorder %v1276_v60, 0.0004427343  ;;  %v1207_v42 = vadd.f32 1.0, %v13300_v59  ;;  %vm952_vm0 = vcmp.gt.f32.partialorder %v13301_v12, 20.0 }
 0x1c8   : > { %v1785_v43 = vsel %vm953_vm13, %v13297_v7, %v1305_v27  ;;  %v1278_v15 = vsel %vm1277_vm15, %v1275_v33, %v1272_v17  ;;  %v1264_v35 = vmul.f32 -0.5, %v13291_v13  ;;  %v1249_v19 = vand.u32 2147483647, %v13288_v14 }
 0x1c9   : > { %v6436_v3 = vpop.eup %6435  ;;  %2137 = vmatprep.subr.mxu1 %v1785_v43  ;;  %v1782_v29 = vsel %vm950_vm10, %v13290_v40, %v1278_v15  ;;  %v1237_v11 = vmul.f32 -0.5, %v13294_v47  ;;  %6445 = vlog2.f32 %v1207_v42  ;;  %v1293_v37 = vmul.f32 %v13283_v2, %v1292_v31  ;;  %v13311_v43 = vld [vmem:[#allocation4_spill] sm:$0xff] }
 0x1ca   : > { %1977 = vmatpush1.msra.mxu0 %v1782_v29  ;;  %v1290_v20 = vmul.f32 0.6931472, %v6436_v3  ;;  %v1255_v1 = vmul.f32 -0.5, %v13295_v25  ;;  %v1225_v4 = vadd.f32 1.0, %v13302_v34  ;;  %vm946_vm1 = vcmp.gt.f32.partialorder %v13303_v28, 20.0 }
 0x1cb   : > { %vm1295_vm2 = vcmp.lt.f32.partialorder %v1294_v63, 0.0004427343  ;;  %v1248_v36 = vmul.f32 %v13288_v14, %v1247_v44  ;;  %v1267_v10 = vand.u32 2147483647, %v13291_v13  ;;  %v1198_v50 = vadd.f32 1.0, %v13304_v18 }
 0x1cc   : > { %v6438_v55 = vpop.eup %6437  ;;  %v1296_v54 = vsel %vm1295_vm2, %v1293_v37, %v1290_v20  ;;  %v1265_v45 = vadd.f32 1.0, %v1264_v35  ;;  %v1240_v32 = vand.u32 2147483647, %v13294_v47  ;;  %6447 = vlog2.f32 %v1225_v4  ;;  %v13312_v37 = vld [vmem:[#allocation5_spill] sm:$0xff] }
 0x1cd   : > { %v1784_v2 = vsel %vm952_vm0, %v13301_v12, %v1296_v54  ;;  %v1245_v6 = vmul.f32 0.6931472, %v6438_v55  ;;  %v1238_v56 = vadd.f32 1.0, %v1237_v11  ;;  %6449 = vlog2.f32 %v1198_v50 }
 0x1ce   : > { %2138 = vmatpush1.msra.mxu1 %v1784_v2  ;;  %vm1250_vm3 = vcmp.lt.f32.partialorder %v1249_v19, 0.0004427343  ;;  %v1256_v14 = vadd.f32 1.0, %v1255_v1  ;;  %v1210_v23 = vmul.f32 -0.5, %v13300_v59  ;;  %v1216_v40 = vadd.f32 1.0, %v13305_v5 }
 0x1cf   : > { %v6440_v26 = vpop.eup %6439  ;;  %vm947_vm4 = vcmp.gt.f32.partialorder %v13306_v49, 20.0  ;;  %v1251_v8 = vsel %vm1250_vm3, %v1248_v36, %v1245_v6  ;;  %vm949_vm5 = vcmp.gt.f32.partialorder %v13307_v30, 20.0  ;;  %vm8806_vm6 = vcmp.lt.f32.partialorder %v1267_v10, 0.0004427343  ;;  %v1839_v6 = vld [vmem:[%s12397_s3 + $0x8] sm:$0xff] }
 0x1d0   : > { %v6442_v61 = vpop.eup %6441  ;;  %v1779_v53 = vsel %vm947_vm4, %v13306_v49, %v1251_v8  ;;  %v1263_v0 = vmul.f32 0.6931472, %v6440_v26  ;;  %v1266_v22 = vmul.f32 %v13291_v13, %v1265_v45  ;;  %v1258_v62 = vand.u32 2147483647, %v13295_v25  ;;  %v13314_v45 = vld [vmem:[#allocation3_spill] sm:$0xff]  ;;  %v1844_v26 = vld [vmem:[%s12397_s3 + $0x30] sm:$0xff] }
 0x1d1   : > { %1978 = vmatprep.subr.mxu0 %v1779_v53  ;;  %v1236_v57 = vmul.f32 0.6931472, %v6442_v61  ;;  %v1239_v38 = vmul.f32 %v13294_v47, %v1238_v56  ;;  %vm1241_vm7 = vcmp.lt.f32.partialorder %v1240_v32, 0.0004427343  ;;  %6451 = vlog2.f32 %v1216_v40  ;;  %v1843_v40 = vld [vmem:[%s12397_s3 + $0x28] sm:$0xff]  ;;  %v1845_v49 = vld [vmem:[%s12397_s3 + $0x38] sm:$0xff] }
 0x1d2   : > { %v6444_v60 = vpop.eup %6443  ;;  %v1269_v52 = vsel %vm8806_vm6, %v1266_v22, %v1263_v0  ;;  %v1257_v48 = vmul.f32 %v13295_v25, %v1256_v14  ;;  %v1211_v39 = vadd.f32 1.0, %v1210_v23  ;;  %v1228_v46 = vmul.f32 -0.5, %v13302_v34  ;;  %v13310_v25 = vld [vmem:[#allocation7_spill] sm:$0xff]  ;;  %v1840_v14 = vld [vmem:[%s12397_s3 + $0x10] sm:$0xff]  ;;  %v1841_v23 = vld [vmem:[%s12397_s3 + $0x18] sm:$0xff] }
 0x1d3   : > { %v1781_v13 = vsel %vm949_vm5, %v13307_v30, %v1269_v52  ;;  %v1242_v9 = vsel %vm1241_vm7, %v1239_v38, %v1236_v57  ;;  %v1254_v7 = vmul.f32 0.6931472, %v6444_v60  ;;  %v1201_v24 = vmul.f32 -0.5, %v13304_v18  ;;  %v1846_v8 = vld [vmem:[%s12397_s3 + $0x40] sm:$0xff]  ;;  %v1847_v30 = vld [vmem:[%s12397_s3 + $0x48] sm:$0xff]  ;;  %v1849_v61 = vld [vmem:[%s12397_s3 + $0x58] sm:$0xff]  ;;  %v8924_v57 = vpop.permute.xlu1 %1942  ;;  %v8926_v38 = vpop.permute.xlu0 %1947 }
 0x1d4   : > { %2139 = vmatprep.subr.mxu1 %v1781_v13  ;;  %v1778_v47 = vsel %vm946_vm1, %v13303_v28, %v1242_v9  ;;  %vm1259_vm8 = vcmp.lt.f32.partialorder %v1258_v62, 0.0004427343  ;;  %v1213_v16 = vand.u32 2147483647, %v13300_v59  ;;  %vm948_vm9 = vcmp.gt.f32.partialorder %v13310_v25, 20.0  ;;  %v13313_v28 = vld [vmem:[#allocation2_spill] sm:$0xff] }
 0x1d5   : > { %1979 = vmatpush1.msra.mxu0 %v1778_v47  ;;  %v1260_v58 = vsel %vm1259_vm8, %v1257_v48, %v1254_v7  ;;  %v1212_v17 = vmul.f32 %v13300_v59, %v1211_v39  ;;  %v1229_v33 = vadd.f32 1.0, %v1228_v46  ;;  %v1231_v63 = vand.u32 2147483647, %v13302_v34  ;;  %v1850_v53 = vld [vmem:[%s12397_s3 + $0x60] sm:$0xff]  ;;  %v1851_v0 = vld [vmem:[%s12397_s3 + $0x68] sm:$0xff]  ;;  %v1852_v22 = vld [vmem:[%s12397_s3 + $0x70] sm:$0xff] }
 0x1d6   : > { %v6446_v21 = vpop.eup %6445  ;;  %v1780_v41 = vsel %vm948_vm9, %v13310_v25, %v1260_v58  ;;  %v1202_v27 = vadd.f32 1.0, %v1201_v24  ;;  %v1219_v44 = vmul.f32 -0.5, %v13305_v5  ;;  %vm1214_vm10 = vcmp.lt.f32.partialorder %v1213_v16, 0.0004427343  ;;  %v1853_v62 = vld [vmem:[%s12397_s3 + $0x78] sm:$0xff] }
 0x1d7   : > { %2140 = vmatpush1.msra.mxu1 %v1780_v41  ;;  %v1209_v31 = vmul.f32 0.6931472, %v6446_v21  ;;  %v1204_v42 = vand.u32 2147483647, %v13304_v18  ;;  %vm943_vm11 = vcmp.gt.f32.partialorder %v13311_v43, 20.0  ;;  %v1230_v59 = vmul.f32 %v13302_v34, %v1229_v33  ;;  %v1838_v34 = vld [vmem:[%s12397_s3] sm:$0xff]  ;;  %v8928_v60 = vpop.permute.xlu1 %1932  ;;  %v8930_v52 = vpop.permute.xlu0 %1937 }
 0x1d8   : > { %vm1232_vm12 = vcmp.lt.f32.partialorder %v1231_v63, 0.0004427343  ;;  %v1203_v11 = vmul.f32 %v13304_v18, %v1202_v27  ;;  %v1220_v20 = vadd.f32 1.0, %v1219_v44  ;;  %vm945_vm13 = vcmp.gt.f32.partialorder %v13312_v37, 20.0 }
 0x1d9   : > { %v6448_v12 = vpop.eup %6447  ;;  %v1215_v15 = vsel %vm1214_vm10, %v1212_v17, %v1209_v31  ;;  %vm1205_vm14 = vcmp.lt.f32.partialorder %v1204_v42, 0.0004427343  ;;  %v1222_v4 = vand.u32 2147483647, %v13305_v5  ;;  %vm942_vm15 = vcmp.gt.f32.partialorder %v13313_v28, 20.0 }
 0x1da   : > { %v6450_v35 = vpop.eup %6449  ;;  %v1775_v3 = vsel %vm943_vm11, %v13311_v43, %v1215_v15  ;;  %v1227_v29 = vmul.f32 0.6931472, %v6448_v12  ;;  %v1221_v54 = vmul.f32 %v13305_v5, %v1220_v20  ;;  %vm944_vm1 = vcmp.gt.f32.partialorder %v13314_v45, 20.0  ;;  %v1842_v5 = vld [vmem:[%s12397_s3 + $0x20] sm:$0xff] }
 0x1db   : > { %1980 = vmatprep.subr.mxu0 %v1775_v3  ;;  %v1200_v19 = vmul.f32 0.6931472, %v6450_v35  ;;  %vm1223_vm0 = vcmp.lt.f32.partialorder %v1222_v4, 0.0004427343  ;;  %v13315_v2 = vmov 0.0   ;;  %v8932_v48 = vpop.permute.xlu1 %1922  ;;  %v8934_v39 = vpop.permute.xlu0 %1927 }
 0x1dc   : > { %v1233_v1 = vsel %vm1232_vm12, %v1230_v59, %v1227_v29 }
 0x1dd   : > { %v1777_v36 = vsel %vm945_vm13, %v13312_v37, %v1233_v1  ;;  %v1206_v10 = vsel %vm1205_vm14, %v1203_v11, %v1200_v19 }
 0x1de   : > { %v6452_v50 = vpop.eup %6451  ;;  %2141 = vmatprep.subr.mxu1 %v1777_v36  ;;  %v1774_v18 = vsel %vm942_vm15, %v13313_v28, %v1206_v10 }
 0x1df   : > { %1981 = vmatpush1.msra.mxu0 %v1774_v18  ;;  %v1218_v55 = vmul.f32 0.6931472, %v6452_v50  ;;  %v8936_v46 = vpop.permute.xlu1 %1912  ;;  %v8938_v13 = vpop.permute.xlu0 %1917 }
 0x1e0   : > { %2015 = vmatmul.mubr.f32.vlgmr.msra.gmra.mxu0 %v1838_v34 }
 0x1e1   : > { %v1224_v32 = vsel %vm1223_vm0, %v1221_v54, %v1218_v55  ;;  %2020 = vmatprep.mubr.f32.mxu0 %v13315_v2 }
 0x1e2   : > { %v1776_v56 = vsel %vm944_vm1, %v13314_v45, %v1224_v32 }
 0x1e3   : > { %2142 = vmatpush1.msra.mxu1 %v1776_v56  ;;  %v8940_v9 = vpop.permute.xlu1 %1902  ;;  %v8942_v7 = vpop.permute.xlu0 %1907 }
 0x1e4   : > { %2176 = vmatmul.mubr.f32.vlgmr.msra.gmra.mxu1 %v1838_v34  ;;  %2021 = vmatmul.mubr.f32.gmra.mxu0 %v1839_v6 }
 0x1e5   : > { %2181 = vmatprep.mubr.f32.mxu1 %v13315_v2  ;;  %2026 = vmatprep.mubr.f32.mxu0 %v13315_v2 }
 0x1e7   : > { %v8944_v24 = vpop.permute.xlu1 %1892  ;;  %v8946_v47 = vpop.permute.xlu0 %1897 }
 0x1e8   : > { %2182 = vmatmul.mubr.f32.gmra.mxu1 %v1839_v6  ;;  %2027 = vmatmul.mubr.f32.gmra.mxu0 %v1840_v14 }
 0x1e9   : > { %2187 = vmatprep.mubr.f32.mxu1 %v13315_v2  ;;  %2032 = vmatprep.mubr.f32.mxu0 %v13315_v2 }
 0x1eb   : > { %v1883_v16 = vpop.permute.xlu1 %1882  ;;  %v1888_v21 = vpop.permute.xlu0 %1887 }
 0x1ec   : > { %2188 = vmatmul.mubr.f32.gmra.mxu1 %v1840_v14  ;;  %2033 = vmatmul.mubr.f32.gmra.mxu0 %v1841_v23 }
 0x1ed   : > { %2193 = vmatprep.mubr.f32.mxu1 %v13315_v2  ;;  %2038 = vmatprep.mubr.f32.mxu0 %v13315_v2 }
 0x1ef   : > { %v1873_v33 = vpop.permute.xlu1 %1872  ;;  %v1878_v43 = vpop.permute.xlu0 %1877 }
 0x1f0   : > { %2194 = vmatmul.mubr.f32.gmra.mxu1 %v1841_v23  ;;  %2039 = vmatmul.mubr.f32.gmra.mxu0 %v1842_v5 }
 0x1f1   : > { %2199 = vmatprep.mubr.f32.mxu1 %v13315_v2  ;;  %2044 = vmatprep.mubr.f32.mxu0 %v13315_v2 }
 0x1f4   : > { %2200 = vmatmul.mubr.f32.gmra.mxu1 %v1842_v5  ;;  %2045 = vmatmul.mubr.f32.gmra.mxu0 %v1843_v40 }
 0x1f5   : > { %2205 = vmatprep.mubr.f32.mxu1 %v13315_v2  ;;  %2050 = vmatprep.mubr.f32.mxu0 %v13315_v2 }
 0x1f8   : > { %2206 = vmatmul.mubr.f32.gmra.mxu1 %v1843_v40  ;;  %2051 = vmatmul.mubr.f32.gmra.mxu0 %v1844_v26 }
 0x1f9   : > { %2211 = vmatprep.mubr.f32.mxu1 %v13315_v2  ;;  %2056 = vmatprep.mubr.f32.mxu0 %v13315_v2 }
 0x1fc   : > { %2212 = vmatmul.mubr.f32.gmra.mxu1 %v1844_v26  ;;  %2057 = vmatmul.mubr.f32.gmra.mxu0 %v1845_v49 }
 0x1fd   : > { %2217 = vmatprep.mubr.f32.mxu1 %v13315_v2  ;;  %2062 = vmatprep.mubr.f32.mxu0 %v13315_v2 }
 0x200   : > { %2218 = vmatmul.mubr.f32.gmra.mxu1 %v1845_v49  ;;  %2063 = vmatmul.mubr.f32.gmra.mxu0 %v1846_v8 }
 0x201   : > { %2223 = vmatprep.mubr.f32.mxu1 %v13315_v2  ;;  %2068 = vmatprep.mubr.f32.mxu0 %v13315_v2 }
 0x204   : > { %2224 = vmatmul.mubr.f32.gmra.mxu1 %v1846_v8  ;;  %2069 = vmatmul.mubr.f32.gmra.mxu0 %v1847_v30 }
 0x205   : > { %2229 = vmatprep.mubr.f32.mxu1 %v13315_v2  ;;  %2074 = vmatprep.mubr.f32.mxu0 %v13315_v2 }
 0x208   : > { %2230 = vmatmul.mubr.f32.gmra.mxu1 %v1847_v30  ;;  %2075 = vmatmul.mubr.f32.gmra.mxu0 %v1848_v51 }
 0x209   : > { %2235 = vmatprep.mubr.f32.mxu1 %v13315_v2  ;;  %2080 = vmatprep.mubr.f32.mxu0 %v13315_v2 }
 0x20c   : > { %2236 = vmatmul.mubr.f32.gmra.mxu1 %v1848_v51  ;;  %2081 = vmatmul.mubr.f32.gmra.mxu0 %v1849_v61 }
 0x20d   : > { %2241 = vmatprep.mubr.f32.mxu1 %v13315_v2  ;;  %2086 = vmatprep.mubr.f32.mxu0 %v13315_v2 }
 0x210   : > { %2242 = vmatmul.mubr.f32.gmra.mxu1 %v1849_v61  ;;  %2087 = vmatmul.mubr.f32.gmra.mxu0 %v1850_v53 }
 0x211   : > { %2247 = vmatprep.mubr.f32.mxu1 %v13315_v2  ;;  %2092 = vmatprep.mubr.f32.mxu0 %v13315_v2 }
 0x214   : > { %2248 = vmatmul.mubr.f32.gmra.mxu1 %v1850_v53  ;;  %2093 = vmatmul.mubr.f32.gmra.mxu0 %v1851_v0 }
 0x215   : > { %2253 = vmatprep.mubr.f32.mxu1 %v13315_v2  ;;  %2098 = vmatprep.mubr.f32.mxu0 %v13315_v2 }
 0x218   : > { %2254 = vmatmul.mubr.f32.gmra.mxu1 %v1851_v0  ;;  %2099 = vmatmul.mubr.f32.gmra.mxu0 %v1852_v22 }
 0x219   : > { %2259 = vmatprep.mubr.f32.mxu1 %v13315_v2  ;;  %2104 = vmatprep.mubr.f32.mxu0 %v13315_v2 }
 0x21c   : > { %2260 = vmatmul.mubr.f32.gmra.mxu1 %v1852_v22  ;;  %2105 = vmatmul.mubr.f32.gmra.mxu0 %v1853_v62 }
 0x21d   : > { %2265 = vmatprep.mubr.f32.mxu1 %v13315_v2  ;;  %3344 = vmatprep.mubr.f32.mxu0 %v13315_v2 }
 0x220   : > { %2266 = vmatmul.mubr.f32.gmra.mxu1 %v1853_v62 }
 0x221   : > { %3505 = vmatprep.mubr.f32.mxu1 %v13315_v2 }
 0x2a0   : > { %v2016_v25 = vpop.f32.mrf.mxu0 }
 0x2a1   : > { %v8948_v27 = vadd.f32 %v2016_v25, %v1873_v33 }
 0x2a2   : > { %v2018_v58 = vpop.f32.mrf.mxu0 }
 0x2a3   : > { %13316 = vst [vmem:[#allocation105_spill] sm:$0xff] %v8948_v27  ;;  %v8950_v44 = vadd.f32 %v2018_v58, %v1873_v33  ;;  %v2336_v59 = vmin.f32 %v8948_v27, 20.0 }
 0x2a4   : > { %v2177_v41 = vpop.f32.mrf.mxu1  ;;  %v2022_v17 = vpop.f32.mrf.mxu0 }
 0x2a5   : > { %13317 = vst [vmem:[#allocation100_spill] sm:$0xff] %v8950_v44  ;;  %v8952_v15 = vadd.f32 %v2177_v41, %v1873_v33  ;;  %v8954_v35 = vadd.f32 %v2022_v17, %v1878_v43  ;;  %v2337_v11 = vmin.f32 %v8950_v44, 20.0  ;;  %v2400_v18 = vmul.f32 1.442695, %v2336_v59 }
 0x2a6   : > { %v2179_v31 = vpop.f32.mrf.mxu1  ;;  %v2024_v63 = vpop.f32.mrf.mxu0 }
 0x2a7   : > { %13318 = vst [vmem:[#allocation102_spill] sm:$0xff] %v8952_v15  ;;  %13319 = vst [vmem:[#allocation101_spill] sm:$0xff] %v8954_v35  ;;  %v8957_v19 = vadd.f32 %v2179_v31, %v1873_v33  ;;  %v2338_v4 = vmin.f32 %v8952_v15, 20.0  ;;  %v8963_v28 = vadd.f32 %v2024_v63, %v1878_v43  ;;  %v2340_v36 = vmin.f32 %v8954_v35, 20.0 }
 0x2a8   : > { %v2183_v42 = vpop.f32.mrf.mxu1  ;;  %v2028_v12 = vpop.f32.mrf.mxu0  ;;  %v2402_v45 = vmul.f32 1.442695, %v2337_v11  ;;  %6453 = vpow2.f32 %v2400_v18 }
 0x2a9   : > { %13320 = vst [vmem:[#allocation106_spill] sm:$0xff] %v8957_v19  ;;  %v8960_v20 = vadd.f32 %v2183_v42, %v1878_v43  ;;  %13322 = vst [vmem:[#allocation70_spill] sm:$0xff] %v8963_v28  ;;  %v2339_v55 = vmin.f32 %v8957_v19, 20.0  ;;  %v8969_v54 = vadd.f32 %v2028_v12, %v1883_v16  ;;  %v2404_v23 = vmul.f32 1.442695, %v2338_v4 }
 0x2aa   : > { %v2185_v3 = vpop.f32.mrf.mxu1  ;;  %v2030_v29 = vpop.f32.mrf.mxu0  ;;  %v2341_v5 = vmin.f32 %v8963_v28, 20.0  ;;  %v2408_v26 = vmul.f32 1.442695, %v2340_v36  ;;  %6455 = vpow2.f32 %v2402_v45 }
 0x2ab   : > { %13321 = vst [vmem:[#allocation103_spill] sm:$0xff] %v8960_v20  ;;  %v8966_v10 = vadd.f32 %v2185_v3, %v1878_v43  ;;  %13324 = vst [vmem:[#allocation98_spill] sm:$0xff] %v8969_v54  ;;  %v2342_v32 = vmin.f32 %v8960_v20, 20.0  ;;  %v8975_v40 = vadd.f32 %v2030_v29, %v1883_v16  ;;  %v2406_v61 = vmul.f32 1.442695, %v2339_v55 }
 0x2ac   : > { %v2189_v37 = vpop.f32.mrf.mxu1  ;;  %v2034_v1 = vpop.f32.mrf.mxu0  ;;  %v2344_v53 = vmin.f32 %v8969_v54, 20.0  ;;  %6457 = vpow2.f32 %v2404_v23  ;;  %v2410_v17 = vmul.f32 1.442695, %v2341_v5 }
 0x2ad   : > { %13323 = vst [vmem:[#allocation78_spill] sm:$0xff] %v8966_v10  ;;  %v8972_v6 = vadd.f32 %v2189_v37, %v1883_v16  ;;  %13326 = vst [vmem:[#allocation93_spill] sm:$0xff] %v8975_v40  ;;  %v2343_v49 = vmin.f32 %v8966_v10, 20.0  ;;  %v8981_v0 = vadd.f32 %v2034_v1, %v1888_v21  ;;  %v2412_v22 = vmul.f32 1.442695, %v2342_v32 }
 0x2ae   : > { %v2191_v34 = vpop.f32.mrf.mxu1  ;;  %v2036_v50 = vpop.f32.mrf.mxu0  ;;  %6459 = vpow2.f32 %v2408_v26  ;;  %v2416_v3 = vmul.f32 1.442695, %v2344_v53 }
 0x2af   : > { %13325 = vst [vmem:[#allocation99_spill] sm:$0xff] %v8972_v6  ;;  %v8978_v8 = vadd.f32 %v2191_v34, %v1883_v16  ;;  %13328 = vst [vmem:[#allocation76_spill] sm:$0xff] %v8981_v0  ;;  %v2346_v62 = vmin.f32 %v8972_v6, 20.0  ;;  %v2345_v16 = vmin.f32 %v8975_v40, 20.0  ;;  %v8987_v33 = vadd.f32 %v2036_v50, %v1888_v21 }
 0x2b0   : > { %v2195_v56 = vpop.f32.mrf.mxu1  ;;  %v2040_v14 = vpop.f32.mrf.mxu0  ;;  %v2414_v31 = vmul.f32 1.442695, %v2343_v49  ;;  %6461 = vpow2.f32 %v2406_v61  ;;  %v2348_v29 = vmin.f32 %v8981_v0, 20.0 }
 0x2b1   : > { %13327 = vst [vmem:[#allocation104_spill] sm:$0xff] %v8978_v8  ;;  %v8984_v25 = vadd.f32 %v2195_v56, %v1888_v21  ;;  %13330 = vst [vmem:[#allocation97_spill] sm:$0xff] %v8987_v33  ;;  %v2347_v63 = vmin.f32 %v8978_v8, 20.0  ;;  %v8994_v59 = vadd.f32 %v2040_v14, %v8944_v24  ;;  %6463 = vpow2.f32 %v2412_v22 }
 0x2b2   : > { %v2197_v30 = vpop.f32.mrf.mxu1  ;;  %v2042_v51 = vpop.f32.mrf.mxu0  ;;  %v2420_v11 = vmul.f32 1.442695, %v2346_v62  ;;  %6465 = vpow2.f32 %v2410_v17  ;;  %v2349_v34 = vmin.f32 %v8987_v33, 20.0  ;;  %v2424_v14 = vmul.f32 1.442695, %v2348_v29 }
 0x2b3   : > { %13329 = vst [vmem:[#allocation96_spill] sm:$0xff] %v8984_v25  ;;  %v8990_v42 = vadd.f32 %v2197_v30, %v1888_v21  ;;  %13332 = vst [vmem:[#allocation75_spill] sm:$0xff] %v8994_v59  ;;  %v2350_v37 = vmin.f32 %v8984_v25, 20.0  ;;  %v2418_v21 = vmul.f32 1.442695, %v2345_v16  ;;  %v9002_v50 = vadd.f32 %v2042_v51, %v8944_v24 }
 0x2b4   : > { %v2201_v58 = vpop.f32.mrf.mxu1  ;;  %v2046_v41 = vpop.f32.mrf.mxu0  ;;  %6467 = vpow2.f32 %v2414_v31  ;;  %v2422_v18 = vmul.f32 1.442695, %v2347_v63  ;;  %v2352_v23 = vmin.f32 %v8994_v59, 20.0 }
 0x2b5   : > { %13331 = vst [vmem:[#allocation94_spill] sm:$0xff] %v8990_v42  ;;  %v8998_v1 = vadd.f32 %v2201_v58, %v8944_v24  ;;  %13334 = vst [vmem:[#allocation91_spill] sm:$0xff] %v9002_v50  ;;  %v2351_v55 = vmin.f32 %v8990_v42, 20.0  ;;  %6469 = vpow2.f32 %v2416_v3  ;;  %v9010_v5 = vadd.f32 %v2046_v41, %v8946_v47  ;;  %v9028_v3 = vpop.eup %6453 }
 0x2b6   : > { %v2203_v12 = vpop.f32.mrf.mxu1  ;;  %v2048_v43 = vpop.f32.mrf.mxu0  ;;  %6471 = vpow2.f32 %v2420_v11  ;;  %v2428_v26 = vmul.f32 1.442695, %v2350_v37  ;;  %v2353_v53 = vmin.f32 %v9002_v50, 20.0  ;;  %v2432_v31 = vmul.f32 1.442695, %v2352_v23  ;;  %13341 = vst [vmem:[#allocation88_spill] sm:$0xff] %v9028_v3 }
 0x2b7   : > { %13333 = vst [vmem:[#allocation82_spill] sm:$0xff] %v8998_v1  ;;  %v9006_v45 = vadd.f32 %v2203_v12, %v8944_v24  ;;  %13336 = vst [vmem:[#allocation81_spill] sm:$0xff] %v9010_v5  ;;  %v2354_v49 = vmin.f32 %v8998_v1, 20.0  ;;  %6473 = vpow2.f32 %v2418_v21  ;;  %v2426_v24 = vmul.f32 1.442695, %v2349_v34 }
 0x2b8   : > { %v2207_v4 = vpop.f32.mrf.mxu1  ;;  %v2052_v36 = vpop.f32.mrf.mxu0  ;;  %v9018_v22 = vadd.f32 %v2048_v43, %v8946_v47  ;;  %6475 = vpow2.f32 %v2422_v18  ;;  %v2430_v62 = vmul.f32 1.442695, %v2351_v55  ;;  %v2356_v63 = vmin.f32 %v9010_v5, 20.0 }
 0x2b9   : > { %13335 = vst [vmem:[#allocation95_spill] sm:$0xff] %v9006_v45  ;;  %v9014_v30 = vadd.f32 %v2207_v4, %v8946_v47  ;;  %v2355_v58 = vmin.f32 %v9006_v45, 20.0  ;;  %6477 = vpow2.f32 %v2424_v14  ;;  %v9026_v12 = vadd.f32 %v2052_v36, %v8940_v9  ;;  %v9034_v4 = vpop.eup %6455 }
 0x2ba   : > { %v2209_v32 = vpop.f32.mrf.mxu1  ;;  %v2054_v56 = vpop.f32.mrf.mxu0  ;;  %13338 = vst [vmem:[#allocation62_spill] sm:$0xff] %v9018_v22  ;;  %6479 = vpow2.f32 %v2428_v26  ;;  %v2436_v43 = vmul.f32 1.442695, %v2354_v49  ;;  %13343 = vst [vmem:[#allocation58_spill] sm:$0xff] %v9034_v4  ;;  %v2434_v21 = vmul.f32 1.442695, %v2353_v53 }
 0x2bb   : > { %13337 = vst [vmem:[#allocation90_spill] sm:$0xff] %v9014_v30  ;;  %v9022_v41 = vadd.f32 %v2209_v32, %v8946_v47  ;;  %13340 = vst [vmem:[#allocation64_spill] sm:$0xff] %v9026_v12  ;;  %v2358_v29 = vmin.f32 %v9014_v30, 20.0  ;;  %6481 = vpow2.f32 %v2426_v24  ;;  %v2357_v34 = vmin.f32 %v9018_v22, 20.0  ;;  %v9040_v18 = vpop.eup %6457 }
 0x2bc   : > { %v2213_v51 = vpop.f32.mrf.mxu1  ;;  %v2058_v61 = vpop.f32.mrf.mxu0  ;;  %v9038_v36 = vadd.f32 %v2054_v56, %v8940_v9  ;;  %13345 = vst [vmem:[#allocation86_spill] sm:$0xff] %v9040_v18  ;;  %6483 = vpow2.f32 %v2430_v62  ;;  %v2438_v55 = vmul.f32 1.442695, %v2355_v58  ;;  %v2360_v24 = vmin.f32 %v9026_v12, 20.0 }
 0x2bd   : > { %13339 = vst [vmem:[#allocation92_spill] sm:$0xff] %v9022_v41  ;;  %v9032_v11 = vadd.f32 %v2213_v51, %v8940_v9  ;;  %v2359_v32 = vmin.f32 %v9022_v41, 20.0  ;;  %v9046_v49 = vpop.eup %6459  ;;  %6485 = vpow2.f32 %v2432_v31  ;;  %v2440_v51 = vmul.f32 1.442695, %v2356_v63 }
 0x2be   : > { %v2215_v17 = vpop.f32.mrf.mxu1  ;;  %v2060_v16 = vpop.f32.mrf.mxu0  ;;  %13344 = vst [vmem:[#allocation60_spill] sm:$0xff] %v9038_v36  ;;  %13347 = vst [vmem:[#allocation50_spill] sm:$0xff] %v9046_v49  ;;  %v9050_v56 = vadd.f32 %v2058_v61, %v8942_v7  ;;  %6487 = vpow2.f32 %v2436_v43  ;;  %v2444_v62 = vmul.f32 1.442695, %v2358_v29  ;;  %v2442_v31 = vmul.f32 1.442695, %v2357_v34 }
 0x2bf   : > { %13342 = vst [vmem:[#allocation89_spill] sm:$0xff] %v9032_v11  ;;  %v9044_v14 = vadd.f32 %v2215_v17, %v8940_v9  ;;  %v9052_v53 = vpop.eup %6461  ;;  %v2362_v58 = vmin.f32 %v9032_v11, 20.0  ;;  %6489 = vpow2.f32 %v2434_v21  ;;  %v2361_v63 = vmin.f32 %v9038_v36, 20.0 }
 0x2c0   : > { %v2219_v47 = vpop.f32.mrf.mxu1  ;;  %v2064_v37 = vpop.f32.mrf.mxu0  ;;  %13348 = vst [vmem:[#allocation84_spill] sm:$0xff] %v9050_v56  ;;  %13349 = vst [vmem:[#allocation54_spill] sm:$0xff] %v9052_v53  ;;  %v9062_v61 = vadd.f32 %v2060_v16, %v8942_v7  ;;  %6491 = vpow2.f32 %v2438_v55  ;;  %v2446_v43 = vmul.f32 1.442695, %v2359_v32  ;;  %v2448_v21 = vmul.f32 1.442695, %v2360_v24 }
 0x2c1   : > { %13346 = vst [vmem:[#allocation87_spill] sm:$0xff] %v9044_v14  ;;  %v9056_v9 = vadd.f32 %v2219_v47, %v8942_v7  ;;  %v9058_v15 = vpop.eup %6463  ;;  %v2363_v29 = vmin.f32 %v9044_v14, 20.0  ;;  %6493 = vpow2.f32 %v2440_v51  ;;  %v2364_v34 = vmin.f32 %v9050_v56, 20.0 }
 0x2c2   : > { %v2221_v23 = vpop.f32.mrf.mxu1  ;;  %v2066_v26 = vpop.f32.mrf.mxu0  ;;  %13351 = vst [vmem:[#allocation85_spill] sm:$0xff] %v9058_v15  ;;  %13352 = vst [vmem:[#allocation56_spill] sm:$0xff] %v9062_v61  ;;  %v9074_v16 = vadd.f32 %v2064_v37, %v8936_v46  ;;  %6495 = vpow2.f32 %v2444_v62  ;;  %v2452_v55 = vmul.f32 1.442695, %v2362_v58  ;;  %v2450_v18 = vmul.f32 1.442695, %v2361_v63 }
 0x2c3   : > { %13350 = vst [vmem:[#allocation52_spill] sm:$0xff] %v9056_v9  ;;  %v9064_v27 = vpop.eup %6465  ;;  %v9068_v47 = vadd.f32 %v2221_v23, %v8942_v7  ;;  %v2366_v32 = vmin.f32 %v9056_v9, 20.0  ;;  %6497 = vpow2.f32 %v2442_v31  ;;  %v2365_v51 = vmin.f32 %v9062_v61, 20.0 }
 0x2c4   : > { %v2225_v17 = vpop.f32.mrf.mxu1  ;;  %v2070_v2 = vpop.f32.mrf.mxu0  ;;  %13353 = vst [vmem:[#allocation80_spill] sm:$0xff] %v9064_v27  ;;  %13356 = vst [vmem:[#allocation42_spill] sm:$0xff] %v9074_v16  ;;  %v2454_v28 = vmul.f32 1.442695, %v2363_v29  ;;  %v9091_v58 = vadd.f32 %v2066_v26, %v8936_v46  ;;  %v2456_v31 = vmul.f32 1.442695, %v2364_v34 }
 0x2c5   : > { %13354 = vst [vmem:[#allocation46_spill] sm:$0xff] %v9068_v47  ;;  %v9070_v20 = vpop.eup %6467  ;;  %v9085_v24 = vadd.f32 %v2225_v17, %v8936_v46  ;;  %6499 = vpow2.f32 %v2446_v43  ;;  %v2367_v62 = vmin.f32 %v9068_v47, 20.0  ;;  %v2368_v63 = vmin.f32 %v9074_v16, 20.0 }
 0x2c6   : > { %v2227_v19 = vpop.f32.mrf.mxu1  ;;  %v2072_v44 = vpop.f32.mrf.mxu0  ;;  %13355 = vst [vmem:[#allocation83_spill] sm:$0xff] %v9070_v20  ;;  %13361 = vst [vmem:[#allocation38_spill] sm:$0xff] %v9091_v58  ;;  %v2460_v43 = vmul.f32 1.442695, %v2366_v32  ;;  %v9104_v29 = vadd.f32 %v2070_v2, %v8938_v13  ;;  %v2458_v49 = vmul.f32 1.442695, %v2365_v51 }
 0x2c7   : > { %v9076_v35 = vpop.eup %6469  ;;  %13359 = vst [vmem:[#allocation44_spill] sm:$0xff] %v9085_v24  ;;  %6501 = vpow2.f32 %v2448_v21  ;;  %v9099_v17 = vadd.f32 %v2227_v19, %v8936_v46  ;;  %v2370_v21 = vmin.f32 %v9085_v24, 20.0  ;;  %v9110_v34 = vadd.f32 %v2072_v44, %v8938_v13 }
 0x2c8   : > { %13357 = vst [vmem:[#allocation77_spill] sm:$0xff] %v9076_v35  ;;  %v9079_v10 = vpop.f32.mrf.mxu1  ;;  %v2076_v7 = vpop.f32.mrf.mxu0  ;;  %13365 = vst [vmem:[#allocation71_spill] sm:$0xff] %v9104_v29  ;;  %v2462_v19 = vmul.f32 1.442695, %v2367_v62  ;;  %v2464_v40 = vmul.f32 1.442695, %v2368_v63 }
 0x2c9   : > { %v9081_v23 = vpop.eup %6471  ;;  %13363 = vst [vmem:[#allocation74_spill] sm:$0xff] %v9099_v17  ;;  %6503 = vpow2.f32 %v2452_v55  ;;  %13367 = vst [vmem:[#allocation36_spill] sm:$0xff] %v9110_v34  ;;  %v2369_v55 = vmin.f32 %v9091_v58, 20.0  ;;  %v2372_v44 = vmin.f32 %v9104_v29, 20.0  ;;  %v9124_v20 = vadd.f32 %v2076_v7, %v8932_v48 }
 0x2ca   : > { %13358 = vst [vmem:[#allocation79_spill] sm:$0xff] %v9081_v23  ;;  %v9087_v37 = vpop.eup %6473  ;;  %v9093_v3 = vpop.f32.mrf.mxu1  ;;  %6505 = vpow2.f32 %v2450_v18  ;;  %v2371_v18 = vmin.f32 %v9099_v17, 20.0  ;;  %v2373_v63 = vmin.f32 %v9110_v34, 20.0 }
 0x2cb   : > { %13360 = vst [vmem:[#allocation48_spill] sm:$0xff] %v9087_v37  ;;  %v2078_v53 = vpop.f32.mrf.mxu0  ;;  %v9095_v4 = vpop.eup %6475  ;;  %6507 = vpow2.f32 %v2454_v28  ;;  %13371 = vst [vmem:[#allocation69_spill] sm:$0xff] %v9124_v20  ;;  %v2466_v33 = vmul.f32 1.442695, %v2369_v55  ;;  %v2376_v7 = vmin.f32 %v9124_v20, 20.0 }
 0x2cc   : > { %13362 = vst [vmem:[#allocation73_spill] sm:$0xff] %v9095_v4  ;;  %v9101_v8 = vpop.eup %6477  ;;  %v2237_v26 = vpop.f32.mrf.mxu1  ;;  %6509 = vpow2.f32 %v2456_v31  ;;  %v2468_v31 = vmul.f32 1.442695, %v2370_v21  ;;  %v9133_v23 = vadd.f32 %v2078_v53, %v8932_v48  ;;  %v2470_v0 = vmul.f32 1.442695, %v2371_v18 }
 0x2cd   : > { %13364 = vst [vmem:[#allocation34_spill] sm:$0xff] %v9101_v8  ;;  %v2082_v15 = vpop.f32.mrf.mxu0  ;;  %v9106_v6 = vpop.eup %6479  ;;  %6511 = vpow2.f32 %v2460_v43  ;;  %v9127_v28 = vadd.f32 %v2237_v26, %v8932_v48  ;;  %v2472_v4 = vmul.f32 1.442695, %v2372_v44  ;;  %v2480_v44 = vmul.f32 1.442695, %v2376_v7 }
 0x2ce   : > { %13366 = vst [vmem:[#allocation40_spill] sm:$0xff] %v9106_v6  ;;  %v9112_v46 = vpop.eup %6481  ;;  %v2239_v32 = vpop.f32.mrf.mxu1  ;;  %6513 = vpow2.f32 %v2458_v49  ;;  %13374 = vst [vmem:[#allocation28_spill] sm:$0xff] %v9133_v23  ;;  %v2377_v53 = vmin.f32 %v9133_v23, 20.0 }
 0x2cf   : > { %13368 = vst [vmem:[#allocation72_spill] sm:$0xff] %v9112_v46  ;;  %v9115_v2 = vpop.f32.mrf.mxu0  ;;  %v9117_v54 = vpop.eup %6483  ;;  %13372 = vst [vmem:[#allocation26_spill] sm:$0xff] %v9127_v28  ;;  %6515 = vpow2.f32 %v2462_v19  ;;  %v2378_v49 = vmin.f32 %v9127_v28, 20.0  ;;  %v9147_v37 = vadd.f32 %v2239_v32, %v8932_v48  ;;  %v9150_v19 = vadd.f32 %v2082_v15, %v8934_v39 }
 0x2d0   : > { %13369 = vst [vmem:[#allocation68_spill] sm:$0xff] %v9117_v54  ;;  %v9120_v51 = vpop.eup %6485  ;;  %v2243_v62 = vpop.f32.mrf.mxu1  ;;  %6517 = vpow2.f32 %v2464_v40  ;;  %v2474_v40 = vmul.f32 1.442695, %v2373_v63 }
 0x2d1   : > { %13370 = vst [vmem:[#allocation30_spill] sm:$0xff] %v9120_v51  ;;  %v2088_v27 = vpop.f32.mrf.mxu0  ;;  %v9129_v42 = vpop.eup %6487  ;;  %13378 = vst [vmem:[#allocation65_spill] sm:$0xff] %v9147_v37  ;;  %6519 = vpow2.f32 %v2468_v31  ;;  %v9157_v18 = vadd.f32 %v2243_v62, %v8934_v39  ;;  %v2379_v48 = vmin.f32 %v9147_v37, 20.0  ;;  %v2380_v32 = vmin.f32 %v9150_v19, 20.0 }
 0x2d2   : > { %13373 = vst [vmem:[#allocation66_spill] sm:$0xff] %v9129_v42  ;;  %v9135_v43 = vpop.eup %6489  ;;  %v9138_v25 = vpop.f32.mrf.mxu1  ;;  %13379 = vst [vmem:[#allocation22_spill] sm:$0xff] %v9150_v19  ;;  %6521 = vpow2.f32 %v2466_v33  ;;  %v2484_v50 = vmul.f32 1.442695, %v2378_v49  ;;  %v2482_v62 = vmul.f32 1.442695, %v2377_v53  ;;  %v9171_v7 = vadd.f32 %v2088_v27, %v8928_v60 }
 0x2d3   : > { %13375 = vst [vmem:[#allocation67_spill] sm:$0xff] %v9135_v43  ;;  %v2090_v26 = vpop.f32.mrf.mxu0  ;;  %v9140_v35 = vpop.eup %6491  ;;  %13381 = vst [vmem:[#allocation24_spill] sm:$0xff] %v9157_v18  ;;  %6523 = vpow2.f32 %v2470_v0  ;;  %v2382_v31 = vmin.f32 %v9157_v18, 20.0  ;;  %v2486_v33 = vmul.f32 1.442695, %v2379_v48 }
 0x2d4   : > { %13376 = vst [vmem:[#allocation32_spill] sm:$0xff] %v9140_v35  ;;  %v9143_v21 = vpop.eup %6493  ;;  %v9152_v55 = vpop.f32.mrf.mxu1  ;;  %6525 = vpow2.f32 %v2472_v4  ;;  %13386 = vst [vmem:[#allocation55_spill] sm:$0xff] %v9171_v7  ;;  %v2488_v42 = vmul.f32 1.442695, %v2380_v32  ;;  %v9176_v0 = vadd.f32 %v2090_v26, %v8928_v60  ;;  %v2384_v48 = vmin.f32 %v9171_v7, 20.0 }
 0x2d5   : > { %13377 = vst [vmem:[#allocation63_spill] sm:$0xff] %v9143_v21  ;;  %v2094_v45 = vpop.f32.mrf.mxu0  ;;  %v9154_v6 = vpop.eup %6495  ;;  %6527 = vpow2.f32 %v2474_v40  ;;  %v2492_v40 = vmul.f32 1.442695, %v2382_v31 }
 0x2d6   : > { %13380 = vst [vmem:[#allocation59_spill] sm:$0xff] %v9154_v6  ;;  %v9159_v1 = vpop.eup %6497  ;;  %v2251_v15 = vpop.f32.mrf.mxu1  ;;  %6529 = vpow2.f32 %v2480_v44  ;;  %v2496_v26 = vmul.f32 1.442695, %v2384_v48  ;;  %v2385_v32 = vmin.f32 %v9176_v0, 20.0  ;;  %vm2321_vm12 = vcmp.gt.f32.partialorder %v9176_v0, 20.0 }
 0x2d7   : > { %13382 = vst [vmem:[#allocation23_spill] sm:$0xff] %v9159_v1  ;;  %v2096_v8 = vpop.f32.mrf.mxu0  ;;  %v9163_v59 = vpop.eup %6499  ;;  %v9179_v49 = vadd.f32 %v2251_v15, %v8928_v60  ;;  %6531 = vpow2.f32 %v2484_v50  ;;  %v9193_v50 = vadd.f32 %v2094_v45, %v8930_v52 }
 0x2d8   : > { %13383 = vst [vmem:[#allocation25_spill] sm:$0xff] %v9163_v59  ;;  %v9166_v63 = vpop.eup %6501  ;;  %v2255_v54 = vpop.f32.mrf.mxu1  ;;  %6533 = vpow2.f32 %v2482_v62  ;;  %v2498_v35 = vmul.f32 1.442695, %v2385_v32  ;;  %v9201_v48 = vadd.f32 %v2096_v8, %v8930_v52 }
 0x2d9   : > { %13384 = vst [vmem:[#allocation61_spill] sm:$0xff] %v9166_v63  ;;  %v9168_v46 = vpop.eup %6503  ;;  %13388 = vst [vmem:[#allocation57_spill] sm:$0xff] %v9179_v49  ;;  %v2100_v53 = vpop.f32.mrf.mxu0  ;;  %6535 = vpow2.f32 %v2486_v33  ;;  %v2387_v15 = vmin.f32 %v9179_v49, 20.0  ;;  %v9196_v31 = vadd.f32 %v2255_v54, %v8930_v52 }
 0x2da   : > { %13385 = vst [vmem:[#allocation20_spill] sm:$0xff] %v9168_v46  ;;  %v9173_v41 = vpop.eup %6505  ;;  %v2257_v4 = vpop.f32.mrf.mxu1  ;;  %6537 = vpow2.f32 %v2488_v42  ;;  %v2388_v42 = vmin.f32 %v9193_v50, 20.0  ;;  %v2389_v54 = vmin.f32 %v9201_v48, 20.0  ;;  %v9214_v8 = vadd.f32 %v2100_v53, %v8924_v57 }
 0x2db   : > { %13387 = vst [vmem:[#allocation18_spill] sm:$0xff] %v9173_v41  ;;  %v9181_v22 = vpop.eup %6507  ;;  %13393 = vst [vmem:[#allocation47_spill] sm:$0xff] %v9196_v31  ;;  %v2102_v5 = vpop.f32.mrf.mxu0  ;;  %6539 = vpow2.f32 %v2492_v40  ;;  %v2502_v33 = vmul.f32 1.442695, %v2387_v15  ;;  %v2390_v45 = vmin.f32 %v9196_v31, 20.0  ;;  %v9209_v6 = vadd.f32 %v2257_v4, %v8930_v52 }
 0x2dc   : > { %13389 = vst [vmem:[#allocation51_spill] sm:$0xff] %v9181_v22  ;;  %v9184_v27 = vpop.eup %6509  ;;  %v2261_v30 = vpop.f32.mrf.mxu1  ;;  %6541 = vpow2.f32 %v2496_v26  ;;  %v2504_v32 = vmul.f32 1.442695, %v2388_v42  ;;  %v2506_v21 = vmul.f32 1.442695, %v2389_v54  ;;  %v9223_v52 = vadd.f32 %v2102_v5, %v8924_v57 }
 0x2dd   : > { %13390 = vst [vmem:[#allocation53_spill] sm:$0xff] %v9184_v27  ;;  %v9186_v44 = vpop.eup %6511  ;;  %6543 = vpow2.f32 %v2498_v35  ;;  %v9217_v15 = vadd.f32 %v2261_v30, %v8924_v57  ;;  %v2106_v26 = vpop.f32.mrf.mxu0  ;;  %v2508_v35 = vmul.f32 1.442695, %v2390_v45  ;;  %v2391_v12 = vmin.f32 %v9209_v6, 20.0 }
 0x2de   : > { %13391 = vst [vmem:[#allocation19_spill] sm:$0xff] %v9186_v44  ;;  %v9190_v51 = vpop.eup %6513  ;;  %v2263_v43 = vpop.f32.mrf.mxu1  ;;  %6545 = vpow2.f32 %v2502_v33  ;;  %v9229_v53 = vadd.f32 %v9115_v2, %v8934_v39  ;;  %v9233_v30 = vadd.f32 %v9138_v25, %v8934_v39  ;;  %v2392_v33 = vmin.f32 %v9214_v8, 20.0 }
 0x2df   : > { %13392 = vst [vmem:[#allocation21_spill] sm:$0xff] %v9190_v51  ;;  %v9198_v62 = vpop.eup %6515  ;;  %6547 = vpow2.f32 %v2504_v32  ;;  %v9240_v5 = vadd.f32 %v9152_v55, %v8928_v60  ;;  %v2394_v45 = vmin.f32 %v9217_v15, 20.0  ;;  %v2393_v54 = vmin.f32 %v9223_v52, 20.0  ;;  %v2108_v32 = vpop.f32.mrf.mxu0 }
 0x2e0   : > { %13394 = vst [vmem:[#allocation49_spill] sm:$0xff] %v9198_v62  ;;  %v9203_v14 = vpop.eup %6517  ;;  %v2267_v4 = vpop.f32.mrf.mxu1  ;;  %13399 = vst [vmem:[#allocation45_spill] sm:$0xff] %v9229_v53  ;;  %6549 = vpow2.f32 %v2508_v35  ;;  %v2512_v59 = vmul.f32 1.442695, %v2392_v33  ;;  %v9247_v39 = vadd.f32 %v2263_v43, %v8924_v57  ;;  %v9250_v25 = vadd.f32 %v2106_v26, %v8926_v38 }
 0x2e1   : > { %13395 = vst [vmem:[#allocation14_spill] sm:$0xff] %v9203_v14  ;;  %v9211_v40 = vpop.eup %6519  ;;  %13400 = vst [vmem:[#allocation39_spill] sm:$0xff] %v9233_v30  ;;  %6551 = vpow2.f32 %v2506_v21  ;;  %v2510_v60 = vmul.f32 1.442695, %v2391_v12  ;;  %v2516_v55 = vmul.f32 1.442695, %v2394_v45  ;;  %v9255_v47 = vadd.f32 %v2267_v4, %v8926_v38 }
 0x2e2   : > { %13396 = vst [vmem:[#allocation43_spill] sm:$0xff] %v9211_v40  ;;  %v9219_v11 = vpop.eup %6521  ;;  %13402 = vst [vmem:[#allocation10_spill] sm:$0xff] %v9240_v5  ;;  %v2514_v35 = vmul.f32 1.442695, %v2393_v54  ;;  %v2269_v46 = vpop.f32.mrf.mxu1  ;;  %v2381_v21 = vmin.f32 %v9229_v53, 20.0  ;;  %6553 = vpow2.f32 %v2512_v59  ;;  %v2395_v57 = vmin.f32 %v9247_v39, 20.0 }
 0x2e3   : > { %13397 = vst [vmem:[#allocation16_spill] sm:$0xff] %v9219_v11  ;;  %v9225_v36 = vpop.eup %6523  ;;  %v2396_v43 = vmin.f32 %v9250_v25, 20.0  ;;  %v2383_v33 = vmin.f32 %v9233_v30, 20.0  ;;  %6555 = vpow2.f32 %v2516_v55  ;;  %v2398_v12 = vmin.f32 %v9255_v47, 20.0 }
 0x2e4   : > { %13398 = vst [vmem:[#allocation17_spill] sm:$0xff] %v9225_v36  ;;  %v9236_v42 = vpop.eup %6525  ;;  %v9267_v4 = vadd.f32 %v2108_v32, %v8926_v38  ;;  %6557 = vpow2.f32 %v2514_v35  ;;  %v2518_v54 = vmul.f32 1.442695, %v2395_v57  ;;  %v9272_v59 = vadd.f32 %v2269_v46, %v8926_v38 }
 0x2e5   : > { %13401 = vst [vmem:[#allocation15_spill] sm:$0xff] %v9236_v42  ;;  %v9244_v2 = vpop.eup %6527  ;;  %v2520_v63 = vmul.f32 1.442695, %v2396_v43  ;;  %v2386_v22 = vmin.f32 %v9240_v5, 20.0  ;;  %6559 = vpow2.f32 %v2510_v60  ;;  %v2524_v41 = vmul.f32 1.442695, %v2398_v12 }
 0x2e6   : > { %13403 = vst [vmem:[#allocation41_spill] sm:$0xff] %v9244_v2  ;;  %v9252_v1 = vpop.eup %6529  ;;  %v2397_v55 = vmin.f32 %v9267_v4, 20.0  ;;  %v9282_v32 = vadd.f32 %v9079_v10, %v8938_v13  ;;  %6561 = vpow2.f32 %v2518_v54  ;;  %v2399_v35 = vmin.f32 %v9272_v59, 20.0 }
 0x2e7   : > { %13404 = vst [vmem:[#allocation35_spill] sm:$0xff] %v9252_v1  ;;  %v9257_v9 = vpop.eup %6531  ;;  %v9289_v38 = vadd.f32 %v9093_v3, %v8938_v13  ;;  %v2490_v46 = vmul.f32 1.442695, %v2381_v21  ;;  %6563 = vpow2.f32 %v2520_v63  ;;  %v2494_v12 = vmul.f32 1.442695, %v2383_v33 }
 0x2e8   : > { %13405 = vst [vmem:[#allocation37_spill] sm:$0xff] %v9257_v9  ;;  %v9262_v26 = vpop.eup %6533  ;;  %13410 = vst [vmem:[#allocation33_spill] sm:$0xff] %v9282_v32  ;;  %v2522_v60 = vmul.f32 1.442695, %v2397_v55  ;;  %6565 = vpow2.f32 %v2524_v41  ;;  %v2526_v24 = vmul.f32 1.442695, %v2399_v35 }
 0x2e9   : > { %13406 = vst [vmem:[#allocation12_spill] sm:$0xff] %v9262_v26  ;;  %v9269_v45 = vpop.eup %6535  ;;  %13411 = vst [vmem:[#allocation6_spill] sm:$0xff] %v9289_v38  ;;  %v2500_v10 = vmul.f32 1.442695, %v2386_v22  ;;  %v2374_v13 = vmin.f32 %v9282_v32, 20.0  ;;  %v2375_v3 = vmin.f32 %v9289_v38, 20.0 }
 0x2ea   : > { %13407 = vst [vmem:[#allocation13_spill] sm:$0xff] %v9269_v45  ;;  %v9274_v56 = vpop.eup %6537  ;;  %6567 = vpow2.f32 %v2522_v60  ;;  %vm2325_vm3 = vcmp.gt.f32.partialorder %v9201_v48, 20.0  ;;  %vm2328_vm4 = vcmp.gt.f32.partialorder %v9214_v8, 20.0  ;;  %vm2329_vm7 = vcmp.gt.f32.partialorder %v9223_v52, 20.0 }
 0x2eb   : > { %13408 = vst [vmem:[#allocation31_spill] sm:$0xff] %v9274_v56  ;;  %v9278_v61 = vpop.eup %6539  ;;  %6569 = vpow2.f32 %v2526_v24  ;;  %v9310_v35 = vmul.f32 1.442695, %v2374_v13  ;;  %vm2333_vm9 = vcmp.gt.f32.partialorder %v9267_v4, 20.0  ;;  %vm2335_vm13 = vcmp.gt.f32.partialorder %v9272_v59, 20.0 }
 0x2ec   : > { %13409 = vst [vmem:[#allocation11_spill] sm:$0xff] %v9278_v61  ;;  %v9285_v57 = vpop.eup %6541  ;;  %6571 = vpow2.f32 %v2490_v46  ;;  %v9312_v46 = vmul.f32 1.442695, %v2375_v3  ;;  %vm2331_vm15 = vcmp.gt.f32.partialorder %v9247_v39, 20.0 }
 0x2ed   : > { %v9291_v43 = vpop.eup %6543  ;;  %6573 = vpow2.f32 %v2494_v12  ;;  %13412 = vst [vmem:[#allocation27_spill] sm:$0xff] %v9310_v35 }
 0x2ee   : > { %v9293_v44 = vpop.eup %6545  ;;  %v2969_v54 = vadd.f32 1.0, %v9291_v43  ;;  %v2972_v41 = vmul.f32 -0.5, %v9291_v43  ;;  %6575 = vpow2.f32 %v2500_v10  ;;  %13413 = vst [vmem:[#allocation29_spill] sm:$0xff] %v9312_v46 }
 0x2ef   : > { %v9296_v17 = vpop.eup %6547  ;;  %v2987_v63 = vadd.f32 1.0, %v9293_v44 }
 0x2f0   : > { %v9301_v21 = vpop.eup %6549  ;;  %v2996_v22 = vadd.f32 1.0, %v9296_v17  ;;  %6577 = vlog2.f32 %v2969_v54  ;;  %v2973_v27 = vadd.f32 1.0, %v2972_v41  ;;  %v9322_v54 = vmul.f32 -0.5, %v9293_v44 }
 0x2f1   : > { %v9304_v33 = vpop.eup %6551  ;;  %6579 = vlog2.f32 %v2987_v63  ;;  %v9330_v41 = vadd.f32 1.0, %v9285_v57  ;;  %v9336_v58 = vadd.f32 1.0, %v9301_v21  ;;  %v9339_v13 = vmul.f32 -0.5, %v9301_v21 }
 0x2f2   : > { %v3005_v24 = vadd.f32 1.0, %v9304_v33  ;;  %v9308_v55 = vpop.eup %6553  ;;  %v9344_v40 = vmul.f32 %v9291_v43, %v2973_v27 }
 0x2f3   : > { %v9314_v60 = vpop.eup %6555  ;;  %v3032_v12 = vadd.f32 1.0, %v9308_v55  ;;  %v3035_v36 = vmul.f32 -0.5, %v9308_v55  ;;  %v3038_v51 = vand.u32 2147483647, %v9308_v55 }
 0x2f4   : > { %6581 = vlog2.f32 %v3005_v24  ;;  %v9318_v16 = vpop.eup %6557  ;;  %v3050_v62 = vadd.f32 1.0, %v9314_v60  ;;  %v2999_v24 = vmul.f32 -0.5, %v9296_v17 }
 0x2f5   : > { %6583 = vlog2.f32 %v2996_v22  ;;  %v9325_v3 = vpop.eup %6559  ;;  %v3041_v63 = vadd.f32 1.0, %v9318_v16  ;;  %v3047_v45 = vand.u32 2147483647, %v9318_v16  ;;  %v3036_v49 = vadd.f32 1.0, %v3035_v36 }
 0x2f6   : > { %6585 = vlog2.f32 %v3032_v12  ;;  %v9332_v10 = vpop.eup %6561  ;;  %v3008_v12 = vmul.f32 -0.5, %v9304_v33  ;;  %v3023_v34 = vadd.f32 1.0, %v9325_v3  ;;  %v9351_v14 = vmul.f32 -0.5, %v9325_v3 }
 0x2f7   : > { %6587 = vlog2.f32 %v3050_v62  ;;  %v6564_v32 = vpop.eup %6563  ;;  %v9356_v11 = vadd.f32 1.0, %v2999_v24  ;;  %v3059_v18 = vadd.f32 1.0, %v9332_v10  ;;  %v3053_v24 = vmul.f32 -0.5, %v9314_v60 }
 0x2f8   : > { %6589 = vlog2.f32 %v3041_v63  ;;  %v9346_v38 = vpop.eup %6565  ;;  %v3068_v62 = vadd.f32 1.0, %v6564_v32  ;;  %v3044_v63 = vmul.f32 -0.5, %v9318_v16  ;;  %v3071_v42 = vmul.f32 -0.5, %v6564_v32 }
 0x2f9   : > { %v6568_v29 = vpop.eup %6567  ;;  %v3086_v22 = vadd.f32 1.0, %v9346_v38  ;;  %v3074_v19 = vand.u32 2147483647, %v6564_v32  ;;  %v3089_v5 = vmul.f32 -0.5, %v9346_v38  ;;  %vm9376_vm2 = vcmp.lt.f32.partialorder %v3038_v51, 0.0004427343 }
 0x2fa   : > { %v6570_v27 = vpop.eup %6569  ;;  %v3077_v28 = vadd.f32 1.0, %v6568_v29  ;;  %6591 = vlog2.f32 %v3068_v62  ;;  %v3080_v37 = vmul.f32 -0.5, %v6568_v29  ;;  %v3045_v1 = vadd.f32 1.0, %v3044_v63 }
 0x2fb   : > { %v9359_v20 = vpop.eup %6571  ;;  %v3095_v23 = vadd.f32 1.0, %v6570_v27  ;;  %v3098_v2 = vmul.f32 -0.5, %v6570_v27  ;;  %v3072_v53 = vadd.f32 1.0, %v3071_v42  ;;  %v3083_v61 = vand.u32 2147483647, %v6568_v29 }
 0x2fc   : > { %13414 = vst [vmem:[#allocation8_spill] sm:$0xff] %v9359_v20  ;;  %v9362_v9 = vpop.eup %6573  ;;  %6593 = vlog2.f32 %v3077_v28  ;;  %v3062_v28 = vmul.f32 -0.5, %v9332_v10  ;;  %v3081_v35 = vadd.f32 1.0, %v3080_v37  ;;  %v3009_v42 = vadd.f32 1.0, %v3008_v12 }
 0x2fd   : > { %13415 = vst [vmem:[#allocation9_spill] sm:$0xff] %v9362_v9  ;;  %v9367_v62 = vpop.eup %6575  ;;  %6595 = vlog2.f32 %v3095_v23  ;;  %v3099_v30 = vadd.f32 1.0, %v3098_v2  ;;  %v3101_v23 = vand.u32 2147483647, %v6570_v27  ;;  %v3092_v31 = vand.u32 2147483647, %v9346_v38 }
 0x2fe   : > { %v9370_v26 = vpop.eup %6577  ;;  %6597 = vlog2.f32 %v3086_v22  ;;  %v9384_v37 = vmul.f32 %v9318_v16, %v3045_v1  ;;  %vm9386_vm5 = vcmp.lt.f32.partialorder %v3047_v45, 0.0004427343  ;;  %v3054_v36 = vadd.f32 1.0, %v3053_v24 }
 0x2ff   : > { %v9374_v7 = vpop.eup %6579  ;;  %6599 = vlog2.f32 %v3059_v18  ;;  %v9390_v2 = vmul.f32 %v6564_v32, %v3072_v53  ;;  %vm9392_vm6 = vcmp.lt.f32.partialorder %v3074_v19, 0.0004427343  ;;  %v3090_v12 = vadd.f32 1.0, %v3089_v5 }
 0x300   : > { %6601 = vlog2.f32 %v3023_v34  ;;  %v3082_v1 = vmul.f32 %v6568_v29, %v3081_v35  ;;  %vm9397_vm8 = vcmp.lt.f32.partialorder %v3083_v61, 0.0004427343  ;;  %v9401_v45 = vmul.f32 %v6570_v27, %v3099_v30 }
 0x301   : > { %v6582_v56 = vpop.eup %6581  ;;  %v3063_v24 = vadd.f32 1.0, %v3062_v28  ;;  %vm9404_vm10 = vcmp.lt.f32.partialorder %v3101_v23, 0.0004427343  ;;  %v3037_v34 = vmul.f32 %v9308_v55, %v3036_v49  ;;  %v3010_v61 = vmul.f32 %v9304_v33, %v3009_v42 }
 0x302   : > { %v6584_v22 = vpop.eup %6583  ;;  %v3007_v46 = vmul.f32 0.6931472, %v6582_v56  ;;  %v3065_v56 = vand.u32 2147483647, %v9332_v10  ;;  %v13426_v29 = vand.u32 2147483647, %v9304_v33  ;;  %6603 = vlog2.f32 %v9336_v58 }
 0x303   : > { %v6586_v51 = vpop.eup %6585  ;;  %vm9419_vm14 = vcmp.lt.f32.partialorder %v3092_v31, 0.0004427343  ;;  %v3027_v27 = vadd.f32 1.0, %v9351_v14  ;;  %v9424_v49 = vmul.f32 0.6931472, %v6584_v22  ;;  %v3091_v33 = vmul.f32 %v9346_v38, %v3090_v12 }
 0x304   : > { %v6588_v20 = vpop.eup %6587  ;;  %v3034_v53 = vmul.f32 0.6931472, %v6586_v51  ;;  %vm9413_vm11 = vcmp.lt.f32.partialorder %v13426_v29, 0.0004427343  ;;  %v3055_v28 = vmul.f32 %v9314_v60, %v3054_v36  ;;  %v13431_v23 = vand.u32 2147483647, %v9291_v43 }
 0x305   : > { %v6590_v32 = vpop.eup %6589  ;;  %v3052_v55 = vmul.f32 0.6931472, %v6588_v20  ;;  %v3013_v31 = vsel %vm9413_vm11, %v3010_v61, %v3007_v46  ;;  %v3064_v20 = vmul.f32 %v9332_v10, %v3063_v24  ;;  %v13434_v38 = vand.u32 2147483647, %v9314_v60  ;;  %v13457_v51 = vld [vmem:[#allocation57_spill] sm:$0xff] }
 0x306   : > { %v3043_v35 = vmul.f32 0.6931472, %v6590_v32  ;;  %vm9434_vm0 = vcmp.lt.f32.partialorder %v13431_v23, 0.0004427343  ;;  %v3040_v58 = vsel %vm9376_vm2, %v3037_v34, %v3034_v53  ;;  %v3001_v46 = vmul.f32 %v9296_v17, %v9356_v11 }
 0x307   : > { %v6592_v14 = vpop.eup %6591  ;;  %vm9446_vm11 = vcmp.lt.f32.partialorder %v13434_v38, 0.0004427343  ;;  %vm9455_vm1 = vcmp.lt.f32.partialorder %v3065_v56, 0.0004427343  ;;  %v13439_v10 = vand.u32 2147483647, %v9296_v17  ;;  %v3157_v11 = vsel %vm2325_vm3, %v9201_v48, %v3013_v31 }
 0x308   : > { %v3070_v22 = vmul.f32 0.6931472, %v6592_v14  ;;  %v3049_v36 = vsel %vm9386_vm5, %v9384_v37, %v3043_v35  ;;  %v3028_v12 = vmul.f32 %v9325_v3, %v3027_v27  ;;  %v13442_v18 = vand.u32 2147483647, %v9325_v3  ;;  %v13453_v38 = vld [vmem:[#allocation29_spill] sm:$0xff] }
 0x309   : > { %vm9461_vm2 = vcmp.lt.f32.partialorder %v13439_v10, 0.0004427343  ;;  %v6594_v63 = vpop.eup %6593  ;;  %6605 = vlog2.f32 %v9330_v41  ;;  %v3160_v48 = vsel %vm2328_vm4, %v9214_v8, %v3040_v58  ;;  %v3058_v3 = vsel %vm9446_vm11, %v3055_v28, %v3052_v55  ;;  %v13458_v10 = vld [vmem:[#allocation31_spill] sm:$0xff] }
 0x30a   : > { %vm9471_vm5 = vcmp.lt.f32.partialorder %v13442_v18, 0.0004427343  ;;  %v3004_v17 = vsel %vm9461_vm2, %v3001_v46, %v9424_v49  ;;  %v6596_v24 = vpop.eup %6595  ;;  %v3079_v53 = vmul.f32 0.6931472, %v6594_v63  ;;  %vm2327_vm3 = vcmp.gt.f32.partialorder %v9209_v6, 20.0  ;;  %v13455_v46 = vld [vmem:[#allocation9_spill] sm:$0xff] }
 0x30b   : > { %v3018_v32 = vadd.f32 1.0, %v9339_v13  ;;  %v6598_v56 = vpop.eup %6597  ;;  %v3097_v34 = vmul.f32 0.6931472, %v6596_v24  ;;  %v3076_v61 = vsel %vm9392_vm6, %v9390_v2, %v3070_v22  ;;  %v3161_v41 = vsel %vm2329_vm7, %v9223_v52, %v3049_v36  ;;  %v13456_v36 = vld [vmem:[#allocation47_spill] sm:$0xff] }
 0x30c   : > { %v2971_v29 = vmul.f32 0.6931472, %v9370_v26  ;;  %v6600_v8 = vpop.eup %6599  ;;  %v3085_v30 = vsel %vm9397_vm8, %v3082_v1, %v3079_v53  ;;  %v3088_v35 = vmul.f32 0.6931472, %v6598_v56  ;;  %v2989_v27 = vmul.f32 0.6931472, %v9374_v7 }
 0x30d   : > { %v2978_v13 = vadd.f32 1.0, %v9367_v62  ;;  %v3165_v9 = vsel %vm2333_vm9, %v9267_v4, %v3085_v30  ;;  %v3103_v2 = vsel %vm9404_vm10, %v9401_v45, %v3097_v34  ;;  %v3061_v52 = vmul.f32 0.6931472, %v6600_v8  ;;  %v6602_v49 = vpop.eup %6601  ;;  %v13459_v53 = vld [vmem:[#allocation11_spill] sm:$0xff]  ;;  %v13464_v30 = vld [vmem:[#allocation12_spill] sm:$0xff] }
 0x30e   : > { %v2991_v26 = vadd.f32 1.0, %v9322_v54  ;;  %3280 = vmatprep.subr.mxu0 %v3165_v9  ;;  %v3167_v1 = vsel %vm2335_vm13, %v9272_v59, %v3103_v2  ;;  %vm13445_vm4 = vcmp.gt.f32.partialorder %v9250_v25, 20.0  ;;  %v3094_v16 = vsel %vm9419_vm14, %v3091_v33, %v3088_v35 }
 0x30f   : > { %v3164_v7 = vsel %vm13445_vm4, %v9250_v25, %v3076_v61  ;;  %v2963_v4 = vmul.f32 -0.5, %v9285_v57  ;;  %3441 = vmatprep.subr.mxu1 %v3167_v1  ;;  %vm13446_vm6 = vcmp.gt.f32.partialorder %v9255_v47, 20.0  ;;  %v3067_v45 = vsel %vm9455_vm1, %v3064_v20, %v3061_v52  ;;  %v13462_v61 = vld [vmem:[#allocation10_spill] sm:$0xff]  ;;  %v13467_v52 = vld [vmem:[#allocation13_spill] sm:$0xff] }
 0x310   : > { %3281 = vmatpush1.msra.mxu0 %v3164_v7  ;;  %v3166_v54 = vsel %vm13446_vm6, %v9255_v47, %v3094_v16  ;;  %v2977_v59 = vsel %vm9434_vm0, %v9344_v40, %v2971_v29  ;;  %6607 = vlog2.f32 %v2978_v13  ;;  %v3163_v25 = vsel %vm2331_vm15, %v9247_v39, %v3067_v45  ;;  %v13452_v39 = vld [vmem:[#allocation8_spill] sm:$0xff] }
 0x311   : > { %3442 = vmatpush1.msra.mxu1 %v3166_v54  ;;  %3282 = vmatprep.subr.mxu0 %v3161_v41  ;;  %vm13447_vm7 = vcmp.gt.f32.partialorder %v9217_v15, 20.0  ;;  %v3025_v5 = vmul.f32 0.6931472, %v6602_v49  ;;  %vm13448_vm8 = vcmp.gt.f32.partialorder %v9193_v50, 20.0  ;;  %v3019_v40 = vmul.f32 %v9301_v21, %v3018_v32  ;;  %v13461_v32 = vld [vmem:[#allocation55_spill] sm:$0xff]  ;;  %v13463_v41 = vld [vmem:[#allocation45_spill] sm:$0xff] }
 0x312   : > { %v3162_v19 = vsel %vm13447_vm7, %v9217_v15, %v3058_v3  ;;  %v3156_v47 = vsel %vm13448_vm8, %v9193_v50, %v3004_v17  ;;  %3443 = vmatprep.subr.mxu1 %v3163_v25  ;;  %3283 = vmatpush1.msra.mxu0 %v3160_v48  ;;  %v2992_v33 = vmul.f32 %v9293_v44, %v2991_v26  ;;  %v13449_v55 = vand.u32 2147483647, %v9293_v44  ;;  %v6604_v15 = vpop.eup %6603  ;;  %v13460_v3 = vld [vmem:[#allocation27_spill] sm:$0xff] }
 0x313   : > { %v2933_v31 = vadd.f32 1.0, %v13452_v39  ;;  %3444 = vmatpush1.msra.mxu1 %v3162_v19  ;;  %3284 = vmatprep.subr.mxu0 %v3157_v11  ;;  %v3031_v50 = vsel %vm9471_vm5, %v3028_v12, %v3025_v5  ;;  %v3153_v23 = vsel %vm2321_vm12, %v9176_v0, %v2977_v59  ;;  %v2964_v42 = vadd.f32 1.0, %v2963_v4  ;;  %v13468_v54 = vld [vmem:[#allocation35_spill] sm:$0xff] }
 0x314   : > { %vm9535_vm9 = vcmp.lt.f32.partialorder %v13449_v55, 0.0004427343  ;;  %v2966_v14 = vand.u32 2147483647, %v9285_v57  ;;  %v3159_v44 = vsel %vm2327_vm3, %v9209_v6, %v3031_v50  ;;  %3285 = vmatpush1.msra.mxu0 %v3156_v47  ;;  %v3016_v20 = vmul.f32 0.6931472, %v6604_v15 }
 0x315   : > { %v2995_v58 = vsel %vm9535_vm9, %v2992_v33, %v2989_v27  ;;  %6609 = vlog2.f32 %v2933_v31  ;;  %3445 = vmatprep.subr.mxu1 %v3159_v44  ;;  %v13454_v43 = vand.u32 2147483647, %v9301_v21  ;;  %3286 = vmatprep.subr.mxu0 %v3153_v23  ;;  %v2981_v0 = vmul.f32 -0.5, %v9367_v62  ;;  %v13472_v19 = vld [vmem:[#allocation39_spill] sm:$0xff]  ;;  %v13475_v23 = vld [vmem:[#allocation37_spill] sm:$0xff] }
 0x316   : > { %6611 = vpow2.f32 %v13453_v38  ;;  %v2951_v22 = vadd.f32 1.0, %v13455_v46  ;;  %vm2326_vm12 = vcmp.gt.f32.partialorder %v13456_v36, 20.0  ;;  %vm2323_vm13 = vcmp.gt.f32.partialorder %v13457_v51, 20.0  ;;  %v6606_v63 = vpop.eup %6605 }
 0x317   : > { %vm3021_vm10 = vcmp.lt.f32.partialorder %v13454_v43, 0.0004427343  ;;  %v2924_v60 = vadd.f32 1.0, %v13458_v10  ;;  %v3155_v12 = vsel %vm2323_vm13, %v13457_v51, %v2995_v58  ;;  %v2962_v21 = vmul.f32 0.6931472, %v6606_v63  ;;  %v13479_v58 = vld [vmem:[#allocation41_spill] sm:$0xff] }
 0x318   : > { %v3022_v6 = vsel %vm3021_vm10, %v3019_v40, %v3016_v20  ;;  %6613 = vlog2.f32 %v2951_v22  ;;  %v2965_v18 = vmul.f32 %v9285_v57, %v2964_v42  ;;  %vm2967_vm14 = vcmp.lt.f32.partialorder %v2966_v14, 0.0004427343  ;;  %v13476_v14 = vld [vmem:[#allocation24_spill] sm:$0xff] }
 0x319   : > { %v3158_v11 = vsel %vm2326_vm12, %v13456_v36, %v3022_v6  ;;  %6615 = vlog2.f32 %v2924_v60  ;;  %v2982_v37 = vadd.f32 1.0, %v2981_v0  ;;  %v2984_v17 = vand.u32 2147483647, %v9367_v62 }
 0x31a   : > { %3446 = vmatpush1.msra.mxu1 %v3158_v11  ;;  %v2936_v24 = vmul.f32 -0.5, %v13452_v39  ;;  %v2942_v48 = vadd.f32 1.0, %v13459_v53  ;;  %6617 = vpow2.f32 %v13460_v3  ;;  %vm2320_vm15 = vcmp.gt.f32.partialorder %v13461_v32, 20.0 }
 0x31b   : > { %3447 = vmatprep.subr.mxu1 %v3155_v12  ;;  %v2968_v56 = vsel %vm2967_vm14, %v2965_v18, %v2962_v21  ;;  %v2954_v34 = vmul.f32 -0.5, %v13455_v46  ;;  %vm2322_vm0 = vcmp.gt.f32.partialorder %v13462_v61, 20.0  ;;  %vm2317_vm1 = vcmp.gt.f32.partialorder %v13463_v41, 20.0  ;;  %v13482_v12 = vld [vmem:[#allocation28_spill] sm:$0xff] }
 0x31c   : > { %v3152_v57 = vsel %vm2320_vm15, %v13461_v32, %v2968_v56  ;;  %6619 = vlog2.f32 %v2942_v48  ;;  %v2939_v29 = vand.u32 2147483647, %v13452_v39  ;;  %v2927_v8 = vmul.f32 -0.5, %v13458_v10 }
 0x31d   : > { %3287 = vmatpush1.msra.mxu0 %v3152_v57  ;;  %v2897_v35 = vadd.f32 1.0, %v13464_v30  ;;  %v6608_v27 = vpop.eup %6607  ;;  %v2983_v13 = vmul.f32 %v9367_v62, %v2982_v37  ;;  %vm9575_vm11 = vcmp.lt.f32.partialorder %v2984_v17, 0.0004427343  ;;  %v2937_v2 = vadd.f32 1.0, %v2936_v24  ;;  %v13469_v62 = vld [vmem:[#allocation22_spill] sm:$0xff]  ;;  %v13483_v24 = vld [vmem:[#allocation65_spill] sm:$0xff] }
 0x31e   : > { %v2915_v26 = vadd.f32 1.0, %v13467_v52  ;;  %v2980_v1 = vmul.f32 0.6931472, %v6608_v27  ;;  %v2955_v7 = vadd.f32 1.0, %v2954_v34  ;;  %v2957_v16 = vand.u32 2147483647, %v13455_v46 }
 0x31f   : > { %6621 = vlog2.f32 %v2897_v35  ;;  %v2930_v4 = vand.u32 2147483647, %v13458_v10  ;;  %v2945_v49 = vmul.f32 -0.5, %v13459_v53  ;;  %v2888_v45 = vadd.f32 1.0, %v13468_v54  ;;  %v13484_v57 = vld [vmem:[#allocation69_spill] sm:$0xff] }
 0x320   : > { %6623 = vlog2.f32 %v2915_v26  ;;  %vm2316_vm2 = vcmp.gt.f32.partialorder %v13469_v62, 20.0  ;;  %v2986_v59 = vsel %vm9575_vm11, %v2983_v13, %v2980_v1  ;;  %vm9587_vm5 = vcmp.lt.f32.partialorder %v2939_v29, 0.0004427343  ;;  %v13487_v13 = vld [vmem:[#allocation15_spill] sm:$0xff] }
 0x321   : > { %vm2319_vm3 = vcmp.gt.f32.partialorder %v13472_v19, 20.0  ;;  %v2928_v5 = vadd.f32 1.0, %v2927_v8  ;;  %v3154_v40 = vsel %vm2322_vm0, %v13462_v61, %v2986_v59  ;;  %v2938_v33 = vmul.f32 %v13452_v39, %v2937_v2 }
 0x322   : > { %v6610_v47 = vpop.eup %6609  ;;  %v2948_v55 = vand.u32 2147483647, %v13459_v53  ;;  %6625 = vlog2.f32 %v2888_v45  ;;  %3448 = vmatpush1.msra.mxu1 %v3154_v40  ;;  %vm9599_vm4 = vcmp.lt.f32.partialorder %v2957_v16, 0.0004427343  ;;  %v2900_v50 = vmul.f32 -0.5, %v13464_v30 }
 0x323   : > { %v9597_v28 = vpop.eup %6611  ;;  %v2935_v31 = vmul.f32 0.6931472, %v6610_v47  ;;  %v2906_v42 = vadd.f32 1.0, %v13475_v23  ;;  %vm2318_vm6 = vcmp.gt.f32.partialorder %v13476_v14, 20.0  ;;  %v2956_v44 = vmul.f32 %v13455_v46, %v2955_v7 }
 0x324   : > { %vm9607_vm7 = vcmp.lt.f32.partialorder %v2930_v4, 0.0004427343  ;;  %v2946_v20 = vadd.f32 1.0, %v2945_v49  ;;  %v2861_v38 = vadd.f32 1.0, %v13479_v58  ;;  %v2929_v22 = vmul.f32 %v13458_v10, %v2928_v5 }
 0x325   : > { %v6614_v43 = vpop.eup %6613  ;;  %v2941_v0 = vsel %vm9587_vm5, %v2938_v33, %v2935_v31  ;;  %v2918_v36 = vmul.f32 -0.5, %v13467_v52  ;;  %6627 = vlog2.f32 %v2906_v42  ;;  %vm9619_vm8 = vcmp.lt.f32.partialorder %v2948_v55, 0.0004427343 }
 0x326   : > { %v6616_v6 = vpop.eup %6615  ;;  %v3149_v46 = vsel %vm2317_vm1, %v13463_v41, %v2941_v0  ;;  %v2953_v51 = vmul.f32 0.6931472, %v6614_v43  ;;  %v2903_v63 = vand.u32 2147483647, %v13464_v30  ;;  %vm2313_vm9 = vcmp.gt.f32.partialorder %v13482_v12, 20.0 }
 0x327   : > { %3288 = vmatprep.subr.mxu0 %v3149_v46  ;;  %v2926_v11 = vmul.f32 0.6931472, %v6616_v6  ;;  %v2901_v10 = vadd.f32 1.0, %v2900_v50  ;;  %v2891_v21 = vmul.f32 -0.5, %v13468_v54  ;;  %6629 = vlog2.f32 %v2861_v38  ;;  %v9626_v18 = vpop.eup %6617  ;;  %v13490_v50 = vld [vmem:[#allocation26_spill] sm:$0xff]  ;;  %v13491_v38 = vld [vmem:[#allocation16_spill] sm:$0xff] }
 0x328   : > { %v2959_v37 = vsel %vm9599_vm4, %v2956_v44, %v2953_v51  ;;  %v2947_v17 = vmul.f32 %v13459_v53, %v2946_v20  ;;  %vm2315_vm10 = vcmp.gt.f32.partialorder %v13483_v24, 20.0  ;;  %v2879_v48 = vadd.f32 1.0, %v9597_v28  ;;  %v13492_v6 = vld [vmem:[#allocation17_spill] sm:$0xff] }
 0x329   : > { %v6620_v3 = vpop.eup %6619  ;;  %v3151_v32 = vsel %vm2319_vm3, %v13472_v19, %v2959_v37  ;;  %v2932_v56 = vsel %vm9607_vm7, %v2929_v22, %v2926_v11  ;;  %v2919_v34 = vadd.f32 1.0, %v2918_v36  ;;  %v2921_v61 = vand.u32 2147483647, %v13467_v52 }
 0x32a   : > { %vm2312_vm12 = vcmp.gt.f32.partialorder %v13484_v57, 20.0  ;;  %3449 = vmatprep.subr.mxu1 %v3151_v32  ;;  %v3148_v53 = vsel %vm2316_vm2, %v13469_v62, %v2932_v56  ;;  %v2944_v41 = vmul.f32 0.6931472, %v6620_v3  ;;  %v2909_v29 = vmul.f32 -0.5, %v13475_v23 }
 0x32b   : > { %6631 = vlog2.f32 %v2879_v48  ;;  %3289 = vmatpush1.msra.mxu0 %v3148_v53  ;;  %v2902_v8 = vmul.f32 %v13464_v30, %v2901_v10  ;;  %vm9645_vm13 = vcmp.lt.f32.partialorder %v2903_v63, 0.0004427343  ;;  %v2892_v27 = vadd.f32 1.0, %v2891_v21  ;;  %v13496_v53 = vld [vmem:[#allocation6_spill] sm:$0xff] }
 0x32c   : > { %v2852_v9 = vadd.f32 1.0, %v13487_v13  ;;  %v6622_v2 = vpop.eup %6621  ;;  %v2950_v26 = vsel %vm9619_vm8, %v2947_v17, %v2944_v41  ;;  %v2894_v1 = vand.u32 2147483647, %v13468_v54  ;;  %v2864_v7 = vmul.f32 -0.5, %v13479_v58  ;;  %v13494_v17 = vld [vmem:[#allocation14_spill] sm:$0xff] }
 0x32d   : > { %v2870_v16 = vadd.f32 1.0, %v9626_v18  ;;  %v6624_v4 = vpop.eup %6623  ;;  %v3150_v30 = vsel %vm2318_vm6, %v13476_v14, %v2950_v26  ;;  %v2899_v49 = vmul.f32 0.6931472, %v6622_v2  ;;  %vm9658_vm14 = vcmp.lt.f32.partialorder %v2921_v61, 0.0004427343  ;;  %v13498_v2 = vld [vmem:[#allocation21_spill] sm:$0xff] }
 0x32e   : > { %6633 = vlog2.f32 %v2852_v9  ;;  %3450 = vmatpush1.msra.mxu1 %v3150_v30  ;;  %v2917_v62 = vmul.f32 0.6931472, %v6624_v4  ;;  %v2920_v59 = vmul.f32 %v13467_v52, %v2919_v34  ;;  %v2910_v25 = vadd.f32 1.0, %v2909_v29  ;;  %v13497_v29 = vld [vmem:[#allocation43_spill] sm:$0xff]  ;;  %v13499_v30 = vld [vmem:[#allocation33_spill] sm:$0xff] }
 0x32f   : > { %v2912_v19 = vand.u32 2147483647, %v13475_v23  ;;  %v6626_v5 = vpop.eup %6625  ;;  %v2905_v47 = vsel %vm9645_vm13, %v2902_v8, %v2899_v49  ;;  %v2893_v40 = vmul.f32 %v13468_v54, %v2892_v27  ;;  %v2882_v33 = vmul.f32 -0.5, %v9597_v28 }
 0x330   : > { %6635 = vlog2.f32 %v2870_v16  ;;  %v3145_v55 = vsel %vm2313_vm9, %v13482_v12, %v2905_v47  ;;  %v2923_v31 = vsel %vm9658_vm14, %v2920_v59, %v2917_v62  ;;  %v2890_v52 = vmul.f32 0.6931472, %v6626_v5  ;;  %v13501_v5 = vld [vmem:[#allocation49_spill] sm:$0xff] }
 0x331   : > { %v2865_v15 = vadd.f32 1.0, %v2864_v7  ;;  %vm2314_vm15 = vcmp.gt.f32.partialorder %v13490_v50, 20.0  ;;  %3290 = vmatprep.subr.mxu0 %v3145_v55  ;;  %v3147_v42 = vsel %vm2315_vm10, %v13483_v24, %v2923_v31  ;;  %vm2895_vm0 = vcmp.lt.f32.partialorder %v2894_v1, 0.0004427343  ;;  %v13502_v31 = vld [vmem:[#allocation42_spill] sm:$0xff] }
 0x332   : > { %v2867_v54 = vand.u32 2147483647, %v13479_v58  ;;  %v6628_v14 = vpop.eup %6627  ;;  %3451 = vmatprep.subr.mxu1 %v3147_v42  ;;  %v2896_v44 = vsel %vm2895_vm0, %v2893_v40, %v2890_v52  ;;  %v2911_v39 = vmul.f32 %v13475_v23, %v2910_v25  ;;  %v2855_v20 = vmul.f32 -0.5, %v13487_v13  ;;  %v13493_v23 = vld [vmem:[#allocation71_spill] sm:$0xff] }
 0x333   : > { %v2825_v43 = vadd.f32 1.0, %v13491_v38  ;;  %v3144_v0 = vsel %vm2312_vm12, %v13484_v57, %v2896_v44  ;;  %v2908_v22 = vmul.f32 0.6931472, %v6628_v14  ;;  %v2883_v36 = vadd.f32 1.0, %v2882_v33  ;;  %v13504_v44 = vld [vmem:[#allocation74_spill] sm:$0xff] }
 0x334   : > { %v2843_v46 = vadd.f32 1.0, %v13492_v6  ;;  %v6630_v51 = vpop.eup %6629  ;;  %3291 = vmatpush1.msra.mxu0 %v3144_v0  ;;  %vm2913_vm1 = vcmp.lt.f32.partialorder %v2912_v19, 0.0004427343  ;;  %v2866_v60 = vmul.f32 %v13479_v58, %v2865_v15  ;;  %v2873_v63 = vmul.f32 -0.5, %v9626_v18  ;;  %v13495_v58 = vld [vmem:[#allocation36_spill] sm:$0xff]  ;;  %v13500_v19 = vld [vmem:[#allocation38_spill] sm:$0xff] }
 0x335   : > { %6637 = vlog2.f32 %v2825_v43  ;;  %vm2308_vm11 = vcmp.gt.f32.partialorder %v13493_v23, 20.0  ;;  %v2914_v11 = vsel %vm2913_vm1, %v2911_v39, %v2908_v22  ;;  %v2863_v12 = vmul.f32 0.6931472, %v6630_v51  ;;  %v13506_v51 = vld [vmem:[#allocation44_spill] sm:$0xff] }
 0x336   : > { %v2885_v10 = vand.u32 2147483647, %v9597_v28  ;;  %6639 = vlog2.f32 %v2843_v46  ;;  %v3146_v21 = vsel %vm2314_vm15, %v13490_v50, %v2914_v11  ;;  %vm2868_vm2 = vcmp.lt.f32.partialorder %v2867_v54, 0.0004427343  ;;  %v13503_v50 = vld [vmem:[#allocation53_spill] sm:$0xff] }
 0x337   : > { %v2856_v37 = vadd.f32 1.0, %v2855_v20  ;;  %v2816_v24 = vadd.f32 1.0, %v13494_v17  ;;  %3452 = vmatpush1.msra.mxu1 %v3146_v21  ;;  %vm2309_vm5 = vcmp.gt.f32.partialorder %v13495_v58, 20.0  ;;  %v2869_v3 = vsel %vm2868_vm2, %v2866_v60, %v2863_v12 }
 0x338   : > { %v6632_v48 = vpop.eup %6631  ;;  %v2884_v32 = vmul.f32 %v9597_v28, %v2883_v36  ;;  %v2858_v56 = vand.u32 2147483647, %v13487_v13  ;;  %v3141_v34 = vsel %vm2309_vm5, %v13495_v58, %v2869_v3  ;;  %v2874_v57 = vadd.f32 1.0, %v2873_v63  ;;  %v13505_v36 = vld [vmem:[#allocation19_spill] sm:$0xff] }
 0x339   : > { %v2881_v61 = vmul.f32 0.6931472, %v6632_v48  ;;  %6641 = vlog2.f32 %v2816_v24  ;;  %3292 = vmatprep.subr.mxu0 %v3141_v34  ;;  %vm2311_vm3 = vcmp.gt.f32.partialorder %v13496_v53, 20.0  ;;  %vm2886_vm4 = vcmp.lt.f32.partialorder %v2885_v10, 0.0004427343  ;;  %v13512_v34 = vld [vmem:[#allocation18_spill] sm:$0xff] }
 0x33a   : > { %v2828_v41 = vmul.f32 -0.5, %v13491_v38  ;;  %v2834_v8 = vadd.f32 1.0, %v13497_v29  ;;  %v2857_v9 = vmul.f32 %v13487_v13, %v2856_v37  ;;  %v2876_v28 = vand.u32 2147483647, %v9626_v18 }
 0x33b   : > { %v6634_v35 = vpop.eup %6633  ;;  %v2887_v27 = vsel %vm2886_vm4, %v2884_v32, %v2881_v61  ;;  %v2789_v26 = vadd.f32 1.0, %v13498_v2  ;;  %v2846_v16 = vmul.f32 -0.5, %v13492_v6  ;;  %vm2310_vm6 = vcmp.gt.f32.partialorder %v13499_v30, 20.0 }
 0x33c   : > { %v3143_v1 = vsel %vm2311_vm3, %v13496_v53, %v2887_v27  ;;  %v2854_v7 = vmul.f32 0.6931472, %v6634_v35  ;;  %6643 = vlog2.f32 %v2834_v8  ;;  %vm2859_vm7 = vcmp.lt.f32.partialorder %v2858_v56, 0.0004427343  ;;  %v13511_v56 = vld [vmem:[#allocation56_spill] sm:$0xff]  ;;  %v13513_v35 = vld [vmem:[#allocation51_spill] sm:$0xff] }
 0x33d   : > { %v6636_v4 = vpop.eup %6635  ;;  %3453 = vmatprep.subr.mxu1 %v3143_v1  ;;  %v2875_v49 = vmul.f32 %v9626_v18, %v2874_v57  ;;  %6645 = vlog2.f32 %v2789_v26  ;;  %v2829_v62 = vadd.f32 1.0, %v2828_v41  ;;  %v2819_v59 = vmul.f32 -0.5, %v13494_v17 }
 0x33e   : > { %v2860_v45 = vsel %vm2859_vm7, %v2857_v9, %v2854_v7  ;;  %v2872_v13 = vmul.f32 0.6931472, %v6636_v4  ;;  %vm2877_vm8 = vcmp.lt.f32.partialorder %v2876_v28, 0.0004427343  ;;  %vm2305_vm9 = vcmp.gt.f32.partialorder %v13500_v19, 20.0  ;;  %v13514_v7 = vld [vmem:[#allocation84_spill] sm:$0xff] }
 0x33f   : > { %v3140_v25 = vsel %vm2308_vm11, %v13493_v23, %v2860_v45  ;;  %v2807_v47 = vadd.f32 1.0, %v13501_v5  ;;  %v2831_v33 = vand.u32 2147483647, %v13491_v38  ;;  %v2847_v18 = vadd.f32 1.0, %v2846_v16  ;;  %v13515_v45 = vld [vmem:[#allocation61_spill] sm:$0xff] }
 0x340   : > { %3293 = vmatpush1.msra.mxu0 %v3140_v25  ;;  %v2878_v40 = vsel %vm2877_vm8, %v2875_v49, %v2872_v13  ;;  %v2849_v55 = vand.u32 2147483647, %v13492_v6  ;;  %vm2304_vm10 = vcmp.gt.f32.partialorder %v13502_v31, 20.0  ;;  %v2837_v15 = vmul.f32 -0.5, %v13497_v29 }
 0x341   : > { %v3142_v52 = vsel %vm2310_vm6, %v13499_v30, %v2878_v40  ;;  %6647 = vlog2.f32 %v2807_v47  ;;  %v2780_v42 = vadd.f32 1.0, %v13503_v50  ;;  %v2830_v14 = vmul.f32 %v13491_v38, %v2829_v62  ;;  %v13516_v62 = vld [vmem:[#allocation52_spill] sm:$0xff] }
 0x342   : > { %v6638_v54 = vpop.eup %6637  ;;  %3454 = vmatpush1.msra.mxu1 %v3142_v52  ;;  %vm2307_vm12 = vcmp.gt.f32.partialorder %v13504_v44, 20.0  ;;  %v2820_v39 = vadd.f32 1.0, %v2819_v59  ;;  %v2822_v20 = vand.u32 2147483647, %v13494_v17  ;;  %v2792_v22 = vmul.f32 -0.5, %v13498_v2 }
 0x343   : > { %v6640_v43 = vpop.eup %6639  ;;  %v2827_v0 = vmul.f32 0.6931472, %v6638_v54  ;;  %6649 = vlog2.f32 %v2780_v42  ;;  %v2798_v46 = vadd.f32 1.0, %v13505_v36  ;;  %vm2306_vm13 = vcmp.gt.f32.partialorder %v13506_v51, 20.0 }
 0x344   : > { %vm2832_vm14 = vcmp.lt.f32.partialorder %v2831_v33, 0.0004427343  ;;  %v2845_v60 = vmul.f32 0.6931472, %v6640_v43  ;;  %v2848_v63 = vmul.f32 %v13492_v6, %v2847_v18  ;;  %v2840_v38 = vand.u32 2147483647, %v13497_v29 }
 0x345   : > { %v2833_v23 = vsel %vm2832_vm14, %v2830_v14, %v2827_v0  ;;  %vm2850_vm15 = vcmp.lt.f32.partialorder %v2849_v55, 0.0004427343  ;;  %v2838_v11 = vadd.f32 1.0, %v2837_v15  ;;  %6651 = vlog2.f32 %v2798_v46  ;;  %v13517_v18 = vld [vmem:[#allocation20_spill] sm:$0xff] }
 0x346   : > { %v6642_v12 = vpop.eup %6641  ;;  %v3137_v10 = vsel %vm2305_vm9, %v13500_v19, %v2833_v23  ;;  %v2851_v21 = vsel %vm2850_vm15, %v2848_v63, %v2845_v60  ;;  %v2821_v37 = vmul.f32 %v13494_v17, %v2820_v39  ;;  %vm9733_vm0 = vcmp.lt.f32.partialorder %v2822_v20, 0.0004427343 }
 0x347   : > { %3294 = vmatprep.subr.mxu0 %v3137_v10  ;;  %v3139_v6 = vsel %vm2307_vm12, %v13504_v44, %v2851_v21  ;;  %v2818_v48 = vmul.f32 0.6931472, %v6642_v12  ;;  %v2793_v58 = vadd.f32 1.0, %v2792_v22  ;;  %v2810_v3 = vmul.f32 -0.5, %v13501_v5  ;;  %v13519_v44 = vld [vmem:[#allocation23_spill] sm:$0xff]  ;;  %v13520_v12 = vld [vmem:[#allocation25_spill] sm:$0xff] }
 0x348   : > { %3455 = vmatprep.subr.mxu1 %v3139_v6  ;;  %vm9741_vm1 = vcmp.lt.f32.partialorder %v2840_v38, 0.0004427343  ;;  %vm2301_vm11 = vcmp.gt.f32.partialorder %v13511_v56, 20.0  ;;  %v2795_v17 = vand.u32 2147483647, %v13498_v2  ;;  %v2753_v61 = vadd.f32 1.0, %v13512_v34 }
 0x349   : > { %v6644_v57 = vpop.eup %6643  ;;  %v2824_v53 = vsel %vm9733_vm0, %v2821_v37, %v2818_v48  ;;  %v2839_v41 = vmul.f32 %v13497_v29, %v2838_v11  ;;  %v2783_v8 = vmul.f32 -0.5, %v13503_v50  ;;  %v2771_v27 = vadd.f32 1.0, %v13513_v35  ;;  %v13521_v37 = vld [vmem:[#allocation60_spill] sm:$0xff] }
 0x34a   : > { %v6646_v9 = vpop.eup %6645  ;;  %v3136_v28 = vsel %vm2304_vm10, %v13502_v31, %v2824_v53  ;;  %v2836_v26 = vmul.f32 0.6931472, %v6644_v57  ;;  %v2801_v1 = vmul.f32 -0.5, %v13505_v36  ;;  %6653 = vlog2.f32 %v2753_v61  ;;  %v13518_v31 = vld [vmem:[#allocation46_spill] sm:$0xff]  ;;  %v13522_v6 = vld [vmem:[#allocation64_spill] sm:$0xff] }
 0x34b   : > { %vm2300_vm2 = vcmp.gt.f32.partialorder %v13514_v7, 20.0  ;;  %3295 = vmatpush1.msra.mxu0 %v3136_v28  ;;  %v2791_v16 = vmul.f32 0.6931472, %v6646_v9  ;;  %v2794_v4 = vmul.f32 %v13498_v2, %v2793_v58  ;;  %v2811_v29 = vadd.f32 1.0, %v2810_v3  ;;  %v13523_v3 = vld [vmem:[#allocation63_spill] sm:$0xff] }
 0x34c   : > { %6655 = vlog2.f32 %v2771_v27  ;;  %v2842_v30 = vsel %vm9741_vm1, %v2839_v41, %v2836_v26  ;;  %vm2796_vm5 = vcmp.lt.f32.partialorder %v2795_v17, 0.0004427343  ;;  %v2813_v49 = vand.u32 2147483647, %v13501_v5  ;;  %v13527_v28 = vld [vmem:[#allocation59_spill] sm:$0xff] }
 0x34d   : > { %v2744_v13 = vadd.f32 1.0, %v13515_v45  ;;  %vm2302_vm3 = vcmp.gt.f32.partialorder %v13516_v62, 20.0  ;;  %v3138_v59 = vsel %vm2306_vm13, %v13506_v51, %v2842_v30  ;;  %v2797_v25 = vsel %vm2796_vm5, %v2794_v4, %v2791_v16 }
 0x34e   : > { %v2784_v19 = vadd.f32 1.0, %v2783_v8  ;;  %v2786_v2 = vand.u32 2147483647, %v13503_v50  ;;  %v6648_v47 = vpop.eup %6647  ;;  %3456 = vmatpush1.msra.mxu1 %v3138_v59  ;;  %v3133_v40 = vsel %vm2301_vm11, %v13511_v56, %v2797_v25  ;;  %v2802_v33 = vadd.f32 1.0, %v2801_v1  ;;  %v13526_v8 = vld [vmem:[#allocation89_spill] sm:$0xff] }
 0x34f   : > { %6657 = vlog2.f32 %v2744_v13  ;;  %v2762_v55 = vadd.f32 1.0, %v13517_v18  ;;  %3296 = vmatprep.subr.mxu0 %v3133_v40  ;;  %vm2303_vm4 = vcmp.gt.f32.partialorder %v13518_v31, 20.0  ;;  %v2809_v52 = vmul.f32 0.6931472, %v6648_v47 }
 0x350   : > { %v2812_v15 = vmul.f32 %v13501_v5, %v2811_v29  ;;  %v2756_v42 = vmul.f32 -0.5, %v13512_v34  ;;  %v6650_v54 = vpop.eup %6649  ;;  %vm2814_vm6 = vcmp.lt.f32.partialorder %v2813_v49, 0.0004427343  ;;  %v2804_v14 = vand.u32 2147483647, %v13505_v36  ;;  %v13528_v29 = vld [vmem:[#allocation87_spill] sm:$0xff] }
 0x351   : > { %6659 = vlog2.f32 %v2762_v55  ;;  %v2717_v39 = vadd.f32 1.0, %v13519_v44  ;;  %v2782_v43 = vmul.f32 0.6931472, %v6650_v54  ;;  %v2785_v0 = vmul.f32 %v13503_v50, %v2784_v19  ;;  %v13534_v54 = vld [vmem:[#allocation32_spill] sm:$0xff] }
 0x352   : > { %v2815_v20 = vsel %vm2814_vm6, %v2812_v15, %v2809_v52  ;;  %v2774_v22 = vmul.f32 -0.5, %v13513_v35  ;;  %v6652_v46 = vpop.eup %6651  ;;  %vm2787_vm7 = vcmp.lt.f32.partialorder %v2786_v2, 0.0004427343  ;;  %v2803_v5 = vmul.f32 %v13505_v36, %v2802_v33 }
 0x353   : > { %v3135_v51 = vsel %vm2303_vm4, %v13518_v31, %v2815_v20  ;;  %6661 = vlog2.f32 %v2717_v39  ;;  %v2788_v60 = vsel %vm2787_vm7, %v2785_v0, %v2782_v43  ;;  %v2800_v63 = vmul.f32 0.6931472, %v6652_v46  ;;  %v13533_v31 = vld [vmem:[#allocation67_spill] sm:$0xff]  ;;  %v13535_v0 = vld [vmem:[#allocation81_spill] sm:$0xff] }
 0x354   : > { %3457 = vmatprep.subr.mxu1 %v3135_v51  ;;  %v2757_v38 = vadd.f32 1.0, %v2756_v42  ;;  %v2759_v23 = vand.u32 2147483647, %v13512_v34  ;;  %v3132_v11 = vsel %vm2300_vm2, %v13514_v7, %v2788_v60  ;;  %vm2805_vm8 = vcmp.lt.f32.partialorder %v2804_v14, 0.0004427343 }
 0x355   : > { %v2747_v50 = vmul.f32 -0.5, %v13515_v45  ;;  %v2735_v10 = vadd.f32 1.0, %v13520_v12  ;;  %3297 = vmatpush1.msra.mxu0 %v3132_v11  ;;  %v2806_v21 = vsel %vm2805_vm8, %v2803_v5, %v2800_v63  ;;  %vm2297_vm9 = vcmp.gt.f32.partialorder %v13521_v37, 20.0 }
 0x356   : > { %v2775_v36 = vadd.f32 1.0, %v2774_v22  ;;  %v2765_v24 = vmul.f32 -0.5, %v13517_v18  ;;  %vm2296_vm10 = vcmp.gt.f32.partialorder %v13522_v6, 20.0  ;;  %v3134_v48 = vsel %vm2302_vm3, %v13516_v62, %v2806_v21  ;;  %v13543_v62 = vld [vmem:[#allocation91_spill] sm:$0xff] }
 0x357   : > { %v2777_v58 = vand.u32 2147483647, %v13513_v35  ;;  %6663 = vlog2.f32 %v2735_v10  ;;  %v2708_v32 = vadd.f32 1.0, %v13523_v3  ;;  %v6654_v56 = vpop.eup %6653  ;;  %3458 = vmatpush1.msra.mxu1 %v3134_v48  ;;  %v2758_v17 = vmul.f32 %v13512_v34, %v2757_v38  ;;  %v13537_v38 = vld [vmem:[#allocation90_spill] sm:$0xff]  ;;  %v13540_v48 = vld [vmem:[#allocation92_spill] sm:$0xff] }
 0x358   : > { %vm9796_vm12 = vcmp.lt.f32.partialorder %v2759_v23, 0.0004427343  ;;  %v2750_v57 = vand.u32 2147483647, %v13515_v45  ;;  %v2720_v53 = vmul.f32 -0.5, %v13519_v44  ;;  %vm2298_vm13 = vcmp.gt.f32.partialorder %v13526_v8, 20.0 }
 0x359   : > { %v6656_v41 = vpop.eup %6655  ;;  %v2755_v27 = vmul.f32 0.6931472, %v6654_v56  ;;  %v2748_v9 = vadd.f32 1.0, %v2747_v50  ;;  %6665 = vlog2.f32 %v2708_v32  ;;  %v2726_v26 = vadd.f32 1.0, %v13527_v28  ;;  %v13538_v23 = vld [vmem:[#allocation62_spill] sm:$0xff] }
 0x35a   : > { %v2773_v1 = vmul.f32 0.6931472, %v6656_v41  ;;  %v2776_v7 = vmul.f32 %v13513_v35, %v2775_v36  ;;  %v2766_v34 = vadd.f32 1.0, %v2765_v24  ;;  %v2768_v16 = vand.u32 2147483647, %v13517_v18  ;;  %v13539_v24 = vld [vmem:[#allocation66_spill] sm:$0xff] }
 0x35b   : > { %v2761_v4 = vsel %vm9796_vm12, %v2758_v17, %v2755_v27  ;;  %vm2299_vm14 = vcmp.gt.f32.partialorder %v13528_v29, 20.0  ;;  %vm2778_vm15 = vcmp.lt.f32.partialorder %v2777_v58, 0.0004427343  ;;  %6667 = vlog2.f32 %v2726_v26 }
 0x35c   : > { %v6658_v30 = vpop.eup %6657  ;;  %v3129_v49 = vsel %vm2297_vm9, %v13521_v37, %v2761_v4  ;;  %v2779_v13 = vsel %vm2778_vm15, %v2776_v7, %v2773_v1  ;;  %vm9812_vm0 = vcmp.lt.f32.partialorder %v2750_v57, 0.0004427343  ;;  %v2721_v35 = vadd.f32 1.0, %v2720_v53  ;;  %v13541_v57 = vld [vmem:[#allocation72_spill] sm:$0xff] }
 0x35d   : > { %3298 = vmatprep.subr.mxu0 %v3129_v49  ;;  %v3131_v59 = vsel %vm2299_vm14, %v13528_v29, %v2779_v13  ;;  %v2746_v25 = vmul.f32 0.6931472, %v6658_v30  ;;  %v2749_v19 = vmul.f32 %v13515_v45, %v2748_v9  ;;  %v2738_v2 = vmul.f32 -0.5, %v13520_v12  ;;  %v13542_v30 = vld [vmem:[#allocation68_spill] sm:$0xff] }
 0x35e   : > { %v6660_v47 = vpop.eup %6659  ;;  %3459 = vmatprep.subr.mxu1 %v3131_v59  ;;  %v2767_v40 = vmul.f32 %v13517_v18, %v2766_v34  ;;  %vm9820_vm1 = vcmp.lt.f32.partialorder %v2768_v16, 0.0004427343  ;;  %v2723_v55 = vand.u32 2147483647, %v13519_v44  ;;  %v2681_v52 = vadd.f32 1.0, %v13533_v31  ;;  %v13544_v59 = vld [vmem:[#allocation75_spill] sm:$0xff] }
 0x35f   : > { %v2752_v15 = vsel %vm9812_vm0, %v2749_v19, %v2746_v25  ;;  %v2764_v42 = vmul.f32 0.6931472, %v6660_v47  ;;  %v2711_v45 = vmul.f32 -0.5, %v13523_v3  ;;  %v2699_v14 = vadd.f32 1.0, %v13534_v54 }
 0x360   : > { %v6662_v39 = vpop.eup %6661  ;;  %v3128_v18 = vsel %vm2296_vm10, %v13522_v6, %v2752_v15  ;;  %v2722_v20 = vmul.f32 %v13519_v44, %v2721_v35  ;;  %v2729_v43 = vmul.f32 -0.5, %v13527_v28  ;;  %6669 = vlog2.f32 %v2681_v52  ;;  %v13536_v44 = vld [vmem:[#allocation30_spill] sm:$0xff] }
 0x361   : > { %vm2292_vm11 = vcmp.gt.f32.partialorder %v13535_v0, 20.0  ;;  %3299 = vmatpush1.msra.mxu0 %v3128_v18  ;;  %v2770_v22 = vsel %vm9820_vm1, %v2767_v40, %v2764_v42  ;;  %v2719_v46 = vmul.f32 0.6931472, %v6662_v39  ;;  %v2739_v51 = vadd.f32 1.0, %v2738_v2  ;;  %v13545_v2 = vld [vmem:[#allocation34_spill] sm:$0xff]  ;;  %v13549_v18 = vld [vmem:[#allocation40_spill] sm:$0xff] }
 0x362   : > { %6671 = vlog2.f32 %v2699_v14  ;;  %v3130_v5 = vsel %vm2298_vm13, %v13526_v8, %v2770_v22  ;;  %vm2724_vm2 = vcmp.lt.f32.partialorder %v2723_v55, 0.0004427343  ;;  %v2741_v60 = vand.u32 2147483647, %v13520_v12 }
 0x363   : > { %v2672_v63 = vadd.f32 1.0, %v13536_v44  ;;  %vm2294_vm5 = vcmp.gt.f32.partialorder %v13537_v38, 20.0  ;;  %3460 = vmatpush1.msra.mxu1 %v3130_v5  ;;  %vm2293_vm3 = vcmp.gt.f32.partialorder %v13538_v23, 20.0  ;;  %v2725_v11 = vsel %vm2724_vm2, %v2722_v20, %v2719_v46 }
 0x364   : > { %v2712_v50 = vadd.f32 1.0, %v2711_v45  ;;  %v2714_v10 = vand.u32 2147483647, %v13523_v3  ;;  %v6664_v21 = vpop.eup %6663  ;;  %v3125_v37 = vsel %vm2293_vm3, %v13538_v23, %v2725_v11  ;;  %v2730_v36 = vadd.f32 1.0, %v2729_v43  ;;  %v13548_v45 = vld [vmem:[#allocation82_spill] sm:$0xff] }
 0x365   : > { %6673 = vlog2.f32 %v2672_v63  ;;  %v2690_v6 = vadd.f32 1.0, %v13539_v24  ;;  %3300 = vmatprep.subr.mxu0 %v3125_v37  ;;  %vm2295_vm4 = vcmp.gt.f32.partialorder %v13540_v48, 20.0  ;;  %v2737_v58 = vmul.f32 0.6931472, %v6664_v21 }
 0x366   : > { %v2740_v32 = vmul.f32 %v13520_v12, %v2739_v51  ;;  %v2684_v56 = vmul.f32 -0.5, %v13533_v31  ;;  %v6666_v17 = vpop.eup %6665  ;;  %vm2742_vm6 = vcmp.lt.f32.partialorder %v2741_v60, 0.0004427343  ;;  %v2732_v61 = vand.u32 2147483647, %v13527_v28  ;;  %v13550_v51 = vld [vmem:[#allocation95_spill] sm:$0xff] }
 0x367   : > { %6675 = vlog2.f32 %v2690_v6  ;;  %v2645_v53 = vadd.f32 1.0, %v13541_v57  ;;  %v2710_v8 = vmul.f32 0.6931472, %v6666_v17  ;;  %v2713_v27 = vmul.f32 %v13523_v3, %v2712_v50  ;;  %v13556_v17 = vld [vmem:[#allocation73_spill] sm:$0xff] }
 0x368   : > { %v2743_v41 = vsel %vm2742_vm6, %v2740_v32, %v2737_v58  ;;  %v2702_v9 = vmul.f32 -0.5, %v13534_v54  ;;  %v6668_v26 = vpop.eup %6667  ;;  %vm2715_vm7 = vcmp.lt.f32.partialorder %v2714_v10, 0.0004427343  ;;  %v2731_v12 = vmul.f32 %v13527_v28, %v2730_v36 }
 0x369   : > { %v3127_v1 = vsel %vm2295_vm4, %v13540_v48, %v2743_v41  ;;  %6677 = vlog2.f32 %v2645_v53  ;;  %v2716_v7 = vsel %vm2715_vm7, %v2713_v27, %v2710_v8  ;;  %v2728_v34 = vmul.f32 0.6931472, %v6668_v26  ;;  %v13555_v48 = vld [vmem:[#allocation48_spill] sm:$0xff] }
 0x36a   : > { %3461 = vmatprep.subr.mxu1 %v3127_v1  ;;  %v2685_v16 = vadd.f32 1.0, %v2684_v56  ;;  %v2687_v4 = vand.u32 2147483647, %v13533_v31  ;;  %v3124_v29 = vsel %vm2292_vm11, %v13535_v0, %v2716_v7  ;;  %vm2733_vm8 = vcmp.lt.f32.partialorder %v2732_v61, 0.0004427343  ;;  %v13557_v27 = vld [vmem:[#allocation76_spill] sm:$0xff] }
 0x36b   : > { %v2675_v3 = vmul.f32 -0.5, %v13536_v44  ;;  %v2663_v49 = vadd.f32 1.0, %v13542_v30  ;;  %3301 = vmatpush1.msra.mxu0 %v3124_v29  ;;  %v2734_v13 = vsel %vm2733_vm8, %v2731_v12, %v2728_v34  ;;  %vm2289_vm9 = vcmp.gt.f32.partialorder %v13543_v62, 20.0 }
 0x36c   : > { %v2703_v28 = vadd.f32 1.0, %v2702_v9  ;;  %v2693_v35 = vmul.f32 -0.5, %v13539_v24  ;;  %vm2288_vm10 = vcmp.gt.f32.partialorder %v13544_v59, 20.0  ;;  %v3126_v25 = vsel %vm2294_vm5, %v13537_v38, %v2734_v13  ;;  %v13565_v38 = vld [vmem:[#allocation93_spill] sm:$0xff] }
 0x36d   : > { %v2705_v19 = vand.u32 2147483647, %v13534_v54  ;;  %6679 = vlog2.f32 %v2663_v49  ;;  %v2636_v47 = vadd.f32 1.0, %v13545_v2  ;;  %v6670_v40 = vpop.eup %6669  ;;  %3462 = vmatpush1.msra.mxu1 %v3126_v25  ;;  %v2686_v33 = vmul.f32 %v13533_v31, %v2685_v16  ;;  %v13559_v16 = vld [vmem:[#allocation96_spill] sm:$0xff]  ;;  %v13562_v25 = vld [vmem:[#allocation94_spill] sm:$0xff] }
 0x36e   : > { %vm9872_vm12 = vcmp.lt.f32.partialorder %v2687_v4, 0.0004427343  ;;  %v2678_v52 = vand.u32 2147483647, %v13536_v44  ;;  %v2648_v15 = vmul.f32 -0.5, %v13541_v57  ;;  %vm2290_vm13 = vcmp.gt.f32.partialorder %v13548_v45, 20.0 }
 0x36f   : > { %v6672_v42 = vpop.eup %6671  ;;  %v2683_v14 = vmul.f32 0.6931472, %v6670_v40  ;;  %v2676_v39 = vadd.f32 1.0, %v2675_v3  ;;  %6681 = vlog2.f32 %v2636_v47  ;;  %v2654_v20 = vadd.f32 1.0, %v13549_v18  ;;  %v13560_v4 = vld [vmem:[#allocation97_spill] sm:$0xff] }
 0x370   : > { %v2701_v43 = vmul.f32 0.6931472, %v6672_v42  ;;  %v2704_v0 = vmul.f32 %v13534_v54, %v2703_v28  ;;  %v2694_v31 = vadd.f32 1.0, %v2693_v35  ;;  %v2696_v22 = vand.u32 2147483647, %v13539_v24  ;;  %v13561_v35 = vld [vmem:[#allocation79_spill] sm:$0xff] }
 0x371   : > { %v2689_v46 = vsel %vm9872_vm12, %v2686_v33, %v2683_v14  ;;  %vm2291_vm14 = vcmp.gt.f32.partialorder %v13550_v51, 20.0  ;;  %vm2706_vm15 = vcmp.lt.f32.partialorder %v2705_v19, 0.0004427343  ;;  %6683 = vlog2.f32 %v2654_v20 }
 0x372   : > { %v6674_v5 = vpop.eup %6673  ;;  %v3121_v60 = vsel %vm2289_vm9, %v13543_v62, %v2689_v46  ;;  %v2707_v63 = vsel %vm2706_vm15, %v2704_v0, %v2701_v43  ;;  %vm9888_vm0 = vcmp.lt.f32.partialorder %v2678_v52, 0.0004427343  ;;  %v2649_v54 = vadd.f32 1.0, %v2648_v15  ;;  %v13563_v52 = vld [vmem:[#allocation80_spill] sm:$0xff] }
 0x373   : > { %3302 = vmatprep.subr.mxu0 %v3121_v60  ;;  %v3123_v23 = vsel %vm2291_vm14, %v13550_v51, %v2707_v63  ;;  %v2674_v11 = vmul.f32 0.6931472, %v6674_v5  ;;  %v2677_v50 = vmul.f32 %v13536_v44, %v2676_v39  ;;  %v2666_v10 = vmul.f32 -0.5, %v13542_v30  ;;  %v13564_v5 = vld [vmem:[#allocation83_spill] sm:$0xff] }
 0x374   : > { %v6676_v21 = vpop.eup %6675  ;;  %3463 = vmatprep.subr.mxu1 %v3123_v23  ;;  %v2695_v37 = vmul.f32 %v13539_v24, %v2694_v31  ;;  %vm9896_vm1 = vcmp.lt.f32.partialorder %v2696_v22, 0.0004427343  ;;  %v2651_v6 = vand.u32 2147483647, %v13541_v57  ;;  %v2609_v58 = vadd.f32 1.0, %v13555_v48  ;;  %v13566_v23 = vld [vmem:[#allocation98_spill] sm:$0xff] }
 0x375   : > { %v2680_v32 = vsel %vm9888_vm0, %v2677_v50, %v2674_v11  ;;  %v2692_v56 = vmul.f32 0.6931472, %v6676_v21  ;;  %v2639_v44 = vmul.f32 -0.5, %v13545_v2  ;;  %v2627_v61 = vadd.f32 1.0, %v13556_v17 }
 0x376   : > { %v6678_v53 = vpop.eup %6677  ;;  %v3120_v24 = vsel %vm2288_vm10, %v13544_v59, %v2680_v32  ;;  %v2650_v41 = vmul.f32 %v13541_v57, %v2649_v54  ;;  %v2657_v8 = vmul.f32 -0.5, %v13549_v18  ;;  %6685 = vlog2.f32 %v2609_v58  ;;  %v13558_v57 = vld [vmem:[#allocation77_spill] sm:$0xff] }
 0x377   : > { %vm2284_vm11 = vcmp.gt.f32.partialorder %v13557_v27, 20.0  ;;  %3303 = vmatpush1.msra.mxu0 %v3120_v24  ;;  %v2698_v9 = vsel %vm9896_vm1, %v2695_v37, %v2692_v56  ;;  %v2647_v26 = vmul.f32 0.6931472, %v6678_v53  ;;  %v2667_v1 = vadd.f32 1.0, %v2666_v10  ;;  %v13567_v10 = vld [vmem:[#allocation50_spill] sm:$0xff]  ;;  %v13571_v24 = vld [vmem:[#allocation85_spill] sm:$0xff] }
 0x378   : > { %6687 = vlog2.f32 %v2627_v61  ;;  %v3122_v12 = vsel %vm2290_vm13, %v13548_v45, %v2698_v9  ;;  %vm2652_vm2 = vcmp.lt.f32.partialorder %v2651_v6, 0.0004427343  ;;  %v2669_v7 = vand.u32 2147483647, %v13542_v30 }
 0x379   : > { %v2600_v34 = vadd.f32 1.0, %v13558_v57  ;;  %vm2286_vm5 = vcmp.gt.f32.partialorder %v13559_v16, 20.0  ;;  %3464 = vmatpush1.msra.mxu1 %v3122_v12  ;;  %vm2285_vm3 = vcmp.gt.f32.partialorder %v13560_v4, 20.0  ;;  %v2653_v29 = vsel %vm2652_vm2, %v2650_v41, %v2647_v26 }
 0x37a   : > { %v2640_v3 = vadd.f32 1.0, %v2639_v44  ;;  %v2642_v49 = vand.u32 2147483647, %v13545_v2  ;;  %v6680_v13 = vpop.eup %6679  ;;  %v3117_v62 = vsel %vm2285_vm3, %v13560_v4, %v2653_v29  ;;  %v2658_v28 = vadd.f32 1.0, %v2657_v8  ;;  %v13570_v44 = vld [vmem:[#allocation99_spill] sm:$0xff] }
 0x37b   : > { %6689 = vlog2.f32 %v2600_v34  ;;  %v2618_v59 = vadd.f32 1.0, %v13561_v35  ;;  %3304 = vmatprep.subr.mxu0 %v3117_v62  ;;  %vm2287_vm4 = vcmp.gt.f32.partialorder %v13562_v25, 20.0  ;;  %v2665_v19 = vmul.f32 0.6931472, %v6680_v13 }
 0x37c   : > { %v2668_v47 = vmul.f32 %v13542_v30, %v2667_v1  ;;  %v2612_v40 = vmul.f32 -0.5, %v13555_v48  ;;  %v6682_v33 = vpop.eup %6681  ;;  %vm2670_vm6 = vcmp.lt.f32.partialorder %v2669_v7, 0.0004427343  ;;  %v2660_v55 = vand.u32 2147483647, %v13549_v18  ;;  %v13572_v1 = vld [vmem:[#allocation104_spill] sm:$0xff] }
 0x37d   : > { %6691 = vlog2.f32 %v2618_v59  ;;  %v2573_v15 = vadd.f32 1.0, %v13563_v52  ;;  %v2638_v45 = vmul.f32 0.6931472, %v6682_v33  ;;  %v2641_v14 = vmul.f32 %v13545_v2, %v2640_v3  ;;  %v13575_v59 = vld [vmem:[#allocation58_spill] sm:$0xff] }
 0x37e   : > { %v2671_v42 = vsel %vm2670_vm6, %v2668_v47, %v2665_v19  ;;  %v2630_v39 = vmul.f32 -0.5, %v13556_v17  ;;  %v6684_v20 = vpop.eup %6683  ;;  %vm2643_vm7 = vcmp.lt.f32.partialorder %v2642_v49, 0.0004427343  ;;  %v2659_v30 = vmul.f32 %v13549_v18, %v2658_v28  ;;  %v13576_v33 = vld [vmem:[#allocation54_spill] sm:$0xff] }
 0x37f   : > { %v3119_v43 = vsel %vm2287_vm4, %v13562_v25, %v2671_v42  ;;  %6693 = vlog2.f32 %v2573_v15  ;;  %v2644_v0 = vsel %vm2643_vm7, %v2641_v14, %v2638_v45  ;;  %v2656_v31 = vmul.f32 0.6931472, %v6684_v20 }
 0x380   : > { %3465 = vmatprep.subr.mxu1 %v3119_v43  ;;  %v2613_v22 = vadd.f32 1.0, %v2612_v40  ;;  %v2615_v46 = vand.u32 2147483647, %v13555_v48  ;;  %v3116_v51 = vsel %vm2284_vm11, %v13557_v27, %v2644_v0  ;;  %vm2661_vm8 = vcmp.lt.f32.partialorder %v2660_v55, 0.0004427343 }
 0x381   : > { %v2603_v2 = vmul.f32 -0.5, %v13558_v57  ;;  %v2591_v60 = vadd.f32 1.0, %v13564_v5  ;;  %3305 = vmatpush1.msra.mxu0 %v3116_v51  ;;  %v2662_v63 = vsel %vm2661_vm8, %v2659_v30, %v2656_v31  ;;  %vm2281_vm9 = vcmp.gt.f32.partialorder %v13565_v38, 20.0  ;;  %v13577_v30 = vld [vmem:[#allocation88_spill] sm:$0xff] }
 0x382   : > { %v2631_v18 = vadd.f32 1.0, %v2630_v39  ;;  %v2621_v54 = vmul.f32 -0.5, %v13561_v35  ;;  %vm2280_vm10 = vcmp.gt.f32.partialorder %v13566_v23, 20.0  ;;  %v3118_v11 = vsel %vm2286_vm5, %v13559_v16, %v2662_v63 }
 0x383   : > { %v2633_v50 = vand.u32 2147483647, %v13556_v17  ;;  %6695 = vlog2.f32 %v2591_v60  ;;  %v2564_v21 = vadd.f32 1.0, %v13567_v10  ;;  %v6686_v37 = vpop.eup %6685  ;;  %3466 = vmatpush1.msra.mxu1 %v3118_v11  ;;  %v2614_v36 = vmul.f32 %v13555_v48, %v2613_v22  ;;  %v13579_v60 = vld [vmem:[#allocation86_spill] sm:$0xff] }
 0x384   : > { %vm9948_vm12 = vcmp.lt.f32.partialorder %v2615_v46, 0.0004427343  ;;  %v2606_v58 = vand.u32 2147483647, %v13558_v57  ;;  %v2576_v32 = vmul.f32 -0.5, %v13563_v52  ;;  %vm2282_vm13 = vcmp.gt.f32.partialorder %v13570_v44, 20.0 }
 0x385   : > { %v6688_v56 = vpop.eup %6687  ;;  %v2611_v61 = vmul.f32 0.6931472, %v6686_v37  ;;  %v2604_v53 = vadd.f32 1.0, %v2603_v2  ;;  %6697 = vlog2.f32 %v2564_v21  ;;  %v2582_v41 = vadd.f32 1.0, %v13571_v24 }
 0x386   : > { %v2629_v8 = vmul.f32 0.6931472, %v6688_v56  ;;  %v2632_v27 = vmul.f32 %v13556_v17, %v2631_v18  ;;  %v2622_v48 = vadd.f32 1.0, %v2621_v54  ;;  %v2624_v9 = vand.u32 2147483647, %v13561_v35 }
 0x387   : > { %v2617_v26 = vsel %vm9948_vm12, %v2614_v36, %v2611_v61  ;;  %vm2283_vm14 = vcmp.gt.f32.partialorder %v13572_v1, 20.0  ;;  %vm2634_vm15 = vcmp.lt.f32.partialorder %v2633_v50, 0.0004427343  ;;  %6699 = vlog2.f32 %v2582_v41 }
 0x388   : > { %v6690_v12 = vpop.eup %6689  ;;  %v3113_v7 = vsel %vm2281_vm9, %v13565_v38, %v2617_v26  ;;  %v2635_v34 = vsel %vm2634_vm15, %v2632_v27, %v2629_v8  ;;  %v2577_v16 = vadd.f32 1.0, %v2576_v32  ;;  %v2594_v4 = vmul.f32 -0.5, %v13564_v5  ;;  %v13580_v38 = vld [vmem:[#allocation78_spill] sm:$0xff] }
 0x389   : > { %3306 = vmatprep.subr.mxu0 %v3113_v7  ;;  %v3115_v17 = vsel %vm2283_vm14, %v13572_v1, %v2635_v34  ;;  %v2602_v29 = vmul.f32 0.6931472, %v6690_v12  ;;  %v2605_v3 = vmul.f32 %v13558_v57, %v2604_v53  ;;  %vm2607_vm0 = vcmp.lt.f32.partialorder %v2606_v58, 0.0004427343 }
 0x38a   : > { %v6692_v49 = vpop.eup %6691  ;;  %3467 = vmatprep.subr.mxu1 %v3115_v17  ;;  %v2623_v13 = vmul.f32 %v13561_v35, %v2622_v48  ;;  %vm9968_vm1 = vcmp.lt.f32.partialorder %v2624_v9, 0.0004427343  ;;  %v2579_v28 = vand.u32 2147483647, %v13563_v52  ;;  %v2537_v25 = vadd.f32 1.0, %v13575_v59 }
 0x38b   : > { %v2608_v19 = vsel %vm2607_vm0, %v2605_v3, %v2602_v29  ;;  %v2620_v47 = vmul.f32 0.6931472, %v6692_v49  ;;  %v2567_v40 = vmul.f32 -0.5, %v13567_v10  ;;  %v2555_v55 = vadd.f32 1.0, %v13576_v33 }
 0x38c   : > { %v6694_v57 = vpop.eup %6693  ;;  %v3112_v15 = vsel %vm2280_vm10, %v13566_v23, %v2608_v19  ;;  %v2578_v35 = vmul.f32 %v13563_v52, %v2577_v16  ;;  %v2595_v42 = vadd.f32 1.0, %v2594_v4  ;;  %6701 = vlog2.f32 %v2537_v25  ;;  %v13578_v52 = vld [vmem:[#allocation70_spill] sm:$0xff] }
 0x38d   : > { %3307 = vmatpush1.msra.mxu0 %v3112_v15  ;;  %v2626_v45 = vsel %vm9968_vm1, %v2623_v13, %v2620_v47  ;;  %v2575_v14 = vmul.f32 0.6931472, %v6694_v57  ;;  %v2585_v39 = vmul.f32 -0.5, %v13571_v24  ;;  %6703 = vlog2.f32 %v2555_v55  ;;  %v13583_v13 = vld [vmem:[#allocation100_spill] sm:$0xff]  ;;  %v13584_v47 = vld [vmem:[#allocation106_spill] sm:$0xff] }
 0x38e   : > { %v3114_v20 = vsel %vm2282_vm13, %v13570_v44, %v2626_v45  ;;  %vm2580_vm11 = vcmp.lt.f32.partialorder %v2579_v28, 0.0004427343  ;;  %v2597_v43 = vand.u32 2147483647, %v13564_v5  ;;  %v2528_v0 = vadd.f32 1.0, %v13577_v30  ;;  %v13581_v44 = vld [vmem:[#allocation101_spill] sm:$0xff] }
 0x38f   : > { %3468 = vmatpush1.msra.mxu1 %v3114_v20  ;;  %vm2277_vm2 = vcmp.gt.f32.partialorder %v13578_v52, 20.0  ;;  %v2581_v31 = vsel %vm2580_vm11, %v2578_v35, %v2575_v14  ;;  %v2568_v22 = vadd.f32 1.0, %v2567_v40  ;;  %v2570_v2 = vand.u32 2147483647, %v13567_v10  ;;  %v13585_v35 = vld [vmem:[#allocation105_spill] sm:$0xff] }
 0x390   : > { %v6696_v46 = vpop.eup %6695  ;;  %v3109_v51 = vsel %vm2277_vm2, %v13578_v52, %v2581_v31  ;;  %6705 = vlog2.f32 %v2528_v0  ;;  %v2546_v63 = vadd.f32 1.0, %v13579_v60  ;;  %vm2279_vm5 = vcmp.gt.f32.partialorder %v13580_v38, 20.0  ;;  %v3169_v31 = vld [vmem:[%s12399_s5 + $0x8] sm:$0xff] }
 0x391   : > { %3308 = vmatprep.subr.mxu0 %v3109_v51  ;;  %v2593_v18 = vmul.f32 0.6931472, %v6696_v46  ;;  %v2596_v54 = vmul.f32 %v13564_v5, %v2595_v42  ;;  %v2586_v23 = vadd.f32 1.0, %v2585_v39  ;;  %vm2598_vm3 = vcmp.lt.f32.partialorder %v2597_v43, 0.0004427343  ;;  %v3168_v39 = vld [vmem:[%s12399_s5] sm:$0xff] }
 0x392   : > { %v6698_v11 = vpop.eup %6697  ;;  %v2588_v50 = vand.u32 2147483647, %v13571_v24  ;;  %v2540_v21 = vmul.f32 -0.5, %v13575_v59  ;;  %6707 = vlog2.f32 %v2546_v63  ;;  %v2569_v6 = vmul.f32 %v13567_v10, %v2568_v22  ;;  %v13582_v10 = vld [vmem:[#allocation103_spill] sm:$0xff]  ;;  %v13586_v43 = vld [vmem:[#allocation102_spill] sm:$0xff]  ;;  %v3170_v22 = vld [vmem:[%s12399_s5 + $0x10] sm:$0xff] }
 0x393   : > { %v2599_v37 = vsel %vm2598_vm3, %v2596_v54, %v2593_v18  ;;  %v2566_v36 = vmul.f32 0.6931472, %v6698_v11  ;;  %v2558_v58 = vmul.f32 -0.5, %v13576_v33  ;;  %vm2571_vm4 = vcmp.lt.f32.partialorder %v2570_v2, 0.0004427343  ;;  %v3171_v46 = vld [vmem:[%s12399_s5 + $0x18] sm:$0xff] }
 0x394   : > { %v6700_v32 = vpop.eup %6699  ;;  %v3111_v56 = vsel %vm2279_vm5, %v13580_v38, %v2599_v37  ;;  %vm2276_vm6 = vcmp.gt.f32.partialorder %v13581_v44, 20.0  ;;  %v2587_v53 = vmul.f32 %v13571_v24, %v2586_v23  ;;  %vm2589_vm7 = vcmp.lt.f32.partialorder %v2588_v50, 0.0004427343  ;;  %v3172_v51 = vld [vmem:[%s12399_s5 + $0x20] sm:$0xff]  ;;  %v3173_v2 = vld [vmem:[%s12399_s5 + $0x28] sm:$0xff]  ;;  %v3175_v63 = vld [vmem:[%s12399_s5 + $0x38] sm:$0xff] }
 0x395   : > { %3469 = vmatprep.subr.mxu1 %v3111_v56  ;;  %v2572_v5 = vsel %vm2571_vm4, %v2569_v6, %v2566_v36  ;;  %v2584_v61 = vmul.f32 0.6931472, %v6700_v32  ;;  %v2541_v8 = vadd.f32 1.0, %v2540_v21  ;;  %v2531_v27 = vmul.f32 -0.5, %v13577_v30  ;;  %v3176_v38 = vld [vmem:[%s12399_s5 + $0x40] sm:$0xff]  ;;  %v3177_v18 = vld [vmem:[%s12399_s5 + $0x48] sm:$0xff]  ;;  %v10102_v36 = vpop.permute.xlu1 %3272  ;;  %v10104_v6 = vpop.permute.xlu0 %3277 }
 0x396   : > { %v3108_v41 = vsel %vm2276_vm6, %v13581_v44, %v2572_v5  ;;  %vm2278_vm8 = vcmp.gt.f32.partialorder %v13582_v10, 20.0  ;;  %v2543_v9 = vand.u32 2147483647, %v13575_v59  ;;  %v2559_v26 = vadd.f32 1.0, %v2558_v58  ;;  %v3178_v54 = vld [vmem:[%s12399_s5 + $0x50] sm:$0xff]  ;;  %v3179_v23 = vld [vmem:[%s12399_s5 + $0x58] sm:$0xff] }
 0x397   : > { %3309 = vmatpush1.msra.mxu0 %v3108_v41  ;;  %v2590_v48 = vsel %vm2589_vm7, %v2587_v53, %v2584_v61  ;;  %v2561_v12 = vand.u32 2147483647, %v13576_v33  ;;  %v2549_v7 = vmul.f32 -0.5, %v13579_v60  ;;  %v2542_v4 = vmul.f32 %v13575_v59, %v2541_v8  ;;  %v3180_v11 = vld [vmem:[%s12399_s5 + $0x60] sm:$0xff]  ;;  %v3181_v50 = vld [vmem:[%s12399_s5 + $0x68] sm:$0xff]  ;;  %v3182_v21 = vld [vmem:[%s12399_s5 + $0x70] sm:$0xff] }
 0x398   : > { %v3110_v1 = vsel %vm2278_vm8, %v13582_v10, %v2590_v48  ;;  %v2532_v17 = vadd.f32 1.0, %v2531_v27  ;;  %vm2544_vm9 = vcmp.lt.f32.partialorder %v2543_v9, 0.0004427343  ;;  %v2560_v3 = vmul.f32 %v13576_v33, %v2559_v26  ;;  %v3183_v37 = vld [vmem:[%s12399_s5 + $0x78] sm:$0xff] }
 0x399   : > { %v6702_v24 = vpop.eup %6701  ;;  %3470 = vmatpush1.msra.mxu1 %v3110_v1  ;;  %v2534_v49 = vand.u32 2147483647, %v13577_v30  ;;  %vm2273_vm10 = vcmp.gt.f32.partialorder %v13583_v13, 20.0  ;;  %vm2562_vm12 = vcmp.lt.f32.partialorder %v2561_v12, 0.0004427343  ;;  %v2550_v28 = vadd.f32 1.0, %v2549_v7  ;;  %v10106_v58 = vpop.permute.xlu1 %3262 }
 0x39a   : > { %v6704_v34 = vpop.eup %6703  ;;  %v2539_v16 = vmul.f32 0.6931472, %v6702_v24  ;;  %vm2275_vm13 = vcmp.gt.f32.partialorder %v13584_v47, 20.0  ;;  %v2552_v59 = vand.u32 2147483647, %v13579_v60  ;;  %v2533_v33 = vmul.f32 %v13577_v30, %v2532_v17  ;;  %v10108_v32 = vpop.permute.xlu0 %3267 }
 0x39b   : > { %v2557_v29 = vmul.f32 0.6931472, %v6704_v34  ;;  %vm2535_vm14 = vcmp.lt.f32.partialorder %v2534_v49, 0.0004427343  ;;  %vm2272_vm15 = vcmp.gt.f32.partialorder %v13585_v35, 20.0  ;;  %v2551_v14 = vmul.f32 %v13579_v60, %v2550_v28  ;;  %v3174_v60 = vld [vmem:[%s12399_s5 + $0x30] sm:$0xff] }
 0x39c   : > { %v2545_v62 = vsel %vm2544_vm9, %v2542_v4, %v2539_v16  ;;  %vm2553_vm0 = vcmp.lt.f32.partialorder %v2552_v59, 0.0004427343  ;;  %vm2274_vm1 = vcmp.gt.f32.partialorder %v13586_v43, 20.0  ;;  %v13587_v52 = vmov 0.0  }
 0x39d   : > { %v6706_v25 = vpop.eup %6705  ;;  %v3105_v19 = vsel %vm2273_vm10, %v13583_v13, %v2545_v62  ;;  %v2563_v40 = vsel %vm2562_vm12, %v2560_v3, %v2557_v29  ;;  %v10110_v56 = vpop.permute.xlu1 %3252 }
 0x39e   : > { %3310 = vmatprep.subr.mxu0 %v3105_v19  ;;  %v3107_v55 = vsel %vm2275_vm13, %v13584_v47, %v2563_v40  ;;  %v2530_v57 = vmul.f32 0.6931472, %v6706_v25  ;;  %v10112_v44 = vpop.permute.xlu0 %3257 }
 0x39f   : > { %v6708_v15 = vpop.eup %6707  ;;  %3471 = vmatprep.subr.mxu1 %v3107_v55 }
 0x3a0   : > { %v2536_v42 = vsel %vm2535_vm14, %v2533_v33, %v2530_v57  ;;  %v2548_v45 = vmul.f32 0.6931472, %v6708_v15 }
 0x3a1   : > { %v3104_v20 = vsel %vm2272_vm15, %v13585_v35, %v2536_v42  ;;  %v10114_v5 = vpop.permute.xlu1 %3242 }
 0x3a2   : > { %3311 = vmatpush1.msra.mxu0 %v3104_v20  ;;  %v2554_v30 = vsel %vm2553_vm0, %v2551_v14, %v2548_v45  ;;  %v10116_v61 = vpop.permute.xlu0 %3247 }
 0x3a3   : > { %v3106_v0 = vsel %vm2274_vm1, %v13586_v43, %v2554_v30  ;;  %3345 = vmatmul.mubr.f32.vlgmr.msra.gmra.mxu0 %v3168_v39 }
 0x3a4   : > { %3472 = vmatpush1.msra.mxu1 %v3106_v0  ;;  %3350 = vmatprep.mubr.f32.mxu0 %v13587_v52 }
 0x3a5   : > { %3506 = vmatmul.mubr.f32.vlgmr.msra.gmra.mxu1 %v3168_v39  ;;  %v10118_v53 = vpop.permute.xlu1 %3232 }
 0x3a6   : > { %3511 = vmatprep.mubr.f32.mxu1 %v13587_v52  ;;  %v10120_v41 = vpop.permute.xlu0 %3237 }
 0x3a7   : > { %3351 = vmatmul.mubr.f32.gmra.mxu0 %v3169_v31 }
 0x3a8   : > { %3356 = vmatprep.mubr.f32.mxu0 %v13587_v52 }
 0x3a9   : > { %3512 = vmatmul.mubr.f32.gmra.mxu1 %v3169_v31  ;;  %v10122_v8 = vpop.permute.xlu1 %3222 }
 0x3aa   : > { %3517 = vmatprep.mubr.f32.mxu1 %v13587_v52  ;;  %v10124_v27 = vpop.permute.xlu0 %3227 }
 0x3ab   : > { %3357 = vmatmul.mubr.f32.gmra.mxu0 %v3170_v22 }
 0x3ac   : > { %3362 = vmatprep.mubr.f32.mxu0 %v13587_v52 }
 0x3ad   : > { %3518 = vmatmul.mubr.f32.gmra.mxu1 %v3170_v22  ;;  %v3213_v10 = vpop.permute.xlu1 %3212 }
 0x3ae   : > { %3523 = vmatprep.mubr.f32.mxu1 %v13587_v52  ;;  %v3218_v1 = vpop.permute.xlu0 %3217 }
 0x3af   : > { %3363 = vmatmul.mubr.f32.gmra.mxu0 %v3171_v46 }
 0x3b0   : > { %3368 = vmatprep.mubr.f32.mxu0 %v13587_v52 }
 0x3b1   : > { %3524 = vmatmul.mubr.f32.gmra.mxu1 %v3171_v46  ;;  %v3203_v24 = vpop.permute.xlu1 %3202 }
 0x3b2   : > { %3529 = vmatprep.mubr.f32.mxu1 %v13587_v52  ;;  %v3208_v13 = vpop.permute.xlu0 %3207 }
 0x3b3   : > { %3369 = vmatmul.mubr.f32.gmra.mxu0 %v3172_v51 }
 0x3b4   : > { %3374 = vmatprep.mubr.f32.mxu0 %v13587_v52 }
 0x3b5   : > { %3530 = vmatmul.mubr.f32.gmra.mxu1 %v3172_v51 }
 0x3b6   : > { %3535 = vmatprep.mubr.f32.mxu1 %v13587_v52 }
 0x3b7   : > { %3375 = vmatmul.mubr.f32.gmra.mxu0 %v3173_v2 }
 0x3b8   : > { %3380 = vmatprep.mubr.f32.mxu0 %v13587_v52 }
 0x3b9   : > { %3536 = vmatmul.mubr.f32.gmra.mxu1 %v3173_v2 }
 0x3ba   : > { %3541 = vmatprep.mubr.f32.mxu1 %v13587_v52 }
 0x3bb   : > { %3381 = vmatmul.mubr.f32.gmra.mxu0 %v3174_v60 }
 0x3bc   : > { %3386 = vmatprep.mubr.f32.mxu0 %v13587_v52 }
 0x3bd   : > { %3542 = vmatmul.mubr.f32.gmra.mxu1 %v3174_v60 }
 0x3be   : > { %3547 = vmatprep.mubr.f32.mxu1 %v13587_v52 }
 0x3bf   : > { %3387 = vmatmul.mubr.f32.gmra.mxu0 %v3175_v63 }
 0x3c0   : > { %3392 = vmatprep.mubr.f32.mxu0 %v13587_v52 }
 0x3c1   : > { %3548 = vmatmul.mubr.f32.gmra.mxu1 %v3175_v63 }
 0x3c2   : > { %3553 = vmatprep.mubr.f32.mxu1 %v13587_v52 }
 0x3c3   : > { %3393 = vmatmul.mubr.f32.gmra.mxu0 %v3176_v38 }
 0x3c4   : > { %3398 = vmatprep.mubr.f32.mxu0 %v13587_v52 }
 0x3c5   : > { %3554 = vmatmul.mubr.f32.gmra.mxu1 %v3176_v38 }
 0x3c6   : > { %3559 = vmatprep.mubr.f32.mxu1 %v13587_v52 }
 0x3c7   : > { %3399 = vmatmul.mubr.f32.gmra.mxu0 %v3177_v18 }
 0x3c8   : > { %3404 = vmatprep.mubr.f32.mxu0 %v13587_v52 }
 0x3c9   : > { %3560 = vmatmul.mubr.f32.gmra.mxu1 %v3177_v18 }
 0x3ca   : > { %3565 = vmatprep.mubr.f32.mxu1 %v13587_v52 }
 0x3cb   : > { %3405 = vmatmul.mubr.f32.gmra.mxu0 %v3178_v54 }
 0x3cc   : > { %3410 = vmatprep.mubr.f32.mxu0 %v13587_v52 }
 0x3cd   : > { %3566 = vmatmul.mubr.f32.gmra.mxu1 %v3178_v54 }
 0x3ce   : > { %3571 = vmatprep.mubr.f32.mxu1 %v13587_v52 }
 0x3cf   : > { %3411 = vmatmul.mubr.f32.gmra.mxu0 %v3179_v23 }
 0x3d0   : > { %3416 = vmatprep.mubr.f32.mxu0 %v13587_v52 }
 0x3d1   : > { %3572 = vmatmul.mubr.f32.gmra.mxu1 %v3179_v23 }
 0x3d2   : > { %3577 = vmatprep.mubr.f32.mxu1 %v13587_v52 }
 0x3d3   : > { %3417 = vmatmul.mubr.f32.gmra.mxu0 %v3180_v11 }
 0x3d4   : > { %3422 = vmatprep.mubr.f32.mxu0 %v13587_v52 }
 0x3d5   : > { %3578 = vmatmul.mubr.f32.gmra.mxu1 %v3180_v11 }
 0x3d6   : > { %3583 = vmatprep.mubr.f32.mxu1 %v13587_v52 }
 0x3d7   : > { %3423 = vmatmul.mubr.f32.gmra.mxu0 %v3181_v50 }
 0x3d8   : > { %3428 = vmatprep.mubr.f32.mxu0 %v13587_v52 }
 0x3d9   : > { %3584 = vmatmul.mubr.f32.gmra.mxu1 %v3181_v50 }
 0x3da   : > { %3589 = vmatprep.mubr.f32.mxu1 %v13587_v52 }
 0x3db   : > { %3429 = vmatmul.mubr.f32.gmra.mxu0 %v3182_v21 }
 0x3dc   : > { %3434 = vmatprep.mubr.f32.mxu0 %v13587_v52 }
 0x3dd   : > { %3590 = vmatmul.mubr.f32.gmra.mxu1 %v3182_v21 }
 0x3de   : > { %3595 = vmatprep.mubr.f32.mxu1 %v13587_v52 }
 0x3df   : > { %3435 = vmatmul.mubr.f32.gmra.mxu0 %v3183_v37 }
 0x3e0   : > { %4674 = vmatprep.mubr.f32.mxu0 %v13587_v52 }
 0x3e1   : > { %3596 = vmatmul.mubr.f32.gmra.mxu1 %v3183_v37 }
 0x3e2   : > { %4835 = vmatprep.mubr.f32.mxu1 %v13587_v52 }
 0x463   : > { %v3346_v48 = vpop.f32.mrf.mxu0 }
 0x464   : > { %v10126_v34 = vadd.f32 %v3346_v48, %v3203_v24 }
 0x465   : > { %v3507_v9 = vpop.f32.mrf.mxu1  ;;  %v3348_v26 = vpop.f32.mrf.mxu0 }
 0x466   : > { %13588 = vst [vmem:[#allocation7_spill] sm:$0xff] %v10126_v34  ;;  %v10128_v17 = vadd.f32 %v3507_v9, %v3203_v24  ;;  %v10130_v29 = vadd.f32 %v3348_v26, %v3203_v24  ;;  %v3666_v28 = vmin.f32 %v10126_v34, 20.0 }
 0x467   : > { %v3509_v12 = vpop.f32.mrf.mxu1  ;;  %v3352_v7 = vpop.f32.mrf.mxu0 }
 0x468   : > { %13589 = vst [vmem:[#allocation4_spill] sm:$0xff] %v10128_v17  ;;  %13590 = vst [vmem:[#allocation5_spill] sm:$0xff] %v10130_v29  ;;  %v10132_v62 = vadd.f32 %v3509_v12, %v3203_v24  ;;  %v10135_v25 = vadd.f32 %v3352_v7, %v3208_v13  ;;  %v3668_v40 = vmin.f32 %v10128_v17, 20.0  ;;  %v3667_v55 = vmin.f32 %v10130_v29, 20.0 }
 0x469   : > { %v3513_v16 = vpop.f32.mrf.mxu1  ;;  %v3354_v4 = vpop.f32.mrf.mxu0  ;;  %v3730_v45 = vmul.f32 1.442695, %v3666_v28 }
 0x46a   : > { %13591 = vst [vmem:[#allocation2_spill] sm:$0xff] %v10132_v62  ;;  %13592 = vst [vmem:[#allocation3_spill] sm:$0xff] %v10135_v25  ;;  %v10138_v59 = vadd.f32 %v3513_v16, %v3208_v13  ;;  %v10141_v57 = vadd.f32 %v3354_v4, %v3208_v13  ;;  %v3669_v35 = vmin.f32 %v10132_v62, 20.0  ;;  %v3670_v14 = vmin.f32 %v10135_v25, 20.0 }
 0x46b   : > { %v3515_v3 = vpop.f32.mrf.mxu1  ;;  %v3358_v49 = vpop.f32.mrf.mxu0  ;;  %v3734_v30 = vmul.f32 1.442695, %v3668_v40  ;;  %v3732_v22 = vmul.f32 1.442695, %v3667_v55  ;;  %6709 = vpow2.f32 %v3730_v45 }
 0x46c   : > { %13593 = vst [vmem:[#allocation8_spill] sm:$0xff] %v10138_v59  ;;  %13594 = vst [vmem:[#allocation29_spill] sm:$0xff] %v10141_v57  ;;  %v10144_v42 = vadd.f32 %v3515_v3, %v3208_v13  ;;  %v10147_v39 = vadd.f32 %v3358_v49, %v3213_v10  ;;  %v3672_v0 = vmin.f32 %v10138_v59, 20.0  ;;  %v3671_v46 = vmin.f32 %v10141_v57, 20.0 }
 0x46d   : > { %v3519_v19 = vpop.f32.mrf.mxu1  ;;  %v3360_v47 = vpop.f32.mrf.mxu0  ;;  %v3736_v63 = vmul.f32 1.442695, %v3669_v35  ;;  %v3738_v54 = vmul.f32 1.442695, %v3670_v14  ;;  %6711 = vpow2.f32 %v3734_v30 }
 0x46e   : > { %13595 = vst [vmem:[#allocation9_spill] sm:$0xff] %v10144_v42  ;;  %13596 = vst [vmem:[#allocation47_spill] sm:$0xff] %v10147_v39  ;;  %v10150_v31 = vadd.f32 %v3519_v19, %v3213_v10  ;;  %v10153_v51 = vadd.f32 %v3360_v47, %v3213_v10  ;;  %v3673_v38 = vmin.f32 %v10144_v42, 20.0  ;;  %v3674_v23 = vmin.f32 %v10147_v39, 20.0 }
 0x46f   : > { %v3521_v33 = vpop.f32.mrf.mxu1  ;;  %v3364_v15 = vpop.f32.mrf.mxu0  ;;  %v3742_v37 = vmul.f32 1.442695, %v3672_v0  ;;  %6713 = vpow2.f32 %v3732_v22  ;;  %v3740_v26 = vmul.f32 1.442695, %v3671_v46 }
 0x470   : > { %13597 = vst [vmem:[#allocation57_spill] sm:$0xff] %v10150_v31  ;;  %13598 = vst [vmem:[#allocation31_spill] sm:$0xff] %v10153_v51  ;;  %v10156_v18 = vadd.f32 %v3521_v33, %v3213_v10  ;;  %v10159_v11 = vadd.f32 %v3364_v15, %v3218_v1  ;;  %v3676_v48 = vmin.f32 %v10150_v31, 20.0  ;;  %v3675_v12 = vmin.f32 %v10153_v51, 20.0 }
 0x471   : > { %v3525_v20 = vpop.f32.mrf.mxu1  ;;  %v3366_v43 = vpop.f32.mrf.mxu0  ;;  %6715 = vpow2.f32 %v3736_v63  ;;  %v3744_v16 = vmul.f32 1.442695, %v3673_v38  ;;  %v3746_v49 = vmul.f32 1.442695, %v3674_v23 }
 0x472   : > { %13599 = vst [vmem:[#allocation11_spill] sm:$0xff] %v10156_v18  ;;  %13600 = vst [vmem:[#allocation27_spill] sm:$0xff] %v10159_v11  ;;  %v10162_v9 = vadd.f32 %v3525_v20, %v3218_v1  ;;  %v10165_v10 = vadd.f32 %v3366_v43, %v3218_v1  ;;  %v3677_v4 = vmin.f32 %v10156_v18, 20.0  ;;  %6717 = vpow2.f32 %v3738_v54 }
 0x473   : > { %v3527_v2 = vpop.f32.mrf.mxu1  ;;  %v3370_v60 = vpop.f32.mrf.mxu0  ;;  %v3678_v13 = vmin.f32 %v10159_v11, 20.0  ;;  %6719 = vpow2.f32 %v3742_v37  ;;  %v3750_v40 = vmul.f32 1.442695, %v3676_v48  ;;  %v3748_v15 = vmul.f32 1.442695, %v3675_v12 }
 0x474   : > { %13601 = vst [vmem:[#allocation55_spill] sm:$0xff] %v10162_v9  ;;  %13602 = vst [vmem:[#allocation10_spill] sm:$0xff] %v10165_v10  ;;  %v10168_v3 = vadd.f32 %v3527_v2, %v3218_v1  ;;  %v10172_v28 = vadd.f32 %v3370_v60, %v10122_v8  ;;  %v3680_v55 = vmin.f32 %v10162_v9, 20.0  ;;  %6721 = vpow2.f32 %v3740_v26 }
 0x475   : > { %v3531_v50 = vpop.f32.mrf.mxu1  ;;  %v3372_v21 = vpop.f32.mrf.mxu0  ;;  %v3679_v1 = vmin.f32 %v10165_v10, 20.0  ;;  %6723 = vpow2.f32 %v3744_v16  ;;  %v3752_v20 = vmul.f32 1.442695, %v3677_v4  ;;  %v3754_v0 = vmul.f32 1.442695, %v3678_v13 }
 0x476   : > { %13603 = vst [vmem:[#allocation45_spill] sm:$0xff] %v10168_v3  ;;  %13604 = vst [vmem:[#allocation12_spill] sm:$0xff] %v10172_v28  ;;  %v10176_v33 = vadd.f32 %v3531_v50, %v10122_v8  ;;  %v10180_v35 = vadd.f32 %v3372_v21, %v10122_v8  ;;  %v3681_v43 = vmin.f32 %v10168_v3, 20.0  ;;  %6725 = vpow2.f32 %v3746_v49 }
 0x477   : > { %v3533_v7 = vpop.f32.mrf.mxu1  ;;  %v3376_v24 = vpop.f32.mrf.mxu0  ;;  %v3682_v22 = vmin.f32 %v10172_v28, 20.0  ;;  %6727 = vpow2.f32 %v3750_v40  ;;  %v3758_v63 = vmul.f32 1.442695, %v3680_v55  ;;  %v3756_v23 = vmul.f32 1.442695, %v3679_v1 }
 0x478   : > { %13605 = vst [vmem:[#allocation13_spill] sm:$0xff] %v10176_v33  ;;  %13606 = vst [vmem:[#allocation35_spill] sm:$0xff] %v10180_v35  ;;  %v10184_v30 = vadd.f32 %v3533_v7, %v10122_v8  ;;  %v10188_v46 = vadd.f32 %v3376_v24, %v10124_v27  ;;  %v3684_v38 = vmin.f32 %v10176_v33, 20.0  ;;  %6729 = vpow2.f32 %v3748_v15  ;;  %v10206_v13 = vpop.eup %6709 }
 0x479   : > { %v3537_v19 = vpop.f32.mrf.mxu1  ;;  %v3378_v47 = vpop.f32.mrf.mxu0  ;;  %v3683_v8 = vmin.f32 %v10180_v35, 20.0  ;;  %6731 = vpow2.f32 %v3752_v20  ;;  %v3760_v48 = vmul.f32 1.442695, %v3681_v43  ;;  %v3762_v7 = vmul.f32 1.442695, %v3682_v22  ;;  %13613 = vst [vmem:[#allocation65_spill] sm:$0xff] %v10206_v13 }
 0x47a   : > { %13607 = vst [vmem:[#allocation22_spill] sm:$0xff] %v10184_v30  ;;  %13608 = vst [vmem:[#allocation39_spill] sm:$0xff] %v10188_v46  ;;  %v10192_v54 = vadd.f32 %v3537_v19, %v10124_v27  ;;  %v10196_v50 = vadd.f32 %v3378_v47, %v10124_v27  ;;  %v3685_v26 = vmin.f32 %v10184_v30, 20.0  ;;  %6733 = vpow2.f32 %v3754_v0 }
 0x47b   : > { %v3539_v45 = vpop.f32.mrf.mxu1  ;;  %v3382_v14 = vpop.f32.mrf.mxu0  ;;  %v3686_v24 = vmin.f32 %v10188_v46, 20.0  ;;  %6735 = vpow2.f32 %v3758_v63  ;;  %v3766_v19 = vmul.f32 1.442695, %v3684_v38  ;;  %v3764_v55 = vmul.f32 1.442695, %v3683_v8 }
 0x47c   : > { %13609 = vst [vmem:[#allocation37_spill] sm:$0xff] %v10192_v54  ;;  %13610 = vst [vmem:[#allocation24_spill] sm:$0xff] %v10196_v50  ;;  %v10200_v12 = vadd.f32 %v3539_v45, %v10124_v27  ;;  %v10204_v16 = vadd.f32 %v3382_v14, %v10118_v53  ;;  %v3688_v47 = vmin.f32 %v10192_v54, 20.0  ;;  %v10212_v27 = vpop.eup %6711  ;;  %6737 = vpow2.f32 %v3756_v23 }
 0x47d   : > { %v3543_v2 = vpop.f32.mrf.mxu1  ;;  %v3384_v60 = vpop.f32.mrf.mxu0  ;;  %13615 = vst [vmem:[#allocation15_spill] sm:$0xff] %v10212_v27  ;;  %v3687_v15 = vmin.f32 %v10196_v50, 20.0  ;;  %6739 = vpow2.f32 %v3760_v48  ;;  %v3768_v43 = vmul.f32 1.442695, %v3685_v26  ;;  %v3770_v63 = vmul.f32 1.442695, %v3686_v24 }
 0x47e   : > { %13611 = vst [vmem:[#allocation41_spill] sm:$0xff] %v10200_v12  ;;  %13612 = vst [vmem:[#allocation28_spill] sm:$0xff] %v10204_v16  ;;  %v10210_v40 = vadd.f32 %v3543_v2, %v10118_v53  ;;  %v10216_v1 = vadd.f32 %v3384_v60, %v10118_v53  ;;  %v10218_v20 = vpop.eup %6713  ;;  %v3689_v0 = vmin.f32 %v10200_v12, 20.0  ;;  %6741 = vpow2.f32 %v3762_v7 }
 0x47f   : > { %v3545_v21 = vpop.f32.mrf.mxu1  ;;  %v3388_v37 = vpop.f32.mrf.mxu0  ;;  %13617 = vst [vmem:[#allocation16_spill] sm:$0xff] %v10218_v20  ;;  %v3690_v38 = vmin.f32 %v10204_v16, 20.0  ;;  %6743 = vpow2.f32 %v3766_v19  ;;  %v3774_v48 = vmul.f32 1.442695, %v3688_v47  ;;  %v3772_v7 = vmul.f32 1.442695, %v3687_v15 }
 0x480   : > { %13614 = vst [vmem:[#allocation69_spill] sm:$0xff] %v10210_v40  ;;  %13616 = vst [vmem:[#allocation26_spill] sm:$0xff] %v10216_v1  ;;  %v10222_v22 = vadd.f32 %v3545_v21, %v10118_v53  ;;  %v10224_v2 = vpop.eup %6715  ;;  %v10228_v60 = vadd.f32 %v3388_v37, %v10120_v41  ;;  %v3692_v26 = vmin.f32 %v10210_v40, 20.0  ;;  %6745 = vpow2.f32 %v3764_v55 }
 0x481   : > { %v3549_v4 = vpop.f32.mrf.mxu1  ;;  %v3390_v49 = vpop.f32.mrf.mxu0  ;;  %13619 = vst [vmem:[#allocation71_spill] sm:$0xff] %v10224_v2  ;;  %v3691_v24 = vmin.f32 %v10216_v1, 20.0  ;;  %6747 = vpow2.f32 %v3768_v43  ;;  %v3776_v19 = vmul.f32 1.442695, %v3689_v0  ;;  %v3778_v55 = vmul.f32 1.442695, %v3690_v38 }
 0x482   : > { %13618 = vst [vmem:[#allocation17_spill] sm:$0xff] %v10222_v22  ;;  %13620 = vst [vmem:[#allocation14_spill] sm:$0xff] %v10228_v60  ;;  %v10230_v52 = vpop.eup %6717  ;;  %v10234_v53 = vadd.f32 %v3549_v4, %v10120_v41  ;;  %v10240_v37 = vadd.f32 %v3390_v49, %v10120_v41  ;;  %v3693_v47 = vmin.f32 %v10222_v22, 20.0  ;;  %6749 = vpow2.f32 %v3770_v63 }
 0x483   : > { %v3551_v45 = vpop.f32.mrf.mxu1  ;;  %v3394_v14 = vpop.f32.mrf.mxu0  ;;  %13621 = vst [vmem:[#allocation36_spill] sm:$0xff] %v10230_v52  ;;  %v3694_v15 = vmin.f32 %v10228_v60, 20.0  ;;  %v3782_v43 = vmul.f32 1.442695, %v3692_v26 }
 0x484   : > { %13622 = vst [vmem:[#allocation6_spill] sm:$0xff] %v10234_v53  ;;  %v10236_v21 = vpop.eup %6719  ;;  %13624 = vst [vmem:[#allocation21_spill] sm:$0xff] %v10240_v37  ;;  %v10246_v4 = vadd.f32 %v3551_v45, %v10120_v41  ;;  %v10252_v49 = vadd.f32 %v3394_v14, %v10114_v5  ;;  %6751 = vpow2.f32 %v3774_v48  ;;  %v3696_v0 = vmin.f32 %v10234_v53, 20.0 }
 0x485   : > { %v3555_v23 = vpop.f32.mrf.mxu1  ;;  %v3396_v8 = vpop.f32.mrf.mxu0  ;;  %13623 = vst [vmem:[#allocation43_spill] sm:$0xff] %v10236_v21  ;;  %v3780_v45 = vmul.f32 1.442695, %v3691_v24  ;;  %v3695_v63 = vmin.f32 %v10240_v37, 20.0  ;;  %v3784_v13 = vmul.f32 1.442695, %v3693_v47 }
 0x486   : > { %v10242_v62 = vpop.eup %6721  ;;  %13626 = vst [vmem:[#allocation38_spill] sm:$0xff] %v10246_v4  ;;  %13628 = vst [vmem:[#allocation42_spill] sm:$0xff] %v10252_v49  ;;  %6753 = vpow2.f32 %v3772_v7  ;;  %v10263_v38 = vadd.f32 %v3555_v23, %v10114_v5  ;;  %v3697_v48 = vmin.f32 %v10246_v4, 20.0  ;;  %v10271_v26 = vadd.f32 %v3396_v8, %v10114_v5 }
 0x487   : > { %v3557_v17 = vpop.f32.mrf.mxu1  ;;  %v3400_v34 = vpop.f32.mrf.mxu0  ;;  %13625 = vst [vmem:[#allocation33_spill] sm:$0xff] %v10242_v62  ;;  %v3786_v7 = vmul.f32 1.442695, %v3694_v15  ;;  %v3698_v24 = vmin.f32 %v10252_v49, 20.0  ;;  %v3788_v31 = vmul.f32 1.442695, %v3695_v63 }
 0x488   : > { %v10248_v29 = vpop.eup %6723  ;;  %13631 = vst [vmem:[#allocation19_spill] sm:$0xff] %v10263_v38  ;;  %6755 = vpow2.f32 %v3776_v19  ;;  %13633 = vst [vmem:[#allocation56_spill] sm:$0xff] %v10271_v26  ;;  %v10277_v23 = vadd.f32 %v3557_v17, %v10114_v5  ;;  %v3790_v19 = vmul.f32 1.442695, %v3696_v0  ;;  %v10282_v47 = vadd.f32 %v3400_v34, %v10116_v61 }
 0x489   : > { %13627 = vst [vmem:[#allocation49_spill] sm:$0xff] %v10248_v29  ;;  %v10254_v59 = vpop.f32.mrf.mxu1  ;;  %v3402_v25 = vpop.f32.mrf.mxu0  ;;  %v3792_v39 = vmul.f32 1.442695, %v3697_v48  ;;  %v3794_v34 = vmul.f32 1.442695, %v3698_v24 }
 0x48a   : > { %v10256_v42 = vpop.eup %6725  ;;  %6757 = vpow2.f32 %v3778_v55  ;;  %13635 = vst [vmem:[#allocation51_spill] sm:$0xff] %v10277_v23  ;;  %13637 = vst [vmem:[#allocation61_spill] sm:$0xff] %v10282_v47  ;;  %v3700_v55 = vmin.f32 %v10263_v38, 20.0  ;;  %v10288_v15 = vadd.f32 %v3402_v25, %v10116_v61  ;;  %v3702_v25 = vmin.f32 %v10282_v47, 20.0 }
 0x48b   : > { %13629 = vst [vmem:[#allocation53_spill] sm:$0xff] %v10256_v42  ;;  %v10259_v41 = vpop.eup %6727  ;;  %v10265_v14 = vpop.f32.mrf.mxu1  ;;  %6759 = vpow2.f32 %v3782_v43  ;;  %v3699_v43 = vmin.f32 %v10271_v26, 20.0 }
 0x48c   : > { %13630 = vst [vmem:[#allocation74_spill] sm:$0xff] %v10259_v41  ;;  %v3406_v27 = vpop.f32.mrf.mxu0  ;;  %v10267_v57 = vpop.eup %6729  ;;  %6761 = vpow2.f32 %v3780_v45  ;;  %13639 = vst [vmem:[#allocation20_spill] sm:$0xff] %v10288_v15  ;;  %v3701_v45 = vmin.f32 %v10277_v23, 20.0  ;;  %v3703_v24 = vmin.f32 %v10288_v15, 20.0 }
 0x48d   : > { %13632 = vst [vmem:[#allocation44_spill] sm:$0xff] %v10267_v57  ;;  %v10273_v2 = vpop.eup %6731  ;;  %v3567_v20 = vpop.f32.mrf.mxu1  ;;  %6763 = vpow2.f32 %v3784_v13  ;;  %v10302_v62 = vadd.f32 %v3406_v27, %v10110_v56  ;;  %v3796_v27 = vmul.f32 1.442695, %v3699_v43 }
 0x48e   : > { %13634 = vst [vmem:[#allocation18_spill] sm:$0xff] %v10273_v2  ;;  %v3408_v18 = vpop.f32.mrf.mxu0  ;;  %v10279_v21 = vpop.eup %6733  ;;  %6765 = vpow2.f32 %v3786_v7  ;;  %v10305_v13 = vadd.f32 %v3567_v20, %v10110_v56  ;;  %v3798_v7 = vmul.f32 1.442695, %v3700_v55  ;;  %v3800_v42 = vmul.f32 1.442695, %v3701_v45 }
 0x48f   : > { %13636 = vst [vmem:[#allocation84_spill] sm:$0xff] %v10279_v21  ;;  %v10284_v8 = vpop.eup %6735  ;;  %v3569_v5 = vpop.f32.mrf.mxu1  ;;  %6767 = vpow2.f32 %v3790_v19  ;;  %13643 = vst [vmem:[#allocation60_spill] sm:$0xff] %v10302_v62  ;;  %v10311_v3 = vadd.f32 %v3408_v18, %v10110_v56  ;;  %v3706_v9 = vmin.f32 %v10302_v62, 20.0  ;;  %v3802_v2 = vmul.f32 1.442695, %v3702_v25 }
 0x490   : > { %13638 = vst [vmem:[#allocation52_spill] sm:$0xff] %v10284_v8  ;;  %v3412_v17 = vpop.f32.mrf.mxu0  ;;  %v10290_v52 = vpop.eup %6737  ;;  %13644 = vst [vmem:[#allocation64_spill] sm:$0xff] %v10305_v13  ;;  %6769 = vpow2.f32 %v3788_v31  ;;  %v3708_v31 = vmin.f32 %v10305_v13, 20.0  ;;  %v10327_v30 = vadd.f32 %v3569_v5, %v10110_v56 }
 0x491   : > { %13640 = vst [vmem:[#allocation46_spill] sm:$0xff] %v10290_v52  ;;  %v10293_v0 = vpop.eup %6739  ;;  %v3573_v63 = vpop.f32.mrf.mxu1  ;;  %13646 = vst [vmem:[#allocation89_spill] sm:$0xff] %v10311_v3  ;;  %6771 = vpow2.f32 %v3792_v39  ;;  %v3707_v57 = vmin.f32 %v10311_v3, 20.0  ;;  %v10330_v39 = vadd.f32 %v3412_v17, %v10112_v44  ;;  %v3810_v25 = vmul.f32 1.442695, %v3706_v9 }
 0x492   : > { %13641 = vst [vmem:[#allocation23_spill] sm:$0xff] %v10293_v0  ;;  %v10296_v51 = vpop.f32.mrf.mxu0  ;;  %v10298_v29 = vpop.eup %6741  ;;  %6773 = vpow2.f32 %v3794_v34  ;;  %13650 = vst [vmem:[#allocation32_spill] sm:$0xff] %v10327_v30  ;;  %v3804_v34 = vmul.f32 1.442695, %v3703_v24  ;;  %v10335_v45 = vadd.f32 %v3573_v63, %v10112_v44  ;;  %v3709_v28 = vmin.f32 %v10327_v30, 20.0 }
 0x493   : > { %13642 = vst [vmem:[#allocation25_spill] sm:$0xff] %v10298_v29  ;;  %v10307_v48 = vpop.eup %6743  ;;  %v10313_v41 = vpop.f32.mrf.mxu1  ;;  %13651 = vst [vmem:[#allocation81_spill] sm:$0xff] %v10330_v39  ;;  %6775 = vpow2.f32 %v3798_v7  ;;  %v3710_v56 = vmin.f32 %v10330_v39, 20.0  ;;  %v3814_v17 = vmul.f32 1.442695, %v3708_v31 }
 0x494   : > { %13645 = vst [vmem:[#allocation63_spill] sm:$0xff] %v10307_v48  ;;  %v3418_v19 = vpop.f32.mrf.mxu0  ;;  %v10315_v10 = vpop.eup %6745  ;;  %13653 = vst [vmem:[#allocation90_spill] sm:$0xff] %v10335_v45  ;;  %6777 = vpow2.f32 %v3796_v27  ;;  %v3712_v7 = vmin.f32 %v10335_v45, 20.0  ;;  %v3812_v0 = vmul.f32 1.442695, %v3707_v57 }
 0x495   : > { %13647 = vst [vmem:[#allocation59_spill] sm:$0xff] %v10315_v10  ;;  %v10318_v20 = vpop.eup %6747  ;;  %v10321_v55 = vpop.f32.mrf.mxu1  ;;  %6779 = vpow2.f32 %v3800_v42  ;;  %v3816_v9 = vmul.f32 1.442695, %v3709_v28  ;;  %v10349_v27 = vadd.f32 %v3418_v19, %v10106_v58  ;;  %v3818_v42 = vmul.f32 1.442695, %v3710_v56 }
 0x496   : > { %13648 = vst [vmem:[#allocation87_spill] sm:$0xff] %v10318_v20  ;;  %v3420_v11 = vpop.f32.mrf.mxu0  ;;  %v10323_v18 = vpop.eup %6749  ;;  %6781 = vpow2.f32 %v3802_v2 }
 0x497   : > { %13649 = vst [vmem:[#allocation67_spill] sm:$0xff] %v10323_v18  ;;  %v10332_v43 = vpop.eup %6751  ;;  %v3581_v8 = vpop.f32.mrf.mxu1  ;;  %6783 = vpow2.f32 %v3804_v34  ;;  %13658 = vst [vmem:[#allocation68_spill] sm:$0xff] %v10349_v27  ;;  %v10354_v31 = vadd.f32 %v3420_v11, %v10106_v58  ;;  %v3822_v34 = vmul.f32 1.442695, %v3712_v7  ;;  %v3714_v28 = vmin.f32 %v10349_v27, 20.0 }
 0x498   : > { %13652 = vst [vmem:[#allocation30_spill] sm:$0xff] %v10332_v43  ;;  %v3424_v33 = vpop.f32.mrf.mxu0  ;;  %v10337_v21 = vpop.eup %6753  ;;  %6785 = vpow2.f32 %v3810_v25  ;;  %v10357_v50 = vadd.f32 %v3581_v8, %v10106_v58 }
 0x499   : > { %13654 = vst [vmem:[#allocation62_spill] sm:$0xff] %v10337_v21  ;;  %v10341_v5 = vpop.eup %6755  ;;  %v3585_v24 = vpop.f32.mrf.mxu1  ;;  %6787 = vpow2.f32 %v3814_v17  ;;  %v3826_v25 = vmul.f32 1.442695, %v3714_v28  ;;  %v3715_v11 = vmin.f32 %v10354_v31, 20.0  ;;  %v10371_v17 = vadd.f32 %v3424_v33, %v10108_v32 }
 0x49a   : > { %13655 = vst [vmem:[#allocation66_spill] sm:$0xff] %v10341_v5  ;;  %v3426_v35 = vpop.f32.mrf.mxu0  ;;  %v10344_v63 = vpop.eup %6757  ;;  %13660 = vst [vmem:[#allocation75_spill] sm:$0xff] %v10357_v50  ;;  %6789 = vpow2.f32 %v3812_v0  ;;  %v3717_v8 = vmin.f32 %v10357_v50, 20.0  ;;  %v10374_v7 = vadd.f32 %v3585_v24, %v10108_v32  ;;  %vm3651_vm12 = vcmp.gt.f32.partialorder %v10354_v31, 20.0 }
 0x49b   : > { %13656 = vst [vmem:[#allocation92_spill] sm:$0xff] %v10344_v63  ;;  %v10346_v52 = vpop.eup %6759  ;;  %v3587_v12 = vpop.f32.mrf.mxu1  ;;  %6791 = vpow2.f32 %v3816_v9  ;;  %v3828_v0 = vmul.f32 1.442695, %v3715_v11  ;;  %v10379_v28 = vadd.f32 %v3426_v35, %v10108_v32 }
 0x49c   : > { %13657 = vst [vmem:[#allocation72_spill] sm:$0xff] %v10346_v52  ;;  %v10351_v48 = vpop.eup %6761  ;;  %v3430_v2 = vpop.f32.mrf.mxu0  ;;  %6793 = vpow2.f32 %v3818_v42  ;;  %13665 = vst [vmem:[#allocation48_spill] sm:$0xff] %v10374_v7  ;;  %v3832_v9 = vmul.f32 1.442695, %v3717_v8  ;;  %v3718_v42 = vmin.f32 %v10371_v17, 20.0  ;;  %v3720_v33 = vmin.f32 %v10374_v7, 20.0 }
 0x49d   : > { %13659 = vst [vmem:[#allocation91_spill] sm:$0xff] %v10351_v48  ;;  %v10359_v57 = vpop.eup %6763  ;;  %v3591_v19 = vpop.f32.mrf.mxu1  ;;  %6795 = vpow2.f32 %v3822_v34  ;;  %v3719_v24 = vmin.f32 %v10379_v28, 20.0  ;;  %v10387_v43 = vadd.f32 %v3587_v12, %v10108_v32  ;;  %v10392_v35 = vadd.f32 %v3430_v2, %v10102_v36 }
 0x49e   : > { %13661 = vst [vmem:[#allocation34_spill] sm:$0xff] %v10359_v57  ;;  %v10362_v54 = vpop.eup %6765  ;;  %v3432_v46 = vpop.f32.mrf.mxu0  ;;  %6797 = vpow2.f32 %v3826_v25  ;;  %v3834_v11 = vmul.f32 1.442695, %v3718_v42  ;;  %v10395_v8 = vadd.f32 %v3591_v19, %v10102_v36  ;;  %v10407_v2 = vadd.f32 %v10296_v51, %v10112_v44 }
 0x49f   : > { %13662 = vst [vmem:[#allocation82_spill] sm:$0xff] %v10362_v54  ;;  %v10364_v29 = vpop.eup %6767  ;;  %v3593_v10 = vpop.f32.mrf.mxu1  ;;  %6799 = vpow2.f32 %v3828_v0  ;;  %v3838_v0 = vmul.f32 1.442695, %v3720_v33  ;;  %v3836_v18 = vmul.f32 1.442695, %v3719_v24  ;;  %v3721_v16 = vmin.f32 %v10387_v43, 20.0 }
 0x4a0   : > { %13663 = vst [vmem:[#allocation40_spill] sm:$0xff] %v10364_v29  ;;  %v10368_v56 = vpop.eup %6769  ;;  %6801 = vpow2.f32 %v3832_v9  ;;  %v3436_v25 = vpop.f32.mrf.mxu0  ;;  %v10401_v32 = vadd.f32 %v3432_v46, %v10102_v36  ;;  %13671 = vst [vmem:[#allocation79_spill] sm:$0xff] %v10407_v2  ;;  %v10411_v19 = vadd.f32 %v10313_v41, %v10112_v44  ;;  %v3722_v9 = vmin.f32 %v10392_v35, 20.0 }
 0x4a1   : > { %13664 = vst [vmem:[#allocation95_spill] sm:$0xff] %v10368_v56  ;;  %v10376_v20 = vpop.eup %6771  ;;  %v3597_v12 = vpop.f32.mrf.mxu1  ;;  %6803 = vpow2.f32 %v3834_v11  ;;  %v10418_v46 = vadd.f32 %v10321_v55, %v10106_v58  ;;  %v3724_v33 = vmin.f32 %v10395_v8, 20.0  ;;  %v10425_v44 = vadd.f32 %v3593_v10, %v10102_v36 }
 0x4a2   : > { %13666 = vst [vmem:[#allocation73_spill] sm:$0xff] %v10376_v20  ;;  %v10381_v22 = vpop.eup %6773  ;;  %13672 = vst [vmem:[#allocation94_spill] sm:$0xff] %v10411_v19  ;;  %6805 = vpow2.f32 %v3838_v0  ;;  %v3723_v24 = vmin.f32 %v10401_v32, 20.0  ;;  %v3842_v5 = vmul.f32 1.442695, %v3722_v9  ;;  %v10428_v41 = vadd.f32 %v3436_v25, %v10104_v6  ;;  %v3438_v11 = vpop.f32.mrf.mxu0 }
 0x4a3   : > { %13667 = vst [vmem:[#allocation76_spill] sm:$0xff] %v10381_v22  ;;  %v10389_v34 = vpop.eup %6775  ;;  %13674 = vst [vmem:[#allocation83_spill] sm:$0xff] %v10418_v46  ;;  %6807 = vpow2.f32 %v3836_v18  ;;  %v3840_v58 = vmul.f32 1.442695, %v3721_v16  ;;  %v3846_v55 = vmul.f32 1.442695, %v3724_v33  ;;  %v10433_v4 = vadd.f32 %v3597_v12, %v10104_v6  ;;  %v3599_v52 = vpop.f32.mrf.mxu1 }
 0x4a4   : > { %13668 = vst [vmem:[#allocation77_spill] sm:$0xff] %v10389_v34  ;;  %v10397_v40 = vpop.eup %6777  ;;  %v3844_v0 = vmul.f32 1.442695, %v3723_v24  ;;  %v3711_v18 = vmin.f32 %v10407_v2, 20.0  ;;  %6809 = vpow2.f32 %v3842_v5  ;;  %v3725_v36 = vmin.f32 %v10425_v44, 20.0 }
 0x4a5   : > { %13669 = vst [vmem:[#allocation96_spill] sm:$0xff] %v10397_v40  ;;  %v10403_v1 = vpop.eup %6779  ;;  %v3726_v10 = vmin.f32 %v10428_v41, 20.0  ;;  %v3713_v9 = vmin.f32 %v10411_v19, 20.0  ;;  %6811 = vpow2.f32 %v3846_v55  ;;  %v3728_v16 = vmin.f32 %v10433_v4, 20.0 }
 0x4a6   : > { %13670 = vst [vmem:[#allocation97_spill] sm:$0xff] %v10403_v1  ;;  %v10414_v42 = vpop.eup %6781  ;;  %v10445_v12 = vadd.f32 %v3438_v11, %v10104_v6  ;;  %6813 = vpow2.f32 %v3844_v0  ;;  %v3848_v24 = vmul.f32 1.442695, %v3725_v36  ;;  %v10450_v5 = vadd.f32 %v3599_v52, %v10104_v6 }
 0x4a7   : > { %13673 = vst [vmem:[#allocation80_spill] sm:$0xff] %v10414_v42  ;;  %v10422_v51 = vpop.eup %6783  ;;  %v3850_v63 = vmul.f32 1.442695, %v3726_v10  ;;  %v3716_v57 = vmin.f32 %v10418_v46, 20.0  ;;  %6815 = vpow2.f32 %v3840_v58  ;;  %v3854_v48 = vmul.f32 1.442695, %v3728_v16 }
 0x4a8   : > { %13675 = vst [vmem:[#allocation93_spill] sm:$0xff] %v10422_v51  ;;  %v10430_v21 = vpop.eup %6785  ;;  %v3727_v55 = vmin.f32 %v10445_v12, 20.0  ;;  %v10460_v11 = vadd.f32 %v10254_v59, %v10116_v61  ;;  %6817 = vpow2.f32 %v3848_v24  ;;  %v3729_v0 = vmin.f32 %v10450_v5, 20.0 }
 0x4a9   : > { %13676 = vst [vmem:[#allocation98_spill] sm:$0xff] %v10430_v21  ;;  %v10435_v53 = vpop.eup %6787  ;;  %v10467_v52 = vadd.f32 %v10265_v14, %v10116_v61  ;;  %v3820_v6 = vmul.f32 1.442695, %v3711_v18  ;;  %6819 = vpow2.f32 %v3850_v63  ;;  %v3824_v16 = vmul.f32 1.442695, %v3713_v9 }
 0x4aa   : > { %13677 = vst [vmem:[#allocation50_spill] sm:$0xff] %v10435_v53  ;;  %v10440_v25 = vpop.eup %6789  ;;  %13682 = vst [vmem:[#allocation54_spill] sm:$0xff] %v10460_v11  ;;  %v3852_v58 = vmul.f32 1.442695, %v3727_v55  ;;  %6821 = vpow2.f32 %v3854_v48  ;;  %v3856_v38 = vmul.f32 1.442695, %v3729_v0 }
 0x4ab   : > { %13678 = vst [vmem:[#allocation99_spill] sm:$0xff] %v10440_v25  ;;  %v10447_v33 = vpop.eup %6791  ;;  %13683 = vst [vmem:[#allocation88_spill] sm:$0xff] %v10467_v52  ;;  %v3830_v59 = vmul.f32 1.442695, %v3716_v57  ;;  %v3704_v61 = vmin.f32 %v10460_v11, 20.0  ;;  %v3705_v14 = vmin.f32 %v10467_v52, 20.0 }
 0x4ac   : > { %13679 = vst [vmem:[#allocation85_spill] sm:$0xff] %v10447_v33  ;;  %v10452_v60 = vpop.eup %6793  ;;  %6823 = vpow2.f32 %v3852_v58  ;;  %vm3655_vm2 = vcmp.gt.f32.partialorder %v10379_v28, 20.0  ;;  %vm3658_vm5 = vcmp.gt.f32.partialorder %v10392_v35, 20.0  ;;  %vm3659_vm6 = vcmp.gt.f32.partialorder %v10401_v32, 20.0 }
 0x4ad   : > { %13680 = vst [vmem:[#allocation104_spill] sm:$0xff] %v10452_v60  ;;  %v10456_v37 = vpop.eup %6795  ;;  %6825 = vpow2.f32 %v3856_v38  ;;  %v10488_v0 = vmul.f32 1.442695, %v3704_v61  ;;  %vm3663_vm8 = vcmp.gt.f32.partialorder %v10445_v12, 20.0  ;;  %vm3665_vm13 = vcmp.gt.f32.partialorder %v10450_v5, 20.0 }
 0x4ae   : > { %13681 = vst [vmem:[#allocation58_spill] sm:$0xff] %v10456_v37  ;;  %v10463_v36 = vpop.eup %6797  ;;  %6827 = vpow2.f32 %v3820_v6  ;;  %v10490_v6 = vmul.f32 1.442695, %v3705_v14  ;;  %vm3661_vm15 = vcmp.gt.f32.partialorder %v10425_v44, 20.0 }
 0x4af   : > { %v10469_v10 = vpop.eup %6799  ;;  %6829 = vpow2.f32 %v3824_v16  ;;  %13684 = vst [vmem:[#allocation70_spill] sm:$0xff] %v10488_v0 }
 0x4b0   : > { %v10471_v29 = vpop.eup %6801  ;;  %v4299_v24 = vadd.f32 1.0, %v10469_v10  ;;  %v4302_v48 = vmul.f32 -0.5, %v10469_v10  ;;  %6831 = vpow2.f32 %v3830_v59  ;;  %13685 = vst [vmem:[#allocation86_spill] sm:$0xff] %v10490_v6 }
 0x4b1   : > { %v10474_v23 = vpop.eup %6803  ;;  %v4317_v63 = vadd.f32 1.0, %v10471_v29 }
 0x4b2   : > { %v10479_v18 = vpop.eup %6805  ;;  %v4326_v38 = vadd.f32 1.0, %v10474_v23  ;;  %6833 = vlog2.f32 %v4299_v24  ;;  %v4303_v54 = vadd.f32 1.0, %v4302_v48  ;;  %v10500_v24 = vmul.f32 -0.5, %v10471_v29 }
 0x4b3   : > { %v10482_v9 = vpop.eup %6807  ;;  %6835 = vlog2.f32 %v4317_v63  ;;  %v10508_v48 = vadd.f32 1.0, %v10463_v36  ;;  %v10514_v26 = vadd.f32 1.0, %v10479_v18  ;;  %v10517_v61 = vmul.f32 -0.5, %v10479_v18 }
 0x4b4   : > { %v4335_v57 = vadd.f32 1.0, %v10482_v9  ;;  %v10486_v55 = vpop.eup %6809  ;;  %v10522_v34 = vmul.f32 %v10469_v10, %v4303_v54 }
 0x4b5   : > { %v10492_v58 = vpop.eup %6811  ;;  %v4362_v16 = vadd.f32 1.0, %v10486_v55  ;;  %v4365_v1 = vmul.f32 -0.5, %v10486_v55  ;;  %v4368_v56 = vand.u32 2147483647, %v10486_v55 }
 0x4b6   : > { %6837 = vlog2.f32 %v4335_v57  ;;  %v10496_v49 = vpop.eup %6813  ;;  %v4380_v20 = vadd.f32 1.0, %v10492_v58  ;;  %v4329_v57 = vmul.f32 -0.5, %v10474_v23 }
 0x4b7   : > { %6839 = vlog2.f32 %v4326_v38  ;;  %v10503_v14 = vpop.eup %6815  ;;  %v4371_v63 = vadd.f32 1.0, %v10496_v49  ;;  %v4377_v33 = vand.u32 2147483647, %v10496_v49  ;;  %v4366_v50 = vadd.f32 1.0, %v4365_v1 }
 0x4b8   : > { %6841 = vlog2.f32 %v4362_v16  ;;  %v10510_v59 = vpop.eup %6817  ;;  %v4338_v16 = vmul.f32 -0.5, %v10482_v9  ;;  %v4353_v15 = vadd.f32 1.0, %v10503_v14  ;;  %v10529_v22 = vmul.f32 -0.5, %v10503_v14 }
 0x4b9   : > { %6843 = vlog2.f32 %v4380_v20  ;;  %v6820_v11 = vpop.eup %6819  ;;  %v10534_v40 = vadd.f32 1.0, %v4329_v57  ;;  %v4389_v45 = vadd.f32 1.0, %v10510_v59  ;;  %v4383_v57 = vmul.f32 -0.5, %v10492_v58 }
 0x4ba   : > { %6845 = vlog2.f32 %v4371_v63  ;;  %v10524_v52 = vpop.eup %6821  ;;  %v4398_v20 = vadd.f32 1.0, %v6820_v11  ;;  %v4374_v63 = vmul.f32 -0.5, %v10496_v49  ;;  %v4401_v42 = vmul.f32 -0.5, %v6820_v11 }
 0x4bb   : > { %v6824_v47 = vpop.eup %6823  ;;  %v4416_v38 = vadd.f32 1.0, %v10524_v52  ;;  %v4404_v39 = vand.u32 2147483647, %v6820_v11  ;;  %v4419_v46 = vmul.f32 -0.5, %v10524_v52  ;;  %vm10554_vm11 = vcmp.lt.f32.partialorder %v4368_v56, 0.0004427343 }
 0x4bc   : > { %v6826_v54 = vpop.eup %6825  ;;  %v4407_v13 = vadd.f32 1.0, %v6824_v47  ;;  %6847 = vlog2.f32 %v4398_v20  ;;  %v4410_v30 = vmul.f32 -0.5, %v6824_v47  ;;  %v4375_v21 = vadd.f32 1.0, %v4374_v63 }
 0x4bd   : > { %v10537_v62 = vpop.eup %6827  ;;  %v4425_v3 = vadd.f32 1.0, %v6826_v54  ;;  %v4428_v51 = vmul.f32 -0.5, %v6826_v54  ;;  %v4402_v2 = vadd.f32 1.0, %v4401_v42  ;;  %v4413_v37 = vand.u32 2147483647, %v6824_v47 }
 0x4be   : > { %13686 = vst [vmem:[#allocation78_spill] sm:$0xff] %v10537_v62  ;;  %v10540_v53 = vpop.eup %6829  ;;  %6849 = vlog2.f32 %v4407_v13  ;;  %v4392_v13 = vmul.f32 -0.5, %v10510_v59  ;;  %v4411_v0 = vadd.f32 1.0, %v4410_v30  ;;  %v4339_v42 = vadd.f32 1.0, %v4338_v16 }
 0x4bf   : > { %13687 = vst [vmem:[#allocation101_spill] sm:$0xff] %v10540_v53  ;;  %v10545_v20 = vpop.eup %6831  ;;  %6851 = vlog2.f32 %v4425_v3  ;;  %v4429_v19 = vadd.f32 1.0, %v4428_v51  ;;  %v4431_v3 = vand.u32 2147483647, %v6826_v54  ;;  %v4422_v7 = vand.u32 2147483647, %v10524_v52 }
 0x4c0   : > { %v10548_v25 = vpop.eup %6833  ;;  %6853 = vlog2.f32 %v4416_v38  ;;  %v10562_v30 = vmul.f32 %v10496_v49, %v4375_v21  ;;  %vm10564_vm3 = vcmp.lt.f32.partialorder %v4377_v33, 0.0004427343  ;;  %v4384_v1 = vadd.f32 1.0, %v4383_v57 }
 0x4c1   : > { %v10552_v27 = vpop.eup %6835  ;;  %6855 = vlog2.f32 %v4389_v45  ;;  %v10568_v51 = vmul.f32 %v6820_v11, %v4402_v2  ;;  %vm10570_vm4 = vcmp.lt.f32.partialorder %v4404_v39, 0.0004427343  ;;  %v4420_v16 = vadd.f32 1.0, %v4419_v46 }
 0x4c2   : > { %6857 = vlog2.f32 %v4353_v15  ;;  %v4412_v21 = vmul.f32 %v6824_v47, %v4411_v0  ;;  %vm10575_vm7 = vcmp.lt.f32.partialorder %v4413_v37, 0.0004427343  ;;  %v10579_v33 = vmul.f32 %v6826_v54, %v4429_v19 }
 0x4c3   : > { %v6838_v60 = vpop.eup %6837  ;;  %v4393_v57 = vadd.f32 1.0, %v4392_v13  ;;  %vm10582_vm9 = vcmp.lt.f32.partialorder %v4431_v3, 0.0004427343  ;;  %v4367_v15 = vmul.f32 %v10486_v55, %v4366_v50  ;;  %v4340_v37 = vmul.f32 %v10482_v9, %v4339_v42 }
 0x4c4   : > { %v6840_v38 = vpop.eup %6839  ;;  %v4337_v6 = vmul.f32 0.6931472, %v6838_v60  ;;  %v4395_v60 = vand.u32 2147483647, %v10510_v59  ;;  %v13698_v47 = vand.u32 2147483647, %v10482_v9  ;;  %6859 = vlog2.f32 %v10514_v26 }
 0x4c5   : > { %v6842_v56 = vpop.eup %6841  ;;  %vm10597_vm14 = vcmp.lt.f32.partialorder %v4422_v7, 0.0004427343  ;;  %v4357_v54 = vadd.f32 1.0, %v10529_v22  ;;  %v10602_v50 = vmul.f32 0.6931472, %v6840_v38  ;;  %v4421_v9 = vmul.f32 %v10524_v52, %v4420_v16 }
 0x4c6   : > { %v6844_v62 = vpop.eup %6843  ;;  %v4364_v2 = vmul.f32 0.6931472, %v6842_v56  ;;  %vm10591_vm10 = vcmp.lt.f32.partialorder %v13698_v47, 0.0004427343  ;;  %v4385_v13 = vmul.f32 %v10492_v58, %v4384_v1  ;;  %v13703_v3 = vand.u32 2147483647, %v10469_v10 }
 0x4c7   : > { %v6846_v11 = vpop.eup %6845  ;;  %v4382_v55 = vmul.f32 0.6931472, %v6844_v62  ;;  %v4343_v7 = vsel %vm10591_vm10, %v4340_v37, %v4337_v6  ;;  %v4394_v62 = vmul.f32 %v10510_v59, %v4393_v57  ;;  %v13706_v52 = vand.u32 2147483647, %v10492_v58  ;;  %v13729_v56 = vld [vmem:[#allocation75_spill] sm:$0xff] }
 0x4c8   : > { %v4373_v0 = vmul.f32 0.6931472, %v6846_v11  ;;  %vm10612_vm0 = vcmp.lt.f32.partialorder %v13703_v3, 0.0004427343  ;;  %v4370_v26 = vsel %vm10554_vm11, %v4367_v15, %v4364_v2  ;;  %v4331_v6 = vmul.f32 %v10474_v23, %v10534_v40 }
 0x4c9   : > { %v6848_v22 = vpop.eup %6847  ;;  %vm10624_vm10 = vcmp.lt.f32.partialorder %v13706_v52, 0.0004427343  ;;  %vm10633_vm1 = vcmp.lt.f32.partialorder %v4395_v60, 0.0004427343  ;;  %v13711_v59 = vand.u32 2147483647, %v10474_v23  ;;  %v4487_v40 = vsel %vm3655_vm2, %v10379_v28, %v4343_v7 }
 0x4ca   : > { %v4400_v38 = vmul.f32 0.6931472, %v6848_v22  ;;  %v4379_v1 = vsel %vm10564_vm3, %v10562_v30, %v4373_v0  ;;  %v4358_v16 = vmul.f32 %v10503_v14, %v4357_v54  ;;  %v13714_v45 = vand.u32 2147483647, %v10503_v14  ;;  %v13725_v52 = vld [vmem:[#allocation86_spill] sm:$0xff] }
 0x4cb   : > { %vm10639_vm11 = vcmp.lt.f32.partialorder %v13711_v59, 0.0004427343  ;;  %v6850_v63 = vpop.eup %6849  ;;  %6861 = vlog2.f32 %v10508_v48  ;;  %v4490_v28 = vsel %vm3658_vm5, %v10392_v35, %v4370_v26  ;;  %v4388_v14 = vsel %vm10624_vm10, %v4385_v13, %v4382_v55  ;;  %v13730_v59 = vld [vmem:[#allocation104_spill] sm:$0xff] }
 0x4cc   : > { %vm10649_vm3 = vcmp.lt.f32.partialorder %v13714_v45, 0.0004427343  ;;  %v4334_v23 = vsel %vm10639_vm11, %v4331_v6, %v10602_v50  ;;  %v6852_v57 = vpop.eup %6851  ;;  %v4409_v2 = vmul.f32 0.6931472, %v6850_v63  ;;  %vm3657_vm2 = vcmp.gt.f32.partialorder %v10387_v43, 20.0  ;;  %v13727_v6 = vld [vmem:[#allocation101_spill] sm:$0xff] }
 0x4cd   : > { %v4348_v11 = vadd.f32 1.0, %v10517_v61  ;;  %v6854_v60 = vpop.eup %6853  ;;  %v4427_v15 = vmul.f32 0.6931472, %v6852_v57  ;;  %v4406_v37 = vsel %vm10570_vm4, %v10568_v51, %v4400_v38  ;;  %v4491_v48 = vsel %vm3659_vm6, %v10401_v32, %v4379_v1  ;;  %v13728_v1 = vld [vmem:[#allocation48_spill] sm:$0xff] }
 0x4ce   : > { %v4301_v47 = vmul.f32 0.6931472, %v10548_v25  ;;  %v6856_v35 = vpop.eup %6855  ;;  %v4415_v19 = vsel %vm10575_vm7, %v4412_v21, %v4409_v2  ;;  %v4418_v0 = vmul.f32 0.6931472, %v6854_v60  ;;  %v4319_v54 = vmul.f32 0.6931472, %v10552_v27 }
 0x4cf   : > { %v4308_v61 = vadd.f32 1.0, %v10545_v20  ;;  %v4495_v53 = vsel %vm3663_vm8, %v10445_v12, %v4415_v19  ;;  %v4433_v51 = vsel %vm10582_vm9, %v10579_v33, %v4427_v15  ;;  %v4391_v32 = vmul.f32 0.6931472, %v6856_v35  ;;  %v6858_v50 = vpop.eup %6857  ;;  %v13731_v2 = vld [vmem:[#allocation58_spill] sm:$0xff]  ;;  %v13736_v19 = vld [vmem:[#allocation99_spill] sm:$0xff] }
 0x4d0   : > { %v4321_v25 = vadd.f32 1.0, %v10500_v24  ;;  %4610 = vmatprep.subr.mxu0 %v4495_v53  ;;  %v4497_v21 = vsel %vm3665_vm13, %v10450_v5, %v4433_v51  ;;  %vm13717_vm5 = vcmp.gt.f32.partialorder %v10428_v41, 20.0  ;;  %v4424_v49 = vsel %vm10597_vm14, %v4421_v9, %v4418_v0 }
 0x4d1   : > { %v4494_v27 = vsel %vm13717_vm5, %v10428_v41, %v4406_v37  ;;  %v4293_v12 = vmul.f32 -0.5, %v10463_v36  ;;  %4771 = vmatprep.subr.mxu1 %v4497_v21  ;;  %vm13718_vm4 = vcmp.gt.f32.partialorder %v10433_v4, 20.0  ;;  %v4397_v33 = vsel %vm10633_vm1, %v4394_v62, %v4391_v32  ;;  %v13734_v37 = vld [vmem:[#allocation83_spill] sm:$0xff]  ;;  %v13739_v32 = vld [vmem:[#allocation85_spill] sm:$0xff] }
 0x4d2   : > { %4611 = vmatpush1.msra.mxu0 %v4494_v27  ;;  %v4496_v24 = vsel %vm13718_vm4, %v10433_v4, %v4424_v49  ;;  %v4307_v5 = vsel %vm10612_vm0, %v10522_v34, %v4301_v47  ;;  %6863 = vlog2.f32 %v4308_v61  ;;  %v4493_v41 = vsel %vm3661_vm15, %v10425_v44, %v4397_v33  ;;  %v13724_v44 = vld [vmem:[#allocation78_spill] sm:$0xff] }
 0x4d3   : > { %4772 = vmatpush1.msra.mxu1 %v4496_v24  ;;  %4612 = vmatprep.subr.mxu0 %v4491_v48  ;;  %vm13719_vm6 = vcmp.gt.f32.partialorder %v10395_v8, 20.0  ;;  %v4355_v46 = vmul.f32 0.6931472, %v6858_v50  ;;  %vm13720_vm7 = vcmp.gt.f32.partialorder %v10371_v17, 20.0  ;;  %v4349_v34 = vmul.f32 %v10479_v18, %v4348_v11  ;;  %v13733_v11 = vld [vmem:[#allocation68_spill] sm:$0xff]  ;;  %v13735_v48 = vld [vmem:[#allocation79_spill] sm:$0xff] }
 0x4d4   : > { %v4492_v39 = vsel %vm13719_vm6, %v10395_v8, %v4388_v14  ;;  %v4486_v4 = vsel %vm13720_vm7, %v10371_v17, %v4334_v23  ;;  %4773 = vmatprep.subr.mxu1 %v4493_v41  ;;  %4613 = vmatpush1.msra.mxu0 %v4490_v28  ;;  %v4322_v9 = vmul.f32 %v10471_v29, %v4321_v25  ;;  %v13721_v55 = vand.u32 2147483647, %v10471_v29  ;;  %v6860_v8 = vpop.eup %6859  ;;  %v13732_v14 = vld [vmem:[#allocation70_spill] sm:$0xff] }
 0x4d5   : > { %v4263_v7 = vadd.f32 1.0, %v13724_v44  ;;  %4774 = vmatpush1.msra.mxu1 %v4492_v39  ;;  %4614 = vmatprep.subr.mxu0 %v4487_v40  ;;  %v4361_v17 = vsel %vm10649_vm3, %v4358_v16, %v4355_v46  ;;  %v4483_v3 = vsel %vm3651_vm12, %v10354_v31, %v4307_v5  ;;  %v4294_v42 = vadd.f32 1.0, %v4293_v12  ;;  %v13740_v24 = vld [vmem:[#allocation98_spill] sm:$0xff] }
 0x4d6   : > { %vm10713_vm8 = vcmp.lt.f32.partialorder %v13721_v55, 0.0004427343  ;;  %v4296_v22 = vand.u32 2147483647, %v10463_v36  ;;  %v4489_v29 = vsel %vm3657_vm2, %v10387_v43, %v4361_v17  ;;  %4615 = vmatpush1.msra.mxu0 %v4486_v4  ;;  %v4346_v62 = vmul.f32 0.6931472, %v6860_v8 }
 0x4d7   : > { %v4325_v26 = vsel %vm10713_vm8, %v4322_v9, %v4319_v54  ;;  %6865 = vlog2.f32 %v4263_v7  ;;  %4775 = vmatprep.subr.mxu1 %v4489_v29  ;;  %v13726_v10 = vand.u32 2147483647, %v10479_v18  ;;  %4616 = vmatprep.subr.mxu0 %v4483_v3  ;;  %v4311_v31 = vmul.f32 -0.5, %v10545_v20  ;;  %v13744_v39 = vld [vmem:[#allocation94_spill] sm:$0xff] }
 0x4d8   : > { %6867 = vpow2.f32 %v13725_v52  ;;  %v4281_v38 = vadd.f32 1.0, %v13727_v6  ;;  %vm3656_vm12 = vcmp.gt.f32.partialorder %v13728_v1, 20.0  ;;  %vm3653_vm13 = vcmp.gt.f32.partialorder %v13729_v56, 20.0  ;;  %v6862_v63 = vpop.eup %6861  ;;  %v13747_v3 = vld [vmem:[#allocation50_spill] sm:$0xff] }
 0x4d9   : > { %vm4351_vm9 = vcmp.lt.f32.partialorder %v13726_v10, 0.0004427343  ;;  %v4254_v58 = vadd.f32 1.0, %v13730_v59  ;;  %v4485_v16 = vsel %vm3653_vm13, %v13729_v56, %v4325_v26  ;;  %v4292_v18 = vmul.f32 0.6931472, %v6862_v63  ;;  %v13751_v26 = vld [vmem:[#allocation93_spill] sm:$0xff] }
 0x4da   : > { %v4352_v43 = vsel %vm4351_vm9, %v4349_v34, %v4346_v62  ;;  %6869 = vlog2.f32 %v4281_v38  ;;  %v4295_v45 = vmul.f32 %v10463_v36, %v4294_v42  ;;  %vm4297_vm14 = vcmp.lt.f32.partialorder %v4296_v22, 0.0004427343  ;;  %v13748_v22 = vld [vmem:[#allocation90_spill] sm:$0xff] }
 0x4db   : > { %v4488_v40 = vsel %vm3656_vm12, %v13728_v1, %v4352_v43  ;;  %6871 = vlog2.f32 %v4254_v58  ;;  %v4312_v30 = vadd.f32 1.0, %v4311_v31  ;;  %v4314_v23 = vand.u32 2147483647, %v10545_v20 }
 0x4dc   : > { %4776 = vmatpush1.msra.mxu1 %v4488_v40  ;;  %v4266_v57 = vmul.f32 -0.5, %v13724_v44  ;;  %v4272_v28 = vadd.f32 1.0, %v13731_v2  ;;  %6873 = vpow2.f32 %v13732_v14  ;;  %vm3650_vm15 = vcmp.gt.f32.partialorder %v13733_v11, 20.0 }
 0x4dd   : > { %4777 = vmatprep.subr.mxu1 %v4485_v16  ;;  %v4298_v60 = vsel %vm4297_vm14, %v4295_v45, %v4292_v18  ;;  %v4284_v15 = vmul.f32 -0.5, %v13727_v6  ;;  %vm3652_vm0 = vcmp.gt.f32.partialorder %v13734_v37, 20.0  ;;  %vm3647_vm1 = vcmp.gt.f32.partialorder %v13735_v48, 20.0  ;;  %v13754_v16 = vld [vmem:[#allocation89_spill] sm:$0xff] }
 0x4de   : > { %v4482_v36 = vsel %vm3650_vm15, %v13733_v11, %v4298_v60  ;;  %6875 = vlog2.f32 %v4272_v28  ;;  %v4269_v47 = vand.u32 2147483647, %v13724_v44  ;;  %v4257_v35 = vmul.f32 -0.5, %v13730_v59 }
 0x4df   : > { %4617 = vmatpush1.msra.mxu0 %v4482_v36  ;;  %v4227_v0 = vadd.f32 1.0, %v13736_v19  ;;  %v6864_v54 = vpop.eup %6863  ;;  %v4313_v61 = vmul.f32 %v10545_v20, %v4312_v30  ;;  %vm10753_vm10 = vcmp.lt.f32.partialorder %v4314_v23, 0.0004427343  ;;  %v4267_v51 = vadd.f32 1.0, %v4266_v57  ;;  %v13741_v20 = vld [vmem:[#allocation81_spill] sm:$0xff]  ;;  %v13755_v57 = vld [vmem:[#allocation32_spill] sm:$0xff] }
 0x4e0   : > { %v4245_v25 = vadd.f32 1.0, %v13739_v32  ;;  %v4310_v21 = vmul.f32 0.6931472, %v6864_v54  ;;  %v4285_v27 = vadd.f32 1.0, %v4284_v15  ;;  %v4287_v49 = vand.u32 2147483647, %v13727_v6 }
 0x4e1   : > { %6877 = vlog2.f32 %v4227_v0  ;;  %v4260_v12 = vand.u32 2147483647, %v13730_v59  ;;  %v4275_v50 = vmul.f32 -0.5, %v13731_v2  ;;  %v4218_v33 = vadd.f32 1.0, %v13740_v24  ;;  %v13756_v36 = vld [vmem:[#allocation60_spill] sm:$0xff] }
 0x4e2   : > { %6879 = vlog2.f32 %v4245_v25  ;;  %vm3646_vm11 = vcmp.gt.f32.partialorder %v13741_v20, 20.0  ;;  %v4316_v5 = vsel %vm10753_vm10, %v4313_v61, %v4310_v21  ;;  %vm10765_vm3 = vcmp.lt.f32.partialorder %v4269_v47, 0.0004427343  ;;  %v13759_v61 = vld [vmem:[#allocation80_spill] sm:$0xff] }
 0x4e3   : > { %vm3649_vm2 = vcmp.gt.f32.partialorder %v13744_v39, 20.0  ;;  %v4258_v46 = vadd.f32 1.0, %v4257_v35  ;;  %v4484_v34 = vsel %vm3652_vm0, %v13734_v37, %v4316_v5  ;;  %v4268_v9 = vmul.f32 %v13724_v44, %v4267_v51 }
 0x4e4   : > { %v6866_v4 = vpop.eup %6865  ;;  %v4278_v55 = vand.u32 2147483647, %v13731_v2  ;;  %6881 = vlog2.f32 %v4218_v33  ;;  %4778 = vmatpush1.msra.mxu1 %v4484_v34  ;;  %vm10777_vm5 = vcmp.lt.f32.partialorder %v4287_v49, 0.0004427343  ;;  %v4230_v17 = vmul.f32 -0.5, %v13736_v19 }
 0x4e5   : > { %v10775_v13 = vpop.eup %6867  ;;  %v4265_v7 = vmul.f32 0.6931472, %v6866_v4  ;;  %v4236_v42 = vadd.f32 1.0, %v13747_v3  ;;  %vm3648_vm4 = vcmp.gt.f32.partialorder %v13748_v22, 20.0  ;;  %v4286_v29 = vmul.f32 %v13727_v6, %v4285_v27 }
 0x4e6   : > { %vm10785_vm6 = vcmp.lt.f32.partialorder %v4260_v12, 0.0004427343  ;;  %v4276_v62 = vadd.f32 1.0, %v4275_v50  ;;  %v4191_v52 = vadd.f32 1.0, %v13751_v26  ;;  %v4259_v38 = vmul.f32 %v13730_v59, %v4258_v46 }
 0x4e7   : > { %v6870_v10 = vpop.eup %6869  ;;  %v4271_v31 = vsel %vm10765_vm3, %v4268_v9, %v4265_v7  ;;  %v4248_v1 = vmul.f32 -0.5, %v13739_v32  ;;  %6883 = vlog2.f32 %v4236_v42  ;;  %vm10797_vm7 = vcmp.lt.f32.partialorder %v4278_v55, 0.0004427343 }
 0x4e8   : > { %v6872_v43 = vpop.eup %6871  ;;  %v4479_v6 = vsel %vm3647_vm1, %v13735_v48, %v4271_v31  ;;  %v4283_v56 = vmul.f32 0.6931472, %v6870_v10  ;;  %v4233_v63 = vand.u32 2147483647, %v13736_v19  ;;  %vm3643_vm8 = vcmp.gt.f32.partialorder %v13754_v16, 20.0 }
 0x4e9   : > { %4618 = vmatprep.subr.mxu0 %v4479_v6  ;;  %v4256_v40 = vmul.f32 0.6931472, %v6872_v43  ;;  %v4231_v59 = vadd.f32 1.0, %v4230_v17  ;;  %v4221_v18 = vmul.f32 -0.5, %v13740_v24  ;;  %6885 = vlog2.f32 %v4191_v52  ;;  %v10804_v45 = vpop.eup %6873  ;;  %v13762_v17 = vld [vmem:[#allocation64_spill] sm:$0xff]  ;;  %v13764_v43 = vld [vmem:[#allocation97_spill] sm:$0xff] }
 0x4ea   : > { %v4289_v30 = vsel %vm10777_vm5, %v4286_v29, %v4283_v56  ;;  %v4277_v23 = vmul.f32 %v13731_v2, %v4276_v62  ;;  %vm3645_vm9 = vcmp.gt.f32.partialorder %v13755_v57, 20.0  ;;  %v4209_v28 = vadd.f32 1.0, %v10775_v13  ;;  %v13763_v52 = vld [vmem:[#allocation96_spill] sm:$0xff] }
 0x4eb   : > { %v6876_v14 = vpop.eup %6875  ;;  %v4481_v11 = vsel %vm3649_vm2, %v13744_v39, %v4289_v30  ;;  %v4262_v60 = vsel %vm10785_vm6, %v4259_v38, %v4256_v40  ;;  %v4249_v15 = vadd.f32 1.0, %v4248_v1  ;;  %v4251_v37 = vand.u32 2147483647, %v13739_v32 }
 0x4ec   : > { %vm3642_vm12 = vcmp.gt.f32.partialorder %v13756_v36, 20.0  ;;  %4779 = vmatprep.subr.mxu1 %v4481_v11  ;;  %v4478_v2 = vsel %vm3646_vm11, %v13741_v20, %v4262_v60  ;;  %v4274_v48 = vmul.f32 0.6931472, %v6876_v14  ;;  %v4239_v47 = vmul.f32 -0.5, %v13747_v3 }
 0x4ed   : > { %6887 = vlog2.f32 %v4209_v28  ;;  %4619 = vmatpush1.msra.mxu0 %v4478_v2  ;;  %v4232_v35 = vmul.f32 %v13736_v19, %v4231_v59  ;;  %vm10823_vm13 = vcmp.lt.f32.partialorder %v4233_v63, 0.0004427343  ;;  %v4222_v54 = vadd.f32 1.0, %v4221_v18  ;;  %v13768_v2 = vld [vmem:[#allocation88_spill] sm:$0xff] }
 0x4ee   : > { %v4182_v53 = vadd.f32 1.0, %v13759_v61  ;;  %v6878_v51 = vpop.eup %6877  ;;  %v4280_v25 = vsel %vm10797_vm7, %v4277_v23, %v4274_v48  ;;  %v4224_v21 = vand.u32 2147483647, %v13740_v24  ;;  %v4194_v27 = vmul.f32 -0.5, %v13751_v26  ;;  %v13766_v23 = vld [vmem:[#allocation76_spill] sm:$0xff] }
 0x4ef   : > { %v4200_v49 = vadd.f32 1.0, %v10804_v45  ;;  %v6880_v12 = vpop.eup %6879  ;;  %v4480_v19 = vsel %vm3648_vm4, %v13748_v22, %v4280_v25  ;;  %v4229_v50 = vmul.f32 0.6931472, %v6878_v51  ;;  %vm10836_vm14 = vcmp.lt.f32.partialorder %v4251_v37, 0.0004427343  ;;  %v13770_v51 = vld [vmem:[#allocation95_spill] sm:$0xff] }
 0x4f0   : > { %6889 = vlog2.f32 %v4182_v53  ;;  %4780 = vmatpush1.msra.mxu1 %v4480_v19  ;;  %v4247_v20 = vmul.f32 0.6931472, %v6880_v12  ;;  %v4250_v5 = vmul.f32 %v13739_v32, %v4249_v15  ;;  %v4240_v41 = vadd.f32 1.0, %v4239_v47  ;;  %v13769_v47 = vld [vmem:[#allocation77_spill] sm:$0xff]  ;;  %v13771_v19 = vld [vmem:[#allocation54_spill] sm:$0xff] }
 0x4f1   : > { %v4242_v39 = vand.u32 2147483647, %v13747_v3  ;;  %v6882_v46 = vpop.eup %6881  ;;  %v4235_v4 = vsel %vm10823_vm13, %v4232_v35, %v4229_v50  ;;  %v4223_v34 = vmul.f32 %v13740_v24, %v4222_v54  ;;  %v4212_v9 = vmul.f32 -0.5, %v10775_v13 }
 0x4f2   : > { %6891 = vlog2.f32 %v4200_v49  ;;  %v4475_v55 = vsel %vm3643_vm8, %v13754_v16, %v4235_v4  ;;  %v4253_v7 = vsel %vm10836_vm14, %v4250_v5, %v4247_v20  ;;  %v4220_v32 = vmul.f32 0.6931472, %v6882_v46  ;;  %v13773_v46 = vld [vmem:[#allocation73_spill] sm:$0xff] }
 0x4f3   : > { %v4195_v8 = vadd.f32 1.0, %v4194_v27  ;;  %vm3644_vm15 = vcmp.gt.f32.partialorder %v13762_v17, 20.0  ;;  %4620 = vmatprep.subr.mxu0 %v4475_v55  ;;  %v4477_v42 = vsel %vm3645_vm9, %v13755_v57, %v4253_v7  ;;  %vm4225_vm0 = vcmp.lt.f32.partialorder %v4224_v21, 0.0004427343  ;;  %v13774_v7 = vld [vmem:[#allocation42_spill] sm:$0xff] }
 0x4f4   : > { %v4197_v24 = vand.u32 2147483647, %v13751_v26  ;;  %v6884_v22 = vpop.eup %6883  ;;  %4781 = vmatprep.subr.mxu1 %v4477_v42  ;;  %v4226_v29 = vsel %vm4225_vm0, %v4223_v34, %v4220_v32  ;;  %v4241_v44 = vmul.f32 %v13747_v3, %v4240_v41  ;;  %v4185_v62 = vmul.f32 -0.5, %v13759_v61  ;;  %v13765_v3 = vld [vmem:[#allocation61_spill] sm:$0xff] }
 0x4f5   : > { %v4155_v10 = vadd.f32 1.0, %v13763_v52  ;;  %v4474_v31 = vsel %vm3642_vm12, %v13756_v36, %v4226_v29  ;;  %v4238_v38 = vmul.f32 0.6931472, %v6884_v22  ;;  %v4213_v1 = vadd.f32 1.0, %v4212_v9  ;;  %v13776_v29 = vld [vmem:[#allocation51_spill] sm:$0xff] }
 0x4f6   : > { %v4173_v6 = vadd.f32 1.0, %v13764_v43  ;;  %v6886_v56 = vpop.eup %6885  ;;  %4621 = vmatpush1.msra.mxu0 %v4474_v31  ;;  %vm4243_vm1 = vcmp.lt.f32.partialorder %v4242_v39, 0.0004427343  ;;  %v4196_v58 = vmul.f32 %v13751_v26, %v4195_v8  ;;  %v4203_v63 = vmul.f32 -0.5, %v10804_v45  ;;  %v13767_v26 = vld [vmem:[#allocation20_spill] sm:$0xff] }
 0x4f7   : > { %6893 = vlog2.f32 %v4155_v10  ;;  %vm3638_vm10 = vcmp.gt.f32.partialorder %v13765_v3, 20.0  ;;  %v4244_v40 = vsel %vm4243_vm1, %v4241_v44, %v4238_v38  ;;  %v4193_v16 = vmul.f32 0.6931472, %v6886_v56  ;;  %v13772_v39 = vld [vmem:[#allocation56_spill] sm:$0xff]  ;;  %v13778_v56 = vld [vmem:[#allocation19_spill] sm:$0xff] }
 0x4f8   : > { %v4215_v59 = vand.u32 2147483647, %v10775_v13  ;;  %6895 = vlog2.f32 %v4173_v6  ;;  %v4476_v18 = vsel %vm3644_vm15, %v13762_v17, %v4244_v40  ;;  %vm4198_vm11 = vcmp.lt.f32.partialorder %v4197_v24, 0.0004427343  ;;  %v13775_v17 = vld [vmem:[#allocation82_spill] sm:$0xff] }
 0x4f9   : > { %v4186_v30 = vadd.f32 1.0, %v4185_v62  ;;  %v4146_v57 = vadd.f32 1.0, %v13766_v23  ;;  %4782 = vmatpush1.msra.mxu1 %v4476_v18  ;;  %vm3639_vm3 = vcmp.gt.f32.partialorder %v13767_v26, 20.0  ;;  %v4199_v14 = vsel %vm4198_vm11, %v4196_v58, %v4193_v16 }
 0x4fa   : > { %v6888_v28 = vpop.eup %6887  ;;  %v4214_v11 = vmul.f32 %v10775_v13, %v4213_v1  ;;  %v4188_v60 = vand.u32 2147483647, %v13759_v61  ;;  %v4471_v15 = vsel %vm3639_vm3, %v13767_v26, %v4199_v14  ;;  %v4204_v36 = vadd.f32 1.0, %v4203_v63  ;;  %v13777_v1 = vld [vmem:[#allocation40_spill] sm:$0xff] }
 0x4fb   : > { %v4211_v37 = vmul.f32 0.6931472, %v6888_v28  ;;  %6897 = vlog2.f32 %v4146_v57  ;;  %4622 = vmatprep.subr.mxu0 %v4471_v15  ;;  %vm3641_vm2 = vcmp.gt.f32.partialorder %v13768_v2, 20.0  ;;  %vm4216_vm5 = vcmp.lt.f32.partialorder %v4215_v59, 0.0004427343  ;;  %v13784_v15 = vld [vmem:[#allocation91_spill] sm:$0xff] }
 0x4fc   : > { %v4158_v48 = vmul.f32 -0.5, %v13763_v52  ;;  %v4164_v35 = vadd.f32 1.0, %v13769_v47  ;;  %v4187_v53 = vmul.f32 %v13759_v61, %v4186_v30  ;;  %v4206_v13 = vand.u32 2147483647, %v10804_v45 }
 0x4fd   : > { %v6890_v0 = vpop.eup %6889  ;;  %v4217_v54 = vsel %vm4216_vm5, %v4214_v11, %v4211_v37  ;;  %v4119_v25 = vadd.f32 1.0, %v13770_v51  ;;  %v4176_v49 = vmul.f32 -0.5, %v13764_v43  ;;  %vm3640_vm4 = vcmp.gt.f32.partialorder %v13771_v19, 20.0 }
 0x4fe   : > { %v4473_v21 = vsel %vm3641_vm2, %v13768_v2, %v4217_v54  ;;  %v4184_v27 = vmul.f32 0.6931472, %v6890_v0  ;;  %6899 = vlog2.f32 %v4164_v35  ;;  %vm4189_vm6 = vcmp.lt.f32.partialorder %v4188_v60, 0.0004427343  ;;  %v13783_v60 = vld [vmem:[#allocation21_spill] sm:$0xff]  ;;  %v13785_v0 = vld [vmem:[#allocation34_spill] sm:$0xff] }
 0x4ff   : > { %v6892_v12 = vpop.eup %6891  ;;  %4783 = vmatprep.subr.mxu1 %v4473_v21  ;;  %v4205_v50 = vmul.f32 %v10804_v45, %v4204_v36  ;;  %6901 = vlog2.f32 %v4119_v25  ;;  %v4159_v20 = vadd.f32 1.0, %v4158_v48  ;;  %v4149_v5 = vmul.f32 -0.5, %v13766_v23 }
 0x500   : > { %v4190_v33 = vsel %vm4189_vm6, %v4187_v53, %v4184_v27  ;;  %v4202_v61 = vmul.f32 0.6931472, %v6892_v12  ;;  %vm4207_vm7 = vcmp.lt.f32.partialorder %v4206_v13, 0.0004427343  ;;  %vm3635_vm8 = vcmp.gt.f32.partialorder %v13772_v39, 20.0  ;;  %v13786_v27 = vld [vmem:[#allocation14_spill] sm:$0xff] }
 0x501   : > { %v4470_v41 = vsel %vm3638_vm10, %v13765_v3, %v4190_v33  ;;  %v4137_v4 = vadd.f32 1.0, %v13773_v46  ;;  %v4161_v9 = vand.u32 2147483647, %v13763_v52  ;;  %v4177_v45 = vadd.f32 1.0, %v4176_v49  ;;  %v13787_v33 = vld [vmem:[#allocation92_spill] sm:$0xff] }
 0x502   : > { %4623 = vmatpush1.msra.mxu0 %v4470_v41  ;;  %v4208_v34 = vsel %vm4207_vm7, %v4205_v50, %v4202_v61  ;;  %v4179_v55 = vand.u32 2147483647, %v13764_v43  ;;  %vm3634_vm9 = vcmp.gt.f32.partialorder %v13774_v7, 20.0  ;;  %v4167_v8 = vmul.f32 -0.5, %v13769_v47 }
 0x503   : > { %v4472_v32 = vsel %vm3640_vm4, %v13771_v19, %v4208_v34  ;;  %6903 = vlog2.f32 %v4137_v4  ;;  %v4110_v42 = vadd.f32 1.0, %v13775_v17  ;;  %v4160_v22 = vmul.f32 %v13763_v52, %v4159_v20  ;;  %v13788_v20 = vld [vmem:[#allocation6_spill] sm:$0xff] }
 0x504   : > { %v6894_v24 = vpop.eup %6893  ;;  %4784 = vmatpush1.msra.mxu1 %v4472_v32  ;;  %vm3637_vm12 = vcmp.gt.f32.partialorder %v13776_v29, 20.0  ;;  %v4150_v44 = vadd.f32 1.0, %v4149_v5  ;;  %v4152_v62 = vand.u32 2147483647, %v13766_v23  ;;  %v4122_v38 = vmul.f32 -0.5, %v13770_v51 }
 0x505   : > { %v6896_v10 = vpop.eup %6895  ;;  %v4157_v31 = vmul.f32 0.6931472, %v6894_v24  ;;  %6905 = vlog2.f32 %v4110_v42  ;;  %v4128_v6 = vadd.f32 1.0, %v13777_v1  ;;  %vm3636_vm13 = vcmp.gt.f32.partialorder %v13778_v56, 20.0 }
 0x506   : > { %vm4162_vm14 = vcmp.lt.f32.partialorder %v4161_v9, 0.0004427343  ;;  %v4175_v58 = vmul.f32 0.6931472, %v6896_v10  ;;  %v4178_v63 = vmul.f32 %v13764_v43, %v4177_v45  ;;  %v4170_v52 = vand.u32 2147483647, %v13769_v47 }
 0x507   : > { %v4163_v3 = vsel %vm4162_vm14, %v4160_v22, %v4157_v31  ;;  %vm4180_vm15 = vcmp.lt.f32.partialorder %v4179_v55, 0.0004427343  ;;  %v4168_v40 = vadd.f32 1.0, %v4167_v8  ;;  %6907 = vlog2.f32 %v4128_v6  ;;  %v13789_v45 = vld [vmem:[#allocation72_spill] sm:$0xff] }
 0x508   : > { %v6898_v16 = vpop.eup %6897  ;;  %v4467_v59 = vsel %vm3635_vm8, %v13772_v39, %v4163_v3  ;;  %v4181_v18 = vsel %vm4180_vm15, %v4178_v63, %v4175_v58  ;;  %v4151_v30 = vmul.f32 %v13766_v23, %v4150_v44  ;;  %vm10911_vm0 = vcmp.lt.f32.partialorder %v4152_v62, 0.0004427343 }
 0x509   : > { %4624 = vmatprep.subr.mxu0 %v4467_v59  ;;  %v4469_v43 = vsel %vm3637_vm12, %v13776_v29, %v4181_v18  ;;  %v4148_v28 = vmul.f32 0.6931472, %v6898_v16  ;;  %v4123_v26 = vadd.f32 1.0, %v4122_v38  ;;  %v4140_v14 = vmul.f32 -0.5, %v13773_v46  ;;  %v13791_v29 = vld [vmem:[#allocation62_spill] sm:$0xff] }
 0x50a   : > { %4785 = vmatprep.subr.mxu1 %v4469_v43  ;;  %vm10919_vm1 = vcmp.lt.f32.partialorder %v4170_v52, 0.0004427343  ;;  %vm3631_vm10 = vcmp.gt.f32.partialorder %v13783_v60, 20.0  ;;  %v4125_v23 = vand.u32 2147483647, %v13770_v51  ;;  %v4083_v37 = vadd.f32 1.0, %v13784_v15 }
 0x50b   : > { %v6900_v36 = vpop.eup %6899  ;;  %v4154_v2 = vsel %vm10911_vm0, %v4151_v30, %v4148_v28  ;;  %v4169_v48 = vmul.f32 %v13769_v47, %v4168_v40  ;;  %v4113_v35 = vmul.f32 -0.5, %v13775_v17  ;;  %v4101_v54 = vadd.f32 1.0, %v13785_v0  ;;  %v13792_v16 = vld [vmem:[#allocation66_spill] sm:$0xff]  ;;  %v13794_v43 = vld [vmem:[#allocation28_spill] sm:$0xff] }
 0x50c   : > { %v6902_v53 = vpop.eup %6901  ;;  %v4466_v13 = vsel %vm3634_vm9, %v13774_v7, %v4154_v2  ;;  %v4166_v25 = vmul.f32 0.6931472, %v6900_v36  ;;  %v4131_v21 = vmul.f32 -0.5, %v13777_v1  ;;  %6909 = vlog2.f32 %v4083_v37  ;;  %v13790_v7 = vld [vmem:[#allocation38_spill] sm:$0xff] }
 0x50d   : > { %vm3630_vm11 = vcmp.gt.f32.partialorder %v13786_v27, 20.0  ;;  %4625 = vmatpush1.msra.mxu0 %v4466_v13  ;;  %v4121_v49 = vmul.f32 0.6931472, %v6902_v53  ;;  %v4124_v12 = vmul.f32 %v13770_v51, %v4123_v26  ;;  %v4141_v47 = vadd.f32 1.0, %v4140_v14  ;;  %v13793_v30 = vld [vmem:[#allocation26_spill] sm:$0xff]  ;;  %v13795_v14 = vld [vmem:[#allocation67_spill] sm:$0xff] }
 0x50e   : > { %6911 = vlog2.f32 %v4101_v54  ;;  %v4172_v19 = vsel %vm10919_vm1, %v4169_v48, %v4166_v25  ;;  %vm4126_vm3 = vcmp.lt.f32.partialorder %v4125_v23, 0.0004427343  ;;  %v4143_v50 = vand.u32 2147483647, %v13773_v46  ;;  %v13799_v13 = vld [vmem:[#allocation30_spill] sm:$0xff] }
 0x50f   : > { %v4074_v61 = vadd.f32 1.0, %v13787_v33  ;;  %vm3632_vm2 = vcmp.gt.f32.partialorder %v13788_v20, 20.0  ;;  %v4468_v5 = vsel %vm3636_vm13, %v13778_v56, %v4172_v19  ;;  %v4127_v41 = vsel %vm4126_vm3, %v4124_v12, %v4121_v49 }
 0x510   : > { %v4114_v39 = vadd.f32 1.0, %v4113_v35  ;;  %v4116_v51 = vand.u32 2147483647, %v13775_v17  ;;  %v6904_v4 = vpop.eup %6903  ;;  %4786 = vmatpush1.msra.mxu1 %v4468_v5  ;;  %v4463_v34 = vsel %vm3631_vm10, %v13783_v60, %v4127_v41  ;;  %v4132_v9 = vadd.f32 1.0, %v4131_v21  ;;  %v13798_v35 = vld [vmem:[#allocation69_spill] sm:$0xff] }
 0x511   : > { %6913 = vlog2.f32 %v4074_v61  ;;  %v4092_v55 = vadd.f32 1.0, %v13789_v45  ;;  %4626 = vmatprep.subr.mxu0 %v4463_v34  ;;  %vm3633_vm5 = vcmp.gt.f32.partialorder %v13790_v7, 20.0  ;;  %v4139_v32 = vmul.f32 0.6931472, %v6904_v4 }
 0x512   : > { %v4142_v8 = vmul.f32 %v13773_v46, %v4141_v47  ;;  %v4086_v42 = vmul.f32 -0.5, %v13784_v15  ;;  %v6906_v24 = vpop.eup %6905  ;;  %vm4144_vm4 = vcmp.lt.f32.partialorder %v4143_v50, 0.0004427343  ;;  %v4134_v22 = vand.u32 2147483647, %v13777_v1  ;;  %v13800_v47 = vld [vmem:[#allocation17_spill] sm:$0xff] }
 0x513   : > { %6915 = vlog2.f32 %v4092_v55  ;;  %v4047_v44 = vadd.f32 1.0, %v13791_v29  ;;  %v4112_v10 = vmul.f32 0.6931472, %v6906_v24  ;;  %v4115_v31 = vmul.f32 %v13775_v17, %v4114_v39  ;;  %v13806_v24 = vld [vmem:[#allocation87_spill] sm:$0xff] }
 0x514   : > { %v4145_v62 = vsel %vm4144_vm4, %v4142_v8, %v4139_v32  ;;  %v4104_v38 = vmul.f32 -0.5, %v13785_v0  ;;  %v6908_v6 = vpop.eup %6907  ;;  %vm4117_vm6 = vcmp.lt.f32.partialorder %v4116_v51, 0.0004427343  ;;  %v4133_v46 = vmul.f32 %v13777_v1, %v4132_v9 }
 0x515   : > { %v4465_v56 = vsel %vm3633_vm5, %v13790_v7, %v4145_v62  ;;  %6917 = vlog2.f32 %v4047_v44  ;;  %v4118_v58 = vsel %vm4117_vm6, %v4115_v31, %v4112_v10  ;;  %v4130_v63 = vmul.f32 0.6931472, %v6908_v6  ;;  %v13805_v7 = vld [vmem:[#allocation59_spill] sm:$0xff] }
 0x516   : > { %4787 = vmatprep.subr.mxu1 %v4465_v56  ;;  %v4087_v52 = vadd.f32 1.0, %v4086_v42  ;;  %v4089_v3 = vand.u32 2147483647, %v13784_v15  ;;  %v4462_v40 = vsel %vm3630_vm11, %v13786_v27, %v4118_v58  ;;  %vm4135_vm7 = vcmp.lt.f32.partialorder %v4134_v22, 0.0004427343  ;;  %v13807_v31 = vld [vmem:[#allocation39_spill] sm:$0xff] }
 0x517   : > { %v4077_v17 = vmul.f32 -0.5, %v13787_v33  ;;  %v4065_v59 = vadd.f32 1.0, %v13792_v16  ;;  %4627 = vmatpush1.msra.mxu0 %v4462_v40  ;;  %v4136_v18 = vsel %vm4135_vm7, %v4133_v46, %v4130_v63  ;;  %vm3627_vm8 = vcmp.gt.f32.partialorder %v13793_v30, 20.0 }
 0x518   : > { %v4105_v1 = vadd.f32 1.0, %v4104_v38  ;;  %v4095_v57 = vmul.f32 -0.5, %v13789_v45  ;;  %vm3626_vm9 = vcmp.gt.f32.partialorder %v13794_v43, 20.0  ;;  %v4464_v28 = vsel %vm3632_vm2, %v13788_v20, %v4136_v18  ;;  %v13815_v20 = vld [vmem:[#allocation35_spill] sm:$0xff] }
 0x519   : > { %v4107_v26 = vand.u32 2147483647, %v13785_v0  ;;  %6919 = vlog2.f32 %v4065_v59  ;;  %v4038_v11 = vadd.f32 1.0, %v13795_v14  ;;  %v6910_v60 = vpop.eup %6909  ;;  %4788 = vmatpush1.msra.mxu1 %v4464_v28  ;;  %v4088_v23 = vmul.f32 %v13784_v15, %v4087_v52  ;;  %v13809_v52 = vld [vmem:[#allocation37_spill] sm:$0xff] }
 0x51a   : > { %vm10974_vm12 = vcmp.lt.f32.partialorder %v4089_v3, 0.0004427343  ;;  %v4080_v36 = vand.u32 2147483647, %v13787_v33  ;;  %v4050_v2 = vmul.f32 -0.5, %v13791_v29  ;;  %vm3628_vm13 = vcmp.gt.f32.partialorder %v13798_v35, 20.0 }
 0x51b   : > { %v6912_v48 = vpop.eup %6911  ;;  %v4085_v54 = vmul.f32 0.6931472, %v6910_v60  ;;  %v4078_v53 = vadd.f32 1.0, %v4077_v17  ;;  %6921 = vlog2.f32 %v4038_v11  ;;  %v4056_v25 = vadd.f32 1.0, %v13799_v13  ;;  %v13810_v3 = vld [vmem:[#allocation24_spill] sm:$0xff]  ;;  %v13812_v28 = vld [vmem:[#allocation41_spill] sm:$0xff] }
 0x51c   : > { %v4103_v21 = vmul.f32 0.6931472, %v6912_v48  ;;  %v4106_v27 = vmul.f32 %v13785_v0, %v4105_v1  ;;  %v4096_v15 = vadd.f32 1.0, %v4095_v57  ;;  %v4098_v49 = vand.u32 2147483647, %v13789_v45  ;;  %v13811_v57 = vld [vmem:[#allocation63_spill] sm:$0xff] }
 0x51d   : > { %v4091_v12 = vsel %vm10974_vm12, %v4088_v23, %v4085_v54  ;;  %vm3629_vm14 = vcmp.gt.f32.partialorder %v13800_v47, 20.0  ;;  %vm4108_vm15 = vcmp.lt.f32.partialorder %v4107_v26, 0.0004427343  ;;  %6923 = vlog2.f32 %v4056_v25 }
 0x51e   : > { %v6914_v19 = vpop.eup %6913  ;;  %v4459_v50 = vsel %vm3627_vm8, %v13793_v30, %v4091_v12  ;;  %v4109_v61 = vsel %vm4108_vm15, %v4106_v27, %v4103_v21  ;;  %vm10990_vm0 = vcmp.lt.f32.partialorder %v4080_v36, 0.0004427343  ;;  %v4051_v0 = vadd.f32 1.0, %v4050_v2  ;;  %v13813_v36 = vld [vmem:[#allocation46_spill] sm:$0xff] }
 0x51f   : > { %4628 = vmatprep.subr.mxu0 %v4459_v50  ;;  %v4461_v5 = vsel %vm3629_vm14, %v13800_v47, %v4109_v61  ;;  %v4076_v41 = vmul.f32 0.6931472, %v6914_v19  ;;  %v4079_v39 = vmul.f32 %v13787_v33, %v4078_v53  ;;  %v4068_v51 = vmul.f32 -0.5, %v13792_v16  ;;  %v13814_v19 = vld [vmem:[#allocation23_spill] sm:$0xff] }
 0x520   : > { %v6916_v4 = vpop.eup %6915  ;;  %4789 = vmatprep.subr.mxu1 %v4461_v5  ;;  %v4097_v34 = vmul.f32 %v13789_v45, %v4096_v15  ;;  %vm10998_vm1 = vcmp.lt.f32.partialorder %v4098_v49, 0.0004427343  ;;  %v4053_v55 = vand.u32 2147483647, %v13791_v29  ;;  %v4011_v32 = vadd.f32 1.0, %v13805_v7  ;;  %v13816_v5 = vld [vmem:[#allocation12_spill] sm:$0xff] }
 0x521   : > { %v4082_v8 = vsel %vm10990_vm0, %v4079_v39, %v4076_v41  ;;  %v4094_v42 = vmul.f32 0.6931472, %v6916_v4  ;;  %v4041_v33 = vmul.f32 -0.5, %v13795_v14  ;;  %v4029_v22 = vadd.f32 1.0, %v13806_v24 }
 0x522   : > { %v6918_v44 = vpop.eup %6917  ;;  %v4458_v45 = vsel %vm3626_vm9, %v13794_v43, %v4082_v8  ;;  %v4052_v62 = vmul.f32 %v13791_v29, %v4051_v0  ;;  %v4059_v10 = vmul.f32 -0.5, %v13799_v13  ;;  %6925 = vlog2.f32 %v4011_v32  ;;  %v13808_v29 = vld [vmem:[#allocation25_spill] sm:$0xff] }
 0x523   : > { %vm3622_vm10 = vcmp.gt.f32.partialorder %v13807_v31, 20.0  ;;  %4629 = vmatpush1.msra.mxu0 %v4458_v45  ;;  %v4100_v38 = vsel %vm10998_vm1, %v4097_v34, %v4094_v42  ;;  %v4049_v6 = vmul.f32 0.6931472, %v6918_v44  ;;  %v4069_v56 = vadd.f32 1.0, %v4068_v51  ;;  %v13817_v51 = vld [vmem:[#allocation84_spill] sm:$0xff] }
 0x524   : > { %6927 = vlog2.f32 %v4029_v22  ;;  %v4460_v46 = vsel %vm3628_vm13, %v13798_v35, %v4100_v38  ;;  %vm4054_vm11 = vcmp.lt.f32.partialorder %v4053_v55, 0.0004427343  ;;  %v4071_v58 = vand.u32 2147483647, %v13792_v16  ;;  %v13821_v45 = vld [vmem:[#allocation52_spill] sm:$0xff] }
 0x525   : > { %v4002_v63 = vadd.f32 1.0, %v13808_v29  ;;  %vm3624_vm3 = vcmp.gt.f32.partialorder %v13809_v52, 20.0  ;;  %4790 = vmatpush1.msra.mxu1 %v4460_v46  ;;  %vm3623_vm2 = vcmp.gt.f32.partialorder %v13810_v3, 20.0  ;;  %v4055_v40 = vsel %vm4054_vm11, %v4052_v62, %v4049_v6 }
 0x526   : > { %v4042_v17 = vadd.f32 1.0, %v4041_v33  ;;  %v4044_v59 = vand.u32 2147483647, %v13795_v14  ;;  %v6920_v18 = vpop.eup %6919  ;;  %v4455_v30 = vsel %vm3623_vm2, %v13810_v3, %v4055_v40  ;;  %v4060_v1 = vadd.f32 1.0, %v4059_v10  ;;  %v13820_v33 = vld [vmem:[#allocation13_spill] sm:$0xff] }
 0x527   : > { %6929 = vlog2.f32 %v4002_v63  ;;  %v4020_v43 = vadd.f32 1.0, %v13811_v57  ;;  %4630 = vmatprep.subr.mxu0 %v4455_v30  ;;  %vm3625_vm5 = vcmp.gt.f32.partialorder %v13812_v28, 20.0  ;;  %v4067_v26 = vmul.f32 0.6931472, %v6920_v18 }
 0x528   : > { %v4070_v11 = vmul.f32 %v13792_v16, %v4069_v56  ;;  %v4014_v60 = vmul.f32 -0.5, %v13805_v7  ;;  %v6922_v23 = vpop.eup %6921  ;;  %vm4072_vm4 = vcmp.lt.f32.partialorder %v4071_v58, 0.0004427343  ;;  %v4062_v37 = vand.u32 2147483647, %v13799_v13  ;;  %v13822_v56 = vld [vmem:[#allocation22_spill] sm:$0xff] }
 0x529   : > { %6931 = vlog2.f32 %v4020_v43  ;;  %v3975_v2 = vadd.f32 1.0, %v13813_v36  ;;  %v4040_v35 = vmul.f32 0.6931472, %v6922_v23  ;;  %v4043_v54 = vmul.f32 %v13795_v14, %v4042_v17  ;;  %v13828_v23 = vld [vmem:[#allocation18_spill] sm:$0xff] }
 0x52a   : > { %v4073_v48 = vsel %vm4072_vm4, %v4070_v11, %v4067_v26  ;;  %v4032_v53 = vmul.f32 -0.5, %v13806_v24  ;;  %v6924_v25 = vpop.eup %6923  ;;  %vm4045_vm6 = vcmp.lt.f32.partialorder %v4044_v59, 0.0004427343  ;;  %v4061_v16 = vmul.f32 %v13799_v13, %v4060_v1 }
 0x52b   : > { %v4457_v21 = vsel %vm3625_vm5, %v13812_v28, %v4073_v48  ;;  %6933 = vlog2.f32 %v3975_v2  ;;  %v4046_v27 = vsel %vm4045_vm6, %v4043_v54, %v4040_v35  ;;  %v4058_v15 = vmul.f32 0.6931472, %v6924_v25  ;;  %v13827_v28 = vld [vmem:[#allocation44_spill] sm:$0xff]  ;;  %v13829_v54 = vld [vmem:[#allocation27_spill] sm:$0xff] }
 0x52c   : > { %4791 = vmatprep.subr.mxu1 %v4457_v21  ;;  %v4015_v49 = vadd.f32 1.0, %v4014_v60  ;;  %v4017_v12 = vand.u32 2147483647, %v13805_v7  ;;  %v4454_v47 = vsel %vm3622_vm10, %v13807_v31, %v4046_v27  ;;  %vm4063_vm7 = vcmp.lt.f32.partialorder %v4062_v37, 0.0004427343 }
 0x52d   : > { %v4005_v14 = vmul.f32 -0.5, %v13808_v29  ;;  %v3993_v50 = vadd.f32 1.0, %v13814_v19  ;;  %4631 = vmatpush1.msra.mxu0 %v4454_v47  ;;  %v4064_v61 = vsel %vm4063_vm7, %v4061_v16, %v4058_v15  ;;  %vm3619_vm8 = vcmp.gt.f32.partialorder %v13815_v20, 20.0 }
 0x52e   : > { %v4033_v13 = vadd.f32 1.0, %v4032_v53  ;;  %v4023_v0 = vmul.f32 -0.5, %v13811_v57  ;;  %vm3618_vm9 = vcmp.gt.f32.partialorder %v13816_v5, 20.0  ;;  %v4456_v41 = vsel %vm3624_vm3, %v13809_v52, %v4064_v61  ;;  %v13837_v52 = vld [vmem:[#allocation31_spill] sm:$0xff] }
 0x52f   : > { %v4035_v39 = vand.u32 2147483647, %v13806_v24  ;;  %6935 = vlog2.f32 %v3993_v50  ;;  %v3966_v4 = vadd.f32 1.0, %v13817_v51  ;;  %v6926_v34 = vpop.eup %6925  ;;  %4792 = vmatpush1.msra.mxu1 %v4456_v41  ;;  %v4016_v9 = vmul.f32 %v13805_v7, %v4015_v49  ;;  %v13831_v49 = vld [vmem:[#allocation55_spill] sm:$0xff]  ;;  %v13834_v41 = vld [vmem:[#allocation45_spill] sm:$0xff] }
 0x530   : > { %vm11050_vm12 = vcmp.lt.f32.partialorder %v4017_v12, 0.0004427343  ;;  %v4008_v32 = vand.u32 2147483647, %v13808_v29  ;;  %v3978_v8 = vmul.f32 -0.5, %v13813_v36  ;;  %vm3620_vm13 = vcmp.gt.f32.partialorder %v13820_v33, 20.0 }
 0x531   : > { %v6928_v42 = vpop.eup %6927  ;;  %v4013_v22 = vmul.f32 0.6931472, %v6926_v34  ;;  %v4006_v44 = vadd.f32 1.0, %v4005_v14  ;;  %6937 = vlog2.f32 %v3966_v4  ;;  %v3984_v62 = vadd.f32 1.0, %v13821_v45  ;;  %v13832_v12 = vld [vmem:[#allocation10_spill] sm:$0xff] }
 0x532   : > { %v4031_v10 = vmul.f32 0.6931472, %v6928_v42  ;;  %v4034_v31 = vmul.f32 %v13806_v24, %v4033_v13  ;;  %v4024_v7 = vadd.f32 1.0, %v4023_v0  ;;  %v4026_v38 = vand.u32 2147483647, %v13811_v57  ;;  %v13833_v0 = vld [vmem:[#allocation74_spill] sm:$0xff] }
 0x533   : > { %v4019_v6 = vsel %vm11050_vm12, %v4016_v9, %v4013_v22  ;;  %vm3621_vm14 = vcmp.gt.f32.partialorder %v13822_v56, 20.0  ;;  %vm4036_vm15 = vcmp.lt.f32.partialorder %v4035_v39, 0.0004427343  ;;  %6939 = vlog2.f32 %v3984_v62 }
 0x534   : > { %v6930_v46 = vpop.eup %6929  ;;  %v4451_v58 = vsel %vm3619_vm8, %v13815_v20, %v4019_v6  ;;  %v4037_v63 = vsel %vm4036_vm15, %v4034_v31, %v4031_v10  ;;  %vm11066_vm0 = vcmp.lt.f32.partialorder %v4008_v32, 0.0004427343  ;;  %v3979_v24 = vadd.f32 1.0, %v3978_v8  ;;  %v13835_v32 = vld [vmem:[#allocation33_spill] sm:$0xff] }
 0x535   : > { %4632 = vmatprep.subr.mxu0 %v4451_v58  ;;  %v4453_v3 = vsel %vm3621_vm14, %v13822_v56, %v4037_v63  ;;  %v4004_v40 = vmul.f32 0.6931472, %v6930_v46  ;;  %v4007_v17 = vmul.f32 %v13808_v29, %v4006_v44  ;;  %v3996_v59 = vmul.f32 -0.5, %v13814_v19  ;;  %v13836_v46 = vld [vmem:[#allocation49_spill] sm:$0xff] }
 0x536   : > { %v6932_v18 = vpop.eup %6931  ;;  %4793 = vmatprep.subr.mxu1 %v4453_v3  ;;  %v4025_v30 = vmul.f32 %v13811_v57, %v4024_v7  ;;  %vm11074_vm1 = vcmp.lt.f32.partialorder %v4026_v38, 0.0004427343  ;;  %v3981_v43 = vand.u32 2147483647, %v13813_v36  ;;  %v3939_v26 = vadd.f32 1.0, %v13827_v28  ;;  %v13838_v3 = vld [vmem:[#allocation47_spill] sm:$0xff] }
 0x537   : > { %v4010_v11 = vsel %vm11066_vm0, %v4007_v17, %v4004_v40  ;;  %v4022_v60 = vmul.f32 0.6931472, %v6932_v18  ;;  %v3969_v29 = vmul.f32 -0.5, %v13817_v51  ;;  %v3957_v37 = vadd.f32 1.0, %v13828_v23 }
 0x538   : > { %v6934_v2 = vpop.eup %6933  ;;  %v4450_v57 = vsel %vm3618_vm9, %v13816_v5, %v4010_v11  ;;  %v3980_v48 = vmul.f32 %v13813_v36, %v3979_v24  ;;  %v3987_v35 = vmul.f32 -0.5, %v13821_v45  ;;  %6941 = vlog2.f32 %v3939_v26  ;;  %v13830_v36 = vld [vmem:[#allocation53_spill] sm:$0xff] }
 0x539   : > { %vm3614_vm10 = vcmp.gt.f32.partialorder %v13829_v54, 20.0  ;;  %4633 = vmatpush1.msra.mxu0 %v4450_v57  ;;  %v4028_v53 = vsel %vm11074_vm1, %v4025_v30, %v4022_v60  ;;  %v3977_v25 = vmul.f32 0.6931472, %v6934_v2  ;;  %v3997_v21 = vadd.f32 1.0, %v3996_v59  ;;  %v13839_v59 = vld [vmem:[#allocation36_spill] sm:$0xff]  ;;  %v13843_v57 = vld [vmem:[#allocation43_spill] sm:$0xff] }
 0x53a   : > { %6943 = vlog2.f32 %v3957_v37  ;;  %v4452_v16 = vsel %vm3620_vm13, %v13820_v33, %v4028_v53  ;;  %vm3982_vm11 = vcmp.lt.f32.partialorder %v3981_v43, 0.0004427343  ;;  %v3999_v27 = vand.u32 2147483647, %v13814_v19 }
 0x53b   : > { %v3930_v15 = vadd.f32 1.0, %v13830_v36  ;;  %vm3616_vm3 = vcmp.gt.f32.partialorder %v13831_v49, 20.0  ;;  %4794 = vmatpush1.msra.mxu1 %v4452_v16  ;;  %vm3615_vm2 = vcmp.gt.f32.partialorder %v13832_v12, 20.0  ;;  %v3983_v47 = vsel %vm3982_vm11, %v3980_v48, %v3977_v25 }
 0x53c   : > { %v3970_v14 = vadd.f32 1.0, %v3969_v29  ;;  %v3972_v50 = vand.u32 2147483647, %v13817_v51  ;;  %v6936_v61 = vpop.eup %6935  ;;  %v4447_v20 = vsel %vm3615_vm2, %v13832_v12, %v3983_v47  ;;  %v3988_v13 = vadd.f32 1.0, %v3987_v35  ;;  %v13842_v29 = vld [vmem:[#allocation57_spill] sm:$0xff] }
 0x53d   : > { %6945 = vlog2.f32 %v3930_v15  ;;  %v3948_v5 = vadd.f32 1.0, %v13833_v0  ;;  %4634 = vmatprep.subr.mxu0 %v4447_v20  ;;  %vm3617_vm5 = vcmp.gt.f32.partialorder %v13834_v41, 20.0  ;;  %v3995_v39 = vmul.f32 0.6931472, %v6936_v61 }
 0x53e   : > { %v3998_v4 = vmul.f32 %v13814_v19, %v3997_v21  ;;  %v3942_v34 = vmul.f32 -0.5, %v13827_v28  ;;  %v6938_v9 = vpop.eup %6937  ;;  %vm4000_vm4 = vcmp.lt.f32.partialorder %v3999_v27, 0.0004427343  ;;  %v3990_v55 = vand.u32 2147483647, %v13821_v45  ;;  %v13844_v21 = vld [vmem:[#allocation11_spill] sm:$0xff] }
 0x53f   : > { %6947 = vlog2.f32 %v3948_v5  ;;  %v3903_v8 = vadd.f32 1.0, %v13835_v32  ;;  %v3968_v33 = vmul.f32 0.6931472, %v6938_v9  ;;  %v3971_v22 = vmul.f32 %v13817_v51, %v3970_v14  ;;  %v13847_v5 = vld [vmem:[#allocation16_spill] sm:$0xff]  ;;  %v13848_v9 = vld [vmem:[#allocation71_spill] sm:$0xff] }
 0x540   : > { %v4001_v42 = vsel %vm4000_vm4, %v3998_v4, %v3995_v39  ;;  %v3960_v44 = vmul.f32 -0.5, %v13828_v23  ;;  %v6940_v62 = vpop.eup %6939  ;;  %vm3973_vm6 = vcmp.lt.f32.partialorder %v3972_v50, 0.0004427343  ;;  %v3989_v19 = vmul.f32 %v13821_v45, %v3988_v13 }
 0x541   : > { %v4449_v10 = vsel %vm3617_vm5, %v13834_v41, %v4001_v42  ;;  %6949 = vlog2.f32 %v3903_v8  ;;  %v3974_v31 = vsel %vm3973_vm6, %v3971_v22, %v3968_v33  ;;  %v3986_v7 = vmul.f32 0.6931472, %v6940_v62 }
 0x542   : > { %4795 = vmatprep.subr.mxu1 %v4449_v10  ;;  %v3943_v38 = vadd.f32 1.0, %v3942_v34  ;;  %v3945_v6 = vand.u32 2147483647, %v13827_v28  ;;  %v4446_v56 = vsel %vm3614_vm10, %v13829_v54, %v3974_v31  ;;  %vm3991_vm7 = vcmp.lt.f32.partialorder %v3990_v55, 0.0004427343 }
 0x543   : > { %v3933_v51 = vmul.f32 -0.5, %v13830_v36  ;;  %v3921_v58 = vadd.f32 1.0, %v13836_v46  ;;  %4635 = vmatpush1.msra.mxu0 %v4446_v56  ;;  %v3992_v63 = vsel %vm3991_vm7, %v3989_v19, %v3986_v7  ;;  %vm3611_vm8 = vcmp.gt.f32.partialorder %v13837_v52, 20.0  ;;  %v13849_v19 = vld [vmem:[#allocation65_spill] sm:$0xff] }
 0x544   : > { %v3961_v45 = vadd.f32 1.0, %v3960_v44  ;;  %v3951_v24 = vmul.f32 -0.5, %v13833_v0  ;;  %vm3610_vm9 = vcmp.gt.f32.partialorder %v13838_v3, 20.0  ;;  %v4448_v40 = vsel %vm3616_vm3, %v13831_v49, %v3992_v63 }
 0x545   : > { %v3963_v17 = vand.u32 2147483647, %v13828_v23  ;;  %6951 = vlog2.f32 %v3921_v58  ;;  %v3894_v18 = vadd.f32 1.0, %v13839_v59  ;;  %v6942_v30 = vpop.eup %6941  ;;  %4796 = vmatpush1.msra.mxu1 %v4448_v40  ;;  %v3944_v1 = vmul.f32 %v13827_v28, %v3943_v38  ;;  %v13851_v58 = vld [vmem:[#allocation15_spill] sm:$0xff] }
 0x546   : > { %vm11126_vm12 = vcmp.lt.f32.partialorder %v3945_v6, 0.0004427343  ;;  %v3936_v26 = vand.u32 2147483647, %v13830_v36  ;;  %v3906_v11 = vmul.f32 -0.5, %v13835_v32  ;;  %vm3612_vm13 = vcmp.gt.f32.partialorder %v13842_v29, 20.0 }
 0x547   : > { %v6944_v60 = vpop.eup %6943  ;;  %v3941_v37 = vmul.f32 0.6931472, %v6942_v30  ;;  %v3934_v2 = vadd.f32 1.0, %v3933_v51  ;;  %6953 = vlog2.f32 %v3894_v18  ;;  %v3912_v48 = vadd.f32 1.0, %v13843_v57 }
 0x548   : > { %v3959_v35 = vmul.f32 0.6931472, %v6944_v60  ;;  %v3962_v54 = vmul.f32 %v13828_v23, %v3961_v45  ;;  %v3952_v28 = vadd.f32 1.0, %v3951_v24  ;;  %v3954_v53 = vand.u32 2147483647, %v13833_v0 }
 0x549   : > { %v3947_v25 = vsel %vm11126_vm12, %v3944_v1, %v3941_v37  ;;  %vm3613_vm14 = vcmp.gt.f32.partialorder %v13844_v21, 20.0  ;;  %vm3964_vm15 = vcmp.lt.f32.partialorder %v3963_v17, 0.0004427343  ;;  %6955 = vlog2.f32 %v3912_v48 }
 0x54a   : > { %v6946_v16 = vpop.eup %6945  ;;  %v4443_v27 = vsel %vm3611_vm8, %v13837_v52, %v3947_v25  ;;  %v3965_v15 = vsel %vm3964_vm15, %v3962_v54, %v3959_v35  ;;  %v3907_v49 = vadd.f32 1.0, %v3906_v11  ;;  %v3924_v12 = vmul.f32 -0.5, %v13836_v46  ;;  %v13852_v52 = vld [vmem:[#allocation9_spill] sm:$0xff] }
 0x54b   : > { %4636 = vmatprep.subr.mxu0 %v4443_v27  ;;  %v4445_v23 = vsel %vm3613_vm14, %v13844_v21, %v3965_v15  ;;  %v3932_v47 = vmul.f32 0.6931472, %v6946_v16  ;;  %v3935_v14 = vmul.f32 %v13830_v36, %v3934_v2  ;;  %vm3937_vm0 = vcmp.lt.f32.partialorder %v3936_v26, 0.0004427343 }
 0x54c   : > { %v6948_v50 = vpop.eup %6947  ;;  %4797 = vmatprep.subr.mxu1 %v4445_v23  ;;  %v3953_v61 = vmul.f32 %v13833_v0, %v3952_v28  ;;  %vm11146_vm1 = vcmp.lt.f32.partialorder %v3954_v53, 0.0004427343  ;;  %v3909_v13 = vand.u32 2147483647, %v13835_v32  ;;  %v3867_v41 = vadd.f32 1.0, %v13847_v5 }
 0x54d   : > { %v3938_v39 = vsel %vm3937_vm0, %v3935_v14, %v3932_v47  ;;  %v3950_v4 = vmul.f32 0.6931472, %v6948_v50  ;;  %v3897_v34 = vmul.f32 -0.5, %v13839_v59  ;;  %v3885_v55 = vadd.f32 1.0, %v13848_v9 }
 0x54e   : > { %v6950_v36 = vpop.eup %6949  ;;  %v4442_v8 = vsel %vm3610_vm9, %v13838_v3, %v3938_v39  ;;  %v3908_v0 = vmul.f32 %v13835_v32, %v3907_v49  ;;  %v3925_v42 = vadd.f32 1.0, %v3924_v12  ;;  %6957 = vlog2.f32 %v3867_v41  ;;  %v13850_v32 = vld [vmem:[#allocation29_spill] sm:$0xff] }
 0x54f   : > { %4637 = vmatpush1.msra.mxu0 %v4442_v8  ;;  %v3956_v33 = vsel %vm11146_vm1, %v3953_v61, %v3950_v4  ;;  %v3905_v22 = vmul.f32 0.6931472, %v6950_v36  ;;  %v3915_v44 = vmul.f32 -0.5, %v13843_v57  ;;  %6959 = vlog2.f32 %v3885_v55  ;;  %v13855_v61 = vld [vmem:[#allocation5_spill] sm:$0xff]  ;;  %v13856_v4 = vld [vmem:[#allocation2_spill] sm:$0xff] }
 0x550   : > { %v4444_v62 = vsel %vm3612_vm13, %v13842_v29, %v3956_v33  ;;  %vm3910_vm10 = vcmp.lt.f32.partialorder %v3909_v13, 0.0004427343  ;;  %v3927_v10 = vand.u32 2147483647, %v13836_v46  ;;  %v3858_v31 = vadd.f32 1.0, %v13849_v19  ;;  %v13853_v29 = vld [vmem:[#allocation3_spill] sm:$0xff] }
 0x551   : > { %4798 = vmatpush1.msra.mxu1 %v4444_v62  ;;  %vm3607_vm11 = vcmp.gt.f32.partialorder %v13850_v32, 20.0  ;;  %v3911_v7 = vsel %vm3910_vm10, %v3908_v0, %v3905_v22  ;;  %v3898_v38 = vadd.f32 1.0, %v3897_v34  ;;  %v3900_v51 = vand.u32 2147483647, %v13839_v59  ;;  %v13857_v0 = vld [vmem:[#allocation7_spill] sm:$0xff] }
 0x552   : > { %v6952_v6 = vpop.eup %6951  ;;  %v4439_v56 = vsel %vm3607_vm11, %v13850_v32, %v3911_v7  ;;  %6961 = vlog2.f32 %v3858_v31  ;;  %v3876_v63 = vadd.f32 1.0, %v13851_v58  ;;  %vm3609_vm3 = vcmp.gt.f32.partialorder %v13852_v52, 20.0  ;;  %v4499_v7 = vld [vmem:[%s12401_s7 + $0x8] sm:$0xff] }
 0x553   : > { %4638 = vmatprep.subr.mxu0 %v4439_v56  ;;  %v3923_v45 = vmul.f32 0.6931472, %v6952_v6  ;;  %v3926_v24 = vmul.f32 %v13836_v46, %v3925_v42  ;;  %v3916_v3 = vadd.f32 1.0, %v3915_v44  ;;  %vm3928_vm2 = vcmp.lt.f32.partialorder %v3927_v10, 0.0004427343  ;;  %v4498_v44 = vld [vmem:[%s12401_s7] sm:$0xff] }
 0x554   : > { %v6954_v40 = vpop.eup %6953  ;;  %v3918_v17 = vand.u32 2147483647, %v13843_v57  ;;  %v3870_v18 = vmul.f32 -0.5, %v13847_v5  ;;  %6963 = vlog2.f32 %v3876_v63  ;;  %v3899_v43 = vmul.f32 %v13839_v59, %v3898_v38  ;;  %v13854_v59 = vld [vmem:[#allocation8_spill] sm:$0xff]  ;;  %v4501_v6 = vld [vmem:[%s12401_s7 + $0x18] sm:$0xff]  ;;  %v4502_v56 = vld [vmem:[%s12401_s7 + $0x20] sm:$0xff] }
 0x555   : > { %v3929_v30 = vsel %vm3928_vm2, %v3926_v24, %v3923_v45  ;;  %v3896_v1 = vmul.f32 0.6931472, %v6954_v40  ;;  %v3888_v26 = vmul.f32 -0.5, %v13848_v9  ;;  %vm3901_vm5 = vcmp.lt.f32.partialorder %v3900_v51, 0.0004427343  ;;  %v13858_v10 = vld [vmem:[#allocation4_spill] sm:$0xff] }
 0x556   : > { %v6956_v11 = vpop.eup %6955  ;;  %v4441_v60 = vsel %vm3609_vm3, %v13852_v52, %v3929_v30  ;;  %vm3606_vm4 = vcmp.gt.f32.partialorder %v13853_v29, 20.0  ;;  %v3917_v2 = vmul.f32 %v13843_v57, %v3916_v3  ;;  %vm3919_vm6 = vcmp.lt.f32.partialorder %v3918_v17, 0.0004427343  ;;  %v4500_v38 = vld [vmem:[%s12401_s7 + $0x10] sm:$0xff]  ;;  %v4503_v51 = vld [vmem:[%s12401_s7 + $0x28] sm:$0xff]  ;;  %v4505_v63 = vld [vmem:[%s12401_s7 + $0x38] sm:$0xff] }
 0x557   : > { %4799 = vmatprep.subr.mxu1 %v4441_v60  ;;  %v3902_v46 = vsel %vm3901_vm5, %v3899_v43, %v3896_v1  ;;  %v3914_v37 = vmul.f32 0.6931472, %v6956_v11  ;;  %v3871_v35 = vadd.f32 1.0, %v3870_v18  ;;  %v3861_v54 = vmul.f32 -0.5, %v13849_v19  ;;  %v4506_v52 = vld [vmem:[%s12401_s7 + $0x40] sm:$0xff]  ;;  %v4507_v45 = vld [vmem:[%s12401_s7 + $0x48] sm:$0xff]  ;;  %v11280_v1 = vpop.permute.xlu1 %4602  ;;  %v11282_v43 = vpop.permute.xlu0 %4607 }
 0x558   : > { %v4438_v48 = vsel %vm3606_vm4, %v13853_v29, %v3902_v46  ;;  %vm3608_vm7 = vcmp.gt.f32.partialorder %v13854_v59, 20.0  ;;  %v3873_v53 = vand.u32 2147483647, %v13847_v5  ;;  %v3889_v25 = vadd.f32 1.0, %v3888_v26  ;;  %v4508_v24 = vld [vmem:[%s12401_s7 + $0x50] sm:$0xff]  ;;  %v4509_v3 = vld [vmem:[%s12401_s7 + $0x58] sm:$0xff] }
 0x559   : > { %4639 = vmatpush1.msra.mxu0 %v4438_v48  ;;  %v3920_v28 = vsel %vm3919_vm6, %v3917_v2, %v3914_v37  ;;  %v3891_v16 = vand.u32 2147483647, %v13848_v9  ;;  %v3879_v27 = vmul.f32 -0.5, %v13851_v58  ;;  %v3872_v12 = vmul.f32 %v13847_v5, %v3871_v35  ;;  %v4510_v40 = vld [vmem:[%s12401_s7 + $0x60] sm:$0xff]  ;;  %v4511_v17 = vld [vmem:[%s12401_s7 + $0x68] sm:$0xff]  ;;  %v4512_v18 = vld [vmem:[%s12401_s7 + $0x70] sm:$0xff] }
 0x55a   : > { %v4440_v21 = vsel %vm3608_vm7, %v13854_v59, %v3920_v28  ;;  %v3862_v23 = vadd.f32 1.0, %v3861_v54  ;;  %vm3874_vm8 = vcmp.lt.f32.partialorder %v3873_v53, 0.0004427343  ;;  %v3890_v14 = vmul.f32 %v13848_v9, %v3889_v25  ;;  %v4513_v30 = vld [vmem:[%s12401_s7 + $0x78] sm:$0xff] }
 0x55b   : > { %v6958_v57 = vpop.eup %6957  ;;  %4800 = vmatpush1.msra.mxu1 %v4440_v21  ;;  %v3864_v50 = vand.u32 2147483647, %v13849_v19  ;;  %vm3603_vm9 = vcmp.gt.f32.partialorder %v13855_v61, 20.0  ;;  %vm3892_vm12 = vcmp.lt.f32.partialorder %v3891_v16, 0.0004427343  ;;  %v3880_v13 = vadd.f32 1.0, %v3879_v27  ;;  %v11284_v26 = vpop.permute.xlu1 %4592 }
 0x55c   : > { %v6960_v15 = vpop.eup %6959  ;;  %v3869_v49 = vmul.f32 0.6931472, %v6958_v57  ;;  %vm3605_vm13 = vcmp.gt.f32.partialorder %v13856_v4, 20.0  ;;  %v3882_v5 = vand.u32 2147483647, %v13851_v58  ;;  %v3863_v9 = vmul.f32 %v13849_v19, %v3862_v23  ;;  %v11286_v11 = vpop.permute.xlu0 %4597 }
 0x55d   : > { %v3887_v47 = vmul.f32 0.6931472, %v6960_v15  ;;  %vm3865_vm14 = vcmp.lt.f32.partialorder %v3864_v50, 0.0004427343  ;;  %vm3602_vm15 = vcmp.gt.f32.partialorder %v13857_v0, 20.0  ;;  %v3881_v22 = vmul.f32 %v13851_v58, %v3880_v13  ;;  %v4504_v58 = vld [vmem:[%s12401_s7 + $0x30] sm:$0xff] }
 0x55e   : > { %v3875_v20 = vsel %vm3874_vm8, %v3872_v12, %v3869_v49  ;;  %vm3883_vm0 = vcmp.lt.f32.partialorder %v3882_v5, 0.0004427343  ;;  %vm3604_vm1 = vcmp.gt.f32.partialorder %v13858_v10, 20.0  ;;  %v13859_v32 = vmov 0.0  }
 0x55f   : > { %v6962_v41 = vpop.eup %6961  ;;  %v4435_v39 = vsel %vm3603_vm9, %v13855_v61, %v3875_v20  ;;  %v3893_v34 = vsel %vm3892_vm12, %v3890_v14, %v3887_v47  ;;  %v11288_v60 = vpop.permute.xlu1 %4582 }
 0x560   : > { %4640 = vmatprep.subr.mxu0 %v4435_v39  ;;  %v4437_v55 = vsel %vm3605_vm13, %v13856_v4, %v3893_v34  ;;  %v3860_v36 = vmul.f32 0.6931472, %v6962_v41  ;;  %v11290_v29 = vpop.permute.xlu0 %4587 }
 0x561   : > { %v6964_v8 = vpop.eup %6963  ;;  %4801 = vmatprep.subr.mxu1 %v4437_v55 }
 0x562   : > { %v3866_v42 = vsel %vm3865_vm14, %v3863_v9, %v3860_v36  ;;  %v3878_v33 = vmul.f32 0.6931472, %v6964_v8 }
 0x563   : > { %v4434_v62 = vsel %vm3602_vm15, %v13857_v0, %v3866_v42  ;;  %v11292_v46 = vpop.permute.xlu1 %4572 }
 0x564   : > { %4641 = vmatpush1.msra.mxu0 %v4434_v62  ;;  %v3884_v19 = vsel %vm3883_vm0, %v3881_v22, %v3878_v33  ;;  %v11294_v37 = vpop.permute.xlu0 %4577 }
 0x565   : > { %v4436_v31 = vsel %vm3604_vm1, %v13858_v10, %v3884_v19  ;;  %4675 = vmatmul.mubr.f32.vlgmr.msra.gmra.mxu0 %v4498_v44 }
 0x566   : > { %4802 = vmatpush1.msra.mxu1 %v4436_v31  ;;  %4680 = vmatprep.mubr.f32.mxu0 %v13859_v32 }
 0x567   : > { %4836 = vmatmul.mubr.f32.vlgmr.msra.gmra.mxu1 %v4498_v44  ;;  %v11296_v2 = vpop.permute.xlu1 %4562 }
 0x568   : > { %4841 = vmatprep.mubr.f32.mxu1 %v13859_v32  ;;  %v11298_v48 = vpop.permute.xlu0 %4567 }
 0x569   : > { %4681 = vmatmul.mubr.f32.gmra.mxu0 %v4499_v7 }
 0x56a   : > { %4686 = vmatprep.mubr.f32.mxu0 %v13859_v32 }
 0x56b   : > { %4842 = vmatmul.mubr.f32.gmra.mxu1 %v4499_v7  ;;  %v11300_v35 = vpop.permute.xlu1 %4552 }
 0x56c   : > { %4847 = vmatprep.mubr.f32.mxu1 %v13859_v32  ;;  %v11302_v54 = vpop.permute.xlu0 %4557 }
 0x56d   : > { %4687 = vmatmul.mubr.f32.gmra.mxu0 %v4500_v38 }
 0x56e   : > { %4692 = vmatprep.mubr.f32.mxu0 %v13859_v32 }
 0x56f   : > { %4848 = vmatmul.mubr.f32.gmra.mxu1 %v4500_v38  ;;  %v4543_v59 = vpop.permute.xlu1 %4542 }
 0x570   : > { %4853 = vmatprep.mubr.f32.mxu1 %v13859_v32  ;;  %v4548_v21 = vpop.permute.xlu0 %4547 }
 0x571   : > { %4693 = vmatmul.mubr.f32.gmra.mxu0 %v4501_v6 }
 0x572   : > { %4698 = vmatprep.mubr.f32.mxu0 %v13859_v32 }
 0x573   : > { %4854 = vmatmul.mubr.f32.gmra.mxu1 %v4501_v6  ;;  %v4533_v57 = vpop.permute.xlu1 %4532 }
 0x574   : > { %4859 = vmatprep.mubr.f32.mxu1 %v13859_v32  ;;  %v4538_v61 = vpop.permute.xlu0 %4537 }
 0x575   : > { %4699 = vmatmul.mubr.f32.gmra.mxu0 %v4502_v56 }
 0x576   : > { %4704 = vmatprep.mubr.f32.mxu0 %v13859_v32 }
 0x577   : > { %4860 = vmatmul.mubr.f32.gmra.mxu1 %v4502_v56 }
 0x578   : > { %4865 = vmatprep.mubr.f32.mxu1 %v13859_v32 }
 0x579   : > { %4705 = vmatmul.mubr.f32.gmra.mxu0 %v4503_v51 }
 0x57a   : > { %4710 = vmatprep.mubr.f32.mxu0 %v13859_v32 }
 0x57b   : > { %4866 = vmatmul.mubr.f32.gmra.mxu1 %v4503_v51 }
 0x57c   : > { %4871 = vmatprep.mubr.f32.mxu1 %v13859_v32 }
 0x57d   : > { %4711 = vmatmul.mubr.f32.gmra.mxu0 %v4504_v58 }
 0x57e   : > { %4716 = vmatprep.mubr.f32.mxu0 %v13859_v32 }
 0x57f   : > { %4872 = vmatmul.mubr.f32.gmra.mxu1 %v4504_v58 }
 0x580   : > { %4877 = vmatprep.mubr.f32.mxu1 %v13859_v32 }
 0x581   : > { %4717 = vmatmul.mubr.f32.gmra.mxu0 %v4505_v63 }
 0x582   : > { %4722 = vmatprep.mubr.f32.mxu0 %v13859_v32 }
 0x583   : > { %4878 = vmatmul.mubr.f32.gmra.mxu1 %v4505_v63 }
 0x584   : > { %4883 = vmatprep.mubr.f32.mxu1 %v13859_v32 }
 0x585   : > { %4723 = vmatmul.mubr.f32.gmra.mxu0 %v4506_v52 }
 0x586   : > { %4728 = vmatprep.mubr.f32.mxu0 %v13859_v32 }
 0x587   : > { %4884 = vmatmul.mubr.f32.gmra.mxu1 %v4506_v52 }
 0x588   : > { %4889 = vmatprep.mubr.f32.mxu1 %v13859_v32 }
 0x589   : > { %4729 = vmatmul.mubr.f32.gmra.mxu0 %v4507_v45 }
 0x58a   : > { %4734 = vmatprep.mubr.f32.mxu0 %v13859_v32 }
 0x58b   : > { %4890 = vmatmul.mubr.f32.gmra.mxu1 %v4507_v45 }
 0x58c   : > { %4895 = vmatprep.mubr.f32.mxu1 %v13859_v32 }
 0x58d   : > { %4735 = vmatmul.mubr.f32.gmra.mxu0 %v4508_v24 }
 0x58e   : > { %4740 = vmatprep.mubr.f32.mxu0 %v13859_v32 }
 0x58f   : > { %4896 = vmatmul.mubr.f32.gmra.mxu1 %v4508_v24 }
 0x590   : > { %4901 = vmatprep.mubr.f32.mxu1 %v13859_v32 }
 0x591   : > { %4741 = vmatmul.mubr.f32.gmra.mxu0 %v4509_v3 }
 0x592   : > { %4746 = vmatprep.mubr.f32.mxu0 %v13859_v32 }
 0x593   : > { %4902 = vmatmul.mubr.f32.gmra.mxu1 %v4509_v3 }
 0x594   : > { %4907 = vmatprep.mubr.f32.mxu1 %v13859_v32 }
 0x595   : > { %4747 = vmatmul.mubr.f32.gmra.mxu0 %v4510_v40 }
 0x596   : > { %4752 = vmatprep.mubr.f32.mxu0 %v13859_v32 }
 0x597   : > { %4908 = vmatmul.mubr.f32.gmra.mxu1 %v4510_v40 }
 0x598   : > { %4913 = vmatprep.mubr.f32.mxu1 %v13859_v32 }
 0x599   : > { %4753 = vmatmul.mubr.f32.gmra.mxu0 %v4511_v17 }
 0x59a   : > { %4758 = vmatprep.mubr.f32.mxu0 %v13859_v32 }
 0x59b   : > { %4914 = vmatmul.mubr.f32.gmra.mxu1 %v4511_v17 }
 0x59c   : > { %4919 = vmatprep.mubr.f32.mxu1 %v13859_v32 }
 0x59d   : > { %4759 = vmatmul.mubr.f32.gmra.mxu0 %v4512_v18 }
 0x59e   : > { %4764 = vmatprep.mubr.f32.mxu0 %v13859_v32 }
 0x59f   : > { %4920 = vmatmul.mubr.f32.gmra.mxu1 %v4512_v18 }
 0x5a0   : > { %4925 = vmatprep.mubr.f32.mxu1 %v13859_v32 }
 0x5a1   : > { %4765 = vmatmul.mubr.f32.gmra.mxu0 %v4513_v30 }
 0x5a2   : > { %5899 = vmatprep.mubr.f32.mxu0 %v13859_v32 }
 0x5a3   : > { %4926 = vmatmul.mubr.f32.gmra.mxu1 %v4513_v30 }
 0x5a4   : > { %5970 = vmatprep.mubr.f32.mxu1 %v13859_v32 }
 0x625   : > { %v4676_v28 = vpop.f32.mrf.mxu0 }
 0x626   : > { %v11304_v15 = vadd.f32 %v4676_v28, %v4533_v57 }
 0x627   : > { %v4837_v53 = vpop.f32.mrf.mxu1  ;;  %v4678_v25 = vpop.f32.mrf.mxu0 }
 0x628   : > { %13860 = vst [vmem:[#allocation103_spill] sm:$0xff] %v11304_v15  ;;  %v11306_v23 = vadd.f32 %v4837_v53, %v4533_v57  ;;  %v11308_v47 = vadd.f32 %v4678_v25, %v4533_v57  ;;  %v4996_v13 = vmin.f32 %v11304_v15, 20.0 }
 0x629   : > { %v4839_v16 = vpop.f32.mrf.mxu1  ;;  %v4682_v27 = vpop.f32.mrf.mxu0 }
 0x62a   : > { %13861 = vst [vmem:[#allocation100_spill] sm:$0xff] %v11306_v23  ;;  %13862 = vst [vmem:[#allocation106_spill] sm:$0xff] %v11308_v47  ;;  %v11310_v20 = vadd.f32 %v4839_v16, %v4533_v57  ;;  %v11313_v41 = vadd.f32 %v4682_v27, %v4538_v61  ;;  %v4998_v34 = vmin.f32 %v11306_v23, 20.0  ;;  %v4997_v55 = vmin.f32 %v11308_v47, 20.0 }
 0x62b   : > { %v4843_v49 = vpop.f32.mrf.mxu1  ;;  %v4684_v12 = vpop.f32.mrf.mxu0  ;;  %v5060_v33 = vmul.f32 1.442695, %v4996_v13 }
 0x62c   : > { %13863 = vst [vmem:[#allocation105_spill] sm:$0xff] %v11310_v20  ;;  %13864 = vst [vmem:[#allocation102_spill] sm:$0xff] %v11313_v41  ;;  %v11316_v5 = vadd.f32 %v4843_v49, %v4538_v61  ;;  %v11319_v36 = vadd.f32 %v4684_v12, %v4538_v61  ;;  %v4999_v0 = vmin.f32 %v11310_v20, 20.0  ;;  %v5000_v22 = vmin.f32 %v11313_v41, 20.0 }
 0x62d   : > { %v4845_v14 = vpop.f32.mrf.mxu1  ;;  %v4688_v50 = vpop.f32.mrf.mxu0  ;;  %v5064_v19 = vmul.f32 1.442695, %v4998_v34  ;;  %v5062_v7 = vmul.f32 1.442695, %v4997_v55  ;;  %6965 = vpow2.f32 %v5060_v33 }
 0x62e   : > { %13865 = vst [vmem:[#allocation78_spill] sm:$0xff] %v11316_v5  ;;  %13866 = vst [vmem:[#allocation86_spill] sm:$0xff] %v11319_v36  ;;  %v11322_v42 = vadd.f32 %v4845_v14, %v4538_v61  ;;  %v11325_v44 = vadd.f32 %v4688_v50, %v4543_v59  ;;  %v5002_v31 = vmin.f32 %v11316_v5, 20.0  ;;  %v5001_v38 = vmin.f32 %v11319_v36, 20.0 }
 0x62f   : > { %v4849_v39 = vpop.f32.mrf.mxu1  ;;  %v4690_v4 = vpop.f32.mrf.mxu0  ;;  %v5066_v58 = vmul.f32 1.442695, %v4999_v0  ;;  %v5068_v45 = vmul.f32 1.442695, %v5000_v22  ;;  %6967 = vpow2.f32 %v5064_v19 }
 0x630   : > { %13867 = vst [vmem:[#allocation101_spill] sm:$0xff] %v11322_v42  ;;  %13868 = vst [vmem:[#allocation48_spill] sm:$0xff] %v11325_v44  ;;  %v11328_v32 = vadd.f32 %v4849_v39, %v4543_v59  ;;  %v11331_v6 = vadd.f32 %v4690_v4, %v4543_v59  ;;  %v5003_v63 = vmin.f32 %v11322_v42, 20.0  ;;  %v5004_v24 = vmin.f32 %v11325_v44, 20.0 }
 0x631   : > { %v4851_v9 = vpop.f32.mrf.mxu1  ;;  %v4694_v8 = vpop.f32.mrf.mxu0  ;;  %v5072_v18 = vmul.f32 1.442695, %v5002_v31  ;;  %6969 = vpow2.f32 %v5062_v7  ;;  %v5070_v53 = vmul.f32 1.442695, %v5001_v38 }
 0x632   : > { %13869 = vst [vmem:[#allocation75_spill] sm:$0xff] %v11328_v32  ;;  %13870 = vst [vmem:[#allocation104_spill] sm:$0xff] %v11331_v6  ;;  %v11334_v52 = vadd.f32 %v4851_v9, %v4543_v59  ;;  %v11337_v3 = vadd.f32 %v4694_v8, %v4548_v21  ;;  %v5006_v30 = vmin.f32 %v11328_v32, 20.0  ;;  %v5005_v25 = vmin.f32 %v11331_v6, 20.0 }
 0x633   : > { %v4855_v62 = vpop.f32.mrf.mxu1  ;;  %v4696_v10 = vpop.f32.mrf.mxu0  ;;  %6971 = vpow2.f32 %v5066_v58  ;;  %v5074_v57 = vmul.f32 1.442695, %v5003_v63  ;;  %v5076_v14 = vmul.f32 1.442695, %v5004_v24 }
 0x634   : > { %13871 = vst [vmem:[#allocation58_spill] sm:$0xff] %v11334_v52  ;;  %13872 = vst [vmem:[#allocation70_spill] sm:$0xff] %v11337_v3  ;;  %v11340_v28 = vadd.f32 %v4855_v62, %v4548_v21  ;;  %v11343_v59 = vadd.f32 %v4696_v10, %v4548_v21  ;;  %v5007_v49 = vmin.f32 %v11334_v52, 20.0  ;;  %6973 = vpow2.f32 %v5068_v45 }
 0x635   : > { %v4857_v56 = vpop.f32.mrf.mxu1  ;;  %v4700_v51 = vpop.f32.mrf.mxu0  ;;  %v5008_v50 = vmin.f32 %v11337_v3, 20.0  ;;  %6975 = vpow2.f32 %v5072_v18  ;;  %v5080_v4 = vmul.f32 1.442695, %v5006_v30  ;;  %v5078_v9 = vmul.f32 1.442695, %v5005_v25 }
 0x636   : > { %13873 = vst [vmem:[#allocation68_spill] sm:$0xff] %v11340_v28  ;;  %13874 = vst [vmem:[#allocation83_spill] sm:$0xff] %v11343_v59  ;;  %v11346_v12 = vadd.f32 %v4857_v56, %v4548_v21  ;;  %v11350_v61 = vadd.f32 %v4700_v51, %v11300_v35  ;;  %v5010_v34 = vmin.f32 %v11340_v28, 20.0  ;;  %6977 = vpow2.f32 %v5070_v53 }
 0x637   : > { %v4861_v40 = vpop.f32.mrf.mxu1  ;;  %v4702_v17 = vpop.f32.mrf.mxu0  ;;  %v5009_v21 = vmin.f32 %v11343_v59, 20.0  ;;  %6979 = vpow2.f32 %v5074_v57  ;;  %v5082_v22 = vmul.f32 1.442695, %v5007_v49  ;;  %v5084_v19 = vmul.f32 1.442695, %v5008_v50 }
 0x638   : > { %13875 = vst [vmem:[#allocation79_spill] sm:$0xff] %v11346_v12  ;;  %13876 = vst [vmem:[#allocation99_spill] sm:$0xff] %v11350_v61  ;;  %v11354_v55 = vadd.f32 %v4861_v40, %v11300_v35  ;;  %v11358_v8 = vadd.f32 %v4702_v17, %v11300_v35  ;;  %v5011_v62 = vmin.f32 %v11346_v12, 20.0  ;;  %6981 = vpow2.f32 %v5076_v14 }
 0x639   : > { %v4863_v16 = vpop.f32.mrf.mxu1  ;;  %v4706_v27 = vpop.f32.mrf.mxu0  ;;  %v5012_v31 = vmin.f32 %v11350_v61, 20.0  ;;  %6983 = vpow2.f32 %v5080_v4  ;;  %v5088_v51 = vmul.f32 1.442695, %v5010_v34  ;;  %v5086_v45 = vmul.f32 1.442695, %v5009_v21 }
 0x63a   : > { %13877 = vst [vmem:[#allocation85_spill] sm:$0xff] %v11354_v55  ;;  %13878 = vst [vmem:[#allocation98_spill] sm:$0xff] %v11358_v8  ;;  %v11362_v10 = vadd.f32 %v4863_v16, %v11300_v35  ;;  %v11366_v7 = vadd.f32 %v4706_v27, %v11302_v54  ;;  %v5014_v58 = vmin.f32 %v11354_v55, 20.0  ;;  %6985 = vpow2.f32 %v5078_v9  ;;  %v11384_v14 = vpop.eup %6965 }
 0x63b   : > { %v4867_v13 = vpop.f32.mrf.mxu1  ;;  %v4708_v39 = vpop.f32.mrf.mxu0  ;;  %v5013_v35 = vmin.f32 %v11358_v8, 20.0  ;;  %6987 = vpow2.f32 %v5082_v22  ;;  %v5090_v18 = vmul.f32 1.442695, %v5011_v62  ;;  %v5092_v25 = vmul.f32 1.442695, %v5012_v31  ;;  %13885 = vst [vmem:[#allocation32_spill] sm:$0xff] %v11384_v14 }
 0x63c   : > { %13879 = vst [vmem:[#allocation81_spill] sm:$0xff] %v11362_v10  ;;  %13880 = vst [vmem:[#allocation94_spill] sm:$0xff] %v11366_v7  ;;  %v11370_v63 = vadd.f32 %v4867_v13, %v11302_v54  ;;  %v11374_v24 = vadd.f32 %v4708_v39, %v11302_v54  ;;  %v5015_v30 = vmin.f32 %v11362_v10, 20.0  ;;  %6989 = vpow2.f32 %v5084_v19 }
 0x63d   : > { %v4869_v0 = vpop.f32.mrf.mxu1  ;;  %v4712_v33 = vpop.f32.mrf.mxu0  ;;  %v5016_v16 = vmin.f32 %v11366_v7, 20.0  ;;  %6991 = vpow2.f32 %v5088_v51  ;;  %v5096_v50 = vmul.f32 1.442695, %v5014_v58  ;;  %v5094_v4 = vmul.f32 1.442695, %v5013_v35 }
 0x63e   : > { %13881 = vst [vmem:[#allocation50_spill] sm:$0xff] %v11370_v63  ;;  %13882 = vst [vmem:[#allocation90_spill] sm:$0xff] %v11374_v24  ;;  %v11378_v53 = vadd.f32 %v4869_v0, %v11302_v54  ;;  %v11382_v27 = vadd.f32 %v4712_v33, %v11296_v2  ;;  %v5018_v13 = vmin.f32 %v11370_v63, 20.0  ;;  %v11390_v54 = vpop.eup %6967  ;;  %6993 = vpow2.f32 %v5086_v45 }
 0x63f   : > { %v4873_v38 = vpop.f32.mrf.mxu1  ;;  %v4714_v56 = vpop.f32.mrf.mxu0  ;;  %13887 = vst [vmem:[#allocation80_spill] sm:$0xff] %v11390_v54  ;;  %v5017_v34 = vmin.f32 %v11374_v24, 20.0  ;;  %6995 = vpow2.f32 %v5090_v18  ;;  %v5098_v22 = vmul.f32 1.442695, %v5015_v30 }
 0x640   : > { %13883 = vst [vmem:[#allocation93_spill] sm:$0xff] %v11378_v53  ;;  %13884 = vst [vmem:[#allocation89_spill] sm:$0xff] %v11382_v27  ;;  %v11388_v39 = vadd.f32 %v4873_v38, %v11296_v2  ;;  %v11394_v9 = vadd.f32 %v4714_v56, %v11296_v2  ;;  %v11396_v33 = vpop.eup %6969  ;;  %v5019_v62 = vmin.f32 %v11378_v53, 20.0  ;;  %6997 = vpow2.f32 %v5092_v25 }
 0x641   : > { %v4875_v40 = vpop.f32.mrf.mxu1  ;;  %v4718_v17 = vpop.f32.mrf.mxu0  ;;  %13889 = vst [vmem:[#allocation96_spill] sm:$0xff] %v11396_v33  ;;  %v5100_v38 = vmul.f32 1.442695, %v5016_v16  ;;  %v5020_v51 = vmin.f32 %v11382_v27, 20.0  ;;  %6999 = vpow2.f32 %v5096_v50  ;;  %v5104_v18 = vmul.f32 1.442695, %v5018_v13 }
 0x642   : > { %13886 = vst [vmem:[#allocation60_spill] sm:$0xff] %v11388_v39  ;;  %13888 = vst [vmem:[#allocation64_spill] sm:$0xff] %v11394_v9  ;;  %v11400_v19 = vadd.f32 %v4875_v40, %v11296_v2  ;;  %v11402_v31 = vpop.eup %6971  ;;  %v11406_v56 = vadd.f32 %v4718_v17, %v11298_v48  ;;  %v5022_v30 = vmin.f32 %v11388_v39, 20.0  ;;  %7001 = vpow2.f32 %v5094_v4 }
 0x643   : > { %v4879_v57 = vpop.f32.mrf.mxu1  ;;  %v4720_v49 = vpop.f32.mrf.mxu0  ;;  %13891 = vst [vmem:[#allocation61_spill] sm:$0xff] %v11402_v31  ;;  %v5102_v25 = vmul.f32 1.442695, %v5017_v34  ;;  %v5021_v16 = vmin.f32 %v11394_v9, 20.0  ;;  %7003 = vpow2.f32 %v5098_v22  ;;  %v5106_v50 = vmul.f32 1.442695, %v5019_v62 }
 0x644   : > { %13890 = vst [vmem:[#allocation97_spill] sm:$0xff] %v11400_v19  ;;  %13892 = vst [vmem:[#allocation76_spill] sm:$0xff] %v11406_v56  ;;  %v11408_v35 = vpop.eup %6973  ;;  %v11412_v2 = vadd.f32 %v4879_v57, %v11298_v48  ;;  %v11418_v17 = vadd.f32 %v4720_v49, %v11298_v48  ;;  %v5023_v13 = vmin.f32 %v11400_v19, 20.0  ;;  %7005 = vpow2.f32 %v5100_v38 }
 0x645   : > { %v4881_v21 = vpop.f32.mrf.mxu1  ;;  %v4724_v0 = vpop.f32.mrf.mxu0  ;;  %13893 = vst [vmem:[#allocation20_spill] sm:$0xff] %v11408_v35  ;;  %v5108_v4 = vmul.f32 1.442695, %v5020_v51  ;;  %v5024_v34 = vmin.f32 %v11406_v56, 20.0  ;;  %v5112_v22 = vmul.f32 1.442695, %v5022_v30 }
 0x646   : > { %13894 = vst [vmem:[#allocation88_spill] sm:$0xff] %v11412_v2  ;;  %v11414_v40 = vpop.eup %6975  ;;  %13896 = vst [vmem:[#allocation95_spill] sm:$0xff] %v11418_v17  ;;  %v11424_v57 = vadd.f32 %v4881_v21, %v11298_v48  ;;  %v11430_v49 = vadd.f32 %v4724_v0, %v11292_v46  ;;  %7007 = vpow2.f32 %v5104_v18  ;;  %v5026_v62 = vmin.f32 %v11412_v2, 20.0 }
 0x647   : > { %v4885_v58 = vpop.f32.mrf.mxu1  ;;  %v4726_v45 = vpop.f32.mrf.mxu0  ;;  %13895 = vst [vmem:[#allocation77_spill] sm:$0xff] %v11414_v40  ;;  %v5110_v21 = vmul.f32 1.442695, %v5021_v16  ;;  %v5025_v38 = vmin.f32 %v11418_v17, 20.0  ;;  %v5114_v14 = vmul.f32 1.442695, %v5023_v13 }
 0x648   : > { %v11420_v20 = vpop.eup %6977  ;;  %13898 = vst [vmem:[#allocation56_spill] sm:$0xff] %v11424_v57  ;;  %13900 = vst [vmem:[#allocation42_spill] sm:$0xff] %v11430_v49  ;;  %7009 = vpow2.f32 %v5102_v25  ;;  %v11441_v51 = vadd.f32 %v4885_v58, %v11292_v46  ;;  %v5027_v18 = vmin.f32 %v11424_v57, 20.0  ;;  %v11449_v30 = vadd.f32 %v4726_v45, %v11292_v46 }
 0x649   : > { %v4887_v23 = vpop.f32.mrf.mxu1  ;;  %v4730_v15 = vpop.f32.mrf.mxu0  ;;  %13897 = vst [vmem:[#allocation54_spill] sm:$0xff] %v11420_v20  ;;  %v5116_v25 = vmul.f32 1.442695, %v5024_v34  ;;  %v5028_v16 = vmin.f32 %v11430_v49, 20.0  ;;  %v5118_v32 = vmul.f32 1.442695, %v5025_v38 }
 0x64a   : > { %v11426_v47 = vpop.eup %6979  ;;  %13903 = vst [vmem:[#allocation40_spill] sm:$0xff] %v11441_v51  ;;  %7011 = vpow2.f32 %v5106_v50  ;;  %13905 = vst [vmem:[#allocation21_spill] sm:$0xff] %v11449_v30  ;;  %v11455_v58 = vadd.f32 %v4887_v23, %v11292_v46  ;;  %v5120_v50 = vmul.f32 1.442695, %v5026_v62  ;;  %v11460_v13 = vadd.f32 %v4730_v15, %v11294_v37 }
 0x64b   : > { %13899 = vst [vmem:[#allocation73_spill] sm:$0xff] %v11426_v47  ;;  %v11432_v5 = vpop.f32.mrf.mxu1  ;;  %v4732_v41 = vpop.f32.mrf.mxu0  ;;  %v5122_v44 = vmul.f32 1.442695, %v5027_v18  ;;  %v5124_v15 = vmul.f32 1.442695, %v5028_v16 }
 0x64c   : > { %v11434_v42 = vpop.eup %6981  ;;  %7013 = vpow2.f32 %v5108_v4  ;;  %13907 = vst [vmem:[#allocation34_spill] sm:$0xff] %v11455_v58  ;;  %13909 = vst [vmem:[#allocation92_spill] sm:$0xff] %v11460_v13  ;;  %v5030_v4 = vmin.f32 %v11441_v51, 20.0  ;;  %v11466_v34 = vadd.f32 %v4732_v41, %v11294_v37  ;;  %v5032_v41 = vmin.f32 %v11460_v13, 20.0 }
 0x64d   : > { %13901 = vst [vmem:[#allocation82_spill] sm:$0xff] %v11434_v42  ;;  %v11437_v48 = vpop.eup %6983  ;;  %v11443_v0 = vpop.f32.mrf.mxu1  ;;  %7015 = vpow2.f32 %v5112_v22  ;;  %v5029_v22 = vmin.f32 %v11449_v30, 20.0 }
 0x64e   : > { %13902 = vst [vmem:[#allocation51_spill] sm:$0xff] %v11437_v48  ;;  %v4736_v54 = vpop.f32.mrf.mxu0  ;;  %v11445_v36 = vpop.eup %6985  ;;  %7017 = vpow2.f32 %v5110_v21  ;;  %13911 = vst [vmem:[#allocation72_spill] sm:$0xff] %v11466_v34  ;;  %v5031_v21 = vmin.f32 %v11455_v58, 20.0  ;;  %v5033_v16 = vmin.f32 %v11466_v34, 20.0 }
 0x64f   : > { %13904 = vst [vmem:[#allocation19_spill] sm:$0xff] %v11445_v36  ;;  %v11451_v31 = vpop.eup %6987  ;;  %v4897_v33 = vpop.f32.mrf.mxu1  ;;  %7019 = vpow2.f32 %v5114_v14  ;;  %v11480_v20 = vadd.f32 %v4736_v54, %v11288_v60  ;;  %v5126_v54 = vmul.f32 1.442695, %v5029_v22 }
 0x650   : > { %13906 = vst [vmem:[#allocation91_spill] sm:$0xff] %v11451_v31  ;;  %v4738_v52 = vpop.f32.mrf.mxu0  ;;  %v11457_v40 = vpop.eup %6989  ;;  %7021 = vpow2.f32 %v5116_v25  ;;  %v11483_v14 = vadd.f32 %v4897_v33, %v11288_v60  ;;  %v5128_v25 = vmul.f32 1.442695, %v5030_v4  ;;  %v5130_v42 = vmul.f32 1.442695, %v5031_v21 }
 0x651   : > { %13908 = vst [vmem:[#allocation14_spill] sm:$0xff] %v11457_v40  ;;  %v11462_v45 = vpop.eup %6991  ;;  %v4899_v46 = vpop.f32.mrf.mxu1  ;;  %7023 = vpow2.f32 %v5120_v50  ;;  %13915 = vst [vmem:[#allocation26_spill] sm:$0xff] %v11480_v20  ;;  %v11489_v12 = vadd.f32 %v4738_v52, %v11288_v60  ;;  %v5036_v28 = vmin.f32 %v11480_v20, 20.0  ;;  %v5132_v31 = vmul.f32 1.442695, %v5032_v41 }
 0x652   : > { %13910 = vst [vmem:[#allocation6_spill] sm:$0xff] %v11462_v45  ;;  %v4742_v23 = vpop.f32.mrf.mxu0  ;;  %v11468_v35 = vpop.eup %6993  ;;  %13916 = vst [vmem:[#allocation28_spill] sm:$0xff] %v11483_v14  ;;  %7025 = vpow2.f32 %v5118_v32  ;;  %v5038_v32 = vmin.f32 %v11483_v14, 20.0  ;;  %v11505_v10 = vadd.f32 %v4899_v46, %v11288_v60 }
 0x653   : > { %13912 = vst [vmem:[#allocation38_spill] sm:$0xff] %v11468_v35  ;;  %v11471_v62 = vpop.eup %6995  ;;  %v4903_v38 = vpop.f32.mrf.mxu1  ;;  %13918 = vst [vmem:[#allocation69_spill] sm:$0xff] %v11489_v12  ;;  %7027 = vpow2.f32 %v5122_v44  ;;  %v5037_v36 = vmin.f32 %v11489_v12, 20.0  ;;  %v11508_v44 = vadd.f32 %v4742_v23, %v11290_v29  ;;  %v5140_v41 = vmul.f32 1.442695, %v5036_v28 }
 0x654   : > { %13913 = vst [vmem:[#allocation62_spill] sm:$0xff] %v11471_v62  ;;  %v11474_v6 = vpop.f32.mrf.mxu0  ;;  %v11476_v47 = vpop.eup %6997  ;;  %7029 = vpow2.f32 %v5124_v15  ;;  %13922 = vst [vmem:[#allocation87_spill] sm:$0xff] %v11505_v10  ;;  %v5134_v15 = vmul.f32 1.442695, %v5033_v16  ;;  %v11513_v21 = vadd.f32 %v4903_v38, %v11290_v29  ;;  %v5039_v61 = vmin.f32 %v11505_v10, 20.0 }
 0x655   : > { %13914 = vst [vmem:[#allocation66_spill] sm:$0xff] %v11476_v47  ;;  %v11485_v18 = vpop.eup %6999  ;;  %v11491_v48 = vpop.f32.mrf.mxu1  ;;  %13923 = vst [vmem:[#allocation39_spill] sm:$0xff] %v11508_v44  ;;  %7031 = vpow2.f32 %v5128_v25  ;;  %v5040_v60 = vmin.f32 %v11508_v44, 20.0  ;;  %v5144_v23 = vmul.f32 1.442695, %v5038_v32 }
 0x656   : > { %13917 = vst [vmem:[#allocation67_spill] sm:$0xff] %v11485_v18  ;;  %v4748_v50 = vpop.f32.mrf.mxu0  ;;  %v11493_v59 = vpop.eup %7001  ;;  %13925 = vst [vmem:[#allocation37_spill] sm:$0xff] %v11513_v21  ;;  %7033 = vpow2.f32 %v5126_v54  ;;  %v5042_v25 = vmin.f32 %v11513_v21, 20.0  ;;  %v5142_v62 = vmul.f32 1.442695, %v5037_v36 }
 0x657   : > { %13919 = vst [vmem:[#allocation30_spill] sm:$0xff] %v11493_v59  ;;  %v11496_v33 = vpop.eup %7003  ;;  %v11499_v4 = vpop.f32.mrf.mxu1  ;;  %7035 = vpow2.f32 %v5130_v42  ;;  %v5146_v28 = vmul.f32 1.442695, %v5039_v61  ;;  %v11527_v54 = vadd.f32 %v4748_v50, %v11284_v26  ;;  %v5148_v42 = vmul.f32 1.442695, %v5040_v60 }
 0x658   : > { %13920 = vst [vmem:[#allocation17_spill] sm:$0xff] %v11496_v33  ;;  %v4750_v3 = vpop.f32.mrf.mxu0  ;;  %v11501_v52 = vpop.eup %7005  ;;  %7037 = vpow2.f32 %v5132_v31 }
 0x659   : > { %13921 = vst [vmem:[#allocation59_spill] sm:$0xff] %v11501_v52  ;;  %v11510_v22 = vpop.eup %7007  ;;  %v4911_v45 = vpop.f32.mrf.mxu1  ;;  %7039 = vpow2.f32 %v5134_v15  ;;  %13930 = vst [vmem:[#allocation23_spill] sm:$0xff] %v11527_v54  ;;  %v11532_v32 = vadd.f32 %v4750_v3, %v11284_v26  ;;  %v5152_v15 = vmul.f32 1.442695, %v5042_v25  ;;  %v5044_v61 = vmin.f32 %v11527_v54, 20.0 }
 0x65a   : > { %13924 = vst [vmem:[#allocation25_spill] sm:$0xff] %v11510_v22  ;;  %v4754_v55 = vpop.f32.mrf.mxu0  ;;  %v11515_v40 = vpop.eup %7009  ;;  %7041 = vpow2.f32 %v5140_v41  ;;  %v11535_v24 = vadd.f32 %v4911_v45, %v11284_v26 }
 0x65b   : > { %13926 = vst [vmem:[#allocation24_spill] sm:$0xff] %v11515_v40  ;;  %v11519_v46 = vpop.eup %7011  ;;  %v4915_v16 = vpop.f32.mrf.mxu1  ;;  %7043 = vpow2.f32 %v5144_v23  ;;  %v5156_v41 = vmul.f32 1.442695, %v5044_v61  ;;  %v5045_v3 = vmin.f32 %v11532_v32, 20.0  ;;  %v11549_v23 = vadd.f32 %v4754_v55, %v11286_v11 }
 0x65c   : > { %13927 = vst [vmem:[#allocation63_spill] sm:$0xff] %v11519_v46  ;;  %v4756_v8 = vpop.f32.mrf.mxu0  ;;  %v11522_v38 = vpop.eup %7013  ;;  %13932 = vst [vmem:[#allocation12_spill] sm:$0xff] %v11535_v24  ;;  %7045 = vpow2.f32 %v5142_v62  ;;  %v5047_v45 = vmin.f32 %v11535_v24, 20.0  ;;  %v11552_v25 = vadd.f32 %v4915_v16, %v11286_v11  ;;  %vm4981_vm12 = vcmp.gt.f32.partialorder %v11532_v32, 20.0 }
 0x65d   : > { %13928 = vst [vmem:[#allocation41_spill] sm:$0xff] %v11522_v38  ;;  %v11524_v35 = vpop.eup %7015  ;;  %v4917_v53 = vpop.f32.mrf.mxu1  ;;  %7047 = vpow2.f32 %v5146_v28  ;;  %v5158_v62 = vmul.f32 1.442695, %v5045_v3  ;;  %v11557_v61 = vadd.f32 %v4756_v8, %v11286_v11 }
 0x65e   : > { %13929 = vst [vmem:[#allocation46_spill] sm:$0xff] %v11524_v35  ;;  %v11529_v18 = vpop.eup %7017  ;;  %v4760_v31 = vpop.f32.mrf.mxu0  ;;  %7049 = vpow2.f32 %v5148_v42  ;;  %13937 = vst [vmem:[#allocation44_spill] sm:$0xff] %v11552_v25  ;;  %v5162_v28 = vmul.f32 1.442695, %v5047_v45  ;;  %v5048_v42 = vmin.f32 %v11549_v23, 20.0  ;;  %v5050_v55 = vmin.f32 %v11552_v25, 20.0 }
 0x65f   : > { %13931 = vst [vmem:[#allocation35_spill] sm:$0xff] %v11529_v18  ;;  %v11537_v36 = vpop.eup %7019  ;;  %v4921_v50 = vpop.f32.mrf.mxu1  ;;  %7051 = vpow2.f32 %v5152_v15  ;;  %v5049_v16 = vmin.f32 %v11557_v61, 20.0  ;;  %v11565_v22 = vadd.f32 %v4917_v53, %v11286_v11  ;;  %v11570_v8 = vadd.f32 %v4760_v31, %v11280_v1 }
 0x660   : > { %13933 = vst [vmem:[#allocation84_spill] sm:$0xff] %v11537_v36  ;;  %v11540_v63 = vpop.eup %7021  ;;  %v4762_v7 = vpop.f32.mrf.mxu0  ;;  %7053 = vpow2.f32 %v5156_v41  ;;  %v5164_v3 = vmul.f32 1.442695, %v5048_v42  ;;  %v11573_v45 = vadd.f32 %v4921_v50, %v11280_v1  ;;  %v11585_v31 = vadd.f32 %v11474_v6, %v11290_v29 }
 0x661   : > { %13934 = vst [vmem:[#allocation13_spill] sm:$0xff] %v11540_v63  ;;  %v11542_v47 = vpop.eup %7023  ;;  %v4923_v59 = vpop.f32.mrf.mxu1  ;;  %7055 = vpow2.f32 %v5158_v62  ;;  %v5168_v62 = vmul.f32 1.442695, %v5050_v55  ;;  %v5166_v52 = vmul.f32 1.442695, %v5049_v16  ;;  %v5051_v27 = vmin.f32 %v11565_v22, 20.0 }
 0x662   : > { %13935 = vst [vmem:[#allocation52_spill] sm:$0xff] %v11542_v47  ;;  %v11546_v60 = vpop.eup %7025  ;;  %7057 = vpow2.f32 %v5162_v28  ;;  %v4766_v41 = vpop.f32.mrf.mxu0  ;;  %v11579_v11 = vadd.f32 %v4762_v7, %v11280_v1  ;;  %13943 = vst [vmem:[#allocation74_spill] sm:$0xff] %v11585_v31  ;;  %v11589_v50 = vadd.f32 %v11491_v48, %v11290_v29  ;;  %v5052_v28 = vmin.f32 %v11570_v8, 20.0 }
 0x663   : > { %13936 = vst [vmem:[#allocation22_spill] sm:$0xff] %v11546_v60  ;;  %v11554_v33 = vpop.eup %7027  ;;  %v4927_v53 = vpop.f32.mrf.mxu1  ;;  %7059 = vpow2.f32 %v5164_v3  ;;  %v11596_v7 = vadd.f32 %v11499_v4, %v11284_v26  ;;  %v5054_v55 = vmin.f32 %v11573_v45, 20.0  ;;  %v11603_v29 = vadd.f32 %v4923_v59, %v11280_v1 }
 0x664   : > { %13938 = vst [vmem:[#allocation18_spill] sm:$0xff] %v11554_v33  ;;  %v11559_v19 = vpop.eup %7029  ;;  %13944 = vst [vmem:[#allocation45_spill] sm:$0xff] %v11589_v50  ;;  %7061 = vpow2.f32 %v5168_v62  ;;  %v5053_v16 = vmin.f32 %v11579_v11, 20.0  ;;  %v5172_v46 = vmul.f32 1.442695, %v5052_v28  ;;  %v11606_v48 = vadd.f32 %v4766_v41, %v11282_v43  ;;  %v4768_v3 = vpop.f32.mrf.mxu0 }
 0x665   : > { %13939 = vst [vmem:[#allocation27_spill] sm:$0xff] %v11559_v19  ;;  %v11567_v15 = vpop.eup %7031  ;;  %13946 = vst [vmem:[#allocation49_spill] sm:$0xff] %v11596_v7  ;;  %7063 = vpow2.f32 %v5166_v52  ;;  %v5170_v26 = vmul.f32 1.442695, %v5051_v27  ;;  %v5176_v4 = vmul.f32 1.442695, %v5054_v55  ;;  %v11611_v57 = vadd.f32 %v4927_v53, %v11282_v43  ;;  %v4929_v35 = vpop.f32.mrf.mxu1 }
 0x666   : > { %13940 = vst [vmem:[#allocation53_spill] sm:$0xff] %v11567_v15  ;;  %v11575_v39 = vpop.eup %7033  ;;  %v5174_v62 = vmul.f32 1.442695, %v5053_v16  ;;  %v5041_v52 = vmin.f32 %v11585_v31, 20.0  ;;  %7065 = vpow2.f32 %v5172_v46  ;;  %v5055_v1 = vmin.f32 %v11603_v29, 20.0 }
 0x667   : > { %13941 = vst [vmem:[#allocation55_spill] sm:$0xff] %v11575_v39  ;;  %v11581_v9 = vpop.eup %7035  ;;  %v5056_v59 = vmin.f32 %v11606_v48, 20.0  ;;  %v5043_v28 = vmin.f32 %v11589_v50, 20.0  ;;  %7067 = vpow2.f32 %v5176_v4  ;;  %v5058_v27 = vmin.f32 %v11611_v57, 20.0 }
 0x668   : > { %13942 = vst [vmem:[#allocation10_spill] sm:$0xff] %v11581_v9  ;;  %v11592_v42 = vpop.eup %7037  ;;  %v11623_v53 = vadd.f32 %v4768_v3, %v11282_v43  ;;  %7069 = vpow2.f32 %v5174_v62  ;;  %v5178_v16 = vmul.f32 1.442695, %v5055_v1  ;;  %v11628_v46 = vadd.f32 %v4929_v35, %v11282_v43 }
 0x669   : > { %13945 = vst [vmem:[#allocation33_spill] sm:$0xff] %v11592_v42  ;;  %v11600_v6 = vpop.eup %7039  ;;  %v5180_v38 = vmul.f32 1.442695, %v5056_v59  ;;  %v5046_v36 = vmin.f32 %v11596_v7, 20.0  ;;  %7071 = vpow2.f32 %v5170_v26  ;;  %v5184_v18 = vmul.f32 1.442695, %v5058_v27 }
 0x66a   : > { %13947 = vst [vmem:[#allocation31_spill] sm:$0xff] %v11600_v6  ;;  %v11608_v40 = vpop.eup %7041  ;;  %v5057_v4 = vmin.f32 %v11623_v53, 20.0  ;;  %v11638_v3 = vadd.f32 %v11432_v5, %v11294_v37  ;;  %7073 = vpow2.f32 %v5178_v16  ;;  %v5059_v62 = vmin.f32 %v11628_v46, 20.0 }
 0x66b   : > { %13948 = vst [vmem:[#allocation47_spill] sm:$0xff] %v11608_v40  ;;  %v11613_v2 = vpop.eup %7043  ;;  %v11645_v43 = vadd.f32 %v11443_v0, %v11294_v37  ;;  %v5150_v35 = vmul.f32 1.442695, %v5041_v52  ;;  %7075 = vpow2.f32 %v5180_v38  ;;  %v5154_v27 = vmul.f32 1.442695, %v5043_v28 }
 0x66c   : > { %13949 = vst [vmem:[#allocation36_spill] sm:$0xff] %v11613_v2  ;;  %v11618_v41 = vpop.eup %7045  ;;  %13954 = vst [vmem:[#allocation71_spill] sm:$0xff] %v11638_v3  ;;  %v5182_v26 = vmul.f32 1.442695, %v5057_v4  ;;  %7077 = vpow2.f32 %v5184_v18  ;;  %v5186_v51 = vmul.f32 1.442695, %v5059_v62 }
 0x66d   : > { %13950 = vst [vmem:[#allocation57_spill] sm:$0xff] %v11618_v41  ;;  %v11625_v55 = vpop.eup %7047  ;;  %13955 = vst [vmem:[#allocation65_spill] sm:$0xff] %v11645_v43  ;;  %v5160_v5 = vmul.f32 1.442695, %v5046_v36  ;;  %v5034_v37 = vmin.f32 %v11638_v3, 20.0  ;;  %v5035_v0 = vmin.f32 %v11645_v43, 20.0 }
 0x66e   : > { %13951 = vst [vmem:[#allocation43_spill] sm:$0xff] %v11625_v55  ;;  %v11630_v56 = vpop.eup %7049  ;;  %7079 = vpow2.f32 %v5182_v26  ;;  %vm4985_vm11 = vcmp.gt.f32.partialorder %v11557_v61, 20.0  ;;  %vm4988_vm3 = vcmp.gt.f32.partialorder %v11570_v8, 20.0  ;;  %vm4989_vm4 = vcmp.gt.f32.partialorder %v11579_v11, 20.0 }
 0x66f   : > { %13952 = vst [vmem:[#allocation11_spill] sm:$0xff] %v11630_v56  ;;  %v11634_v17 = vpop.eup %7051  ;;  %7081 = vpow2.f32 %v5186_v51  ;;  %v11666_v62 = vmul.f32 1.442695, %v5034_v37  ;;  %vm4993_vm7 = vcmp.gt.f32.partialorder %v11623_v53, 20.0  ;;  %vm4995_vm13 = vcmp.gt.f32.partialorder %v11628_v46, 20.0 }
 0x670   : > { %13953 = vst [vmem:[#allocation16_spill] sm:$0xff] %v11634_v17  ;;  %v11641_v1 = vpop.eup %7053  ;;  %7083 = vpow2.f32 %v5150_v35  ;;  %v11668_v35 = vmul.f32 1.442695, %v5035_v0  ;;  %vm4991_vm15 = vcmp.gt.f32.partialorder %v11603_v29, 20.0 }
 0x671   : > { %v11647_v59 = vpop.eup %7055  ;;  %7085 = vpow2.f32 %v5154_v27  ;;  %13956 = vst [vmem:[#allocation29_spill] sm:$0xff] %v11666_v62 }
 0x672   : > { %v11649_v47 = vpop.eup %7057  ;;  %v5629_v16 = vadd.f32 1.0, %v11647_v59  ;;  %v5632_v18 = vmul.f32 -0.5, %v11647_v59  ;;  %7087 = vpow2.f32 %v5160_v5  ;;  %13957 = vst [vmem:[#allocation15_spill] sm:$0xff] %v11668_v35 }
 0x673   : > { %v11652_v58 = vpop.eup %7059  ;;  %v5647_v38 = vadd.f32 1.0, %v11649_v47 }
 0x674   : > { %v11657_v52 = vpop.eup %7061  ;;  %v5656_v51 = vadd.f32 1.0, %v11652_v58  ;;  %7089 = vlog2.f32 %v5629_v16  ;;  %v5633_v63 = vadd.f32 1.0, %v5632_v18  ;;  %v11678_v16 = vmul.f32 -0.5, %v11649_v47 }
 0x675   : > { %v11660_v28 = vpop.eup %7063  ;;  %7091 = vlog2.f32 %v5647_v38  ;;  %v11686_v18 = vadd.f32 1.0, %v11641_v1  ;;  %v11692_v30 = vadd.f32 1.0, %v11657_v52  ;;  %v11695_v37 = vmul.f32 -0.5, %v11657_v52 }
 0x676   : > { %v5665_v36 = vadd.f32 1.0, %v11660_v28  ;;  %v11664_v4 = vpop.eup %7065  ;;  %v11700_v15 = vmul.f32 %v11647_v59, %v5633_v63 }
 0x677   : > { %v11670_v26 = vpop.eup %7067  ;;  %v5692_v27 = vadd.f32 1.0, %v11664_v4  ;;  %v5695_v9 = vmul.f32 -0.5, %v11664_v4  ;;  %v5698_v60 = vand.u32 2147483647, %v11664_v4 }
 0x678   : > { %7093 = vlog2.f32 %v5665_v36  ;;  %v11674_v49 = vpop.eup %7069  ;;  %v5710_v33 = vadd.f32 1.0, %v11670_v26  ;;  %v5659_v36 = vmul.f32 -0.5, %v11652_v58 }
 0x679   : > { %7095 = vlog2.f32 %v5656_v51  ;;  %v11681_v0 = vpop.eup %7071  ;;  %v5701_v38 = vadd.f32 1.0, %v11674_v49  ;;  %v5707_v55 = vand.u32 2147483647, %v11674_v49  ;;  %v5696_v24 = vadd.f32 1.0, %v5695_v9 }
 0x67a   : > { %7097 = vlog2.f32 %v5692_v27  ;;  %v11688_v5 = vpop.eup %7073  ;;  %v5668_v27 = vmul.f32 -0.5, %v11660_v28  ;;  %v5683_v34 = vadd.f32 1.0, %v11681_v0  ;;  %v11707_v19 = vmul.f32 -0.5, %v11681_v0 }
 0x67b   : > { %7099 = vlog2.f32 %v5710_v33  ;;  %v7076_v3 = vpop.eup %7075  ;;  %v11712_v39 = vadd.f32 1.0, %v5659_v36  ;;  %v5719_v21 = vadd.f32 1.0, %v11688_v5  ;;  %v5713_v36 = vmul.f32 -0.5, %v11670_v26 }
 0x67c   : > { %7101 = vlog2.f32 %v5701_v38  ;;  %v11702_v43 = vpop.eup %7077  ;;  %v5728_v33 = vadd.f32 1.0, %v7076_v3  ;;  %v5704_v38 = vmul.f32 -0.5, %v11674_v49  ;;  %v5731_v42 = vmul.f32 -0.5, %v7076_v3 }
 0x67d   : > { %v7080_v13 = vpop.eup %7079  ;;  %v5746_v51 = vadd.f32 1.0, %v11702_v43  ;;  %v5734_v44 = vand.u32 2147483647, %v7076_v3  ;;  %v5749_v7 = vmul.f32 -0.5, %v11702_v43  ;;  %vm11732_vm10 = vcmp.lt.f32.partialorder %v5698_v60, 0.0004427343 }
 0x67e   : > { %v7082_v63 = vpop.eup %7081  ;;  %v5737_v14 = vadd.f32 1.0, %v7080_v13  ;;  %7103 = vlog2.f32 %v5728_v33  ;;  %v5740_v10 = vmul.f32 -0.5, %v7080_v13  ;;  %v5705_v40 = vadd.f32 1.0, %v5704_v38 }
 0x67f   : > { %v11715_v20 = vpop.eup %7083  ;;  %v5755_v12 = vadd.f32 1.0, %v7082_v63  ;;  %v5758_v6 = vmul.f32 -0.5, %v7082_v63  ;;  %v5732_v31 = vadd.f32 1.0, %v5731_v42  ;;  %v5743_v17 = vand.u32 2147483647, %v7080_v13 }
 0x680   : > { %13958 = vst [vmem:[#allocation9_spill] sm:$0xff] %v11715_v20  ;;  %v11718_v2 = vpop.eup %7085  ;;  %7105 = vlog2.f32 %v5737_v14  ;;  %v5722_v14 = vmul.f32 -0.5, %v11688_v5  ;;  %v5741_v62 = vadd.f32 1.0, %v5740_v10  ;;  %v5669_v42 = vadd.f32 1.0, %v5668_v27 }
 0x681   : > { %13959 = vst [vmem:[#allocation3_spill] sm:$0xff] %v11718_v2  ;;  %v11723_v33 = vpop.eup %7087  ;;  %7107 = vlog2.f32 %v5755_v12  ;;  %v5759_v50 = vadd.f32 1.0, %v5758_v6  ;;  %v5761_v12 = vand.u32 2147483647, %v7082_v63  ;;  %v5752_v25 = vand.u32 2147483647, %v11702_v43 }
 0x682   : > { %v11726_v41 = vpop.eup %7089  ;;  %7109 = vlog2.f32 %v5746_v51  ;;  %v11740_v10 = vmul.f32 %v11674_v49, %v5705_v40  ;;  %vm11742_vm2 = vcmp.lt.f32.partialorder %v5707_v55, 0.0004427343  ;;  %v5714_v9 = vadd.f32 1.0, %v5713_v36 }
 0x683   : > { %v11730_v54 = vpop.eup %7091  ;;  %7111 = vlog2.f32 %v5719_v21  ;;  %v11746_v6 = vmul.f32 %v7076_v3, %v5732_v31  ;;  %vm11748_vm5 = vcmp.lt.f32.partialorder %v5734_v44, 0.0004427343  ;;  %v5750_v27 = vadd.f32 1.0, %v5749_v7 }
 0x684   : > { %7113 = vlog2.f32 %v5683_v34  ;;  %v5742_v40 = vmul.f32 %v7080_v13, %v5741_v62  ;;  %vm11753_vm6 = vcmp.lt.f32.partialorder %v5743_v17, 0.0004427343  ;;  %v11757_v55 = vmul.f32 %v7082_v63, %v5759_v50 }
 0x685   : > { %v7094_v56 = vpop.eup %7093  ;;  %v5723_v36 = vadd.f32 1.0, %v5722_v14  ;;  %vm11760_vm8 = vcmp.lt.f32.partialorder %v5761_v12, 0.0004427343  ;;  %v5697_v34 = vmul.f32 %v11664_v4, %v5696_v24  ;;  %v5670_v17 = vmul.f32 %v11660_v28, %v5669_v42 }
 0x686   : > { %v7096_v51 = vpop.eup %7095  ;;  %v5667_v35 = vmul.f32 0.6931472, %v7094_v56  ;;  %v5725_v56 = vand.u32 2147483647, %v11688_v5  ;;  %v13970_v13 = vand.u32 2147483647, %v11660_v28  ;;  %7115 = vlog2.f32 %v11692_v30 }
 0x687   : > { %v7098_v60 = vpop.eup %7097  ;;  %vm11775_vm14 = vcmp.lt.f32.partialorder %v5752_v25, 0.0004427343  ;;  %v5687_v63 = vadd.f32 1.0, %v11707_v19  ;;  %v11780_v24 = vmul.f32 0.6931472, %v7096_v51  ;;  %v5751_v28 = vmul.f32 %v11702_v43, %v5750_v27 }
 0x688   : > { %v7100_v20 = vpop.eup %7099  ;;  %v5694_v31 = vmul.f32 0.6931472, %v7098_v60  ;;  %vm11769_vm9 = vcmp.lt.f32.partialorder %v13970_v13, 0.0004427343  ;;  %v5715_v14 = vmul.f32 %v11670_v26, %v5714_v9  ;;  %v13975_v12 = vand.u32 2147483647, %v11647_v59 }
 0x689   : > { %v7102_v3 = vpop.eup %7101  ;;  %v5712_v4 = vmul.f32 0.6931472, %v7100_v20  ;;  %v5673_v25 = vsel %vm11769_vm9, %v5670_v17, %v5667_v35  ;;  %v5724_v20 = vmul.f32 %v11688_v5, %v5723_v36  ;;  %v13978_v43 = vand.u32 2147483647, %v11670_v26  ;;  %v14001_v60 = vld [vmem:[#allocation12_spill] sm:$0xff] }
 0x68a   : > { %v5703_v62 = vmul.f32 0.6931472, %v7102_v3  ;;  %vm11790_vm0 = vcmp.lt.f32.partialorder %v13975_v12, 0.0004427343  ;;  %v5700_v30 = vsel %vm11732_vm10, %v5697_v34, %v5694_v31  ;;  %v5661_v35 = vmul.f32 %v11652_v58, %v11712_v39 }
 0x68b   : > { %v7104_v19 = vpop.eup %7103  ;;  %vm11802_vm9 = vcmp.lt.f32.partialorder %v13978_v43, 0.0004427343  ;;  %vm11811_vm1 = vcmp.lt.f32.partialorder %v5725_v56, 0.0004427343  ;;  %v13983_v5 = vand.u32 2147483647, %v11652_v58  ;;  %v5817_v39 = vsel %vm4985_vm11, %v11557_v61, %v5673_v25 }
 0x68c   : > { %v5730_v51 = vmul.f32 0.6931472, %v7104_v19  ;;  %v5709_v9 = vsel %vm11742_vm2, %v11740_v10, %v5703_v62  ;;  %v5688_v27 = vmul.f32 %v11681_v0, %v5687_v63  ;;  %v13986_v21 = vand.u32 2147483647, %v11681_v0  ;;  %v13997_v43 = vld [vmem:[#allocation15_spill] sm:$0xff] }
 0x68d   : > { %vm11817_vm10 = vcmp.lt.f32.partialorder %v13983_v5, 0.0004427343  ;;  %v7106_v38 = vpop.eup %7105  ;;  %7117 = vlog2.f32 %v11686_v18  ;;  %v5820_v61 = vsel %vm4988_vm3, %v11570_v8, %v5700_v30  ;;  %v5718_v0 = vsel %vm11802_vm9, %v5715_v14, %v5712_v4  ;;  %v14002_v5 = vld [vmem:[#allocation11_spill] sm:$0xff] }
 0x68e   : > { %vm11827_vm2 = vcmp.lt.f32.partialorder %v13986_v21, 0.0004427343  ;;  %v5664_v58 = vsel %vm11817_vm10, %v5661_v35, %v11780_v24  ;;  %v7108_v36 = vpop.eup %7107  ;;  %v5739_v31 = vmul.f32 0.6931472, %v7106_v38  ;;  %vm4987_vm11 = vcmp.gt.f32.partialorder %v11565_v22, 20.0  ;;  %v13999_v35 = vld [vmem:[#allocation3_spill] sm:$0xff] }
 0x68f   : > { %v5678_v3 = vadd.f32 1.0, %v11695_v37  ;;  %v7110_v56 = vpop.eup %7109  ;;  %v5757_v34 = vmul.f32 0.6931472, %v7108_v36  ;;  %v5736_v17 = vsel %vm11748_vm5, %v11746_v6, %v5730_v51  ;;  %v5821_v18 = vsel %vm4989_vm4, %v11579_v11, %v5709_v9  ;;  %v14000_v9 = vld [vmem:[#allocation44_spill] sm:$0xff] }
 0x690   : > { %v5631_v13 = vmul.f32 0.6931472, %v11726_v41  ;;  %v7112_v8 = vpop.eup %7111  ;;  %v5745_v50 = vsel %vm11753_vm6, %v5742_v40, %v5739_v31  ;;  %v5748_v62 = vmul.f32 0.6931472, %v7110_v56  ;;  %v5649_v63 = vmul.f32 0.6931472, %v11730_v54 }
 0x691   : > { %v5638_v37 = vadd.f32 1.0, %v11723_v33  ;;  %v5825_v2 = vsel %vm4993_vm7, %v11623_v53, %v5745_v50  ;;  %v5763_v6 = vsel %vm11760_vm8, %v11757_v55, %v5757_v34  ;;  %v5721_v11 = vmul.f32 0.6931472, %v7112_v8  ;;  %v7114_v24 = vpop.eup %7113  ;;  %v14003_v31 = vld [vmem:[#allocation16_spill] sm:$0xff]  ;;  %v14008_v50 = vld [vmem:[#allocation57_spill] sm:$0xff] }
 0x692   : > { %v5651_v41 = vadd.f32 1.0, %v11678_v16  ;;  %5835 = vmatprep.subr.mxu0 %v5825_v2  ;;  %v5827_v40 = vsel %vm4995_vm13, %v11628_v46, %v5763_v6  ;;  %vm13989_vm3 = vcmp.gt.f32.partialorder %v11606_v48, 20.0  ;;  %v5754_v49 = vsel %vm11775_vm14, %v5751_v28, %v5748_v62 }
 0x693   : > { %v5824_v54 = vsel %vm13989_vm3, %v11606_v48, %v5736_v17  ;;  %v5623_v53 = vmul.f32 -0.5, %v11641_v1  ;;  %5906 = vmatprep.subr.mxu1 %v5827_v40  ;;  %vm13990_vm5 = vcmp.gt.f32.partialorder %v11611_v57, 20.0  ;;  %v5727_v55 = vsel %vm11811_vm1, %v5724_v20, %v5721_v11  ;;  %v14006_v17 = vld [vmem:[#allocation49_spill] sm:$0xff]  ;;  %v14011_v11 = vld [vmem:[#allocation43_spill] sm:$0xff] }
 0x694   : > { %5836 = vmatpush1.msra.mxu0 %v5824_v54  ;;  %v5826_v16 = vsel %vm13990_vm5, %v11611_v57, %v5754_v49  ;;  %v5637_v46 = vsel %vm11790_vm0, %v11700_v15, %v5631_v13  ;;  %7119 = vlog2.f32 %v5638_v37  ;;  %v5823_v48 = vsel %vm4991_vm15, %v11603_v29, %v5727_v55  ;;  %v13996_v29 = vld [vmem:[#allocation9_spill] sm:$0xff] }
 0x695   : > { %5907 = vmatpush1.msra.mxu1 %v5826_v16  ;;  %5837 = vmatprep.subr.mxu0 %v5821_v18  ;;  %vm13991_vm4 = vcmp.gt.f32.partialorder %v11573_v45, 20.0  ;;  %v5685_v7 = vmul.f32 0.6931472, %v7114_v24  ;;  %vm13992_vm6 = vcmp.gt.f32.partialorder %v11549_v23, 20.0  ;;  %v5679_v15 = vmul.f32 %v11657_v52, %v5678_v3  ;;  %v14005_v3 = vld [vmem:[#allocation23_spill] sm:$0xff]  ;;  %v14007_v18 = vld [vmem:[#allocation74_spill] sm:$0xff] }
 0x696   : > { %v5822_v44 = vsel %vm13991_vm4, %v11573_v45, %v5718_v0  ;;  %v5816_v57 = vsel %vm13992_vm6, %v11549_v23, %v5664_v58  ;;  %5908 = vmatprep.subr.mxu1 %v5823_v48  ;;  %5838 = vmatpush1.msra.mxu0 %v5820_v61  ;;  %v5652_v28 = vmul.f32 %v11649_v47, %v5651_v41  ;;  %v13993_v4 = vand.u32 2147483647, %v11649_v47  ;;  %v7116_v45 = vpop.eup %7115  ;;  %v14004_v0 = vld [vmem:[#allocation29_spill] sm:$0xff]  ;;  %v14012_v16 = vld [vmem:[#allocation47_spill] sm:$0xff] }
 0x697   : > { %v5593_v25 = vadd.f32 1.0, %v13996_v29  ;;  %5909 = vmatpush1.msra.mxu1 %v5822_v44  ;;  %5839 = vmatprep.subr.mxu0 %v5817_v39  ;;  %v5691_v23 = vsel %vm11827_vm2, %v5688_v27, %v5685_v7  ;;  %v5813_v12 = vsel %vm4981_vm12, %v11532_v32, %v5637_v46  ;;  %v5624_v42 = vadd.f32 1.0, %v5623_v53  ;;  %v14016_v44 = vld [vmem:[#allocation45_spill] sm:$0xff] }
 0x698   : > { %vm11891_vm7 = vcmp.lt.f32.partialorder %v13993_v4, 0.0004427343  ;;  %v5626_v19 = vand.u32 2147483647, %v11641_v1  ;;  %v5819_v47 = vsel %vm4987_vm11, %v11565_v22, %v5691_v23  ;;  %5840 = vmatpush1.msra.mxu0 %v5816_v57  ;;  %v5676_v20 = vmul.f32 0.6931472, %v7116_v45 }
 0x699   : > { %v5655_v30 = vsel %vm11891_vm7, %v5652_v28, %v5649_v63  ;;  %7121 = vlog2.f32 %v5593_v25  ;;  %5910 = vmatprep.subr.mxu1 %v5819_v47  ;;  %v13998_v59 = vand.u32 2147483647, %v11657_v52  ;;  %5841 = vmatprep.subr.mxu0 %v5813_v12  ;;  %v5641_v32 = vmul.f32 -0.5, %v11723_v33  ;;  %v14019_v12 = vld [vmem:[#allocation36_spill] sm:$0xff] }
 0x69a   : > { %7123 = vpow2.f32 %v13997_v43  ;;  %v5611_v51 = vadd.f32 1.0, %v13999_v35  ;;  %vm4986_vm12 = vcmp.gt.f32.partialorder %v14000_v9, 20.0  ;;  %vm4983_vm13 = vcmp.gt.f32.partialorder %v14001_v60, 20.0  ;;  %v7118_v38 = vpop.eup %7117 }
 0x69b   : > { %vm5681_vm8 = vcmp.lt.f32.partialorder %v13998_v59, 0.0004427343  ;;  %v5584_v26 = vadd.f32 1.0, %v14002_v5  ;;  %v5815_v27 = vsel %vm4983_vm13, %v14001_v60, %v5655_v30  ;;  %v5622_v52 = vmul.f32 0.6931472, %v7118_v38  ;;  %v14023_v30 = vld [vmem:[#allocation31_spill] sm:$0xff] }
 0x69c   : > { %v5682_v22 = vsel %vm5681_vm8, %v5679_v15, %v5676_v20  ;;  %7125 = vlog2.f32 %v5611_v51  ;;  %v5625_v21 = vmul.f32 %v11641_v1, %v5624_v42  ;;  %vm5627_vm14 = vcmp.lt.f32.partialorder %v5626_v19, 0.0004427343  ;;  %v14020_v19 = vld [vmem:[#allocation37_spill] sm:$0xff] }
 0x69d   : > { %v5818_v39 = vsel %vm4986_vm12, %v14000_v9, %v5682_v22  ;;  %7127 = vlog2.f32 %v5584_v26  ;;  %v5642_v10 = vadd.f32 1.0, %v5641_v32  ;;  %v5644_v58 = vand.u32 2147483647, %v11723_v33 }
 0x69e   : > { %5911 = vmatpush1.msra.mxu1 %v5818_v39  ;;  %v5596_v36 = vmul.f32 -0.5, %v13996_v29  ;;  %v5602_v61 = vadd.f32 1.0, %v14003_v31  ;;  %7129 = vpow2.f32 %v14004_v0  ;;  %vm4980_vm15 = vcmp.gt.f32.partialorder %v14005_v3, 20.0 }
 0x69f   : > { %5912 = vmatprep.subr.mxu1 %v5815_v27  ;;  %v5628_v56 = vsel %vm5627_vm14, %v5625_v21, %v5622_v52  ;;  %v5614_v34 = vmul.f32 -0.5, %v13999_v35  ;;  %vm4982_vm0 = vcmp.gt.f32.partialorder %v14006_v17, 20.0  ;;  %vm4977_vm1 = vcmp.gt.f32.partialorder %v14007_v18, 20.0  ;;  %v14026_v27 = vld [vmem:[#allocation69_spill] sm:$0xff] }
 0x6a0   : > { %v5812_v1 = vsel %vm4980_vm15, %v14005_v3, %v5628_v56  ;;  %7131 = vlog2.f32 %v5602_v61  ;;  %v5599_v13 = vand.u32 2147483647, %v13996_v29  ;;  %v5587_v8 = vmul.f32 -0.5, %v14002_v5 }
 0x6a1   : > { %5842 = vmatpush1.msra.mxu0 %v5812_v1  ;;  %v5557_v62 = vadd.f32 1.0, %v14008_v50  ;;  %v7120_v63 = vpop.eup %7119  ;;  %v5643_v37 = vmul.f32 %v11723_v33, %v5642_v10  ;;  %vm11931_vm9 = vcmp.lt.f32.partialorder %v5644_v58, 0.0004427343  ;;  %v5597_v6 = vadd.f32 1.0, %v5596_v36  ;;  %v14013_v33 = vld [vmem:[#allocation39_spill] sm:$0xff]  ;;  %v14028_v1 = vld [vmem:[#allocation26_spill] sm:$0xff] }
 0x6a2   : > { %v5575_v41 = vadd.f32 1.0, %v14011_v11  ;;  %v5640_v40 = vmul.f32 0.6931472, %v7120_v63  ;;  %v5615_v54 = vadd.f32 1.0, %v5614_v34  ;;  %v5617_v49 = vand.u32 2147483647, %v13999_v35 }
 0x6a3   : > { %7133 = vlog2.f32 %v5557_v62  ;;  %v5590_v53 = vand.u32 2147483647, %v14002_v5  ;;  %v5605_v24 = vmul.f32 -0.5, %v14003_v31  ;;  %v5548_v55 = vadd.f32 1.0, %v14012_v16  ;;  %v14027_v36 = vld [vmem:[#allocation87_spill] sm:$0xff] }
 0x6a4   : > { %7135 = vlog2.f32 %v5575_v41  ;;  %vm4976_vm10 = vcmp.gt.f32.partialorder %v14013_v33, 20.0  ;;  %v5646_v46 = vsel %vm11931_vm9, %v5643_v37, %v5640_v40  ;;  %vm11943_vm2 = vcmp.lt.f32.partialorder %v5599_v13, 0.0004427343  ;;  %v14031_v37 = vld [vmem:[#allocation33_spill] sm:$0xff] }
 0x6a5   : > { %vm4979_vm11 = vcmp.gt.f32.partialorder %v14016_v44, 20.0  ;;  %v5588_v7 = vadd.f32 1.0, %v5587_v8  ;;  %v5814_v15 = vsel %vm4982_vm0, %v14006_v17, %v5646_v46  ;;  %v5598_v28 = vmul.f32 %v13996_v29, %v5597_v6 }
 0x6a6   : > { %v7122_v57 = vpop.eup %7121  ;;  %v5608_v4 = vand.u32 2147483647, %v14003_v31  ;;  %7137 = vlog2.f32 %v5548_v55  ;;  %5913 = vmatpush1.msra.mxu1 %v5814_v15  ;;  %vm11955_vm3 = vcmp.lt.f32.partialorder %v5617_v49, 0.0004427343  ;;  %v5560_v23 = vmul.f32 -0.5, %v14008_v50 }
 0x6a7   : > { %v11953_v14 = vpop.eup %7123  ;;  %v5595_v25 = vmul.f32 0.6931472, %v7122_v57  ;;  %v5566_v42 = vadd.f32 1.0, %v14019_v12  ;;  %vm4978_vm5 = vcmp.gt.f32.partialorder %v14020_v19, 20.0  ;;  %v5616_v47 = vmul.f32 %v13999_v35, %v5615_v54 }
 0x6a8   : > { %vm11963_vm4 = vcmp.lt.f32.partialorder %v5590_v53, 0.0004427343  ;;  %v5606_v20 = vadd.f32 1.0, %v5605_v24  ;;  %v5521_v43 = vadd.f32 1.0, %v14023_v30  ;;  %v5589_v51 = vmul.f32 %v14002_v5, %v5588_v7 }
 0x6a9   : > { %v7126_v59 = vpop.eup %7125  ;;  %v5601_v32 = vsel %vm11943_vm2, %v5598_v28, %v5595_v25  ;;  %v5578_v9 = vmul.f32 -0.5, %v14011_v11  ;;  %7139 = vlog2.f32 %v5566_v42  ;;  %vm11975_vm6 = vcmp.lt.f32.partialorder %v5608_v4, 0.0004427343 }
 0x6aa   : > { %v7128_v22 = vpop.eup %7127  ;;  %v5809_v35 = vsel %vm4977_vm1, %v14007_v18, %v5601_v32  ;;  %v5613_v60 = vmul.f32 0.6931472, %v7126_v59  ;;  %v5563_v38 = vand.u32 2147483647, %v14008_v50  ;;  %vm4973_vm7 = vcmp.gt.f32.partialorder %v14026_v27, 20.0 }
 0x6ab   : > { %5843 = vmatprep.subr.mxu0 %v5809_v35  ;;  %v5586_v39 = vmul.f32 0.6931472, %v7128_v22  ;;  %v5561_v5 = vadd.f32 1.0, %v5560_v23  ;;  %v5551_v52 = vmul.f32 -0.5, %v14012_v16  ;;  %7141 = vlog2.f32 %v5521_v43  ;;  %v11982_v21 = vpop.eup %7129  ;;  %v14034_v23 = vld [vmem:[#allocation28_spill] sm:$0xff]  ;;  %v14035_v43 = vld [vmem:[#allocation55_spill] sm:$0xff] }
 0x6ac   : > { %v5619_v10 = vsel %vm11955_vm3, %v5616_v47, %v5613_v60  ;;  %v5607_v58 = vmul.f32 %v14003_v31, %v5606_v20  ;;  %vm4975_vm8 = vcmp.gt.f32.partialorder %v14027_v36, 20.0  ;;  %v5539_v61 = vadd.f32 1.0, %v11953_v14  ;;  %v14036_v22 = vld [vmem:[#allocation10_spill] sm:$0xff] }
 0x6ad   : > { %v7132_v0 = vpop.eup %7131  ;;  %v5811_v3 = vsel %vm4979_vm11, %v14016_v44, %v5619_v10  ;;  %v5592_v56 = vsel %vm11963_vm4, %v5589_v51, %v5586_v39  ;;  %v5579_v34 = vadd.f32 1.0, %v5578_v9  ;;  %v5581_v17 = vand.u32 2147483647, %v14011_v11 }
 0x6ae   : > { %vm4972_vm12 = vcmp.gt.f32.partialorder %v14028_v1, 20.0  ;;  %5914 = vmatprep.subr.mxu1 %v5811_v3  ;;  %v5808_v31 = vsel %vm4976_vm10, %v14013_v33, %v5592_v56  ;;  %v5604_v18 = vmul.f32 0.6931472, %v7132_v0  ;;  %v5569_v13 = vmul.f32 -0.5, %v14019_v12 }
 0x6af   : > { %7143 = vlog2.f32 %v5539_v61  ;;  %5844 = vmatpush1.msra.mxu0 %v5808_v31  ;;  %v5562_v8 = vmul.f32 %v14008_v50, %v5561_v5  ;;  %vm12001_vm13 = vcmp.lt.f32.partialorder %v5563_v38, 0.0004427343  ;;  %v5552_v63 = vadd.f32 1.0, %v5551_v52  ;;  %v14040_v31 = vld [vmem:[#allocation65_spill] sm:$0xff] }
 0x6b0   : > { %v5512_v2 = vadd.f32 1.0, %v14031_v37  ;;  %v7134_v6 = vpop.eup %7133  ;;  %v5610_v41 = vsel %vm11975_vm6, %v5607_v58, %v5604_v18  ;;  %v5554_v40 = vand.u32 2147483647, %v14012_v16  ;;  %v5524_v54 = vmul.f32 -0.5, %v14023_v30  ;;  %v14038_v58 = vld [vmem:[#allocation27_spill] sm:$0xff] }
 0x6b1   : > { %v5530_v49 = vadd.f32 1.0, %v11982_v21  ;;  %v7136_v53 = vpop.eup %7135  ;;  %v5810_v50 = vsel %vm4978_vm5, %v14020_v19, %v5610_v41  ;;  %v5559_v24 = vmul.f32 0.6931472, %v7134_v6  ;;  %vm12014_vm14 = vcmp.lt.f32.partialorder %v5581_v17, 0.0004427343  ;;  %v14042_v6 = vld [vmem:[#allocation22_spill] sm:$0xff] }
 0x6b2   : > { %7145 = vlog2.f32 %v5512_v2  ;;  %5915 = vmatpush1.msra.mxu1 %v5810_v50  ;;  %v5577_v33 = vmul.f32 0.6931472, %v7136_v53  ;;  %v5580_v46 = vmul.f32 %v14011_v11, %v5579_v34  ;;  %v5570_v48 = vadd.f32 1.0, %v5569_v13  ;;  %v14041_v13 = vld [vmem:[#allocation53_spill] sm:$0xff]  ;;  %v14043_v50 = vld [vmem:[#allocation71_spill] sm:$0xff] }
 0x6b3   : > { %v5572_v44 = vand.u32 2147483647, %v14019_v12  ;;  %v7138_v7 = vpop.eup %7137  ;;  %v5565_v57 = vsel %vm12001_vm13, %v5562_v8, %v5559_v24  ;;  %v5553_v15 = vmul.f32 %v14012_v16, %v5552_v63  ;;  %v5542_v28 = vmul.f32 -0.5, %v11953_v14 }
 0x6b4   : > { %7147 = vlog2.f32 %v5530_v49  ;;  %v5805_v4 = vsel %vm4973_vm7, %v14026_v27, %v5565_v57  ;;  %v5583_v25 = vsel %vm12014_vm14, %v5580_v46, %v5577_v33  ;;  %v5550_v11 = vmul.f32 0.6931472, %v7138_v7  ;;  %v14045_v7 = vld [vmem:[#allocation18_spill] sm:$0xff] }
 0x6b5   : > { %v5525_v45 = vadd.f32 1.0, %v5524_v54  ;;  %vm4974_vm15 = vcmp.gt.f32.partialorder %v14034_v23, 20.0  ;;  %5845 = vmatprep.subr.mxu0 %v5805_v4  ;;  %v5807_v42 = vsel %vm4975_vm8, %v14027_v36, %v5583_v25  ;;  %vm5555_vm0 = vcmp.lt.f32.partialorder %v5554_v40, 0.0004427343  ;;  %v14046_v25 = vld [vmem:[#allocation42_spill] sm:$0xff] }
 0x6b6   : > { %v5527_v16 = vand.u32 2147483647, %v14023_v30  ;;  %v7140_v19 = vpop.eup %7139  ;;  %5916 = vmatprep.subr.mxu1 %v5807_v42  ;;  %v5556_v47 = vsel %vm5555_vm0, %v5553_v15, %v5550_v11  ;;  %v5571_v29 = vmul.f32 %v14019_v12, %v5570_v48  ;;  %v5515_v20 = vmul.f32 -0.5, %v14031_v37  ;;  %v14037_v12 = vld [vmem:[#allocation92_spill] sm:$0xff] }
 0x6b7   : > { %v5485_v59 = vadd.f32 1.0, %v14035_v43  ;;  %v5804_v32 = vsel %vm4972_vm12, %v14028_v1, %v5556_v47  ;;  %v5568_v51 = vmul.f32 0.6931472, %v7140_v19  ;;  %v5543_v9 = vadd.f32 1.0, %v5542_v28  ;;  %v14048_v47 = vld [vmem:[#allocation34_spill] sm:$0xff] }
 0x6b8   : > { %v5503_v35 = vadd.f32 1.0, %v14036_v22  ;;  %v7142_v60 = vpop.eup %7141  ;;  %5846 = vmatpush1.msra.mxu0 %v5804_v32  ;;  %vm5573_vm1 = vcmp.lt.f32.partialorder %v5572_v44, 0.0004427343  ;;  %v5526_v26 = vmul.f32 %v14023_v30, %v5525_v45  ;;  %v5533_v38 = vmul.f32 -0.5, %v11982_v21  ;;  %v14039_v30 = vld [vmem:[#allocation72_spill] sm:$0xff]  ;;  %v14044_v44 = vld [vmem:[#allocation21_spill] sm:$0xff] }
 0x6b9   : > { %7149 = vlog2.f32 %v5485_v59  ;;  %vm4968_vm9 = vcmp.gt.f32.partialorder %v14037_v12, 20.0  ;;  %v5574_v39 = vsel %vm5573_vm1, %v5571_v29, %v5568_v51  ;;  %v5523_v27 = vmul.f32 0.6931472, %v7142_v60  ;;  %v14050_v60 = vld [vmem:[#allocation40_spill] sm:$0xff] }
 0x6ba   : > { %v5545_v5 = vand.u32 2147483647, %v11953_v14  ;;  %7151 = vlog2.f32 %v5503_v35  ;;  %v5806_v52 = vsel %vm4974_vm15, %v14034_v23, %v5574_v39  ;;  %vm5528_vm10 = vcmp.lt.f32.partialorder %v5527_v16, 0.0004427343  ;;  %v14047_v23 = vld [vmem:[#allocation13_spill] sm:$0xff] }
 0x6bb   : > { %v5516_v10 = vadd.f32 1.0, %v5515_v20  ;;  %v5476_v36 = vadd.f32 1.0, %v14038_v58  ;;  %5917 = vmatpush1.msra.mxu1 %v5806_v52  ;;  %vm4969_vm2 = vcmp.gt.f32.partialorder %v14039_v30, 20.0  ;;  %v5529_v0 = vsel %vm5528_vm10, %v5526_v26, %v5523_v27 }
 0x6bc   : > { %v7144_v61 = vpop.eup %7143  ;;  %v5544_v3 = vmul.f32 %v11953_v14, %v5543_v9  ;;  %v5518_v56 = vand.u32 2147483647, %v14031_v37  ;;  %v5801_v34 = vsel %vm4969_vm2, %v14039_v30, %v5529_v0  ;;  %v5534_v1 = vadd.f32 1.0, %v5533_v38  ;;  %v14049_v9 = vld [vmem:[#allocation52_spill] sm:$0xff] }
 0x6bd   : > { %v5541_v17 = vmul.f32 0.6931472, %v7144_v61  ;;  %7153 = vlog2.f32 %v5476_v36  ;;  %5847 = vmatprep.subr.mxu0 %v5801_v34  ;;  %vm4971_vm11 = vcmp.gt.f32.partialorder %v14040_v31, 20.0  ;;  %vm5546_vm3 = vcmp.lt.f32.partialorder %v5545_v5, 0.0004427343  ;;  %v14056_v34 = vld [vmem:[#allocation35_spill] sm:$0xff] }
 0x6be   : > { %v5488_v18 = vmul.f32 -0.5, %v14035_v43  ;;  %v5494_v8 = vadd.f32 1.0, %v14041_v13  ;;  %v5517_v2 = vmul.f32 %v14031_v37, %v5516_v10  ;;  %v5536_v14 = vand.u32 2147483647, %v11982_v21 }
 0x6bf   : > { %v7146_v62 = vpop.eup %7145  ;;  %v5547_v63 = vsel %vm5546_vm3, %v5544_v3, %v5541_v17  ;;  %v5449_v41 = vadd.f32 1.0, %v14042_v6  ;;  %v5506_v49 = vmul.f32 -0.5, %v14036_v22  ;;  %vm4970_vm5 = vcmp.gt.f32.partialorder %v14043_v50, 20.0 }
 0x6c0   : > { %v5803_v40 = vsel %vm4971_vm11, %v14040_v31, %v5547_v63  ;;  %v5514_v54 = vmul.f32 0.6931472, %v7146_v62  ;;  %7155 = vlog2.f32 %v5494_v8  ;;  %vm5519_vm4 = vcmp.lt.f32.partialorder %v5518_v56, 0.0004427343  ;;  %v14055_v56 = vld [vmem:[#allocation95_spill] sm:$0xff]  ;;  %v14057_v62 = vld [vmem:[#allocation84_spill] sm:$0xff] }
 0x6c1   : > { %v7148_v53 = vpop.eup %7147  ;;  %5918 = vmatprep.subr.mxu1 %v5803_v40  ;;  %v5535_v24 = vmul.f32 %v11982_v21, %v5534_v1  ;;  %7157 = vlog2.f32 %v5449_v41  ;;  %v5489_v33 = vadd.f32 1.0, %v5488_v18  ;;  %v5479_v46 = vmul.f32 -0.5, %v14038_v58 }
 0x6c2   : > { %v5520_v55 = vsel %vm5519_vm4, %v5517_v2, %v5514_v54  ;;  %v5532_v37 = vmul.f32 0.6931472, %v7148_v53  ;;  %vm5537_vm6 = vcmp.lt.f32.partialorder %v5536_v14, 0.0004427343  ;;  %vm4965_vm7 = vcmp.gt.f32.partialorder %v14044_v44, 20.0  ;;  %v14058_v54 = vld [vmem:[#allocation76_spill] sm:$0xff] }
 0x6c3   : > { %v5800_v48 = vsel %vm4968_vm9, %v14037_v12, %v5520_v55  ;;  %v5467_v57 = vadd.f32 1.0, %v14045_v7  ;;  %v5491_v28 = vand.u32 2147483647, %v14035_v43  ;;  %v5507_v21 = vadd.f32 1.0, %v5506_v49  ;;  %v14059_v55 = vld [vmem:[#allocation41_spill] sm:$0xff] }
 0x6c4   : > { %5848 = vmatpush1.msra.mxu0 %v5800_v48  ;;  %v5538_v15 = vsel %vm5537_vm6, %v5535_v24, %v5532_v37  ;;  %v5509_v4 = vand.u32 2147483647, %v14036_v22  ;;  %vm4964_vm8 = vcmp.gt.f32.partialorder %v14046_v25, 20.0  ;;  %v5497_v45 = vmul.f32 -0.5, %v14041_v13 }
 0x6c5   : > { %v5802_v11 = vsel %vm4970_vm5, %v14043_v50, %v5538_v15  ;;  %7159 = vlog2.f32 %v5467_v57  ;;  %v5440_v42 = vadd.f32 1.0, %v14047_v23  ;;  %v5490_v19 = vmul.f32 %v14035_v43, %v5489_v33  ;;  %v14060_v33 = vld [vmem:[#allocation88_spill] sm:$0xff] }
 0x6c6   : > { %v7150_v16 = vpop.eup %7149  ;;  %5919 = vmatpush1.msra.mxu1 %v5802_v11  ;;  %vm4967_vm12 = vcmp.gt.f32.partialorder %v14048_v47, 20.0  ;;  %v5480_v29 = vadd.f32 1.0, %v5479_v46  ;;  %v5482_v20 = vand.u32 2147483647, %v14038_v58  ;;  %v5452_v51 = vmul.f32 -0.5, %v14042_v6 }
 0x6c7   : > { %v7152_v59 = vpop.eup %7151  ;;  %v5487_v32 = vmul.f32 0.6931472, %v7150_v16  ;;  %7161 = vlog2.f32 %v5440_v42  ;;  %v5458_v35 = vadd.f32 1.0, %v14049_v9  ;;  %vm4966_vm13 = vcmp.gt.f32.partialorder %v14050_v60, 20.0 }
 0x6c8   : > { %vm5492_vm14 = vcmp.lt.f32.partialorder %v5491_v28, 0.0004427343  ;;  %v5505_v26 = vmul.f32 0.6931472, %v7152_v59  ;;  %v5508_v38 = vmul.f32 %v14036_v22, %v5507_v21  ;;  %v5500_v43 = vand.u32 2147483647, %v14041_v13 }
 0x6c9   : > { %v5493_v12 = vsel %vm5492_vm14, %v5490_v19, %v5487_v32  ;;  %vm5510_vm15 = vcmp.lt.f32.partialorder %v5509_v4, 0.0004427343  ;;  %v5498_v39 = vadd.f32 1.0, %v5497_v45  ;;  %7163 = vlog2.f32 %v5458_v35  ;;  %v14061_v21 = vld [vmem:[#allocation46_spill] sm:$0xff] }
 0x6ca   : > { %v7154_v27 = vpop.eup %7153  ;;  %v5797_v5 = vsel %vm4965_vm7, %v14044_v44, %v5493_v12  ;;  %v5511_v52 = vsel %vm5510_vm15, %v5508_v38, %v5505_v26  ;;  %v5481_v10 = vmul.f32 %v14038_v58, %v5480_v29  ;;  %vm12089_vm0 = vcmp.lt.f32.partialorder %v5482_v20, 0.0004427343 }
 0x6cb   : > { %5849 = vmatprep.subr.mxu0 %v5797_v5  ;;  %v5799_v22 = vsel %vm4967_vm12, %v14048_v47, %v5511_v52  ;;  %v5478_v61 = vmul.f32 0.6931472, %v7154_v27  ;;  %v5453_v30 = vadd.f32 1.0, %v5452_v51  ;;  %v5470_v0 = vmul.f32 -0.5, %v14045_v7  ;;  %v14063_v47 = vld [vmem:[#allocation24_spill] sm:$0xff]  ;;  %v14064_v27 = vld [vmem:[#allocation63_spill] sm:$0xff] }
 0x6cc   : > { %5920 = vmatprep.subr.mxu1 %v5799_v22  ;;  %vm12097_vm1 = vcmp.lt.f32.partialorder %v5500_v43, 0.0004427343  ;;  %vm4961_vm9 = vcmp.gt.f32.partialorder %v14055_v56, 20.0  ;;  %v5455_v58 = vand.u32 2147483647, %v14042_v6  ;;  %v5413_v17 = vadd.f32 1.0, %v14056_v34 }
 0x6cd   : > { %v7156_v1 = vpop.eup %7155  ;;  %v5484_v31 = vsel %vm12089_vm0, %v5481_v10, %v5478_v61  ;;  %v5499_v18 = vmul.f32 %v14041_v13, %v5498_v39  ;;  %v5443_v8 = vmul.f32 -0.5, %v14047_v23  ;;  %v5431_v63 = vadd.f32 1.0, %v14057_v62  ;;  %v14065_v10 = vld [vmem:[#allocation64_spill] sm:$0xff]  ;;  %v14066_v22 = vld [vmem:[#allocation89_spill] sm:$0xff] }
 0x6ce   : > { %v7158_v2 = vpop.eup %7157  ;;  %v5796_v14 = vsel %vm4964_vm8, %v14046_v25, %v5484_v31  ;;  %v5496_v41 = vmul.f32 0.6931472, %v7156_v1  ;;  %v5461_v40 = vmul.f32 -0.5, %v14049_v9  ;;  %7165 = vlog2.f32 %v5413_v17  ;;  %v14062_v25 = vld [vmem:[#allocation56_spill] sm:$0xff] }
 0x6cf   : > { %vm4960_vm10 = vcmp.gt.f32.partialorder %v14058_v54, 20.0  ;;  %5850 = vmatpush1.msra.mxu0 %v5796_v14  ;;  %v5451_v49 = vmul.f32 0.6931472, %v7158_v2  ;;  %v5454_v53 = vmul.f32 %v14042_v6, %v5453_v30  ;;  %v5471_v13 = vadd.f32 1.0, %v5470_v0  ;;  %v14067_v0 = vld [vmem:[#allocation59_spill] sm:$0xff]  ;;  %v14071_v14 = vld [vmem:[#allocation25_spill] sm:$0xff] }
 0x6d0   : > { %7167 = vlog2.f32 %v5431_v63  ;;  %v5502_v50 = vsel %vm12097_vm1, %v5499_v18, %v5496_v41  ;;  %vm5456_vm2 = vcmp.lt.f32.partialorder %v5455_v58, 0.0004427343  ;;  %v5473_v24 = vand.u32 2147483647, %v14045_v7 }
 0x6d1   : > { %v5404_v37 = vadd.f32 1.0, %v14059_v55  ;;  %vm4962_vm11 = vcmp.gt.f32.partialorder %v14060_v33, 20.0  ;;  %v5798_v46 = vsel %vm4966_vm13, %v14050_v60, %v5502_v50  ;;  %v5457_v48 = vsel %vm5456_vm2, %v5454_v53, %v5451_v49 }
 0x6d2   : > { %v5444_v44 = vadd.f32 1.0, %v5443_v8  ;;  %v5446_v6 = vand.u32 2147483647, %v14047_v23  ;;  %v7160_v57 = vpop.eup %7159  ;;  %5921 = vmatpush1.msra.mxu1 %v5798_v46  ;;  %v5793_v15 = vsel %vm4961_vm9, %v14055_v56, %v5457_v48  ;;  %v5462_v28 = vadd.f32 1.0, %v5461_v40  ;;  %v14070_v8 = vld [vmem:[#allocation60_spill] sm:$0xff] }
 0x6d3   : > { %7169 = vlog2.f32 %v5404_v37  ;;  %v5422_v4 = vadd.f32 1.0, %v14061_v21  ;;  %5851 = vmatprep.subr.mxu0 %v5793_v15  ;;  %vm4963_vm3 = vcmp.gt.f32.partialorder %v14062_v25, 20.0  ;;  %v5469_v11 = vmul.f32 0.6931472, %v7160_v57 }
 0x6d4   : > { %v5472_v45 = vmul.f32 %v14045_v7, %v5471_v13  ;;  %v5416_v42 = vmul.f32 -0.5, %v14056_v34  ;;  %v7162_v16 = vpop.eup %7161  ;;  %vm5474_vm5 = vcmp.lt.f32.partialorder %v5473_v24, 0.0004427343  ;;  %v5464_v19 = vand.u32 2147483647, %v14049_v9  ;;  %v14072_v13 = vld [vmem:[#allocation97_spill] sm:$0xff] }
 0x6d5   : > { %7171 = vlog2.f32 %v5422_v4  ;;  %v5377_v29 = vadd.f32 1.0, %v14063_v47  ;;  %v5442_v59 = vmul.f32 0.6931472, %v7162_v16  ;;  %v5445_v32 = vmul.f32 %v14047_v23, %v5444_v44  ;;  %v14078_v16 = vld [vmem:[#allocation17_spill] sm:$0xff] }
 0x6d6   : > { %v5475_v20 = vsel %vm5474_vm5, %v5472_v45, %v5469_v11  ;;  %v5434_v51 = vmul.f32 -0.5, %v14057_v62  ;;  %v7164_v35 = vpop.eup %7163  ;;  %vm5447_vm4 = vcmp.lt.f32.partialorder %v5446_v6, 0.0004427343  ;;  %v5463_v7 = vmul.f32 %v14049_v9, %v5462_v28 }
 0x6d7   : > { %v5795_v60 = vsel %vm4963_vm3, %v14062_v25, %v5475_v20  ;;  %7173 = vlog2.f32 %v5377_v29  ;;  %v5448_v26 = vsel %vm5447_vm4, %v5445_v32, %v5442_v59  ;;  %v5460_v38 = vmul.f32 0.6931472, %v7164_v35  ;;  %v14077_v25 = vld [vmem:[#allocation30_spill] sm:$0xff] }
 0x6d8   : > { %5922 = vmatprep.subr.mxu1 %v5795_v60  ;;  %v5417_v43 = vadd.f32 1.0, %v5416_v42  ;;  %v5419_v12 = vand.u32 2147483647, %v14056_v34  ;;  %v5792_v39 = vsel %vm4960_vm10, %v14058_v54, %v5448_v26  ;;  %vm5465_vm6 = vcmp.lt.f32.partialorder %v5464_v19, 0.0004427343  ;;  %v14079_v32 = vld [vmem:[#allocation94_spill] sm:$0xff] }
 0x6d9   : > { %v5407_v23 = vmul.f32 -0.5, %v14059_v55  ;;  %v5395_v5 = vadd.f32 1.0, %v14064_v27  ;;  %5852 = vmatpush1.msra.mxu0 %v5792_v39  ;;  %v5466_v52 = vsel %vm5465_vm6, %v5463_v7, %v5460_v38  ;;  %vm4957_vm7 = vcmp.gt.f32.partialorder %v14065_v10, 20.0 }
 0x6da   : > { %v5435_v9 = vadd.f32 1.0, %v5434_v51  ;;  %v5425_v36 = vmul.f32 -0.5, %v14061_v21  ;;  %vm4956_vm8 = vcmp.gt.f32.partialorder %v14066_v22, 20.0  ;;  %v5794_v61 = vsel %vm4962_vm11, %v14060_v33, %v5466_v52  ;;  %v14087_v33 = vld [vmem:[#allocation98_spill] sm:$0xff] }
 0x6db   : > { %v5437_v30 = vand.u32 2147483647, %v14057_v62  ;;  %7175 = vlog2.f32 %v5395_v5  ;;  %v5368_v3 = vadd.f32 1.0, %v14067_v0  ;;  %v7166_v56 = vpop.eup %7165  ;;  %5923 = vmatpush1.msra.mxu1 %v5794_v61  ;;  %v5418_v58 = vmul.f32 %v14056_v34, %v5417_v43  ;;  %v14081_v43 = vld [vmem:[#allocation50_spill] sm:$0xff]  ;;  %v14084_v61 = vld [vmem:[#allocation93_spill] sm:$0xff] }
 0x6dc   : > { %vm12152_vm12 = vcmp.lt.f32.partialorder %v5419_v12, 0.0004427343  ;;  %v5410_v1 = vand.u32 2147483647, %v14059_v55  ;;  %v5380_v31 = vmul.f32 -0.5, %v14063_v47  ;;  %vm4958_vm13 = vcmp.gt.f32.partialorder %v14070_v8, 20.0 }
 0x6dd   : > { %v7168_v18 = vpop.eup %7167  ;;  %v5415_v63 = vmul.f32 0.6931472, %v7166_v56  ;;  %v5408_v2 = vadd.f32 1.0, %v5407_v23  ;;  %7177 = vlog2.f32 %v5368_v3  ;;  %v5386_v41 = vadd.f32 1.0, %v14071_v14  ;;  %v14082_v12 = vld [vmem:[#allocation90_spill] sm:$0xff] }
 0x6de   : > { %v5433_v40 = vmul.f32 0.6931472, %v7168_v18  ;;  %v5436_v54 = vmul.f32 %v14057_v62, %v5435_v9  ;;  %v5426_v34 = vadd.f32 1.0, %v5425_v36  ;;  %v5428_v49 = vand.u32 2147483647, %v14061_v21  ;;  %v14083_v36 = vld [vmem:[#allocation67_spill] sm:$0xff] }
 0x6df   : > { %v5421_v53 = vsel %vm12152_vm12, %v5418_v58, %v5415_v63  ;;  %vm4959_vm14 = vcmp.gt.f32.partialorder %v14072_v13, 20.0  ;;  %vm5438_vm15 = vcmp.lt.f32.partialorder %v5437_v30, 0.0004427343  ;;  %7179 = vlog2.f32 %v5386_v41 }
 0x6e0   : > { %v7170_v50 = vpop.eup %7169  ;;  %v5789_v24 = vsel %vm4957_vm7, %v14065_v10, %v5421_v53  ;;  %v5439_v37 = vsel %vm5438_vm15, %v5436_v54, %v5433_v40  ;;  %vm12168_vm0 = vcmp.lt.f32.partialorder %v5410_v1, 0.0004427343  ;;  %v5381_v62 = vadd.f32 1.0, %v5380_v31  ;;  %v14085_v1 = vld [vmem:[#allocation38_spill] sm:$0xff] }
 0x6e1   : > { %5853 = vmatprep.subr.mxu0 %v5789_v24  ;;  %v5791_v46 = vsel %vm4959_vm14, %v14072_v13, %v5439_v37  ;;  %v5406_v48 = vmul.f32 0.6931472, %v7170_v50  ;;  %v5409_v44 = vmul.f32 %v14059_v55, %v5408_v2  ;;  %v5398_v6 = vmul.f32 -0.5, %v14064_v27  ;;  %v14086_v50 = vld [vmem:[#allocation62_spill] sm:$0xff] }
 0x6e2   : > { %v7172_v57 = vpop.eup %7171  ;;  %5924 = vmatprep.subr.mxu1 %v5791_v46  ;;  %v5427_v15 = vmul.f32 %v14061_v21, %v5426_v34  ;;  %vm12176_vm1 = vcmp.lt.f32.partialorder %v5428_v49, 0.0004427343  ;;  %v5383_v4 = vand.u32 2147483647, %v14063_v47  ;;  %v5341_v11 = vadd.f32 1.0, %v14077_v25  ;;  %v14088_v46 = vld [vmem:[#allocation99_spill] sm:$0xff] }
 0x6e3   : > { %v5412_v45 = vsel %vm12168_vm0, %v5409_v44, %v5406_v48  ;;  %v5424_v42 = vmul.f32 0.6931472, %v7172_v57  ;;  %v5371_v55 = vmul.f32 -0.5, %v14067_v0  ;;  %v5359_v19 = vadd.f32 1.0, %v14078_v16 }
 0x6e4   : > { %v7174_v29 = vpop.eup %7173  ;;  %v5788_v21 = vsel %vm4956_vm8, %v14066_v22, %v5412_v45  ;;  %v5382_v20 = vmul.f32 %v14063_v47, %v5381_v62  ;;  %v5389_v59 = vmul.f32 -0.5, %v14071_v14  ;;  %7181 = vlog2.f32 %v5341_v11  ;;  %v14080_v47 = vld [vmem:[#allocation66_spill] sm:$0xff] }
 0x6e5   : > { %vm4952_vm9 = vcmp.gt.f32.partialorder %v14079_v32, 20.0  ;;  %5854 = vmatpush1.msra.mxu0 %v5788_v21  ;;  %v5430_v51 = vsel %vm12176_vm1, %v5427_v15, %v5424_v42  ;;  %v5379_v35 = vmul.f32 0.6931472, %v7174_v29  ;;  %v5399_v60 = vadd.f32 1.0, %v5398_v6  ;;  %v14089_v6 = vld [vmem:[#allocation14_spill] sm:$0xff] }
 0x6e6   : > { %7183 = vlog2.f32 %v5359_v19  ;;  %v5790_v7 = vsel %vm4958_vm13, %v14070_v8, %v5430_v51  ;;  %vm5384_vm10 = vcmp.lt.f32.partialorder %v5383_v4, 0.0004427343  ;;  %v5401_v26 = vand.u32 2147483647, %v14064_v27  ;;  %v14093_v21 = vld [vmem:[#allocation6_spill] sm:$0xff] }
 0x6e7   : > { %v5332_v38 = vadd.f32 1.0, %v14080_v47  ;;  %vm4954_vm2 = vcmp.gt.f32.partialorder %v14081_v43, 20.0  ;;  %5925 = vmatpush1.msra.mxu1 %v5790_v7  ;;  %vm4953_vm11 = vcmp.gt.f32.partialorder %v14082_v12, 20.0  ;;  %v5385_v39 = vsel %vm5384_vm10, %v5382_v20, %v5379_v35 }
 0x6e8   : > { %v5372_v23 = vadd.f32 1.0, %v5371_v55  ;;  %v5374_v5 = vand.u32 2147483647, %v14067_v0  ;;  %v7176_v52 = vpop.eup %7175  ;;  %v5785_v10 = vsel %vm4953_vm11, %v14082_v12, %v5385_v39  ;;  %v5390_v9 = vadd.f32 1.0, %v5389_v59  ;;  %v14092_v55 = vld [vmem:[#allocation85_spill] sm:$0xff] }
 0x6e9   : > { %7185 = vlog2.f32 %v5332_v38  ;;  %v5350_v22 = vadd.f32 1.0, %v14083_v36  ;;  %5855 = vmatprep.subr.mxu0 %v5785_v10  ;;  %vm4955_vm3 = vcmp.gt.f32.partialorder %v14084_v61, 20.0  ;;  %v5397_v30 = vmul.f32 0.6931472, %v7176_v52 }
 0x6ea   : > { %v5400_v3 = vmul.f32 %v14064_v27, %v5399_v60  ;;  %v5344_v56 = vmul.f32 -0.5, %v14077_v25  ;;  %v7178_v58 = vpop.eup %7177  ;;  %vm5402_vm5 = vcmp.lt.f32.partialorder %v5401_v26, 0.0004427343  ;;  %v5392_v17 = vand.u32 2147483647, %v14071_v14  ;;  %v14094_v60 = vld [vmem:[#allocation81_spill] sm:$0xff] }
 0x6eb   : > { %7187 = vlog2.f32 %v5350_v22  ;;  %v5305_v31 = vadd.f32 1.0, %v14085_v1  ;;  %v5370_v8 = vmul.f32 0.6931472, %v7178_v58  ;;  %v5373_v63 = vmul.f32 %v14067_v0, %v5372_v23  ;;  %v14100_v58 = vld [vmem:[#allocation91_spill] sm:$0xff] }
 0x6ec   : > { %v5403_v18 = vsel %vm5402_vm5, %v5400_v3, %v5397_v30  ;;  %v5362_v2 = vmul.f32 -0.5, %v14078_v16  ;;  %v7180_v41 = vpop.eup %7179  ;;  %vm5375_vm4 = vcmp.lt.f32.partialorder %v5374_v5, 0.0004427343  ;;  %v5391_v27 = vmul.f32 %v14071_v14, %v5390_v9 }
 0x6ed   : > { %v5787_v40 = vsel %vm4955_vm3, %v14084_v61, %v5403_v18  ;;  %7189 = vlog2.f32 %v5305_v31  ;;  %v5376_v54 = vsel %vm5375_vm4, %v5373_v63, %v5370_v8  ;;  %v5388_v34 = vmul.f32 0.6931472, %v7180_v41  ;;  %v14099_v61 = vld [vmem:[#allocation19_spill] sm:$0xff]  ;;  %v14101_v63 = vld [vmem:[#allocation70_spill] sm:$0xff] }
 0x6ee   : > { %5926 = vmatprep.subr.mxu1 %v5787_v40  ;;  %v5345_v49 = vadd.f32 1.0, %v5344_v56  ;;  %v5347_v53 = vand.u32 2147483647, %v14077_v25  ;;  %v5784_v13 = vsel %vm4952_vm9, %v14079_v32, %v5376_v54  ;;  %vm5393_vm6 = vcmp.lt.f32.partialorder %v5392_v17, 0.0004427343 }
 0x6ef   : > { %v5335_v0 = vmul.f32 -0.5, %v14080_v47  ;;  %v5323_v24 = vadd.f32 1.0, %v14086_v50  ;;  %5856 = vmatpush1.msra.mxu0 %v5784_v13  ;;  %v5394_v37 = vsel %vm5393_vm6, %v5391_v27, %v5388_v34  ;;  %vm4949_vm7 = vcmp.gt.f32.partialorder %v14087_v33, 20.0 }
 0x6f0   : > { %v5363_v14 = vadd.f32 1.0, %v5362_v2  ;;  %v5353_v62 = vmul.f32 -0.5, %v14083_v36  ;;  %vm4948_vm8 = vcmp.gt.f32.partialorder %v14088_v46, 20.0  ;;  %v5786_v48 = vsel %vm4954_vm2, %v14081_v43, %v5394_v37  ;;  %v14109_v43 = vld [vmem:[#allocation104_spill] sm:$0xff] }
 0x6f1   : > { %v5365_v44 = vand.u32 2147483647, %v14078_v16  ;;  %7191 = vlog2.f32 %v5323_v24  ;;  %v5296_v57 = vadd.f32 1.0, %v14089_v6  ;;  %v7182_v15 = vpop.eup %7181  ;;  %5927 = vmatpush1.msra.mxu1 %v5786_v48  ;;  %v5346_v28 = vmul.f32 %v14077_v25, %v5345_v49  ;;  %v14103_v49 = vld [vmem:[#allocation68_spill] sm:$0xff]  ;;  %v14106_v48 = vld [vmem:[#allocation79_spill] sm:$0xff] }
 0x6f2   : > { %vm12228_vm12 = vcmp.lt.f32.partialorder %v5347_v53, 0.0004427343  ;;  %v5338_v11 = vand.u32 2147483647, %v14080_v47  ;;  %v5308_v45 = vmul.f32 -0.5, %v14085_v1  ;;  %vm4950_vm13 = vcmp.gt.f32.partialorder %v14092_v55, 20.0 }
 0x6f3   : > { %v7184_v42 = vpop.eup %7183  ;;  %v5343_v19 = vmul.f32 0.6931472, %v7182_v15  ;;  %v5336_v29 = vadd.f32 1.0, %v5335_v0  ;;  %7193 = vlog2.f32 %v5296_v57  ;;  %v5314_v20 = vadd.f32 1.0, %v14093_v21  ;;  %v14104_v53 = vld [vmem:[#allocation83_spill] sm:$0xff] }
 0x6f4   : > { %v5361_v59 = vmul.f32 0.6931472, %v7184_v42  ;;  %v5364_v32 = vmul.f32 %v14078_v16, %v5363_v14  ;;  %v5354_v25 = vadd.f32 1.0, %v5353_v62  ;;  %v5356_v51 = vand.u32 2147483647, %v14083_v36  ;;  %v14105_v62 = vld [vmem:[#allocation51_spill] sm:$0xff] }
 0x6f5   : > { %v5349_v35 = vsel %vm12228_vm12, %v5346_v28, %v5343_v19  ;;  %vm4951_vm14 = vcmp.gt.f32.partialorder %v14094_v60, 20.0  ;;  %vm5366_vm15 = vcmp.lt.f32.partialorder %v5365_v44, 0.0004427343  ;;  %7195 = vlog2.f32 %v5314_v20 }
 0x6f6   : > { %v7186_v7 = vpop.eup %7185  ;;  %v5781_v26 = vsel %vm4949_vm7, %v14087_v33, %v5349_v35  ;;  %v5367_v38 = vsel %vm5366_vm15, %v5364_v32, %v5361_v59  ;;  %vm12244_vm0 = vcmp.lt.f32.partialorder %v5338_v11, 0.0004427343  ;;  %v5309_v16 = vadd.f32 1.0, %v5308_v45  ;;  %v14107_v11 = vld [vmem:[#allocation54_spill] sm:$0xff] }
 0x6f7   : > { %5857 = vmatprep.subr.mxu0 %v5781_v26  ;;  %v5783_v12 = vsel %vm4951_vm14, %v14094_v60, %v5367_v38  ;;  %v5334_v39 = vmul.f32 0.6931472, %v7186_v7  ;;  %v5337_v23 = vmul.f32 %v14080_v47, %v5336_v29  ;;  %v5326_v5 = vmul.f32 -0.5, %v14086_v50  ;;  %v14108_v7 = vld [vmem:[#allocation73_spill] sm:$0xff] }
 0x6f8   : > { %v7188_v52 = vpop.eup %7187  ;;  %5928 = vmatprep.subr.mxu1 %v5783_v12  ;;  %v5355_v10 = vmul.f32 %v14083_v36, %v5354_v25  ;;  %vm12252_vm1 = vcmp.lt.f32.partialorder %v5356_v51, 0.0004427343  ;;  %v5311_v22 = vand.u32 2147483647, %v14085_v1  ;;  %v5269_v30 = vadd.f32 1.0, %v14099_v61  ;;  %v14110_v12 = vld [vmem:[#allocation48_spill] sm:$0xff] }
 0x6f9   : > { %v5340_v3 = vsel %vm12244_vm0, %v5337_v23, %v5334_v39  ;;  %v5352_v56 = vmul.f32 0.6931472, %v7188_v52  ;;  %v5299_v47 = vmul.f32 -0.5, %v14089_v6  ;;  %v5287_v17 = vadd.f32 1.0, %v14100_v58 }
 0x6fa   : > { %v7190_v31 = vpop.eup %7189  ;;  %v5780_v36 = vsel %vm4948_vm8, %v14088_v46, %v5340_v3  ;;  %v5310_v18 = vmul.f32 %v14085_v1, %v5309_v16  ;;  %v5317_v8 = vmul.f32 -0.5, %v14093_v21  ;;  %7197 = vlog2.f32 %v5269_v30  ;;  %v14102_v1 = vld [vmem:[#allocation82_spill] sm:$0xff] }
 0x6fb   : > { %vm4944_vm9 = vcmp.gt.f32.partialorder %v14101_v63, 20.0  ;;  %5858 = vmatpush1.msra.mxu0 %v5780_v36  ;;  %v5358_v2 = vsel %vm12252_vm1, %v5355_v10, %v5352_v56  ;;  %v5307_v41 = vmul.f32 0.6931472, %v7190_v31  ;;  %v5327_v40 = vadd.f32 1.0, %v5326_v5  ;;  %v14111_v5 = vld [vmem:[#allocation20_spill] sm:$0xff]  ;;  %v14115_v36 = vld [vmem:[#allocation77_spill] sm:$0xff] }
 0x6fc   : > { %7199 = vlog2.f32 %v5287_v17  ;;  %v5782_v27 = vsel %vm4950_vm13, %v14092_v55, %v5358_v2  ;;  %vm5312_vm10 = vcmp.lt.f32.partialorder %v5311_v22, 0.0004427343  ;;  %v5329_v54 = vand.u32 2147483647, %v14086_v50 }
 0x6fd   : > { %v5260_v34 = vadd.f32 1.0, %v14102_v1  ;;  %vm4946_vm2 = vcmp.gt.f32.partialorder %v14103_v49, 20.0  ;;  %5929 = vmatpush1.msra.mxu1 %v5782_v27  ;;  %vm4945_vm11 = vcmp.gt.f32.partialorder %v14104_v53, 20.0  ;;  %v5313_v13 = vsel %vm5312_vm10, %v5310_v18, %v5307_v41 }
 0x6fe   : > { %v5300_v0 = vadd.f32 1.0, %v5299_v47  ;;  %v5302_v24 = vand.u32 2147483647, %v14089_v6  ;;  %v7192_v37 = vpop.eup %7191  ;;  %v5777_v33 = vsel %vm4945_vm11, %v14104_v53, %v5313_v13  ;;  %v5318_v14 = vadd.f32 1.0, %v5317_v8  ;;  %v14114_v47 = vld [vmem:[#allocation75_spill] sm:$0xff] }
 0x6ff   : > { %7201 = vlog2.f32 %v5260_v34  ;;  %v5278_v46 = vadd.f32 1.0, %v14105_v62  ;;  %5859 = vmatprep.subr.mxu0 %v5777_v33  ;;  %vm4947_vm3 = vcmp.gt.f32.partialorder %v14106_v48, 20.0  ;;  %v5325_v44 = vmul.f32 0.6931472, %v7192_v37 }
 0x700   : > { %v5328_v57 = vmul.f32 %v14086_v50, %v5327_v40  ;;  %v5272_v15 = vmul.f32 -0.5, %v14099_v61  ;;  %v7194_v28 = vpop.eup %7193  ;;  %vm5330_vm5 = vcmp.lt.f32.partialorder %v5329_v54, 0.0004427343  ;;  %v5320_v4 = vand.u32 2147483647, %v14093_v21  ;;  %v14116_v40 = vld [vmem:[#allocation58_spill] sm:$0xff] }
 0x701   : > { %7203 = vlog2.f32 %v5278_v46  ;;  %v5233_v45 = vadd.f32 1.0, %v14107_v11  ;;  %v5298_v55 = vmul.f32 0.6931472, %v7194_v28  ;;  %v5301_v19 = vmul.f32 %v14089_v6, %v5300_v0  ;;  %v14119_v46 = vld [vmem:[#allocation96_spill] sm:$0xff]  ;;  %v14120_v28 = vld [vmem:[#allocation61_spill] sm:$0xff] }
 0x702   : > { %v5331_v42 = vsel %vm5330_vm5, %v5328_v57, %v5325_v44  ;;  %v5290_v29 = vmul.f32 -0.5, %v14100_v58  ;;  %v7196_v20 = vpop.eup %7195  ;;  %vm5303_vm4 = vcmp.lt.f32.partialorder %v5302_v24, 0.0004427343  ;;  %v5319_v50 = vmul.f32 %v14093_v21, %v5318_v14 }
 0x703   : > { %v5779_v59 = vsel %vm4947_vm3, %v14106_v48, %v5331_v42  ;;  %7205 = vlog2.f32 %v5233_v45  ;;  %v5304_v32 = vsel %vm5303_vm4, %v5301_v19, %v5298_v55  ;;  %v5316_v25 = vmul.f32 0.6931472, %v7196_v20 }
 0x704   : > { %5930 = vmatprep.subr.mxu1 %v5779_v59  ;;  %v5273_v51 = vadd.f32 1.0, %v5272_v15  ;;  %v5275_v35 = vand.u32 2147483647, %v14099_v61  ;;  %v5776_v60 = vsel %vm4944_vm9, %v14101_v63, %v5304_v32  ;;  %vm5321_vm6 = vcmp.lt.f32.partialorder %v5320_v4, 0.0004427343 }
 0x705   : > { %v5263_v6 = vmul.f32 -0.5, %v14102_v1  ;;  %v5251_v26 = vadd.f32 1.0, %v14108_v7  ;;  %5860 = vmatpush1.msra.mxu0 %v5776_v60  ;;  %v5322_v38 = vsel %vm5321_vm6, %v5319_v50, %v5316_v25  ;;  %vm4941_vm7 = vcmp.gt.f32.partialorder %v14109_v43, 20.0  ;;  %v14121_v50 = vld [vmem:[#allocation32_spill] sm:$0xff] }
 0x706   : > { %v5291_v21 = vadd.f32 1.0, %v5290_v29  ;;  %v5281_v16 = vmul.f32 -0.5, %v14105_v62  ;;  %vm4940_vm8 = vcmp.gt.f32.partialorder %v14110_v12, 20.0  ;;  %v5778_v39 = vsel %vm4946_vm2, %v14103_v49, %v5322_v38 }
 0x707   : > { %v5293_v23 = vand.u32 2147483647, %v14100_v58  ;;  %7207 = vlog2.f32 %v5251_v26  ;;  %v5224_v52 = vadd.f32 1.0, %v14111_v5  ;;  %v7198_v10 = vpop.eup %7197  ;;  %5931 = vmatpush1.msra.mxu1 %v5778_v39  ;;  %v5274_v9 = vmul.f32 %v14099_v61, %v5273_v51  ;;  %v14123_v26 = vld [vmem:[#allocation80_spill] sm:$0xff] }
 0x708   : > { %vm12304_vm12 = vcmp.lt.f32.partialorder %v5275_v35, 0.0004427343  ;;  %v5266_v30 = vand.u32 2147483647, %v14102_v1  ;;  %v5236_v3 = vmul.f32 -0.5, %v14107_v11  ;;  %vm4942_vm13 = vcmp.gt.f32.partialorder %v14114_v47, 20.0 }
 0x709   : > { %v7200_v56 = vpop.eup %7199  ;;  %v5271_v17 = vmul.f32 0.6931472, %v7198_v10  ;;  %v5264_v31 = vadd.f32 1.0, %v5263_v6  ;;  %7209 = vlog2.f32 %v5224_v52  ;;  %v5242_v18 = vadd.f32 1.0, %v14115_v36 }
 0x70a   : > { %v5289_v8 = vmul.f32 0.6931472, %v7200_v56  ;;  %v5292_v63 = vmul.f32 %v14100_v58, %v5291_v21  ;;  %v5282_v61 = vadd.f32 1.0, %v5281_v16  ;;  %v5284_v2 = vand.u32 2147483647, %v14105_v62 }
 0x70b   : > { %v5277_v41 = vsel %vm12304_vm12, %v5274_v9, %v5271_v17  ;;  %vm4943_vm14 = vcmp.gt.f32.partialorder %v14116_v40, 20.0  ;;  %vm5294_vm15 = vcmp.lt.f32.partialorder %v5293_v23, 0.0004427343  ;;  %7211 = vlog2.f32 %v5242_v18 }
 0x70c   : > { %v7202_v27 = vpop.eup %7201  ;;  %v5773_v54 = vsel %vm4941_vm7, %v14109_v43, %v5277_v41  ;;  %v5295_v34 = vsel %vm5294_vm15, %v5292_v63, %v5289_v8  ;;  %v5237_v49 = vadd.f32 1.0, %v5236_v3  ;;  %v5254_v53 = vmul.f32 -0.5, %v14108_v7  ;;  %v14124_v43 = vld [vmem:[#allocation101_spill] sm:$0xff] }
 0x70d   : > { %5861 = vmatprep.subr.mxu0 %v5773_v54  ;;  %v5775_v58 = vsel %vm4943_vm14, %v14116_v40, %v5295_v34  ;;  %v5262_v13 = vmul.f32 0.6931472, %v7202_v27  ;;  %v5265_v0 = vmul.f32 %v14102_v1, %v5264_v31  ;;  %vm5267_vm0 = vcmp.lt.f32.partialorder %v5266_v30, 0.0004427343 }
 0x70e   : > { %v7204_v24 = vpop.eup %7203  ;;  %5932 = vmatprep.subr.mxu1 %v5775_v58  ;;  %v5283_v37 = vmul.f32 %v14105_v62, %v5282_v61  ;;  %vm12324_vm1 = vcmp.lt.f32.partialorder %v5284_v2, 0.0004427343  ;;  %v5239_v14 = vand.u32 2147483647, %v14107_v11  ;;  %v5197_v48 = vadd.f32 1.0, %v14119_v46 }
 0x70f   : > { %v5268_v44 = vsel %vm5267_vm0, %v5265_v0, %v5262_v13  ;;  %v5280_v57 = vmul.f32 0.6931472, %v7204_v24  ;;  %v5227_v15 = vmul.f32 -0.5, %v14111_v5  ;;  %v5215_v4 = vadd.f32 1.0, %v14120_v28 }
 0x710   : > { %v7206_v1 = vpop.eup %7205  ;;  %v5772_v45 = vsel %vm4940_vm8, %v14110_v12, %v5268_v44  ;;  %v5238_v62 = vmul.f32 %v14107_v11, %v5237_v49  ;;  %v5255_v42 = vadd.f32 1.0, %v5254_v53  ;;  %7213 = vlog2.f32 %v5197_v48  ;;  %v14122_v11 = vld [vmem:[#allocation86_spill] sm:$0xff] }
 0x711   : > { %5862 = vmatpush1.msra.mxu0 %v5772_v45  ;;  %v5286_v55 = vsel %vm12324_vm1, %v5283_v37, %v5280_v57  ;;  %v5235_v19 = vmul.f32 0.6931472, %v7206_v1  ;;  %v5245_v29 = vmul.f32 -0.5, %v14115_v36  ;;  %7215 = vlog2.f32 %v5215_v4  ;;  %v14127_v37 = vld [vmem:[#allocation106_spill] sm:$0xff]  ;;  %v14128_v57 = vld [vmem:[#allocation105_spill] sm:$0xff] }
 0x712   : > { %v5774_v20 = vsel %vm4942_vm13, %v14114_v47, %v5286_v55  ;;  %vm5240_vm9 = vcmp.lt.f32.partialorder %v5239_v14, 0.0004427343  ;;  %v5257_v59 = vand.u32 2147483647, %v14108_v7  ;;  %v5188_v32 = vadd.f32 1.0, %v14121_v50  ;;  %v14125_v47 = vld [vmem:[#allocation102_spill] sm:$0xff] }
 0x713   : > { %5933 = vmatpush1.msra.mxu1 %v5774_v20  ;;  %vm4937_vm10 = vcmp.gt.f32.partialorder %v14122_v11, 20.0  ;;  %v5241_v25 = vsel %vm5240_vm9, %v5238_v62, %v5235_v19  ;;  %v5228_v51 = vadd.f32 1.0, %v5227_v15  ;;  %v5230_v6 = vand.u32 2147483647, %v14111_v5  ;;  %v14129_v62 = vld [vmem:[#allocation103_spill] sm:$0xff] }
 0x714   : > { %v7208_v35 = vpop.eup %7207  ;;  %v5769_v60 = vsel %vm4937_vm10, %v14122_v11, %v5241_v25  ;;  %7217 = vlog2.f32 %v5188_v32  ;;  %v5206_v38 = vadd.f32 1.0, %v14123_v26  ;;  %vm4939_vm2 = vcmp.gt.f32.partialorder %v14124_v43, 20.0  ;;  %v5833_v11 = vpop.permute.xlu0 %5832 }
 0x715   : > { %5863 = vmatprep.subr.mxu0 %v5769_v60  ;;  %v5253_v21 = vmul.f32 0.6931472, %v7208_v35  ;;  %v5256_v16 = vmul.f32 %v14108_v7, %v5255_v42  ;;  %v5246_v12 = vadd.f32 1.0, %v5245_v29  ;;  %vm5258_vm11 = vcmp.lt.f32.partialorder %v5257_v59, 0.0004427343  ;;  %v14130_v59 = vld [vmem:[#allocation100_spill] sm:$0xff] }
 0x716   : > { %v7210_v39 = vpop.eup %7209  ;;  %v5248_v23 = vand.u32 2147483647, %v14115_v36  ;;  %v5200_v52 = vmul.f32 -0.5, %v14119_v46  ;;  %7219 = vlog2.f32 %v5206_v38  ;;  %v5229_v22 = vmul.f32 %v14111_v5, %v5228_v51  ;;  %v14126_v5 = vld [vmem:[#allocation78_spill] sm:$0xff] }
 0x717   : > { %v5259_v10 = vsel %vm5258_vm11, %v5256_v16, %v5253_v21  ;;  %v5226_v9 = vmul.f32 0.6931472, %v7210_v39  ;;  %v5218_v30 = vmul.f32 -0.5, %v14120_v28  ;;  %vm5231_vm3 = vcmp.lt.f32.partialorder %v5230_v6, 0.0004427343 }
 0x718   : > { %v7212_v3 = vpop.eup %7211  ;;  %v5771_v56 = vsel %vm4939_vm2, %v14124_v43, %v5259_v10  ;;  %vm4936_vm5 = vcmp.gt.f32.partialorder %v14125_v47, 20.0  ;;  %v5247_v31 = vmul.f32 %v14115_v36, %v5246_v12  ;;  %vm5249_vm4 = vcmp.lt.f32.partialorder %v5248_v23, 0.0004427343  ;;  %v5828_v29 = vld [vmem:[%s12403_s9] sm:$0xf] }
 0x719   : > { %5934 = vmatprep.subr.mxu1 %v5771_v56  ;;  %v5232_v7 = vsel %vm5231_vm3, %v5229_v22, %v5226_v9  ;;  %v5244_v17 = vmul.f32 0.6931472, %v7212_v3  ;;  %v5201_v8 = vadd.f32 1.0, %v5200_v52  ;;  %v5191_v63 = vmul.f32 -0.5, %v14121_v50 }
 0x71a   : > { %v5768_v18 = vsel %vm4936_vm5, %v14125_v47, %v5232_v7  ;;  %vm4938_vm6 = vcmp.gt.f32.partialorder %v14126_v5, 20.0  ;;  %v5203_v2 = vand.u32 2147483647, %v14119_v46  ;;  %v5219_v41 = vadd.f32 1.0, %v5218_v30 }
 0x71b   : > { %5864 = vmatpush1.msra.mxu0 %v5768_v18  ;;  %v5250_v61 = vsel %vm5249_vm4, %v5247_v31, %v5244_v17  ;;  %v5221_v27 = vand.u32 2147483647, %v14120_v28  ;;  %v5209_v54 = vmul.f32 -0.5, %v14123_v26  ;;  %v5202_v53 = vmul.f32 %v14119_v46, %v5201_v8 }
 0x71c   : > { %v5770_v40 = vsel %vm4938_vm6, %v14126_v5, %v5250_v61  ;;  %v5192_v58 = vadd.f32 1.0, %v5191_v63  ;;  %vm5204_vm7 = vcmp.lt.f32.partialorder %v5203_v2, 0.0004427343  ;;  %v5220_v0 = vmul.f32 %v14120_v28, %v5219_v41 }
 0x71d   : > { %v7214_v36 = vpop.eup %7213  ;;  %5935 = vmatpush1.msra.mxu1 %v5770_v40  ;;  %v5194_v24 = vand.u32 2147483647, %v14121_v50  ;;  %vm4933_vm8 = vcmp.gt.f32.partialorder %v14127_v37, 20.0  ;;  %vm5222_vm12 = vcmp.lt.f32.partialorder %v5221_v27, 0.0004427343  ;;  %v5210_v14 = vadd.f32 1.0, %v5209_v54 }
 0x71e   : > { %v7216_v34 = vpop.eup %7215  ;;  %v5199_v49 = vmul.f32 0.6931472, %v7214_v36  ;;  %vm4935_vm13 = vcmp.gt.f32.partialorder %v14128_v57, 20.0  ;;  %v5212_v46 = vand.u32 2147483647, %v14123_v26  ;;  %v5193_v28 = vmul.f32 %v14121_v50, %v5192_v58 }
 0x71f   : > { %v5217_v13 = vmul.f32 0.6931472, %v7216_v34  ;;  %vm5195_vm14 = vcmp.lt.f32.partialorder %v5194_v24, 0.0004427343  ;;  %vm4932_vm15 = vcmp.gt.f32.partialorder %v14129_v62, 20.0  ;;  %v5211_v19 = vmul.f32 %v14123_v26, %v5210_v14 }
 0x720   : > { %v5205_v33 = vsel %vm5204_vm7, %v5202_v53, %v5199_v49  ;;  %vm5213_vm0 = vcmp.lt.f32.partialorder %v5212_v46, 0.0004427343  ;;  %vm4934_vm1 = vcmp.gt.f32.partialorder %v14130_v59, 20.0  ;;  %v5977_v47 = vlaneseq }
 0x721   : > { %v7218_v48 = vpop.eup %7217  ;;  %v5765_v44 = vsel %vm4933_vm8, %v14127_v37, %v5205_v33  ;;  %v5223_v15 = vsel %vm5222_vm12, %v5220_v0, %v5217_v13 }
 0x722   : > { %5865 = vmatprep.subr.mxu0 %v5765_v44  ;;  %v5767_v4 = vsel %vm4935_vm13, %v14128_v57, %v5223_v15  ;;  %v5190_v1 = vmul.f32 0.6931472, %v7218_v48  ;;  %v5978_v17 = vshrl.u32 %v5977_v47, 7 }
 0x723   : > { %v7220_v45 = vpop.eup %7219  ;;  %5936 = vmatprep.subr.mxu1 %v5767_v4 }
 0x724   : > { %v5196_v42 = vsel %vm5195_vm14, %v5193_v28, %v5190_v1  ;;  %v5208_v55 = vmul.f32 0.6931472, %v7220_v45  ;;  %vm6011_vm9 = vcmp.eq.s32.totalorder %v5978_v17, 0 }
 0x725   : > { %v5764_v20 = vsel %vm4932_vm15, %v14129_v62, %v5196_v42 }
 0x726   : > { %5866 = vmatpush1.msra.mxu0 %v5764_v20  ;;  %v5214_v50 = vsel %vm5213_vm0, %v5211_v19, %v5208_v55 }
 0x727   : > { %v5766_v32 = vsel %vm4934_vm1, %v14130_v59, %v5214_v50  ;;  %5900 = vmatmul.mubr.f32.vlgmr.msra.gmra.mxu0 %v5828_v29 }
 0x728   : > { %5937 = vmatpush1.msra.mxu1 %v5766_v32 }
 0x729   : > { %5971 = vmatmul.mubr.f32.vlgmr.msra.gmra.mxu1 %v5828_v29 }
 0x7e7   : > { %v5901_v25 = vpop.f32.mrf.mxu0 }
 0x7e8   : > { %v5902_v51 = vadd.f32 %v5901_v25, %v5833_v11 }
 0x7e9   : > { %v5972_v35 = vpop.f32.mrf.mxu1  ;;  %v5903_v60 = vpop.f32.mrf.mxu0 }
 0x7ea   : > { %v6157_v6 = vmul.f32 -1.442695, %v5902_v51  ;;  %v5973_v26 = vadd.f32 %v5972_v35, %v5833_v11  ;;  %v5904_v38 = vadd.f32 %v5903_v60, %v5833_v11 }
 0x7eb   : > { %v5974_v43 = vpop.f32.mrf.mxu1 }
 0x7ec   : > { %7221 = vpow2.f32 %v6157_v6  ;;  %v6159_v21 = vmul.f32 -1.442695, %v5973_v26  ;;  %v6158_v16 = vmul.f32 -1.442695, %v5904_v38  ;;  %v5975_v12 = vadd.f32 %v5974_v43, %v5833_v11 }
 0x7ee   : > { %7223 = vpow2.f32 %v6159_v21  ;;  %v6160_v39 = vmul.f32 -1.442695, %v5975_v12 }
 0x7ef   : > { %7225 = vpow2.f32 %v6158_v16 }
 0x7f0   : > { %7227 = vpow2.f32 %v6160_v39 }
 0x7f9   : > { %v7222_v23 = vpop.eup %7221 }
 0x7fa   : > { %v5991_v52 = vadd.f32 1.0, %v7222_v23 }
 0x7fb   : > { %v7224_v10 = vpop.eup %7223 }
 0x7fc   : > { %v7226_v9 = vpop.eup %7225  ;;  %7229 = vrcp.f32 %v5991_v52  ;;  %v5993_v22 = vadd.f32 1.0, %v7224_v10 }
 0x7fd   : > { %v7228_v30 = vpop.eup %7227  ;;  %v5992_v3 = vadd.f32 1.0, %v7226_v9 }
 0x7fe   : > { %7231 = vrcp.f32 %v5993_v22  ;;  %v5994_v56 = vadd.f32 1.0, %v7228_v30 }
 0x7ff   : > { %7233 = vrcp.f32 %v5992_v3 }
 0x800   : > { %7235 = vrcp.f32 %v5994_v56 }
 0x809   : > { %v7230_v7 = vpop.eup %7229 }
 0x80a   : > { %v6003_v31 = vmul.f32 1.002, %v7230_v7 }
 0x80b   : > { %v7232_v18 = vpop.eup %7231 }
 0x80c   : > { %v7234_v8 = vpop.eup %7233  ;;  %v6005_v63 = vmul.f32 1.002, %v7232_v18  ;;  %v6161_v61 = vadd.f32 -0.001, %v6003_v31 }
 0x80d   : > { %v7236_v5 = vpop.eup %7235  ;;  %v6004_v2 = vmul.f32 1.002, %v7234_v8 }
 0x80e   : > { %v6163_v41 = vadd.f32 -0.001, %v6005_v63  ;;  %v6006_v40 = vmul.f32 1.002, %v7236_v5  ;;  %v6012_v36 = vsel %vm6011_vm9, %v5902_v51, %v6161_v61 }
 0x80f   : > { %v6162_v27 = vadd.f32 -0.001, %v6004_v2 }
 0x810   : > { %v6164_v54 = vadd.f32 -0.001, %v6006_v40  ;;  %v6014_v49 = vsel %vm6011_vm9, %v5973_v26, %v6163_v41 }
 0x811   : > { %v6013_v34 = vsel %vm6011_vm9, %v5904_v38, %v6162_v27 }
 0x812   : > { %v6020_v53 = vcombine.low %v6012_v36, %v6013_v34  ;;  %v6015_v58 = vsel %vm6011_vm9, %v5975_v12, %v6164_v54 }
 0x813   : > { %v6021_v13 = vcombine.low %v6014_v49, %v6015_v58 }
 0x814   : > { %6024 = vst [vmem:[%s424_s14] sm:$0xff] %v6020_v53 }
 0x815   : > { %6025 = vst [vmem:[%s424_s14 + $0x8] sm:$0xff] %v6021_v13 }
 0x816 PF: > { %s21_s19 = sadd.s32 1, %s7259_s19   ;;  %s14131_s17 = smov %s7255_s18 }
 0x817   : > { %p18_p5 = scmp.ge.s32.totalorder %s21_s19, 4   ;;  %s14132_s18 = smov %s14134_s20 }
 0x819   :  { %20 = sbr.rel (!%p18_p5) target bundleno = 2 (0x2), region = 94 }

</bundles_post_ra>
